<compile_context>
chip_gen: v7x
topology: tpu7x:2x2x1
jax: 0.10.0
libtpu: 0.0.40
codegen_flags: <defaults>
</compile_context>

<pallas_src>
import jax
import jax.numpy as jnp
from jax.experimental import pallas as pl
from jax.experimental.pallas import tpu as pltpu

_LANE = 128
_MAX_SUBLANES = 8


# ---------------------------------------------------------------------------
# Kernels
# ---------------------------------------------------------------------------


def _hp_abs_sum_lanepacked_kernel(x_ref, r_ref, out_ref):
    """Lane-packed planes.  Block (H, W, S, 128); out block (S, 128).

    Sublane and lane vreg dims are both plane-parallel, so every 3x3 tap is a
    leading-axis slice and the H/W reduction is a leading-axis VPU add.
    """
    d = x_ref[...].astype(jnp.float32) - r_ref[...].astype(jnp.float32)
    H, W, S, L = d.shape

    # Separable 3x3 box sum with zero boundary conditions (leading-axis ops).
    if W > 1:
        zw = jnp.zeros((H, 1, S, L), jnp.float32)
        rs = (jnp.concatenate([zw, d[:, :W - 1]], axis=1) + d
              + jnp.concatenate([d[:, 1:], zw], axis=1))
    else:
        rs = d
    if H > 1:
        zh = jnp.zeros((1, W, S, L), jnp.float32)
        box = (jnp.concatenate([zh, rs[:H - 1]], axis=0) + rs
               + jnp.concatenate([rs[1:], zh], axis=0))
    else:
        box = rs

    # High-pass: 8*center - 8 neighbours == 9*center - box3x3.
    a = jnp.abs(9.0 * d - box)
    out_ref[...] = jnp.sum(a, axis=(0, 1))          # (S, 128) lane-dense partial


def _hp_abs_sum_native_kernel(x_ref, r_ref, out_ref):
    """Native NCHW planes.  Block (P, H, W): H on sublanes, W on lanes."""
    d = x_ref[...].astype(jnp.float32) - r_ref[...].astype(jnp.float32)
    P, H, W = d.shape

    zw = jnp.zeros((P, H, 1), jnp.float32)
    rs = (jnp.concatenate([zw, d[:, :, :W - 1]], axis=2) + d
          + jnp.concatenate([d[:, :, 1:], zw], axis=2))
    zh = jnp.zeros((P, 1, W), jnp.float32)
    box = (jnp.concatenate([zh, rs[:, :H - 1, :]], axis=1) + rs
           + jnp.concatenate([rs[:, 1:, :], zh], axis=1))

    a = jnp.abs(9.0 * d - box)
    asum = jnp.sum(a, axis=0)                       # plane-axis VPU reduce -> (H, W)
    # Fold H down to 8 sublanes with aligned slices: VPU adds only, and the
    # output store is a full-vreg, lane-dense (8, W) block (no XLU reduce,
    # no masked 1-sublane store).
    acc = asum[0:8, :]
    for k in range(1, H // 8):
        acc = acc + asum[8 * k:8 * (k + 1), :]
    out_ref[...] = acc


# ---------------------------------------------------------------------------
# Wrapper
# ---------------------------------------------------------------------------


def _vmem_budget():
    """Generation-aware VMEM working-set budget and scoped-VMEM limit."""
    cap = 64 * 1024 * 1024                          # conservative (v7x per-core)
    try:
        cap = int(pltpu.get_tpu_info().vmem_capacity_bytes)
    except Exception:
        pass
    budget = min(int(cap * 0.40), 48 * 1024 * 1024)  # double-buffered working set
    limit = min(int(cap * 0.75), 100 * 1024 * 1024)  # compiler scoped-VMEM limit
    return budget, limit


def _mean_abs_hp_diff(x, reference):
    """mean(|HP(x) - HP(reference)|) == mean(|HP(x - reference)|)."""
    assert x.shape == reference.shape and x.ndim == 4
    N, C, H, W = x.shape
    BC = N * C
    itemsize = jnp.dtype(x.dtype).itemsize
    budget, vmem_limit = _vmem_budget()

    # Rough per-element working set: 2 inputs x 2 pipeline buffers (input
    # dtype) + ~8 live f32 temporaries (d, rs, box, shifted copies, |hp|).
    bytes_per_elem = 4 * itemsize + 32
    plane_bytes = H * W * bytes_per_elem            # one (H, W) plane
    group_bytes = plane_bytes * _LANE               # one 128-plane lane group

    cparams = pltpu.CompilerParams(
        # Stateless grid steps -> independent; lets megacore shard them.
        # TODO(synk): try pltpu.CORE_PARALLEL on v7x if profiling shows a
        # single TensorCore executing the whole grid.
        dimension_semantics=("parallel",),
        vmem_limit_bytes=vmem_limit)

    if H % 8 == 0 and W % _LANE == 0 and plane_bytes <= budget:
        # --- Native-layout path: no transpose/pad HBM pass; per-plane blocks,
        # so arbitrarily many planes / large aligned images stay VMEM-safe.
        xn = x.reshape(BC, H, W)
        rn = reference.reshape(BC, H, W)
        max_planes = max(1, min(BC, budget // plane_bytes))
        tbp = 1
        for t in range(max_planes, 0, -1):          # largest divisor of BC that fits
            if BC % t == 0:
                tbp = t
                break
        g = BC // tbp

        partials = pl.pallas_call(
            _hp_abs_sum_native_kernel,
            out_shape=jax.ShapeDtypeStruct((g, 8, W), jnp.float32),
            grid=(g,),
            in_specs=[
                pl.BlockSpec((tbp, H, W), lambda i: (i, 0, 0)),
                pl.BlockSpec((tbp, H, W), lambda i: (i, 0, 0)),
            ],
            out_specs=pl.BlockSpec((None, 8, W), lambda i: (i, 0, 0)),
            compiler_params=cparams,
        )(xn, rn)

    elif group_bytes <= budget:
        # --- Lane-packed path (small / unaligned planes): plane axis packed
        # onto sublanes AND lanes; (H, W) live only in untiled leading dims.
        s = max(1, min(_MAX_SUBLANES, budget // group_bytes, pl.cdiv(BC, _LANE)))
        planes_per_block = s * _LANE
        bc_pad = pl.cdiv(BC, planes_per_block) * planes_per_block
        g = bc_pad // planes_per_block

        def prep(a):
            a3 = jnp.transpose(a.reshape(BC, H, W), (1, 2, 0))
            if bc_pad != BC:                         # padded planes give d == 0
                a3 = jnp.pad(a3, ((0, 0), (0, 0), (0, bc_pad - BC)))
            return a3.reshape(H, W, g, s, _LANE)

        partials = pl.pallas_call(
            _hp_abs_sum_lanepacked_kernel,
            out_shape=jax.ShapeDtypeStruct((g, s, _LANE), jnp.float32),
            grid=(g,),
            in_specs=[
                pl.BlockSpec((H, W, None, s, _LANE), lambda i: (0, 0, i, 0, 0)),
                pl.BlockSpec((H, W, None, s, _LANE), lambda i: (0, 0, i, 0, 0)),
            ],
            out_specs=pl.BlockSpec((None, s, _LANE), lambda i: (i, 0, 0)),
            compiler_params=cparams,
        )(prep(x), prep(reference))

    else:
        # TODO(synk): very large planes that are not (8, 128)-aligned need
        # H row-band tiling with a 1-row halo; not implemented.
        raise NotImplementedError(
            "EdgeLoss pallas kernel: plane too large for VMEM and not "
            "(8, 128)-aligned")

    return jnp.sum(partials) / jnp.float32(N * C * H * W)


def edge_loss(x, reference, statistical=False):
    """Pallas implementation of EdgeLoss.forward."""
    if statistical:
        # |mean|HP(x)| - mean|HP(ref)||.  Reuses the same kernels with a zero
        # reference (HP is linear, so HP(x) - HP(0) == HP(x)).
        zeros = jnp.zeros_like(x)
        mean_x = _mean_abs_hp_diff(x, zeros)
        mean_r = _mean_abs_hp_diff(reference, zeros)
        return jnp.abs(mean_x - mean_r)
    return _mean_abs_hp_diff(x, reference)


# ---------------------------------------------------------------------------
# Pure-JAX reference (depthwise conv) for correctness checking
# ---------------------------------------------------------------------------


def _hp_conv_reference(a):
    n, c, h, w = a.shape
    filt = jnp.array([[-1.0, -1.0, -1.0],
                      [-1.0, 8.0, -1.0],
                      [-1.0, -1.0, -1.0]], dtype=jnp.float32)
    wts = jnp.tile(filt[None, None], (c, 1, 1, 1))  # (C, 1, 3, 3)
    return jax.lax.conv_general_dilated(
        a.astype(jnp.float32), wts, window_strides=(1, 1),
        padding=((1, 1), (1, 1)),
        dimension_numbers=("NCHW", "OIHW", "NCHW"),
        feature_group_count=c)


def _reference_edge_loss(x, r, statistical=False):
    hx = _hp_conv_reference(x)
    hr = _hp_conv_reference(r)
    if statistical:
        return jnp.abs(jnp.abs(hx).mean() - jnp.abs(hr).mean())
    return jnp.mean(jnp.abs(hx - hr))


if __name__ == "__main__":
    key = jax.random.PRNGKey(0)
    k1, k2, k3, k4 = jax.random.split(key, 4)

    # Small, non-128-aligned planes -> lane-packed path.
    x1 = jax.random.normal(k1, (2, 4, 16, 16), dtype=jnp.float32)
    r1 = jax.random.normal(k2, (2, 4, 16, 16), dtype=jnp.float32)
    got1 = jax.block_until_ready(edge_loss(x1, r1))
    want1 = jax.block_until_ready(_reference_edge_loss(x1, r1))
    assert jnp.allclose(got1, want1, rtol=1e-4, atol=1e-5), (got1, want1)

    # Lane-aligned planes -> native (no-transpose) path.
    x2 = jax.random.normal(k3, (1, 2, 8, 128), dtype=jnp.float32)
    r2 = jax.random.normal(k4, (1, 2, 8, 128), dtype=jnp.float32)
    got2 = jax.block_until_ready(edge_loss(x2, r2))
    want2 = jax.block_until_ready(_reference_edge_loss(x2, r2))
    assert jnp.allclose(got2, want2, rtol=1e-4, atol=1e-5), (got2, want2)

    # statistical=True branch (same kernels, two single-input passes).
    got3 = jax.block_until_ready(edge_loss(x1, r1, statistical=True))
    want3 = jax.block_until_ready(
        _reference_edge_loss(x1, r1, statistical=True))
    assert jnp.allclose(got3, want3, rtol=1e-3, atol=1e-4), (got3, want3)

    print("KERNEL_OK")
</pallas_src>

<mosaic_0001>
module attributes {stable_mosaic.version = 11 : i64} {
  func.func @_hp_abs_sum_lanepacked_kernel(%arg0: i32, %arg1: memref<16x16x1x1x128xf32, #tpu.memory_space<vmem>>, %arg2: memref<16x16x1x1x128xf32, #tpu.memory_space<vmem>>, %arg3: memref<1x1x128xf32, #tpu.memory_space<vmem>>) attributes {dimension_semantics = [#tpu.dimension_semantics<parallel>], iteration_bounds = array<i64: 1>, scalar_prefetch = 0 : i64, scratch_operands = 0 : i64, tpu.core_type = #tpu.core_type<tc>, window_params = [{transform_indices = @transform_0, window_bounds = array<i64: 16, 16, 1, 1, 128>}, {transform_indices = @transform_1, window_bounds = array<i64: 16, 16, 1, 1, 128>}, {transform_indices = @transform_2, window_bounds = array<i64: 1, 1, 128>}]} {
    %c0 = arith.constant 0 : index
    %c0_0 = arith.constant 0 : index
    %c0_1 = arith.constant 0 : index
    %c0_2 = arith.constant 0 : index
    %c0_3 = arith.constant 0 : index
    %0 = vector.load %arg1[%c0, %c0_0, %c0_1, %c0_2, %c0_3] : memref<16x16x1x1x128xf32, #tpu.memory_space<vmem>>, vector<16x16x1x1x128xf32>
    %1 = vector.shape_cast %0 : vector<16x16x1x1x128xf32> to vector<16x16x1x128xf32>
    %c0_4 = arith.constant 0 : index
    %c0_5 = arith.constant 0 : index
    %c0_6 = arith.constant 0 : index
    %c0_7 = arith.constant 0 : index
    %c0_8 = arith.constant 0 : index
    %2 = vector.load %arg2[%c0_4, %c0_5, %c0_6, %c0_7, %c0_8] : memref<16x16x1x1x128xf32, #tpu.memory_space<vmem>>, vector<16x16x1x1x128xf32>
    %3 = vector.shape_cast %2 : vector<16x16x1x1x128xf32> to vector<16x16x1x128xf32>
    %4 = arith.subf %1, %3 : vector<16x16x1x128xf32>
    %cst = arith.constant 0.000000e+00 : f32
    %5 = vector.broadcast %cst : f32 to vector<16x1x1x128xf32>
    %6 = vector.extract_strided_slice %4 {offsets = [0, 0, 0, 0], sizes = [16, 15, 1, 128], strides = [1, 1, 1, 1]} : vector<16x16x1x128xf32> to vector<16x15x1x128xf32>
    %7 = tpu.concatenate %5, %6 in 1 : vector<16x1x1x128xf32>, vector<16x15x1x128xf32> -> vector<16x16x1x128xf32>
    %8 = arith.addf %7, %4 : vector<16x16x1x128xf32>
    %9 = vector.extract_strided_slice %4 {offsets = [0, 1, 0, 0], sizes = [16, 15, 1, 128], strides = [1, 1, 1, 1]} : vector<16x16x1x128xf32> to vector<16x15x1x128xf32>
    %10 = tpu.concatenate %9, %5 in 1 : vector<16x15x1x128xf32>, vector<16x1x1x128xf32> -> vector<16x16x1x128xf32>
    %11 = arith.addf %8, %10 : vector<16x16x1x128xf32>
    %cst_9 = arith.constant 0.000000e+00 : f32
    %12 = vector.broadcast %cst_9 : f32 to vector<1x16x1x128xf32>
    %13 = vector.extract_strided_slice %11 {offsets = [0, 0, 0, 0], sizes = [15, 16, 1, 128], strides = [1, 1, 1, 1]} : vector<16x16x1x128xf32> to vector<15x16x1x128xf32>
    %14 = tpu.concatenate %12, %13 in 0 : vector<1x16x1x128xf32>, vector<15x16x1x128xf32> -> vector<16x16x1x128xf32>
    %15 = arith.addf %14, %11 : vector<16x16x1x128xf32>
    %16 = vector.extract_strided_slice %11 {offsets = [1, 0, 0, 0], sizes = [15, 16, 1, 128], strides = [1, 1, 1, 1]} : vector<16x16x1x128xf32> to vector<15x16x1x128xf32>
    %17 = tpu.concatenate %16, %12 in 0 : vector<15x16x1x128xf32>, vector<1x16x1x128xf32> -> vector<16x16x1x128xf32>
    %18 = arith.addf %15, %17 : vector<16x16x1x128xf32>
    %cst_10 = arith.constant 9.000000e+00 : f32
    %19 = vector.broadcast %cst_10 : f32 to vector<16x16x1x128xf32>
    %20 = arith.mulf %19, %4 : vector<16x16x1x128xf32>
    %21 = arith.subf %20, %18 : vector<16x16x1x128xf32>
    %22 = math.absf %21 : vector<16x16x1x128xf32>
    %cst_11 = arith.constant dense<0.000000e+00> : vector<1x128xf32>
    %23 = vector.multi_reduction <add>, %22, %cst_11 [0, 1] : vector<16x16x1x128xf32> to vector<1x128xf32>
    %c0_12 = arith.constant 0 : index
    %c0_13 = arith.constant 0 : index
    %c0_14 = arith.constant 0 : index
    %24 = vector.load %arg3[%c0_12, %c0_13, %c0_14] : memref<1x1x128xf32, #tpu.memory_space<vmem>>, vector<1x1x128xf32>
    %25 = vector.shape_cast %24 : vector<1x1x128xf32> to vector<1x128xf32>
    %26 = vector.shape_cast %23 : vector<1x128xf32> to vector<1x1x128xf32>
    tpu.vector_store %arg3[%c0_12, %c0_13, %c0_14], %26 {strides = array<i32>} : memref<1x1x128xf32, #tpu.memory_space<vmem>>, vector<1x1x128xf32>,
    return
  }
  func.func @transform_0(%arg0: i32) -> (i32, i32, i32, i32, i32) {
    %c0_i32 = arith.constant 0 : i32
    %c0_i32_0 = arith.constant 0 : i32
    %c0_i32_1 = arith.constant 0 : i32
    %c0_i32_2 = arith.constant 0 : i32
    %c0_i32_3 = arith.constant 0 : i32
    return %c0_i32, %c0_i32_0, %arg0, %c0_i32_1, %c0_i32_2 : i32, i32, i32, i32, i32
  }
  func.func @transform_1(%arg0: i32) -> (i32, i32, i32, i32, i32) {
    %c0_i32 = arith.constant 0 : i32
    %c0_i32_0 = arith.constant 0 : i32
    %c0_i32_1 = arith.constant 0 : i32
    %c0_i32_2 = arith.constant 0 : i32
    %c0_i32_3 = arith.constant 0 : i32
    return %c0_i32, %c0_i32_0, %arg0, %c0_i32_1, %c0_i32_2 : i32, i32, i32, i32, i32
  }
  func.func @transform_2(%arg0: i32) -> (i32, i32, i32) {
    %c0_i32 = arith.constant 0 : i32
    %c0_i32_0 = arith.constant 0 : i32
    %c0_i32_1 = arith.constant 0 : i32
    return %arg0, %c0_i32, %c0_i32_0 : i32, i32, i32
  }
}

</mosaic_0001>

<bundles_post_ra>
// kernel: tpu_custom_call.1
= control target key start
LH: loop header
LB: loop body
LE: loop exit
PB: predicated region body
PF: predicated region fallthrough
CT: control target
= control target key end

     0   :  { %7 = vsyncpa [#allocation3], 0  ;;  %s6868_s0 = inlined_call_operand.hbm [shape: f32[16,16,1,1,128], index: 0, kind: input, shape index: {}]   ;;  %s6869_s1 = inlined_call_operand.hbm [shape: f32[16,16,1,1,128], index: 1, kind: input, shape index: {}]   ;;  %s6870_s2 = inlined_call_operand.hbm [shape: f32[1,1,128], index: 2, kind: output, shape index: {}]  }
   0x1   :  { %8 = vsyncpa [#allocation6], 0 }
   0x2   :  { %9 = vsyncpa [#allocation4], 0  ;;  %s3206_s9 = smov [#allocation2]   ;;  %s3134_s13 = scalar_lea.hbm %s6868_s0, 4096 }
   0x3   :  { %s15_s10 = sshll.u32 %s3206_s9, 4  ;;  %p3135_p0 = scmp.ne.s32.totalorder %s6868_s0, %s3134_s13  ;;  %s16_s10 = int_to_ptr.vmem [resolvable:$true] %s15_s10 }
   0x4   :  { %p3138_p1 = scmp.lt.u32.totalorder %s3134_s13, %s6868_s0 }
   0x6   :  { %p3140_p2 = pnand %p3138_p1, %p3135_p0 }
   0x8   :  { %3143 = shalt.err (!%p3140_p2)
}
   0x9   :  { %s3144_s18 = scalar_lea.vmem %s16_s10, 4096  ;;  %p3149_p4 = scmp.lt.s32.totalorder %s16_s10, %s16_s10 }
   0xa   :  { %p3145_p3 = scmp.ne.s32.totalorder %s16_s10, %s3144_s18  ;;  %p3150_p5 = scmp.lt.s32.totalorder %s3144_s18, %s3144_s18 }
   0xc   :  { %p3151_p6 = por %p3150_p5, %p3149_p4 }
   0xe   :  { %p3152_p7 = pnand %p3151_p6, %p3145_p3 }
  0x10   :  { %3155 = shalt.err (!%p3152_p7)
}
  0x11   :  { %s3207_s19 = smov 16   ;;  %s3208_s20 = smov 1  }
  0x12   :  { %21 = dma.hbm_to_vmem [thread:$0]  %s6868_s0, 4096, %s16_s10, [#allocation3], %s3207_s19, %s3207_s19, %s3208_s20  }
  0x13   :  { %s3209_s23 = smov [#allocation5]   ;;  %s3156_s27 = scalar_lea.hbm %s6869_s1, 4096 }
  0x14   :  { %s27_s24 = sshll.u32 %s3209_s23, 4  ;;  %p3157_p8 = scmp.ne.s32.totalorder %s6869_s1, %s3156_s27  ;;  %s28_s24 = int_to_ptr.vmem [resolvable:$true] %s27_s24 }
  0x15   :  { %p3160_p9 = scmp.lt.u32.totalorder %s3156_s27, %s6869_s1 }
  0x17   :  { %p3162_p10 = pnand %p3160_p9, %p3157_p8 }
  0x19   :  { %3165 = shalt.err (!%p3162_p10)
}
  0x1a   :  { %s3166_s4 = scalar_lea.vmem %s28_s24, 4096  ;;  %p3171_p12 = scmp.lt.s32.totalorder %s28_s24, %s28_s24 }
  0x1b   :  { %p3167_p11 = scmp.ne.s32.totalorder %s28_s24, %s3166_s4  ;;  %p3172_p13 = scmp.lt.s32.totalorder %s3166_s4, %s3166_s4 }
  0x1d   :  { %p3173_p0 = por %p3172_p13, %p3171_p12 }
  0x1f   :  { %p3174_p1 = pnand %p3173_p0, %p3167_p11 }
  0x21   :  { %3177 = shalt.err (!%p3174_p1)
}
  0x22   :  { %33 = dma.hbm_to_vmem [thread:$0]  %s6869_s1, 4096, %s28_s24, [#allocation6], %s3207_s19, %s3207_s19, %s3208_s20  }
  0x23   :  { %3200 = dma.done.wait [#allocation3], 4096  }
  0x24   :  { %3201 = vsyncadd [#allocation3], 4294963200 }
  0x25   :  { %3202 = dma.done.wait [#allocation6], 4096  }
  0x26   :  { %3203 = vsyncadd [#allocation6], 4294963200  ;;  %v40_v0 = vld [vmem:[#allocation2] sm:$0x1]  ;;  %v41_v1 = vld [vmem:[#allocation2 + $0x1] sm:$0x1] }
  0x27   :  { %v42_v2 = vld [vmem:[#allocation2 + $0x2] sm:$0x1]  ;;  %v43_v3 = vld [vmem:[#allocation2 + $0x3] sm:$0x1]  ;;  %v296_v4 = vld [vmem:[#allocation5] sm:$0x1] }
  0x28   :  { %v297_v5 = vld [vmem:[#allocation5 + $0x1] sm:$0x1]  ;;  %v44_v6 = vld [vmem:[#allocation2 + $0x4] sm:$0x1]  ;;  %v45_v7 = vld [vmem:[#allocation2 + $0x5] sm:$0x1]  ;;  %v3250_v22 = vsub.f32 %v40_v0, %v296_v4 }
  0x29   :  { %v46_v8 = vld [vmem:[#allocation2 + $0x6] sm:$0x1]  ;;  %v47_v9 = vld [vmem:[#allocation2 + $0x7] sm:$0x1]  ;;  %v298_v10 = vld [vmem:[#allocation5 + $0x2] sm:$0x1]  ;;  %v3252_v23 = vsub.f32 %v41_v1, %v297_v5 }
  0x2a   :  { %v48_v11 = vld [vmem:[#allocation2 + $0x8] sm:$0x1]  ;;  %v49_v12 = vld [vmem:[#allocation2 + $0x9] sm:$0x1]  ;;  %v50_v13 = vld [vmem:[#allocation2 + $0xa] sm:$0x1]  ;;  %v3254_v30 = vsub.f32 %v42_v2, %v298_v10 }
  0x2b   :  { %v299_v14 = vld [vmem:[#allocation5 + $0x3] sm:$0x1]  ;;  %v300_v15 = vld [vmem:[#allocation5 + $0x4] sm:$0x1]  ;;  %v51_v16 = vld [vmem:[#allocation2 + $0xb] sm:$0x1]  ;;  %v3274_v57 = vadd.f32 %v3252_v23, %v3250_v22 }
  0x2c   :  { %v52_v17 = vld [vmem:[#allocation2 + $0xc] sm:$0x1]  ;;  %v53_v18 = vld [vmem:[#allocation2 + $0xd] sm:$0x1]  ;;  %v301_v19 = vld [vmem:[#allocation5 + $0x5] sm:$0x1]  ;;  %v3256_v37 = vsub.f32 %v43_v3, %v299_v14  ;;  %v3258_v44 = vsub.f32 %v44_v6, %v300_v15  ;;  %v3284_v3 = vadd.f32 %v3254_v30, %v3252_v23 }
  0x2d   :  { %v302_v20 = vld [vmem:[#allocation5 + $0x6] sm:$0x1]  ;;  %v303_v21 = vld [vmem:[#allocation5 + $0x7] sm:$0x1]  ;;  %7394 = vst [vmem:[#allocation11_spill] sm:$0xff] %v3250_v22  ;;  %7395 = vst [vmem:[#allocation12_spill] sm:$0xff] %v3252_v23  ;;  %v3260_v45 = vsub.f32 %v45_v7, %v301_v19 }
  0x2e   :  { %v54_v24 = vld [vmem:[#allocation2 + $0xe] sm:$0x1]  ;;  %v55_v25 = vld [vmem:[#allocation2 + $0xf] sm:$0x1]  ;;  %v56_v26 = vld [vmem:[#allocation2 + $0x10] sm:$0x1]  ;;  %v3262_v46 = vsub.f32 %v46_v8, %v302_v20  ;;  %v3264_v47 = vsub.f32 %v47_v9, %v303_v21 }
  0x2f   :  { %v304_v27 = vld [vmem:[#allocation5 + $0x8] sm:$0x1]  ;;  %v305_v28 = vld [vmem:[#allocation5 + $0x9] sm:$0x1]  ;;  %v306_v29 = vld [vmem:[#allocation5 + $0xa] sm:$0x1] }
  0x30   :  { %7396 = vst [vmem:[#allocation13_spill] sm:$0xff] %v3254_v30  ;;  %v57_v31 = vld [vmem:[#allocation2 + $0x11] sm:$0x1]  ;;  %v58_v32 = vld [vmem:[#allocation2 + $0x12] sm:$0x1]  ;;  %7397 = vst [vmem:[#allocation14_spill] sm:$0xff] %v3256_v37  ;;  %v3266_v54 = vsub.f32 %v48_v11, %v304_v27  ;;  %v3268_v55 = vsub.f32 %v49_v12, %v305_v28  ;;  %v3270_v56 = vsub.f32 %v50_v13, %v306_v29 }
  0x31   :  { %v59_v33 = vld [vmem:[#allocation2 + $0x13] sm:$0x1]  ;;  %v307_v34 = vld [vmem:[#allocation5 + $0xb] sm:$0x1]  ;;  %v308_v35 = vld [vmem:[#allocation5 + $0xc] sm:$0x1]  ;;  %v3294_v13 = vadd.f32 %v3256_v37, %v3254_v30 }
  0x32   :  { %v309_v36 = vld [vmem:[#allocation5 + $0xd] sm:$0x1]  ;;  %v60_v38 = vld [vmem:[#allocation2 + $0x14] sm:$0x1]  ;;  %v61_v39 = vld [vmem:[#allocation2 + $0x15] sm:$0x1]  ;;  %v3276_v0 = vsub.f32 %v51_v16, %v307_v34  ;;  %v3278_v1 = vsub.f32 %v52_v17, %v308_v35 }
  0x33   :  { %v62_v40 = vld [vmem:[#allocation2 + $0x16] sm:$0x1]  ;;  %v310_v41 = vld [vmem:[#allocation5 + $0xe] sm:$0x1]  ;;  %v311_v42 = vld [vmem:[#allocation5 + $0xf] sm:$0x1]  ;;  %v3280_v2 = vsub.f32 %v53_v18, %v309_v36 }
  0x34   :  { %v312_v43 = vld [vmem:[#allocation5 + $0x10] sm:$0x1]  ;;  %7398 = vst [vmem:[#allocation15_spill] sm:$0xff] %v3258_v44  ;;  %7399 = vst [vmem:[#allocation16_spill] sm:$0xff] %v3260_v45  ;;  %v63_v48 = vld [vmem:[#allocation2 + $0x17] sm:$0x1]  ;;  %v3286_v10 = vsub.f32 %v54_v24, %v310_v41  ;;  %v3288_v11 = vsub.f32 %v55_v25, %v311_v42  ;;  %v3304_v25 = vadd.f32 %v3258_v44, %v3256_v37 }
  0x35   :  { %7400 = vst [vmem:[#allocation17_spill] sm:$0xff] %v3262_v46  ;;  %7401 = vst [vmem:[#allocation18_spill] sm:$0xff] %v3264_v47  ;;  %v64_v49 = vld [vmem:[#allocation2 + $0x18] sm:$0x1]  ;;  %v65_v50 = vld [vmem:[#allocation2 + $0x19] sm:$0x1]  ;;  %v3290_v12 = vsub.f32 %v56_v26, %v312_v43 }
  0x36   :  { %v313_v51 = vld [vmem:[#allocation5 + $0x11] sm:$0x1]  ;;  %v314_v52 = vld [vmem:[#allocation5 + $0x12] sm:$0x1]  ;;  %v315_v53 = vld [vmem:[#allocation5 + $0x13] sm:$0x1] }
  0x37   :  { %7402 = vst [vmem:[#allocation19_spill] sm:$0xff] %v3266_v54  ;;  %7403 = vst [vmem:[#allocation20_spill] sm:$0xff] %v3268_v55  ;;  %v66_v58 = vld [vmem:[#allocation2 + $0x1a] sm:$0x1]  ;;  %v67_v59 = vld [vmem:[#allocation2 + $0x1b] sm:$0x1]  ;;  %v3296_v20 = vsub.f32 %v57_v31, %v313_v51  ;;  %v3298_v21 = vsub.f32 %v58_v32, %v314_v52  ;;  %v3300_v24 = vsub.f32 %v59_v33, %v315_v53 }
  0x38   :  { %7404 = vst [vmem:[#allocation21_spill] sm:$0xff] %v3270_v56  ;;  %7405 = vst [vmem:[#allocation22_spill] sm:$0xff] %v3274_v57  ;;  %v68_v60 = vld [vmem:[#allocation2 + $0x1c] sm:$0x1]  ;;  %v316_v61 = vld [vmem:[#allocation5 + $0x14] sm:$0x1]  ;;  %v3314_v32 = vadd.f32 %v3260_v45, %v3258_v44 }
  0x39   :  { %v317_v62 = vld [vmem:[#allocation5 + $0x15] sm:$0x1]  ;;  %v318_v63 = vld [vmem:[#allocation5 + $0x16] sm:$0x1]  ;;  %7406 = vst [vmem:[#allocation23_spill] sm:$0xff] %v3276_v0  ;;  %7407 = vst [vmem:[#allocation24_spill] sm:$0xff] %v3278_v1  ;;  %v3306_v36 = vsub.f32 %v60_v38, %v316_v61 }
  0x3a   :  { %7408 = vst [vmem:[#allocation25_spill] sm:$0xff] %v3280_v2  ;;  %7409 = vst [vmem:[#allocation26_spill] sm:$0xff] %v3284_v3  ;;  %v69_v4 = vld [vmem:[#allocation2 + $0x1d] sm:$0x1]  ;;  %v70_v5 = vld [vmem:[#allocation2 + $0x1e] sm:$0x1]  ;;  %v3308_v41 = vsub.f32 %v61_v39, %v317_v62  ;;  %v3310_v31 = vsub.f32 %v62_v40, %v318_v63  ;;  %v3324_v39 = vadd.f32 %v3262_v46, %v3260_v45 }
  0x3b   :  { %v71_v6 = vld [vmem:[#allocation2 + $0x1f] sm:$0x1]  ;;  %v319_v7 = vld [vmem:[#allocation5 + $0x17] sm:$0x1]  ;;  %v320_v8 = vld [vmem:[#allocation5 + $0x18] sm:$0x1] }
  0x3c   :  { %v321_v9 = vld [vmem:[#allocation5 + $0x19] sm:$0x1]  ;;  %7410 = vst [vmem:[#allocation27_spill] sm:$0xff] %v3286_v10  ;;  %7411 = vst [vmem:[#allocation28_spill] sm:$0xff] %v3288_v11  ;;  %v72_v14 = vld [vmem:[#allocation2 + $0x20] sm:$0x1]  ;;  %v3316_v23 = vsub.f32 %v63_v48, %v319_v7  ;;  %v3318_v22 = vsub.f32 %v64_v49, %v320_v8  ;;  %v3334_v49 = vadd.f32 %v3264_v47, %v3262_v46 }
  0x3d   :  { %7412 = vst [vmem:[#allocation29_spill] sm:$0xff] %v3290_v12  ;;  %7413 = vst [vmem:[#allocation30_spill] sm:$0xff] %v3294_v13  ;;  %v73_v15 = vld [vmem:[#allocation2 + $0x21] sm:$0x1]  ;;  %v74_v16 = vld [vmem:[#allocation2 + $0x22] sm:$0x1]  ;;  %v3320_v38 = vsub.f32 %v65_v50, %v321_v9 }
  0x3e   :  { %v322_v17 = vld [vmem:[#allocation5 + $0x1a] sm:$0x1]  ;;  %v323_v18 = vld [vmem:[#allocation5 + $0x1b] sm:$0x1]  ;;  %v324_v19 = vld [vmem:[#allocation5 + $0x1c] sm:$0x1] }
  0x3f   :  { %7414 = vst [vmem:[#allocation31_spill] sm:$0xff] %v3296_v20  ;;  %7415 = vst [vmem:[#allocation32_spill] sm:$0xff] %v3298_v21  ;;  %v75_v26 = vld [vmem:[#allocation2 + $0x23] sm:$0x1]  ;;  %v76_v27 = vld [vmem:[#allocation2 + $0x24] sm:$0x1]  ;;  %v3326_v13 = vsub.f32 %v66_v58, %v322_v17  ;;  %v3328_v44 = vsub.f32 %v67_v59, %v323_v18  ;;  %v3330_v48 = vsub.f32 %v68_v60, %v324_v19 }
  0x40   :  { %7416 = vst [vmem:[#allocation33_spill] sm:$0xff] %v3300_v24  ;;  %7417 = vst [vmem:[#allocation34_spill] sm:$0xff] %v3304_v25  ;;  %v77_v28 = vld [vmem:[#allocation2 + $0x25] sm:$0x1]  ;;  %v325_v29 = vld [vmem:[#allocation5 + $0x1d] sm:$0x1]  ;;  %v3344_v59 = vadd.f32 %v3266_v54, %v3264_v47 }
  0x41   :  { %v326_v34 = vld [vmem:[#allocation5 + $0x1e] sm:$0x1]  ;;  %v327_v35 = vld [vmem:[#allocation5 + $0x1f] sm:$0x1]  ;;  %7418 = vst [vmem:[#allocation35_spill] sm:$0xff] %v3306_v36  ;;  %7419 = vst [vmem:[#allocation36_spill] sm:$0xff] %v3308_v41  ;;  %v3336_v3 = vsub.f32 %v69_v4, %v325_v29 }
  0x42   :  { %7420 = vst [vmem:[#allocation37_spill] sm:$0xff] %v3310_v31  ;;  %7421 = vst [vmem:[#allocation38_spill] sm:$0xff] %v3314_v32  ;;  %v78_v33 = vld [vmem:[#allocation2 + $0x26] sm:$0x1]  ;;  %v79_v42 = vld [vmem:[#allocation2 + $0x27] sm:$0x1]  ;;  %v3338_v37 = vsub.f32 %v70_v5, %v326_v34  ;;  %v3340_v58 = vsub.f32 %v71_v6, %v327_v35  ;;  %v3354_v5 = vadd.f32 %v3268_v55, %v3266_v54 }
  0x43   :  { %v80_v43 = vld [vmem:[#allocation2 + $0x28] sm:$0x1]  ;;  %v328_v51 = vld [vmem:[#allocation5 + $0x20] sm:$0x1]  ;;  %v329_v52 = vld [vmem:[#allocation5 + $0x21] sm:$0x1] }
  0x44   :  { %v330_v53 = vld [vmem:[#allocation5 + $0x22] sm:$0x1]  ;;  %7422 = vst [vmem:[#allocation39_spill] sm:$0xff] %v3316_v23  ;;  %7423 = vst [vmem:[#allocation40_spill] sm:$0xff] %v3318_v22  ;;  %v81_v40 = vld [vmem:[#allocation2 + $0x29] sm:$0x1]  ;;  %v3346_v57 = vsub.f32 %v72_v14, %v328_v51  ;;  %v3348_v30 = vsub.f32 %v73_v15, %v329_v52  ;;  %v3364_v15 = vadd.f32 %v3270_v56, %v3268_v55 }
  0x45   :  { %7424 = vst [vmem:[#allocation41_spill] sm:$0xff] %v3320_v38  ;;  %7425 = vst [vmem:[#allocation42_spill] sm:$0xff] %v3324_v39  ;;  %v82_v61 = vld [vmem:[#allocation2 + $0x2a] sm:$0x1]  ;;  %v83_v62 = vld [vmem:[#allocation2 + $0x2b] sm:$0x1]  ;;  %v3350_v4 = vsub.f32 %v74_v16, %v330_v53 }
  0x46   :  { %v331_v63 = vld [vmem:[#allocation5 + $0x23] sm:$0x1]  ;;  %v332_v32 = vld [vmem:[#allocation5 + $0x24] sm:$0x1]  ;;  %v333_v25 = vld [vmem:[#allocation5 + $0x25] sm:$0x1] }
  0x47   :  { %7426 = vst [vmem:[#allocation43_spill] sm:$0xff] %v3326_v13  ;;  %7427 = vst [vmem:[#allocation44_spill] sm:$0xff] %v3328_v44  ;;  %v84_v50 = vld [vmem:[#allocation2 + $0x2c] sm:$0x1]  ;;  %v85_v7 = vld [vmem:[#allocation2 + $0x2d] sm:$0x1]  ;;  %v3360_v14 = vsub.f32 %v77_v28, %v333_v25  ;;  %v3374_v25 = vadd.f32 %v3276_v0, %v3270_v56 }
  0x48   :  { %7428 = vst [vmem:[#allocation45_spill] sm:$0xff] %v3330_v48  ;;  %7429 = vst [vmem:[#allocation46_spill] sm:$0xff] %v3334_v49  ;;  %v86_v8 = vld [vmem:[#allocation2 + $0x2e] sm:$0x1]  ;;  %v334_v9 = vld [vmem:[#allocation5 + $0x26] sm:$0x1] }
  0x49   :  { %v335_v39 = vld [vmem:[#allocation5 + $0x27] sm:$0x1]  ;;  %v336_v45 = vld [vmem:[#allocation5 + $0x28] sm:$0x1]  ;;  %7430 = vst [vmem:[#allocation47_spill] sm:$0xff] %v3336_v3  ;;  %7431 = vst [vmem:[#allocation48_spill] sm:$0xff] %v3338_v37  ;;  %v3358_v37 = vsub.f32 %v76_v27, %v332_v32 }
  0x4a   :  { %7432 = vst [vmem:[#allocation49_spill] sm:$0xff] %v3340_v58  ;;  %7433 = vst [vmem:[#allocation50_spill] sm:$0xff] %v3344_v59  ;;  %v87_v60 = vld [vmem:[#allocation2 + $0x2f] sm:$0x1]  ;;  %v88_v17 = vld [vmem:[#allocation2 + $0x30] sm:$0x1]  ;;  %v3356_v58 = vsub.f32 %v75_v26, %v331_v63  ;;  %v3370_v26 = vsub.f32 %v80_v43, %v336_v45  ;;  %v3384_v45 = vadd.f32 %v3278_v1, %v3276_v0 }
  0x4b   :  { %v89_v18 = vld [vmem:[#allocation2 + $0x31] sm:$0x1]  ;;  %v337_v19 = vld [vmem:[#allocation5 + $0x29] sm:$0x1]  ;;  %v338_v49 = vld [vmem:[#allocation5 + $0x2a] sm:$0x1] }
  0x4c   :  { %v339_v46 = vld [vmem:[#allocation5 + $0x2b] sm:$0x1]  ;;  %7434 = vst [vmem:[#allocation51_spill] sm:$0xff] %v3346_v57  ;;  %7435 = vst [vmem:[#allocation52_spill] sm:$0xff] %v3348_v30  ;;  %v90_v6 = vld [vmem:[#allocation2 + $0x32] sm:$0x1]  ;;  %v3368_v30 = vsub.f32 %v79_v42, %v335_v39 }
  0x4d   :  { %7436 = vst [vmem:[#allocation53_spill] sm:$0xff] %v3350_v4  ;;  %7437 = vst [vmem:[#allocation54_spill] sm:$0xff] %v3354_v5  ;;  %v91_v29 = vld [vmem:[#allocation2 + $0x33] sm:$0x1]  ;;  %v92_v34 = vld [vmem:[#allocation2 + $0x34] sm:$0x1]  ;;  %v3366_v4 = vsub.f32 %v78_v33, %v334_v9  ;;  %v3380_v33 = vsub.f32 %v83_v62, %v339_v46  ;;  %v3394_v46 = vadd.f32 %v3280_v2, %v3278_v1 }
  0x4e   :  { %v340_v35 = vld [vmem:[#allocation5 + $0x2c] sm:$0x1]  ;;  %v341_v59 = vld [vmem:[#allocation5 + $0x2d] sm:$0x1]  ;;  %v342_v47 = vld [vmem:[#allocation5 + $0x2e] sm:$0x1] }
  0x4f   :  { %7438 = vst [vmem:[#allocation55_spill] sm:$0xff] %v3356_v58  ;;  %7439 = vst [vmem:[#allocation56_spill] sm:$0xff] %v3358_v37  ;;  %v93_v16 = vld [vmem:[#allocation2 + $0x35] sm:$0x1]  ;;  %v94_v51 = vld [vmem:[#allocation2 + $0x36] sm:$0x1]  ;;  %v3378_v37 = vsub.f32 %v82_v61, %v338_v49 }
  0x50   :  { %7440 = vst [vmem:[#allocation57_spill] sm:$0xff] %v3360_v14  ;;  %7441 = vst [vmem:[#allocation58_spill] sm:$0xff] %v3364_v15  ;;  %v95_v52 = vld [vmem:[#allocation2 + $0x37] sm:$0x1]  ;;  %v343_v53 = vld [vmem:[#allocation5 + $0x2f] sm:$0x1]  ;;  %v3376_v14 = vsub.f32 %v81_v40, %v337_v19  ;;  %v3390_v40 = vsub.f32 %v86_v8, %v342_v47  ;;  %v3404_v47 = vadd.f32 %v3286_v10, %v3280_v2 }
  0x51   :  { %v344_v5 = vld [vmem:[#allocation5 + $0x30] sm:$0x1]  ;;  %v345_v54 = vld [vmem:[#allocation5 + $0x31] sm:$0x1]  ;;  %7442 = vst [vmem:[#allocation59_spill] sm:$0xff] %v3366_v4  ;;  %7443 = vst [vmem:[#allocation60_spill] sm:$0xff] %v3368_v30  ;;  %v3388_v30 = vsub.f32 %v85_v7, %v341_v59 }
  0x52   :  { %7444 = vst [vmem:[#allocation61_spill] sm:$0xff] %v3370_v26  ;;  %7445 = vst [vmem:[#allocation62_spill] sm:$0xff] %v3374_v25  ;;  %v96_v27 = vld [vmem:[#allocation2 + $0x38] sm:$0x1]  ;;  %v97_v28 = vld [vmem:[#allocation2 + $0x39] sm:$0x1]  ;;  %v3386_v26 = vsub.f32 %v84_v50, %v340_v35  ;;  %v3400_v50 = vsub.f32 %v89_v18, %v345_v54  ;;  %v3414_v54 = vadd.f32 %v3288_v11, %v3286_v10 }
  0x53   :  { %v98_v32 = vld [vmem:[#allocation2 + $0x3a] sm:$0x1]  ;;  %v346_v63 = vld [vmem:[#allocation5 + $0x32] sm:$0x1]  ;;  %v347_v15 = vld [vmem:[#allocation5 + $0x33] sm:$0x1] }
  0x54   :  { %v348_v55 = vld [vmem:[#allocation5 + $0x34] sm:$0x1]  ;;  %7446 = vst [vmem:[#allocation63_spill] sm:$0xff] %v3376_v14  ;;  %7447 = vst [vmem:[#allocation64_spill] sm:$0xff] %v3378_v37  ;;  %v99_v42 = vld [vmem:[#allocation2 + $0x3b] sm:$0x1]  ;;  %v3398_v37 = vsub.f32 %v88_v17, %v344_v5 }
  0x55   :  { %7448 = vst [vmem:[#allocation65_spill] sm:$0xff] %v3380_v33  ;;  %7449 = vst [vmem:[#allocation66_spill] sm:$0xff] %v3384_v45  ;;  %v100_v43 = vld [vmem:[#allocation2 + $0x3c] sm:$0x1]  ;;  %v101_v39 = vld [vmem:[#allocation2 + $0x3d] sm:$0x1]  ;;  %v3396_v33 = vsub.f32 %v87_v60, %v343_v53  ;;  %v3410_v60 = vsub.f32 %v92_v34, %v348_v55  ;;  %v3424_v55 = vadd.f32 %v3296_v20, %v3290_v12 }
  0x56   :  { %v349_v9 = vld [vmem:[#allocation5 + $0x35] sm:$0x1]  ;;  %v350_v25 = vld [vmem:[#allocation5 + $0x36] sm:$0x1]  ;;  %v351_v56 = vld [vmem:[#allocation5 + $0x37] sm:$0x1] }
  0x57   :  { %7450 = vst [vmem:[#allocation67_spill] sm:$0xff] %v3386_v26  ;;  %7451 = vst [vmem:[#allocation68_spill] sm:$0xff] %v3388_v30  ;;  %v102_v61 = vld [vmem:[#allocation2 + $0x3e] sm:$0x1]  ;;  %v103_v62 = vld [vmem:[#allocation2 + $0x3f] sm:$0x1]  ;;  %v3408_v30 = vsub.f32 %v91_v29, %v347_v15 }
  0x58   :  { %7452 = vst [vmem:[#allocation69_spill] sm:$0xff] %v3390_v40  ;;  %7453 = vst [vmem:[#allocation70_spill] sm:$0xff] %v3394_v46  ;;  %v104_v49 = vld [vmem:[#allocation2 + $0x40] sm:$0x1]  ;;  %v352_v19 = vld [vmem:[#allocation5 + $0x38] sm:$0x1]  ;;  %v3406_v40 = vsub.f32 %v90_v6, %v346_v63  ;;  %v3420_v6 = vsub.f32 %v95_v52, %v351_v56  ;;  %v3434_v56 = vadd.f32 %v3298_v21, %v3296_v20 }
  0x59   :  { %v353_v45 = vld [vmem:[#allocation5 + $0x39] sm:$0x1]  ;;  %v354_v0 = vld [vmem:[#allocation5 + $0x3a] sm:$0x1]  ;;  %7454 = vst [vmem:[#allocation71_spill] sm:$0xff] %v3396_v33  ;;  %7455 = vst [vmem:[#allocation72_spill] sm:$0xff] %v3398_v37  ;;  %v3418_v37 = vsub.f32 %v94_v51, %v350_v25  ;;  %v3426_v10 = vsub.f32 %v96_v27, %v352_v19 }
  0x5a   :  { %7456 = vst [vmem:[#allocation73_spill] sm:$0xff] %v3400_v50  ;;  %7457 = vst [vmem:[#allocation74_spill] sm:$0xff] %v3404_v47  ;;  %v105_v7 = vld [vmem:[#allocation2 + $0x41] sm:$0x1]  ;;  %v106_v8 = vld [vmem:[#allocation2 + $0x42] sm:$0x1]  ;;  %v3416_v50 = vsub.f32 %v93_v16, %v349_v9  ;;  %v3430_v16 = vsub.f32 %v98_v32, %v354_v0  ;;  %v3444_v0 = vadd.f32 %v3300_v24, %v3298_v21 }
  0x5b   :  { %v107_v59 = vld [vmem:[#allocation2 + $0x43] sm:$0x1]  ;;  %v355_v35 = vld [vmem:[#allocation5 + $0x3b] sm:$0x1]  ;;  %v356_v46 = vld [vmem:[#allocation5 + $0x3c] sm:$0x1] }
  0x5c   :  { %v357_v1 = vld [vmem:[#allocation5 + $0x3d] sm:$0x1]  ;;  %7458 = vst [vmem:[#allocation75_spill] sm:$0xff] %v3406_v40  ;;  %7459 = vst [vmem:[#allocation76_spill] sm:$0xff] %v3408_v30  ;;  %v108_v17 = vld [vmem:[#allocation2 + $0x44] sm:$0x1] }
  0x5d   :  { %7460 = vst [vmem:[#allocation77_spill] sm:$0xff] %v3410_v60  ;;  %7461 = vst [vmem:[#allocation78_spill] sm:$0xff] %v3414_v54  ;;  %v109_v18 = vld [vmem:[#allocation2 + $0x45] sm:$0x1]  ;;  %v110_v5 = vld [vmem:[#allocation2 + $0x46] sm:$0x1]  ;;  %v3428_v60 = vsub.f32 %v97_v28, %v353_v45  ;;  %v3440_v27 = vsub.f32 %v101_v39, %v357_v1  ;;  %v3454_v1 = vadd.f32 %v3306_v36, %v3300_v24 }
  0x5e   :  { %v358_v53 = vld [vmem:[#allocation5 + $0x3e] sm:$0x1]  ;;  %v359_v47 = vld [vmem:[#allocation5 + $0x3f] sm:$0x1]  ;;  %v360_v2 = vld [vmem:[#allocation5 + $0x40] sm:$0x1] }
  0x5f   :  { %7462 = vst [vmem:[#allocation79_spill] sm:$0xff] %v3416_v50  ;;  %7463 = vst [vmem:[#allocation80_spill] sm:$0xff] %v3418_v37  ;;  %v111_v29 = vld [vmem:[#allocation2 + $0x47] sm:$0x1]  ;;  %v112_v34 = vld [vmem:[#allocation2 + $0x48] sm:$0x1]  ;;  %v3438_v37 = vsub.f32 %v100_v43, %v356_v46 }
  0x60   :  { %7464 = vst [vmem:[#allocation81_spill] sm:$0xff] %v3420_v6  ;;  %7465 = vst [vmem:[#allocation82_spill] sm:$0xff] %v3424_v55  ;;  %v113_v15 = vld [vmem:[#allocation2 + $0x49] sm:$0x1]  ;;  %v361_v63 = vld [vmem:[#allocation5 + $0x41] sm:$0x1]  ;;  %v3436_v6 = vsub.f32 %v99_v42, %v355_v35  ;;  %v3450_v42 = vsub.f32 %v104_v49, %v360_v2  ;;  %v3464_v2 = vadd.f32 %v3308_v41, %v3306_v36 }
  0x61   :  { %v362_v54 = vld [vmem:[#allocation5 + $0x42] sm:$0x1]  ;;  %v363_v11 = vld [vmem:[#allocation5 + $0x43] sm:$0x1]  ;;  %7466 = vst [vmem:[#allocation83_spill] sm:$0xff] %v3426_v10  ;;  %7467 = vst [vmem:[#allocation84_spill] sm:$0xff] %v3428_v60  ;;  %v3448_v60 = vsub.f32 %v103_v62, %v359_v47 }
  0x62   :  { %7468 = vst [vmem:[#allocation85_spill] sm:$0xff] %v3430_v16  ;;  %7469 = vst [vmem:[#allocation86_spill] sm:$0xff] %v3434_v56  ;;  %v114_v51 = vld [vmem:[#allocation2 + $0x4a] sm:$0x1]  ;;  %v115_v52 = vld [vmem:[#allocation2 + $0x4b] sm:$0x1]  ;;  %v3446_v16 = vsub.f32 %v102_v61, %v358_v53  ;;  %v3460_v61 = vsub.f32 %v107_v59, %v363_v11  ;;  %v3474_v11 = vadd.f32 %v3310_v31, %v3308_v41 }
  0x63   :  { %v116_v25 = vld [vmem:[#allocation2 + $0x4c] sm:$0x1]  ;;  %v364_v9 = vld [vmem:[#allocation5 + $0x44] sm:$0x1]  ;;  %v365_v12 = vld [vmem:[#allocation5 + $0x45] sm:$0x1] }
  0x64   :  { %v366_v55 = vld [vmem:[#allocation5 + $0x46] sm:$0x1]  ;;  %7470 = vst [vmem:[#allocation87_spill] sm:$0xff] %v3436_v6  ;;  %7471 = vst [vmem:[#allocation88_spill] sm:$0xff] %v3438_v37  ;;  %v117_v28 = vld [vmem:[#allocation2 + $0x4d] sm:$0x1]  ;;  %v3458_v37 = vsub.f32 %v106_v8, %v362_v54 }
  0x65   :  { %7472 = vst [vmem:[#allocation89_spill] sm:$0xff] %v3440_v27  ;;  %7473 = vst [vmem:[#allocation90_spill] sm:$0xff] %v3444_v0  ;;  %v118_v32 = vld [vmem:[#allocation2 + $0x4e] sm:$0x1]  ;;  %v119_v45 = vld [vmem:[#allocation2 + $0x4f] sm:$0x1]  ;;  %v3456_v27 = vsub.f32 %v105_v7, %v361_v63  ;;  %v3470_v7 = vsub.f32 %v110_v5, %v366_v55 }
  0x66   :  { %v367_v19 = vld [vmem:[#allocation5 + $0x47] sm:$0x1]  ;;  %v368_v20 = vld [vmem:[#allocation5 + $0x48] sm:$0x1]  ;;  %v369_v56 = vld [vmem:[#allocation5 + $0x49] sm:$0x1] }
  0x67   :  { %7474 = vst [vmem:[#allocation91_spill] sm:$0xff] %v3446_v16  ;;  %7475 = vst [vmem:[#allocation92_spill] sm:$0xff] %v3448_v60  ;;  %v120_v43 = vld [vmem:[#allocation2 + $0x50] sm:$0x1]  ;;  %v121_v39 = vld [vmem:[#allocation2 + $0x51] sm:$0x1]  ;;  %v3468_v60 = vsub.f32 %v109_v18, %v365_v12  ;;  %v3484_v12 = vadd.f32 %v3316_v23, %v3310_v31 }
  0x68   :  { %7476 = vst [vmem:[#allocation93_spill] sm:$0xff] %v3450_v42  ;;  %7477 = vst [vmem:[#allocation94_spill] sm:$0xff] %v3454_v1  ;;  %v122_v46 = vld [vmem:[#allocation2 + $0x52] sm:$0x1]  ;;  %v370_v35 = vld [vmem:[#allocation5 + $0x4a] sm:$0x1]  ;;  %v3466_v42 = vsub.f32 %v108_v17, %v364_v9  ;;  %v3480_v17 = vsub.f32 %v113_v15, %v369_v56 }
  0x69   :  { %v371_v0 = vld [vmem:[#allocation5 + $0x4b] sm:$0x1]  ;;  %v372_v21 = vld [vmem:[#allocation5 + $0x4c] sm:$0x1]  ;;  %7478 = vst [vmem:[#allocation95_spill] sm:$0xff] %v3456_v27  ;;  %7479 = vst [vmem:[#allocation96_spill] sm:$0xff] %v3458_v37  ;;  %v3478_v37 = vsub.f32 %v112_v34, %v368_v20  ;;  %v3494_v20 = vadd.f32 %v3318_v22, %v3316_v23 }
  0x6a   :  { %7480 = vst [vmem:[#allocation97_spill] sm:$0xff] %v3460_v61  ;;  %7481 = vst [vmem:[#allocation98_spill] sm:$0xff] %v3464_v2  ;;  %v123_v62 = vld [vmem:[#allocation2 + $0x53] sm:$0x1]  ;;  %v124_v49 = vld [vmem:[#allocation2 + $0x54] sm:$0x1]  ;;  %v3476_v61 = vsub.f32 %v111_v29, %v367_v19  ;;  %v3490_v29 = vsub.f32 %v116_v25, %v372_v21  ;;  %v3504_v21 = vadd.f32 %v3320_v38, %v3318_v22 }
  0x6b   :  { %v125_v47 = vld [vmem:[#allocation2 + $0x55] sm:$0x1]  ;;  %v373_v53 = vld [vmem:[#allocation5 + $0x4d] sm:$0x1]  ;;  %v374_v1 = vld [vmem:[#allocation5 + $0x4e] sm:$0x1] }
  0x6c   :  { %v375_v24 = vld [vmem:[#allocation5 + $0x4f] sm:$0x1]  ;;  %7482 = vst [vmem:[#allocation99_spill] sm:$0xff] %v3466_v42  ;;  %7483 = vst [vmem:[#allocation100_spill] sm:$0xff] %v3468_v60  ;;  %v126_v8 = vld [vmem:[#allocation2 + $0x56] sm:$0x1]  ;;  %v3488_v60 = vsub.f32 %v115_v52, %v371_v0 }
  0x6d   :  { %7484 = vst [vmem:[#allocation101_spill] sm:$0xff] %v3470_v7  ;;  %7485 = vst [vmem:[#allocation102_spill] sm:$0xff] %v3474_v11  ;;  %v127_v59 = vld [vmem:[#allocation2 + $0x57] sm:$0x1]  ;;  %v128_v54 = vld [vmem:[#allocation2 + $0x58] sm:$0x1]  ;;  %v3486_v7 = vsub.f32 %v114_v51, %v370_v35  ;;  %v3500_v51 = vsub.f32 %v119_v45, %v375_v24  ;;  %v3514_v24 = vadd.f32 %v3326_v13, %v3320_v38 }
  0x6e   :  { %v376_v63 = vld [vmem:[#allocation5 + $0x50] sm:$0x1]  ;;  %v377_v2 = vld [vmem:[#allocation5 + $0x51] sm:$0x1]  ;;  %v378_v36 = vld [vmem:[#allocation5 + $0x52] sm:$0x1] }
  0x6f   :  { %7486 = vst [vmem:[#allocation103_spill] sm:$0xff] %v3476_v61  ;;  %7487 = vst [vmem:[#allocation104_spill] sm:$0xff] %v3478_v37  ;;  %v129_v18 = vld [vmem:[#allocation2 + $0x59] sm:$0x1]  ;;  %v130_v5 = vld [vmem:[#allocation2 + $0x5a] sm:$0x1]  ;;  %v3498_v37 = vsub.f32 %v118_v32, %v374_v1 }
  0x70   :  { %7488 = vst [vmem:[#allocation105_spill] sm:$0xff] %v3480_v17  ;;  %7489 = vst [vmem:[#allocation106_spill] sm:$0xff] %v3484_v12  ;;  %v131_v55 = vld [vmem:[#allocation2 + $0x5b] sm:$0x1]  ;;  %v379_v9 = vld [vmem:[#allocation5 + $0x53] sm:$0x1]  ;;  %v3496_v17 = vsub.f32 %v117_v28, %v373_v53  ;;  %v3510_v28 = vsub.f32 %v122_v46, %v378_v36  ;;  %v3524_v36 = vadd.f32 %v3328_v44, %v3326_v13 }
  0x71   :  { %v380_v11 = vld [vmem:[#allocation5 + $0x54] sm:$0x1]  ;;  %v381_v41 = vld [vmem:[#allocation5 + $0x55] sm:$0x1]  ;;  %7490 = vst [vmem:[#allocation107_spill] sm:$0xff] %v3486_v7  ;;  %7491 = vst [vmem:[#allocation108_spill] sm:$0xff] %v3488_v60  ;;  %v3508_v60 = vsub.f32 %v121_v39, %v377_v2 }
  0x72   :  { %7492 = vst [vmem:[#allocation109_spill] sm:$0xff] %v3490_v29  ;;  %7493 = vst [vmem:[#allocation110_spill] sm:$0xff] %v3494_v20  ;;  %v132_v34 = vld [vmem:[#allocation2 + $0x5c] sm:$0x1]  ;;  %v133_v15 = vld [vmem:[#allocation2 + $0x5d] sm:$0x1]  ;;  %v3506_v29 = vsub.f32 %v120_v43, %v376_v63  ;;  %v3520_v43 = vsub.f32 %v125_v47, %v381_v41  ;;  %v3534_v41 = vadd.f32 %v3330_v48, %v3328_v44 }
  0x73   :  { %v134_v56 = vld [vmem:[#allocation2 + $0x5e] sm:$0x1]  ;;  %v382_v19 = vld [vmem:[#allocation5 + $0x56] sm:$0x1]  ;;  %v383_v12 = vld [vmem:[#allocation5 + $0x57] sm:$0x1] }
  0x74   :  { %v384_v31 = vld [vmem:[#allocation5 + $0x58] sm:$0x1]  ;;  %7494 = vst [vmem:[#allocation111_spill] sm:$0xff] %v3496_v17  ;;  %7495 = vst [vmem:[#allocation112_spill] sm:$0xff] %v3498_v37  ;;  %v135_v52 = vld [vmem:[#allocation2 + $0x5f] sm:$0x1]  ;;  %v3518_v37 = vsub.f32 %v124_v49, %v380_v11 }
  0x75   :  { %7496 = vst [vmem:[#allocation113_spill] sm:$0xff] %v3500_v51  ;;  %7497 = vst [vmem:[#allocation114_spill] sm:$0xff] %v3504_v21  ;;  %v136_v25 = vld [vmem:[#allocation2 + $0x60] sm:$0x1]  ;;  %v137_v0 = vld [vmem:[#allocation2 + $0x61] sm:$0x1]  ;;  %v3516_v51 = vsub.f32 %v123_v62, %v379_v9  ;;  %v3530_v62 = vsub.f32 %v128_v54, %v384_v31  ;;  %v3544_v31 = vadd.f32 %v3336_v3, %v3330_v48 }
  0x76   :  { %v385_v35 = vld [vmem:[#allocation5 + $0x59] sm:$0x1]  ;;  %v386_v20 = vld [vmem:[#allocation5 + $0x5a] sm:$0x1]  ;;  %v387_v23 = vld [vmem:[#allocation5 + $0x5b] sm:$0x1] }
  0x77   :  { %7498 = vst [vmem:[#allocation115_spill] sm:$0xff] %v3506_v29  ;;  %7499 = vst [vmem:[#allocation116_spill] sm:$0xff] %v3508_v60  ;;  %v138_v32 = vld [vmem:[#allocation2 + $0x62] sm:$0x1]  ;;  %v139_v45 = vld [vmem:[#allocation2 + $0x63] sm:$0x1]  ;;  %v3528_v60 = vsub.f32 %v127_v59, %v383_v12 }
  0x78   :  { %7500 = vst [vmem:[#allocation117_spill] sm:$0xff] %v3510_v28  ;;  %7501 = vst [vmem:[#allocation118_spill] sm:$0xff] %v3514_v24  ;;  %v140_v1 = vld [vmem:[#allocation2 + $0x64] sm:$0x1]  ;;  %v388_v53 = vld [vmem:[#allocation5 + $0x5c] sm:$0x1]  ;;  %v3526_v28 = vsub.f32 %v126_v8, %v382_v19  ;;  %v3540_v8 = vsub.f32 %v131_v55, %v387_v23 }
  0x79   :  { %v389_v21 = vld [vmem:[#allocation5 + $0x5d] sm:$0x1]  ;;  %v390_v22 = vld [vmem:[#allocation5 + $0x5e] sm:$0x1]  ;;  %7502 = vst [vmem:[#allocation119_spill] sm:$0xff] %v3516_v51  ;;  %7503 = vst [vmem:[#allocation120_spill] sm:$0xff] %v3518_v37  ;;  %v3538_v37 = vsub.f32 %v130_v5, %v386_v20 }
  0x7a   :  { %7504 = vst [vmem:[#allocation121_spill] sm:$0xff] %v3520_v43  ;;  %7505 = vst [vmem:[#allocation122_spill] sm:$0xff] %v3524_v36  ;;  %v141_v39 = vld [vmem:[#allocation2 + $0x65] sm:$0x1]  ;;  %v142_v46 = vld [vmem:[#allocation2 + $0x66] sm:$0x1]  ;;  %v3536_v43 = vsub.f32 %v129_v18, %v385_v35  ;;  %v3550_v18 = vsub.f32 %v134_v56, %v390_v22 }
  0x7b   :  { %v143_v2 = vld [vmem:[#allocation2 + $0x67] sm:$0x1]  ;;  %v391_v63 = vld [vmem:[#allocation5 + $0x5f] sm:$0x1]  ;;  %v392_v24 = vld [vmem:[#allocation5 + $0x60] sm:$0x1] }
  0x7c   :  { %v393_v38 = vld [vmem:[#allocation5 + $0x61] sm:$0x1]  ;;  %7506 = vst [vmem:[#allocation123_spill] sm:$0xff] %v3526_v28  ;;  %7507 = vst [vmem:[#allocation124_spill] sm:$0xff] %v3528_v60  ;;  %v144_v49 = vld [vmem:[#allocation2 + $0x68] sm:$0x1]  ;;  %v3548_v60 = vsub.f32 %v133_v15, %v389_v21 }
  0x7d   :  { %7508 = vst [vmem:[#allocation125_spill] sm:$0xff] %v3530_v62  ;;  %7509 = vst [vmem:[#allocation126_spill] sm:$0xff] %v3534_v41  ;;  %v145_v47 = vld [vmem:[#allocation2 + $0x69] sm:$0x1]  ;;  %v146_v11 = vld [vmem:[#allocation2 + $0x6a] sm:$0x1]  ;;  %v3546_v62 = vsub.f32 %v132_v34, %v388_v53  ;;  %v3560_v34 = vsub.f32 %v137_v0, %v393_v38 }
  0x7e   :  { %v394_v9 = vld [vmem:[#allocation5 + $0x62] sm:$0x1]  ;;  %v395_v36 = vld [vmem:[#allocation5 + $0x63] sm:$0x1]  ;;  %v396_v13 = vld [vmem:[#allocation5 + $0x64] sm:$0x1] }
  0x7f   :  { %7510 = vst [vmem:[#allocation127_spill] sm:$0xff] %v3536_v43  ;;  %7511 = vst [vmem:[#allocation128_spill] sm:$0xff] %v3538_v37  ;;  %v147_v59 = vld [vmem:[#allocation2 + $0x6b] sm:$0x1]  ;;  %v148_v54 = vld [vmem:[#allocation2 + $0x6c] sm:$0x1]  ;;  %v3556_v37 = vsub.f32 %v135_v52, %v391_v63  ;;  %v3558_v43 = vsub.f32 %v136_v25, %v392_v24  ;;  %v3570_v52 = vsub.f32 %v140_v1, %v396_v13 }
  0x80   :  { %7512 = vst [vmem:[#allocation129_spill] sm:$0xff] %v3540_v8  ;;  %7513 = vst [vmem:[#allocation130_spill] sm:$0xff] %v3544_v31  ;;  %v149_v12 = vld [vmem:[#allocation2 + $0x6d] sm:$0x1]  ;;  %v397_v19 = vld [vmem:[#allocation5 + $0x65] sm:$0x1] }
  0x81   :  { %v398_v41 = vld [vmem:[#allocation5 + $0x66] sm:$0x1]  ;;  %v399_v44 = vld [vmem:[#allocation5 + $0x67] sm:$0x1]  ;;  %7514 = vst [vmem:[#allocation131_spill] sm:$0xff] %v3546_v62  ;;  %7515 = vst [vmem:[#allocation132_spill] sm:$0xff] %v3548_v60  ;;  %v3566_v60 = vsub.f32 %v138_v32, %v394_v9  ;;  %v3568_v62 = vsub.f32 %v139_v45, %v395_v36 }
  0x82   :  { %7516 = vst [vmem:[#allocation133_spill] sm:$0xff] %v3550_v18  ;;  %v7517_v5 = vld [vmem:[#allocation48_spill] sm:$0xff]  ;;  %v400_v31 = vld [vmem:[#allocation5 + $0x68] sm:$0x1]  ;;  %v401_v48 = vld [vmem:[#allocation5 + $0x69] sm:$0x1]  ;;  %v3580_v32 = vsub.f32 %v143_v2, %v399_v44 }
  0x83   :  { %v3554_v23 = vadd.f32 %v7517_v5, %v3336_v3  ;;  %v150_v55 = vld [vmem:[#allocation2 + $0x6e] sm:$0x1]  ;;  %v151_v20 = vld [vmem:[#allocation2 + $0x6f] sm:$0x1]  ;;  %v152_v35 = vld [vmem:[#allocation2 + $0x70] sm:$0x1] }
  0x84   :  { %v402_v8 = vld [vmem:[#allocation5 + $0x6a] sm:$0x1]  ;;  %7519 = vst [vmem:[#allocation135_spill] sm:$0xff] %v3556_v37  ;;  %7520 = vst [vmem:[#allocation136_spill] sm:$0xff] %v3558_v43  ;;  %v7522_v15 = vld [vmem:[#allocation49_spill] sm:$0xff]  ;;  %v3578_v43 = vsub.f32 %v142_v46, %v398_v41  ;;  %vm2600_vm0 = vcmask 1040384  }
  0x85   :  { %7518 = vst [vmem:[#allocation134_spill] sm:$0xff] %v3554_v23  ;;  %7521 = vst [vmem:[#allocation137_spill] sm:$0xff] %v3560_v34  ;;  %v3564_v22 = vadd.f32 %v7522_v15, %v7517_v5  ;;  %v153_v56 = vld [vmem:[#allocation2 + $0x71] sm:$0x1]  ;;  %v154_v21 = vld [vmem:[#allocation2 + $0x72] sm:$0x1]  ;;  %v3576_v34 = vsub.f32 %v141_v39, %v397_v19  ;;  %v3590_v39 = vsub.f32 %v146_v11, %v402_v8 }
  0x86   :  { %v155_v53 = vld [vmem:[#allocation2 + $0x73] sm:$0x1]  ;;  %v403_v23 = vld [vmem:[#allocation5 + $0x6b] sm:$0x1]  ;;  %v404_v3 = vld [vmem:[#allocation5 + $0x6c] sm:$0x1] }
  0x87   :  { %7523 = vst [vmem:[#allocation138_spill] sm:$0xff] %v3564_v22  ;;  %v405_v18 = vld [vmem:[#allocation5 + $0x6d] sm:$0x1]  ;;  %7524 = vst [vmem:[#allocation139_spill] sm:$0xff] %v3566_v60  ;;  %v156_v0 = vld [vmem:[#allocation2 + $0x74] sm:$0x1]  ;;  %v3588_v60 = vsub.f32 %v145_v47, %v401_v48 }
  0x88   :  { %7525 = vst [vmem:[#allocation140_spill] sm:$0xff] %v3568_v62  ;;  %7526 = vst [vmem:[#allocation141_spill] sm:$0xff] %v3570_v52  ;;  %v7527_v25 = vld [vmem:[#allocation52_spill] sm:$0xff]  ;;  %v157_v24 = vld [vmem:[#allocation2 + $0x75] sm:$0x1]  ;;  %v3586_v62 = vsub.f32 %v144_v49, %v400_v31  ;;  %v3600_v49 = vsub.f32 %v149_v12, %v405_v18  ;;  %s3210_s1 = smov [#allocation7]  }
  0x89   :  { %v3574_v38 = vadd.f32 %v7527_v25, %v3346_v57  ;;  %v158_v63 = vld [vmem:[#allocation2 + $0x76] sm:$0x1]  ;;  %v406_v22 = vld [vmem:[#allocation5 + $0x6e] sm:$0x1]  ;;  %v407_v15 = vld [vmem:[#allocation5 + $0x6f] sm:$0x1] }
  0x8a   :  { %v408_v5 = vld [vmem:[#allocation5 + $0x70] sm:$0x1]  ;;  %7529 = vst [vmem:[#allocation143_spill] sm:$0xff] %v3576_v34  ;;  %7530 = vst [vmem:[#allocation144_spill] sm:$0xff] %v3578_v43  ;;  %v7532_v45 = vld [vmem:[#allocation53_spill] sm:$0xff]  ;;  %v3598_v43 = vsub.f32 %v148_v54, %v404_v3  ;;  %s3119_s6 = sshll.u32 %s3210_s1, 4  ;;  %s3120_s6 = int_to_ptr.vmem [resolvable:$true] %s3119_s6 }
  0x8b   :  { %7528 = vst [vmem:[#allocation142_spill] sm:$0xff] %v3574_v38  ;;  %7531 = vst [vmem:[#allocation145_spill] sm:$0xff] %v3580_v32  ;;  %v3584_v13 = vadd.f32 %v7532_v45, %v7527_v25  ;;  %v159_v1 = vld [vmem:[#allocation2 + $0x77] sm:$0x1]  ;;  %v160_v36 = vld [vmem:[#allocation2 + $0x78] sm:$0x1]  ;;  %v3594_v44 = vadd.f32 %v3356_v58, %v7532_v45  ;;  %v3596_v32 = vsub.f32 %v147_v59, %v403_v23  ;;  %p3183_p3 = scmp.lt.s32.totalorder %s3120_s6, %s3120_s6 }
  0x8c   :  { %v161_v9 = vld [vmem:[#allocation2 + $0x79] sm:$0x1]  ;;  %v409_v57 = vld [vmem:[#allocation5 + $0x71] sm:$0x1]  ;;  %v410_v38 = vld [vmem:[#allocation5 + $0x72] sm:$0x1]  ;;  %v3610_v59 = vsub.f32 %v152_v35, %v408_v5 }
  0x8d   :  { %7533 = vst [vmem:[#allocation146_spill] sm:$0xff] %v3584_v13  ;;  %v411_v52 = vld [vmem:[#allocation5 + $0x73] sm:$0x1]  ;;  %7534 = vst [vmem:[#allocation147_spill] sm:$0xff] %v3586_v62  ;;  %v162_v46 = vld [vmem:[#allocation2 + $0x7a] sm:$0x1]  ;;  %v3608_v62 = vsub.f32 %v151_v20, %v407_v15 }
  0x8e   :  { %7535 = vst [vmem:[#allocation148_spill] sm:$0xff] %v3588_v60  ;;  %7536 = vst [vmem:[#allocation149_spill] sm:$0xff] %v3590_v39  ;;  %v163_v2 = vld [vmem:[#allocation2 + $0x7b] sm:$0x1]  ;;  %v164_v41 = vld [vmem:[#allocation2 + $0x7c] sm:$0x1]  ;;  %v3606_v60 = vsub.f32 %v150_v55, %v406_v22  ;;  %v3620_v55 = vsub.f32 %v155_v53, %v411_v52 }
  0x8f   :  { %7537 = vst [vmem:[#allocation150_spill] sm:$0xff] %v3594_v44  ;;  %v412_v19 = vld [vmem:[#allocation5 + $0x74] sm:$0x1]  ;;  %v413_v25 = vld [vmem:[#allocation5 + $0x75] sm:$0x1]  ;;  %7538 = vst [vmem:[#allocation151_spill] sm:$0xff] %v3596_v32  ;;  %v3618_v32 = vsub.f32 %v154_v21, %v410_v38 }
  0x90   :  { %v414_v13 = vld [vmem:[#allocation5 + $0x76] sm:$0x1]  ;;  %7539 = vst [vmem:[#allocation152_spill] sm:$0xff] %v3598_v43  ;;  %7540 = vst [vmem:[#allocation153_spill] sm:$0xff] %v3600_v49  ;;  %v7541_v48 = vld [vmem:[#allocation56_spill] sm:$0xff]  ;;  %v3616_v43 = vsub.f32 %v153_v56, %v409_v57  ;;  %s3178_s7 = scalar_lea.vmem %s3120_s6, 16 }
  0x91   :  { %v3604_v47 = vadd.f32 %v7541_v48, %v3356_v58  ;;  %v165_v11 = vld [vmem:[#allocation2 + $0x7d] sm:$0x1]  ;;  %v166_v8 = vld [vmem:[#allocation2 + $0x7e] sm:$0x1]  ;;  %v167_v31 = vld [vmem:[#allocation2 + $0x7f] sm:$0x1]  ;;  %v3630_v57 = vsub.f32 %v158_v63, %v414_v13  ;;  %p3179_p2 = scmp.ne.s32.totalorder %s3120_s6, %s3178_s7 }
  0x92   :  { %v415_v44 = vld [vmem:[#allocation5 + $0x77] sm:$0x1]  ;;  %v416_v45 = vld [vmem:[#allocation5 + $0x78] sm:$0x1]  ;;  %v417_v39 = vld [vmem:[#allocation5 + $0x79] sm:$0x1] }
  0x93   :  { %7542 = vst [vmem:[#allocation154_spill] sm:$0xff] %v3604_v47  ;;  %7543 = vst [vmem:[#allocation155_spill] sm:$0xff] %v3606_v60  ;;  %v7546_v3 = vld [vmem:[#allocation57_spill] sm:$0xff]  ;;  %v168_v12 = vld [vmem:[#allocation2 + $0x80] sm:$0x1]  ;;  %s3182_s8 = scalar_lea.vmem %s3120_s6, 32 }
  0x94   :  { %7544 = vst [vmem:[#allocation156_spill] sm:$0xff] %v3608_v62  ;;  %7545 = vst [vmem:[#allocation157_spill] sm:$0xff] %v3610_v59  ;;  %v3614_v54 = vadd.f32 %v7546_v3, %v7541_v48  ;;  %v169_v18 = vld [vmem:[#allocation2 + $0x81] sm:$0x1]  ;;  %v170_v23 = vld [vmem:[#allocation2 + $0x82] sm:$0x1]  ;;  %v3624_v5 = vadd.f32 %v3366_v4, %v7546_v3  ;;  %v3626_v59 = vsub.f32 %v156_v0, %v412_v19  ;;  %p3184_p4 = scmp.lt.s32.totalorder %s3182_s8, %s3178_s7 }
  0x95   :  { %v418_v47 = vld [vmem:[#allocation5 + $0x7a] sm:$0x1]  ;;  %v419_v58 = vld [vmem:[#allocation5 + $0x7b] sm:$0x1]  ;;  %v420_v49 = vld [vmem:[#allocation5 + $0x7c] sm:$0x1]  ;;  %v3628_v62 = vsub.f32 %v157_v24, %v413_v25  ;;  %v3640_v0 = vsub.f32 %v161_v9, %v417_v39 }
  0x96   :  { %7547 = vst [vmem:[#allocation158_spill] sm:$0xff] %v3614_v54  ;;  %7548 = vst [vmem:[#allocation159_spill] sm:$0xff] %v3616_v43  ;;  %v171_v20 = vld [vmem:[#allocation2 + $0x83] sm:$0x1]  ;;  %v172_v35 = vld [vmem:[#allocation2 + $0x84] sm:$0x1]  ;;  %v3638_v43 = vsub.f32 %v160_v36, %v416_v45  ;;  %p3185_p5 = por %p3184_p4, %p3183_p3 }
  0x97   :  { %7549 = vst [vmem:[#allocation160_spill] sm:$0xff] %v3618_v32  ;;  %7550 = vst [vmem:[#allocation161_spill] sm:$0xff] %v3620_v55  ;;  %v173_v15 = vld [vmem:[#allocation2 + $0x85] sm:$0x1]  ;;  %v421_v22 = vld [vmem:[#allocation5 + $0x7d] sm:$0x1]  ;;  %v3636_v32 = vsub.f32 %v159_v1, %v415_v44  ;;  %v3650_v1 = vsub.f32 %v164_v41, %v420_v49 }
  0x98   :  { %7551 = vst [vmem:[#allocation162_spill] sm:$0xff] %v3624_v5  ;;  %v422_v54 = vld [vmem:[#allocation5 + $0x7e] sm:$0x1]  ;;  %v423_v48 = vld [vmem:[#allocation5 + $0x7f] sm:$0x1]  ;;  %7552 = vst [vmem:[#allocation163_spill] sm:$0xff] %v3626_v59  ;;  %v3648_v59 = vsub.f32 %v163_v2, %v419_v58  ;;  %p3186_p6 = pnand %p3185_p5, %p3179_p2 }
  0x99   :  { %7553 = vst [vmem:[#allocation164_spill] sm:$0xff] %v3628_v62  ;;  %7554 = vst [vmem:[#allocation165_spill] sm:$0xff] %v3630_v57  ;;  %v7555_v56 = vld [vmem:[#allocation60_spill] sm:$0xff]  ;;  %v174_v53 = vld [vmem:[#allocation2 + $0x86] sm:$0x1]  ;;  %v3646_v62 = vsub.f32 %v162_v46, %v418_v47  ;;  %v3660_v46 = vsub.f32 %v167_v31, %v423_v48 }
  0x9a   :  { %v3634_v21 = vadd.f32 %v7555_v56, %v3366_v4  ;;  %v175_v52 = vld [vmem:[#allocation2 + $0x87] sm:$0x1]  ;;  %v176_v38 = vld [vmem:[#allocation2 + $0x88] sm:$0x1]  ;;  %v424_v5 = vld [vmem:[#allocation5 + $0x80] sm:$0x1] }
  0x9b   :  { %v425_v3 = vld [vmem:[#allocation5 + $0x81] sm:$0x1]  ;;  %v426_v55 = vld [vmem:[#allocation5 + $0x82] sm:$0x1]  ;;  %7557 = vst [vmem:[#allocation167_spill] sm:$0xff] %v3636_v32  ;;  %7558 = vst [vmem:[#allocation168_spill] sm:$0xff] %v3638_v43  ;;  %v3658_v43 = vsub.f32 %v166_v8, %v422_v54 }
  0x9c   :  { %7556 = vst [vmem:[#allocation166_spill] sm:$0xff] %v3634_v21  ;;  %7559 = vst [vmem:[#allocation169_spill] sm:$0xff] %v3640_v0  ;;  %v7560_v25 = vld [vmem:[#allocation61_spill] sm:$0xff]  ;;  %v177_v63 = vld [vmem:[#allocation2 + $0x89] sm:$0x1]  ;;  %v3656_v0 = vsub.f32 %v165_v11, %v421_v22  ;;  %v3670_v11 = vsub.f32 %v170_v23, %v426_v55 }
  0x9d   :  { %v3644_v24 = vadd.f32 %v7560_v25, %v7555_v56  ;;  %v178_v13 = vld [vmem:[#allocation2 + $0x8a] sm:$0x1]  ;;  %v179_v19 = vld [vmem:[#allocation2 + $0x8b] sm:$0x1]  ;;  %v427_v21 = vld [vmem:[#allocation5 + $0x83] sm:$0x1]  ;;  %v3654_v45 = vadd.f32 %v3376_v14, %v7560_v25 }
  0x9e   :  { %v428_v4 = vld [vmem:[#allocation5 + $0x84] sm:$0x1]  ;;  %v429_v57 = vld [vmem:[#allocation5 + $0x85] sm:$0x1]  ;;  %7562 = vst [vmem:[#allocation171_spill] sm:$0xff] %v3646_v62  ;;  %7563 = vst [vmem:[#allocation172_spill] sm:$0xff] %v3648_v59  ;;  %v3666_v59 = vsub.f32 %v168_v12, %v424_v5  ;;  %v3668_v62 = vsub.f32 %v169_v18, %v425_v3 }
  0x9f   :  { %7561 = vst [vmem:[#allocation170_spill] sm:$0xff] %v3644_v24  ;;  %7564 = vst [vmem:[#allocation173_spill] sm:$0xff] %v3650_v1  ;;  %v180_v36 = vld [vmem:[#allocation2 + $0x8c] sm:$0x1]  ;;  %v181_v9 = vld [vmem:[#allocation2 + $0x8d] sm:$0x1]  ;;  %v3680_v12 = vsub.f32 %v173_v15, %v429_v57 }
  0xa0   :  { %7565 = vst [vmem:[#allocation174_spill] sm:$0xff] %v3654_v45  ;;  %v182_v39 = vld [vmem:[#allocation2 + $0x8e] sm:$0x1]  ;;  %v430_v44 = vld [vmem:[#allocation5 + $0x86] sm:$0x1]  ;;  %7566 = vst [vmem:[#allocation175_spill] sm:$0xff] %v3656_v0  ;;  %v3678_v0 = vsub.f32 %v172_v35, %v428_v4 }
  0xa1   :  { %v431_v24 = vld [vmem:[#allocation5 + $0x87] sm:$0x1]  ;;  %v432_v56 = vld [vmem:[#allocation5 + $0x88] sm:$0x1]  ;;  %7567 = vst [vmem:[#allocation176_spill] sm:$0xff] %v3658_v43  ;;  %7568 = vst [vmem:[#allocation177_spill] sm:$0xff] %v3660_v46  ;;  %v3676_v43 = vsub.f32 %v171_v20, %v427_v21 }
  0xa2   :  { %v7569_v58 = vld [vmem:[#allocation64_spill] sm:$0xff]  ;;  %v433_v45 = vld [vmem:[#allocation5 + $0x89] sm:$0x1]  ;;  %7571 = vst [vmem:[#allocation179_spill] sm:$0xff] %v3666_v59  ;;  %7572 = vst [vmem:[#allocation180_spill] sm:$0xff] %v3668_v62  ;;  %v3688_v62 = vsub.f32 %v175_v52, %v431_v24  ;;  %v3690_v20 = vsub.f32 %v176_v38, %v432_v56 }
  0xa3   :  { %v3664_v2 = vadd.f32 %v7569_v58, %v3376_v14  ;;  %v183_v41 = vld [vmem:[#allocation2 + $0x8f] sm:$0x1]  ;;  %v184_v49 = vld [vmem:[#allocation2 + $0x90] sm:$0x1]  ;;  %v185_v47 = vld [vmem:[#allocation2 + $0x91] sm:$0x1] }
  0xa4   :  { %v434_v25 = vld [vmem:[#allocation5 + $0x8a] sm:$0x1]  ;;  %v435_v1 = vld [vmem:[#allocation5 + $0x8b] sm:$0x1]  ;;  %7573 = vst [vmem:[#allocation181_spill] sm:$0xff] %v3670_v11  ;;  %v7574_v8 = vld [vmem:[#allocation65_spill] sm:$0xff]  ;;  %v3686_v11 = vsub.f32 %v174_v53, %v430_v44 }
  0xa5   :  { %7570 = vst [vmem:[#allocation178_spill] sm:$0xff] %v3664_v2  ;;  %v3674_v48 = vadd.f32 %v7574_v8, %v7569_v58  ;;  %v186_v31 = vld [vmem:[#allocation2 + $0x92] sm:$0x1]  ;;  %v187_v54 = vld [vmem:[#allocation2 + $0x93] sm:$0x1]  ;;  %7576 = vst [vmem:[#allocation183_spill] sm:$0xff] %v3676_v43  ;;  %v3684_v3 = vadd.f32 %v3386_v26, %v7574_v8  ;;  %v3698_v43 = vsub.f32 %v178_v13, %v434_v25 }
  0xa6   :  { %v188_v22 = vld [vmem:[#allocation2 + $0x94] sm:$0x1]  ;;  %v436_v2 = vld [vmem:[#allocation5 + $0x8c] sm:$0x1]  ;;  %v437_v14 = vld [vmem:[#allocation5 + $0x8d] sm:$0x1]  ;;  %v3700_v53 = vsub.f32 %v179_v19, %v435_v1 }
  0xa7   :  { %7575 = vst [vmem:[#allocation182_spill] sm:$0xff] %v3674_v48  ;;  %v438_v46 = vld [vmem:[#allocation5 + $0x8e] sm:$0x1]  ;;  %7577 = vst [vmem:[#allocation184_spill] sm:$0xff] %v3678_v0  ;;  %v189_v18 = vld [vmem:[#allocation2 + $0x95] sm:$0x1]  ;;  %v3696_v0 = vsub.f32 %v177_v63, %v433_v45 }
  0xa8   :  { %7578 = vst [vmem:[#allocation185_spill] sm:$0xff] %v3680_v12  ;;  %7579 = vst [vmem:[#allocation186_spill] sm:$0xff] %v3684_v3  ;;  %v190_v23 = vld [vmem:[#allocation2 + $0x96] sm:$0x1]  ;;  %v191_v55 = vld [vmem:[#allocation2 + $0x97] sm:$0x1]  ;;  %v3710_v63 = vsub.f32 %v182_v39, %v438_v46 }
  0xa9   :  { %v439_v5 = vld [vmem:[#allocation5 + $0x8f] sm:$0x1]  ;;  %v440_v48 = vld [vmem:[#allocation5 + $0x90] sm:$0x1]  ;;  %v441_v58 = vld [vmem:[#allocation5 + $0x91] sm:$0x1] }
  0xaa   :  { %7580 = vst [vmem:[#allocation187_spill] sm:$0xff] %v3686_v11  ;;  %7581 = vst [vmem:[#allocation188_spill] sm:$0xff] %v3688_v62  ;;  %v7583_v4 = vld [vmem:[#allocation68_spill] sm:$0xff]  ;;  %v192_v15 = vld [vmem:[#allocation2 + $0x98] sm:$0x1]  ;;  %v3706_v62 = vsub.f32 %v180_v36, %v436_v2  ;;  %v3708_v11 = vsub.f32 %v181_v9, %v437_v14  ;;  %v3720_v36 = vsub.f32 %v185_v47, %v441_v58 }
  0xab   :  { %7582 = vst [vmem:[#allocation189_spill] sm:$0xff] %v3690_v20  ;;  %v3694_v35 = vadd.f32 %v7583_v4, %v3386_v26  ;;  %v193_v57 = vld [vmem:[#allocation2 + $0x99] sm:$0x1]  ;;  %v194_v21 = vld [vmem:[#allocation2 + $0x9a] sm:$0x1]  ;;  %7585 = vst [vmem:[#allocation191_spill] sm:$0xff] %v3696_v0 }
  0xac   :  { %v442_v3 = vld [vmem:[#allocation5 + $0x92] sm:$0x1]  ;;  %v443_v8 = vld [vmem:[#allocation5 + $0x93] sm:$0x1]  ;;  %v444_v12 = vld [vmem:[#allocation5 + $0x94] sm:$0x1] }
  0xad   :  { %7584 = vst [vmem:[#allocation190_spill] sm:$0xff] %v3694_v35  ;;  %7586 = vst [vmem:[#allocation192_spill] sm:$0xff] %v3698_v43  ;;  %v7588_v52 = vld [vmem:[#allocation69_spill] sm:$0xff]  ;;  %v195_v38 = vld [vmem:[#allocation2 + $0x9b] sm:$0x1]  ;;  %v3718_v43 = vsub.f32 %v184_v49, %v440_v48 }
  0xae   :  { %7587 = vst [vmem:[#allocation193_spill] sm:$0xff] %v3700_v53  ;;  %v3704_v56 = vadd.f32 %v7588_v52, %v7583_v4  ;;  %v196_v24 = vld [vmem:[#allocation2 + $0x9c] sm:$0x1]  ;;  %v197_v44 = vld [vmem:[#allocation2 + $0x9d] sm:$0x1]  ;;  %7590 = vst [vmem:[#allocation195_spill] sm:$0xff] %v3706_v62  ;;  %v3714_v25 = vadd.f32 %v3396_v33, %v7588_v52  ;;  %v3716_v53 = vsub.f32 %v183_v41, %v439_v5 }
  0xaf   :  { %v445_v35 = vld [vmem:[#allocation5 + $0x95] sm:$0x1]  ;;  %v446_v26 = vld [vmem:[#allocation5 + $0x96] sm:$0x1]  ;;  %v447_v20 = vld [vmem:[#allocation5 + $0x97] sm:$0x1]  ;;  %v3728_v62 = vsub.f32 %v187_v54, %v443_v8  ;;  %v3730_v41 = vsub.f32 %v188_v22, %v444_v12  ;;  %v3744_v8 = vadd.f32 %v3408_v30, %v3406_v40 }
  0xb0   :  { %7589 = vst [vmem:[#allocation194_spill] sm:$0xff] %v3704_v56  ;;  %7591 = vst [vmem:[#allocation196_spill] sm:$0xff] %v3708_v11  ;;  %v198_v13 = vld [vmem:[#allocation2 + $0x9e] sm:$0x1]  ;;  %v199_v19 = vld [vmem:[#allocation2 + $0x9f] sm:$0x1]  ;;  %v3726_v11 = vsub.f32 %v186_v31, %v442_v3  ;;  %v3740_v31 = vsub.f32 %v191_v55, %v447_v20 }
  0xb1   :  { %7592 = vst [vmem:[#allocation197_spill] sm:$0xff] %v3710_v63  ;;  %7593 = vst [vmem:[#allocation198_spill] sm:$0xff] %v3714_v25  ;;  %v200_v1 = vld [vmem:[#allocation2 + $0xa0] sm:$0x1]  ;;  %v448_v45 = vld [vmem:[#allocation5 + $0x98] sm:$0x1] }
  0xb2   :  { %v449_v56 = vld [vmem:[#allocation5 + $0x99] sm:$0x1]  ;;  %v450_v4 = vld [vmem:[#allocation5 + $0x9a] sm:$0x1]  ;;  %7594 = vst [vmem:[#allocation199_spill] sm:$0xff] %v3716_v53  ;;  %7595 = vst [vmem:[#allocation200_spill] sm:$0xff] %v3718_v43  ;;  %v3738_v43 = vsub.f32 %v190_v23, %v446_v26 }
  0xb3   :  { %7596 = vst [vmem:[#allocation201_spill] sm:$0xff] %v3720_v36  ;;  %v7597_v14 = vld [vmem:[#allocation72_spill] sm:$0xff]  ;;  %v7598_v9 = vld [vmem:[#allocation73_spill] sm:$0xff]  ;;  %v201_v46 = vld [vmem:[#allocation2 + $0xa1] sm:$0x1]  ;;  %v3736_v36 = vsub.f32 %v189_v18, %v445_v35  ;;  %v3750_v18 = vsub.f32 %v194_v21, %v450_v4 }
  0xb4   :  { %v3724_v39 = vadd.f32 %v7598_v9, %v7597_v14  ;;  %v202_v2 = vld [vmem:[#allocation2 + $0xa2] sm:$0x1]  ;;  %v203_v33 = vld [vmem:[#allocation2 + $0xa3] sm:$0x1]  ;;  %v451_v25 = vld [vmem:[#allocation5 + $0x9b] sm:$0x1]  ;;  %v3734_v58 = vadd.f32 %v3406_v40, %v7598_v9 }
  0xb5   :  { %v452_v52 = vld [vmem:[#allocation5 + $0x9c] sm:$0x1]  ;;  %v453_v63 = vld [vmem:[#allocation5 + $0x9d] sm:$0x1]  ;;  %7600 = vst [vmem:[#allocation203_spill] sm:$0xff] %v3726_v11  ;;  %7601 = vst [vmem:[#allocation204_spill] sm:$0xff] %v3728_v62  ;;  %v3748_v62 = vsub.f32 %v193_v57, %v449_v56 }
  0xb6   :  { %7599 = vst [vmem:[#allocation202_spill] sm:$0xff] %v3724_v39  ;;  %7602 = vst [vmem:[#allocation205_spill] sm:$0xff] %v3730_v41  ;;  %v204_v49 = vld [vmem:[#allocation2 + $0xa4] sm:$0x1]  ;;  %v205_v47 = vld [vmem:[#allocation2 + $0xa5] sm:$0x1]  ;;  %v3746_v41 = vsub.f32 %v192_v15, %v448_v45  ;;  %v3760_v15 = vsub.f32 %v197_v44, %v453_v63 }
  0xb7   :  { %7603 = vst [vmem:[#allocation206_spill] sm:$0xff] %v3734_v58  ;;  %v206_v48 = vld [vmem:[#allocation2 + $0xa6] sm:$0x1]  ;;  %v454_v5 = vld [vmem:[#allocation5 + $0x9e] sm:$0x1]  ;;  %7604 = vst [vmem:[#allocation207_spill] sm:$0xff] %v3736_v36  ;;  %v3758_v36 = vsub.f32 %v196_v24, %v452_v52 }
  0xb8   :  { %v455_v14 = vld [vmem:[#allocation5 + $0x9f] sm:$0x1]  ;;  %v456_v39 = vld [vmem:[#allocation5 + $0xa0] sm:$0x1]  ;;  %7605 = vst [vmem:[#allocation208_spill] sm:$0xff] %v3738_v43  ;;  %7606 = vst [vmem:[#allocation209_spill] sm:$0xff] %v3740_v31  ;;  %v3756_v43 = vsub.f32 %v195_v38, %v451_v25 }
  0xb9   :  { %7607 = vst [vmem:[#allocation210_spill] sm:$0xff] %v3744_v8  ;;  %v207_v54 = vld [vmem:[#allocation2 + $0xa7] sm:$0x1]  ;;  %v208_v22 = vld [vmem:[#allocation2 + $0xa8] sm:$0x1]  ;;  %7608 = vst [vmem:[#allocation211_spill] sm:$0xff] %v3746_v41  ;;  %v3770_v38 = vsub.f32 %v200_v1, %v456_v39 }
  0xba   :  { %v209_v12 = vld [vmem:[#allocation2 + $0xa9] sm:$0x1]  ;;  %v457_v3 = vld [vmem:[#allocation5 + $0xa1] sm:$0x1]  ;;  %v458_v9 = vld [vmem:[#allocation5 + $0xa2] sm:$0x1] }
  0xbb   :  { %v459_v58 = vld [vmem:[#allocation5 + $0xa3] sm:$0x1]  ;;  %7609 = vst [vmem:[#allocation212_spill] sm:$0xff] %v3748_v62  ;;  %7610 = vst [vmem:[#allocation213_spill] sm:$0xff] %v3750_v18  ;;  %v7611_v26 = vld [vmem:[#allocation77_spill] sm:$0xff]  ;;  %v3766_v18 = vsub.f32 %v198_v13, %v454_v5  ;;  %v3768_v62 = vsub.f32 %v199_v19, %v455_v14 }
  0xbc   :  { %v3754_v23 = vadd.f32 %v7611_v26, %v3408_v30  ;;  %v210_v55 = vld [vmem:[#allocation2 + $0xaa] sm:$0x1]  ;;  %v211_v20 = vld [vmem:[#allocation2 + $0xab] sm:$0x1]  ;;  %v212_v35 = vld [vmem:[#allocation2 + $0xac] sm:$0x1]  ;;  %v3764_v4 = vadd.f32 %v3416_v50, %v7611_v26  ;;  %v3780_v13 = vsub.f32 %v203_v33, %v459_v58 }
  0xbd   :  { %v460_v8 = vld [vmem:[#allocation5 + $0xa4] sm:$0x1]  ;;  %v461_v40 = vld [vmem:[#allocation5 + $0xa5] sm:$0x1]  ;;  %v462_v31 = vld [vmem:[#allocation5 + $0xa6] sm:$0x1] }
  0xbe   :  { %7612 = vst [vmem:[#allocation214_spill] sm:$0xff] %v3754_v23  ;;  %7613 = vst [vmem:[#allocation215_spill] sm:$0xff] %v3756_v43  ;;  %v213_v57 = vld [vmem:[#allocation2 + $0xad] sm:$0x1]  ;;  %v214_v21 = vld [vmem:[#allocation2 + $0xae] sm:$0x1]  ;;  %v3778_v43 = vsub.f32 %v202_v2, %v458_v9 }
  0xbf   :  { %7614 = vst [vmem:[#allocation216_spill] sm:$0xff] %v3758_v36  ;;  %7615 = vst [vmem:[#allocation217_spill] sm:$0xff] %v3760_v15  ;;  %v215_v56 = vld [vmem:[#allocation2 + $0xaf] sm:$0x1]  ;;  %v463_v45 = vld [vmem:[#allocation5 + $0xa7] sm:$0x1]  ;;  %v3776_v36 = vsub.f32 %v201_v46, %v457_v3  ;;  %v3790_v46 = vsub.f32 %v206_v48, %v462_v31 }
  0xc0   :  { %7616 = vst [vmem:[#allocation218_spill] sm:$0xff] %v3764_v4  ;;  %v464_v23 = vld [vmem:[#allocation5 + $0xa8] sm:$0x1]  ;;  %v465_v30 = vld [vmem:[#allocation5 + $0xa9] sm:$0x1]  ;;  %7617 = vst [vmem:[#allocation219_spill] sm:$0xff] %v3766_v18  ;;  %v3788_v18 = vsub.f32 %v205_v47, %v461_v40 }
  0xc1   :  { %7618 = vst [vmem:[#allocation220_spill] sm:$0xff] %v3768_v62  ;;  %7619 = vst [vmem:[#allocation221_spill] sm:$0xff] %v3770_v38  ;;  %v7620_v52 = vld [vmem:[#allocation80_spill] sm:$0xff]  ;;  %v218_v25 = vld [vmem:[#allocation2 + $0xb2] sm:$0x1]  ;;  %v3786_v62 = vsub.f32 %v204_v49, %v460_v8  ;;  %v3800_v49 = vsub.f32 %v209_v12, %v465_v30 }
  0xc2   :  { %v3774_v24 = vadd.f32 %v7620_v52, %v3416_v50  ;;  %v216_v44 = vld [vmem:[#allocation2 + $0xb0] sm:$0x1]  ;;  %v217_v63 = vld [vmem:[#allocation2 + $0xb1] sm:$0x1]  ;;  %v466_v4 = vld [vmem:[#allocation5 + $0xaa] sm:$0x1] }
  0xc3   :  { %v467_v26 = vld [vmem:[#allocation5 + $0xab] sm:$0x1]  ;;  %v468_v15 = vld [vmem:[#allocation5 + $0xac] sm:$0x1]  ;;  %7622 = vst [vmem:[#allocation223_spill] sm:$0xff] %v3776_v36  ;;  %7623 = vst [vmem:[#allocation224_spill] sm:$0xff] %v3778_v43  ;;  %v3798_v43 = vsub.f32 %v208_v22, %v464_v23 }
  0xc4   :  { %7621 = vst [vmem:[#allocation222_spill] sm:$0xff] %v3774_v24  ;;  %7624 = vst [vmem:[#allocation225_spill] sm:$0xff] %v3780_v13  ;;  %v7625_v19 = vld [vmem:[#allocation81_spill] sm:$0xff]  ;;  %v469_v24 = vld [vmem:[#allocation5 + $0xad] sm:$0x1]  ;;  %v3796_v13 = vsub.f32 %v207_v54, %v463_v45  ;;  %v3810_v54 = vsub.f32 %v212_v35, %v468_v15 }
  0xc5   :  { %v3784_v1 = vadd.f32 %v7625_v19, %v7620_v52  ;;  %v219_v14 = vld [vmem:[#allocation2 + $0xb3] sm:$0x1]  ;;  %v220_v39 = vld [vmem:[#allocation2 + $0xb4] sm:$0x1]  ;;  %v221_v5 = vld [vmem:[#allocation2 + $0xb5] sm:$0x1]  ;;  %v3794_v33 = vadd.f32 %v3426_v10, %v7625_v19 }
  0xc6   :  { %v470_v50 = vld [vmem:[#allocation5 + $0xae] sm:$0x1]  ;;  %v471_v38 = vld [vmem:[#allocation5 + $0xaf] sm:$0x1]  ;;  %7627 = vst [vmem:[#allocation227_spill] sm:$0xff] %v3786_v62  ;;  %7628 = vst [vmem:[#allocation228_spill] sm:$0xff] %v3788_v18  ;;  %v3806_v18 = vsub.f32 %v210_v55, %v466_v4  ;;  %v3808_v62 = vsub.f32 %v211_v20, %v467_v26 }
  0xc7   :  { %7626 = vst [vmem:[#allocation226_spill] sm:$0xff] %v3784_v1  ;;  %7629 = vst [vmem:[#allocation229_spill] sm:$0xff] %v3790_v46  ;;  %v222_v9 = vld [vmem:[#allocation2 + $0xb6] sm:$0x1]  ;;  %v223_v2 = vld [vmem:[#allocation2 + $0xb7] sm:$0x1]  ;;  %v3820_v55 = vsub.f32 %v215_v56, %v471_v38 }
  0xc8   :  { %7630 = vst [vmem:[#allocation230_spill] sm:$0xff] %v3794_v33  ;;  %v224_v58 = vld [vmem:[#allocation2 + $0xb8] sm:$0x1]  ;;  %v472_v3 = vld [vmem:[#allocation5 + $0xb0] sm:$0x1]  ;;  %7631 = vst [vmem:[#allocation231_spill] sm:$0xff] %v3796_v13  ;;  %v3818_v13 = vsub.f32 %v214_v21, %v470_v50 }
  0xc9   :  { %v473_v1 = vld [vmem:[#allocation5 + $0xb1] sm:$0x1]  ;;  %v474_v52 = vld [vmem:[#allocation5 + $0xb2] sm:$0x1]  ;;  %7632 = vst [vmem:[#allocation232_spill] sm:$0xff] %v3798_v43  ;;  %7633 = vst [vmem:[#allocation233_spill] sm:$0xff] %v3800_v49  ;;  %v3816_v43 = vsub.f32 %v213_v57, %v469_v24 }
  0xca   :  { %v7634_v40 = vld [vmem:[#allocation84_spill] sm:$0xff]  ;;  %v225_v48 = vld [vmem:[#allocation2 + $0xb9] sm:$0x1]  ;;  %v226_v31 = vld [vmem:[#allocation2 + $0xba] sm:$0x1]  ;;  %7636 = vst [vmem:[#allocation235_spill] sm:$0xff] %v3806_v18  ;;  %v3830_v57 = vsub.f32 %v218_v25, %v474_v52 }
  0xcb   :  { %v3804_v47 = vadd.f32 %v7634_v40, %v3426_v10  ;;  %v227_v8 = vld [vmem:[#allocation2 + $0xbb] sm:$0x1]  ;;  %v475_v33 = vld [vmem:[#allocation5 + $0xb3] sm:$0x1]  ;;  %v476_v19 = vld [vmem:[#allocation5 + $0xb4] sm:$0x1] }
  0xcc   :  { %v477_v46 = vld [vmem:[#allocation5 + $0xb5] sm:$0x1]  ;;  %7637 = vst [vmem:[#allocation236_spill] sm:$0xff] %v3808_v62  ;;  %7638 = vst [vmem:[#allocation237_spill] sm:$0xff] %v3810_v54  ;;  %v228_v12 = vld [vmem:[#allocation2 + $0xbc] sm:$0x1]  ;;  %v3826_v54 = vsub.f32 %v216_v44, %v472_v3  ;;  %v3828_v62 = vsub.f32 %v217_v63, %v473_v1 }
  0xcd   :  { %7635 = vst [vmem:[#allocation234_spill] sm:$0xff] %v3804_v47  ;;  %v7639_v22 = vld [vmem:[#allocation85_spill] sm:$0xff]  ;;  %v229_v23 = vld [vmem:[#allocation2 + $0xbd] sm:$0x1]  ;;  %v230_v45 = vld [vmem:[#allocation2 + $0xbe] sm:$0x1]  ;;  %v3840_v44 = vsub.f32 %v221_v5, %v477_v46 }
  0xce   :  { %v3814_v30 = vadd.f32 %v7639_v22, %v7634_v40  ;;  %v478_v47 = vld [vmem:[#allocation5 + $0xb6] sm:$0x1]  ;;  %v479_v10 = vld [vmem:[#allocation5 + $0xb7] sm:$0x1]  ;;  %v480_v49 = vld [vmem:[#allocation5 + $0xb8] sm:$0x1]  ;;  %v3824_v26 = vadd.f32 %v3436_v6, %v7639_v22 }
  0xcf   :  { %7641 = vst [vmem:[#allocation239_spill] sm:$0xff] %v3816_v43  ;;  %7642 = vst [vmem:[#allocation240_spill] sm:$0xff] %v3818_v13  ;;  %v231_v20 = vld [vmem:[#allocation2 + $0xbf] sm:$0x1]  ;;  %v232_v35 = vld [vmem:[#allocation2 + $0xc0] sm:$0x1]  ;;  %v3836_v13 = vsub.f32 %v219_v14, %v475_v33  ;;  %v3838_v43 = vsub.f32 %v220_v39, %v476_v19  ;;  %v3850_v14 = vsub.f32 %v224_v58, %v480_v49 }
  0xd0   :  { %7640 = vst [vmem:[#allocation238_spill] sm:$0xff] %v3814_v30  ;;  %7643 = vst [vmem:[#allocation241_spill] sm:$0xff] %v3820_v55  ;;  %v233_v15 = vld [vmem:[#allocation2 + $0xc1] sm:$0x1]  ;;  %v481_v4 = vld [vmem:[#allocation5 + $0xb9] sm:$0x1] }
  0xd1   :  { %7644 = vst [vmem:[#allocation242_spill] sm:$0xff] %v3824_v26  ;;  %v482_v30 = vld [vmem:[#allocation5 + $0xba] sm:$0x1]  ;;  %v483_v40 = vld [vmem:[#allocation5 + $0xbb] sm:$0x1]  ;;  %7645 = vst [vmem:[#allocation243_spill] sm:$0xff] %v3826_v54  ;;  %v3848_v54 = vsub.f32 %v223_v2, %v479_v10 }
  0xd2   :  { %7646 = vst [vmem:[#allocation244_spill] sm:$0xff] %v3828_v62  ;;  %7647 = vst [vmem:[#allocation245_spill] sm:$0xff] %v3830_v57  ;;  %v7648_v50 = vld [vmem:[#allocation88_spill] sm:$0xff]  ;;  %v234_v56 = vld [vmem:[#allocation2 + $0xc2] sm:$0x1]  ;;  %v3846_v62 = vsub.f32 %v222_v9, %v478_v47  ;;  %v3860_v9 = vsub.f32 %v227_v8, %v483_v40 }
  0xd3   :  { %v3834_v21 = vadd.f32 %v7648_v50, %v3436_v6  ;;  %v235_v38 = vld [vmem:[#allocation2 + $0xc3] sm:$0x1]  ;;  %v236_v24 = vld [vmem:[#allocation2 + $0xc4] sm:$0x1]  ;;  %v484_v26 = vld [vmem:[#allocation5 + $0xbc] sm:$0x1] }
  0xd4   :  { %v485_v22 = vld [vmem:[#allocation5 + $0xbd] sm:$0x1]  ;;  %v486_v55 = vld [vmem:[#allocation5 + $0xbe] sm:$0x1]  ;;  %7650 = vst [vmem:[#allocation247_spill] sm:$0xff] %v3836_v13  ;;  %7651 = vst [vmem:[#allocation248_spill] sm:$0xff] %v3838_v43  ;;  %v3858_v43 = vsub.f32 %v226_v31, %v482_v30 }
  0xd5   :  { %7649 = vst [vmem:[#allocation246_spill] sm:$0xff] %v3834_v21  ;;  %7652 = vst [vmem:[#allocation249_spill] sm:$0xff] %v3840_v44  ;;  %v7653_v63 = vld [vmem:[#allocation89_spill] sm:$0xff]  ;;  %v237_v25 = vld [vmem:[#allocation2 + $0xc5] sm:$0x1]  ;;  %v3856_v44 = vsub.f32 %v225_v48, %v481_v4  ;;  %v3870_v48 = vsub.f32 %v230_v45, %v486_v55 }
  0xd6   :  { %v3844_v52 = vadd.f32 %v7653_v63, %v7648_v50  ;;  %v238_v1 = vld [vmem:[#allocation2 + $0xc6] sm:$0x1]  ;;  %v239_v3 = vld [vmem:[#allocation2 + $0xc7] sm:$0x1]  ;;  %v487_v21 = vld [vmem:[#allocation5 + $0xbf] sm:$0x1]  ;;  %v3854_v19 = vadd.f32 %v3446_v16, %v7653_v63 }
  0xd7   :  { %v488_v6 = vld [vmem:[#allocation5 + $0xc0] sm:$0x1]  ;;  %v489_v57 = vld [vmem:[#allocation5 + $0xc1] sm:$0x1]  ;;  %7655 = vst [vmem:[#allocation251_spill] sm:$0xff] %v3846_v62  ;;  %7656 = vst [vmem:[#allocation252_spill] sm:$0xff] %v3848_v54  ;;  %v3866_v54 = vsub.f32 %v228_v12, %v484_v26  ;;  %v3868_v62 = vsub.f32 %v229_v23, %v485_v22 }
  0xd8   :  { %7654 = vst [vmem:[#allocation250_spill] sm:$0xff] %v3844_v52  ;;  %7657 = vst [vmem:[#allocation253_spill] sm:$0xff] %v3850_v14  ;;  %v240_v39 = vld [vmem:[#allocation2 + $0xc8] sm:$0x1]  ;;  %v241_v5 = vld [vmem:[#allocation2 + $0xc9] sm:$0x1]  ;;  %v3880_v12 = vsub.f32 %v233_v15, %v489_v57 }
  0xd9   :  { %7658 = vst [vmem:[#allocation254_spill] sm:$0xff] %v3854_v19  ;;  %v242_v46 = vld [vmem:[#allocation2 + $0xca] sm:$0x1]  ;;  %v490_v33 = vld [vmem:[#allocation5 + $0xc2] sm:$0x1]  ;;  %7659 = vst [vmem:[#allocation255_spill] sm:$0xff] %v3856_v44 }
  0xda   :  { %v491_v52 = vld [vmem:[#allocation5 + $0xc3] sm:$0x1]  ;;  %v492_v50 = vld [vmem:[#allocation5 + $0xc4] sm:$0x1]  ;;  %7660 = vst [vmem:[#allocation256_spill] sm:$0xff] %v3858_v43  ;;  %7661 = vst [vmem:[#allocation257_spill] sm:$0xff] %v3860_v9  ;;  %v3876_v9 = vsub.f32 %v231_v20, %v487_v21  ;;  %v3878_v43 = vsub.f32 %v232_v35, %v488_v6 }
  0xdb   :  { %v7662_v10 = vld [vmem:[#allocation92_spill] sm:$0xff]  ;;  %v493_v19 = vld [vmem:[#allocation5 + $0xc5] sm:$0x1]  ;;  %v494_v63 = vld [vmem:[#allocation5 + $0xc6] sm:$0x1]  ;;  %7664 = vst [vmem:[#allocation259_spill] sm:$0xff] %v3866_v54  ;;  %v3888_v54 = vsub.f32 %v235_v38, %v491_v52  ;;  %v3890_v20 = vsub.f32 %v236_v24, %v492_v50 }
  0xdc   :  { %v3864_v2 = vadd.f32 %v7662_v10, %v3446_v16  ;;  %v243_v58 = vld [vmem:[#allocation2 + $0xcb] sm:$0x1]  ;;  %v244_v49 = vld [vmem:[#allocation2 + $0xcc] sm:$0x1]  ;;  %v245_v47 = vld [vmem:[#allocation2 + $0xcd] sm:$0x1] }
  0xdd   :  { %v495_v14 = vld [vmem:[#allocation5 + $0xc7] sm:$0x1]  ;;  %7665 = vst [vmem:[#allocation260_spill] sm:$0xff] %v3868_v62  ;;  %7666 = vst [vmem:[#allocation261_spill] sm:$0xff] %v3870_v48  ;;  %v7667_v31 = vld [vmem:[#allocation93_spill] sm:$0xff]  ;;  %v3886_v62 = vsub.f32 %v234_v56, %v490_v33 }
  0xde   :  { %7663 = vst [vmem:[#allocation258_spill] sm:$0xff] %v3864_v2  ;;  %v3874_v40 = vadd.f32 %v3456_v27, %v7667_v31  ;;  %v246_v8 = vld [vmem:[#allocation2 + $0xce] sm:$0x1]  ;;  %v247_v30 = vld [vmem:[#allocation2 + $0xcf] sm:$0x1]  ;;  %7669 = vst [vmem:[#allocation263_spill] sm:$0xff] %v3876_v9  ;;  %v3898_v9 = vsub.f32 %v238_v1, %v494_v63  ;;  %v3900_v56 = vsub.f32 %v239_v3, %v495_v14 }
  0xdf   :  { %v248_v4 = vld [vmem:[#allocation2 + $0xd0] sm:$0x1]  ;;  %v496_v2 = vld [vmem:[#allocation5 + $0xc8] sm:$0x1]  ;;  %v497_v10 = vld [vmem:[#allocation5 + $0xc9] sm:$0x1] }
  0xe0   :  { %7668 = vst [vmem:[#allocation262_spill] sm:$0xff] %v3874_v40  ;;  %v498_v16 = vld [vmem:[#allocation5 + $0xca] sm:$0x1]  ;;  %7670 = vst [vmem:[#allocation264_spill] sm:$0xff] %v3878_v43  ;;  %v249_v45 = vld [vmem:[#allocation2 + $0xd1] sm:$0x1]  ;;  %v3896_v43 = vsub.f32 %v237_v25, %v493_v19 }
  0xe1   :  { %7671 = vst [vmem:[#allocation265_spill] sm:$0xff] %v3880_v12  ;;  %v7672_v22 = vld [vmem:[#allocation96_spill] sm:$0xff]  ;;  %v250_v55 = vld [vmem:[#allocation2 + $0xd2] sm:$0x1]  ;;  %v251_v26 = vld [vmem:[#allocation2 + $0xd3] sm:$0x1]  ;;  %v3910_v25 = vsub.f32 %v242_v46, %v498_v16 }
  0xe2   :  { %v3884_v23 = vadd.f32 %v7672_v22, %v3456_v27  ;;  %v499_v31 = vld [vmem:[#allocation5 + $0xcb] sm:$0x1]  ;;  %v500_v40 = vld [vmem:[#allocation5 + $0xcc] sm:$0x1]  ;;  %v501_v48 = vld [vmem:[#allocation5 + $0xcd] sm:$0x1] }
  0xe3   :  { %7674 = vst [vmem:[#allocation267_spill] sm:$0xff] %v3886_v62  ;;  %7675 = vst [vmem:[#allocation268_spill] sm:$0xff] %v3888_v54  ;;  %v7677_v6 = vld [vmem:[#allocation97_spill] sm:$0xff]  ;;  %v502_v27 = vld [vmem:[#allocation5 + $0xce] sm:$0x1]  ;;  %v3908_v54 = vsub.f32 %v241_v5, %v497_v10 }
  0xe4   :  { %7673 = vst [vmem:[#allocation266_spill] sm:$0xff] %v3884_v23  ;;  %7676 = vst [vmem:[#allocation269_spill] sm:$0xff] %v3890_v20  ;;  %v3894_v35 = vadd.f32 %v7677_v6, %v7672_v22  ;;  %v252_v15 = vld [vmem:[#allocation2 + $0xd4] sm:$0x1]  ;;  %v253_v57 = vld [vmem:[#allocation2 + $0xd5] sm:$0x1]  ;;  %v3904_v50 = vadd.f32 %v3466_v42, %v7677_v6  ;;  %v3906_v20 = vsub.f32 %v240_v39, %v496_v2 }
  0xe5   :  { %v254_v21 = vld [vmem:[#allocation2 + $0xd6] sm:$0x1]  ;;  %v503_v23 = vld [vmem:[#allocation5 + $0xcf] sm:$0x1]  ;;  %v504_v12 = vld [vmem:[#allocation5 + $0xd0] sm:$0x1]  ;;  %v3920_v39 = vsub.f32 %v245_v47, %v501_v48 }
  0xe6   :  { %7678 = vst [vmem:[#allocation270_spill] sm:$0xff] %v3894_v35  ;;  %7679 = vst [vmem:[#allocation271_spill] sm:$0xff] %v3896_v43  ;;  %v255_v38 = vld [vmem:[#allocation2 + $0xd7] sm:$0x1]  ;;  %v256_v24 = vld [vmem:[#allocation2 + $0xd8] sm:$0x1]  ;;  %v3918_v43 = vsub.f32 %v244_v49, %v500_v40 }
  0xe7   :  { %7680 = vst [vmem:[#allocation272_spill] sm:$0xff] %v3898_v9  ;;  %7681 = vst [vmem:[#allocation273_spill] sm:$0xff] %v3900_v56  ;;  %v257_v52 = vld [vmem:[#allocation2 + $0xd9] sm:$0x1]  ;;  %v505_v33 = vld [vmem:[#allocation5 + $0xd1] sm:$0x1]  ;;  %v3916_v9 = vsub.f32 %v243_v58, %v499_v31  ;;  %v3930_v58 = vsub.f32 %v248_v4, %v504_v12 }
  0xe8   :  { %7682 = vst [vmem:[#allocation274_spill] sm:$0xff] %v3904_v50  ;;  %v506_v35 = vld [vmem:[#allocation5 + $0xd2] sm:$0x1]  ;;  %v507_v22 = vld [vmem:[#allocation5 + $0xd3] sm:$0x1]  ;;  %7683 = vst [vmem:[#allocation275_spill] sm:$0xff] %v3906_v20  ;;  %v3928_v20 = vsub.f32 %v247_v30, %v503_v23 }
  0xe9   :  { %7684 = vst [vmem:[#allocation276_spill] sm:$0xff] %v3908_v54  ;;  %7685 = vst [vmem:[#allocation277_spill] sm:$0xff] %v3910_v25  ;;  %v7686_v63 = vld [vmem:[#allocation100_spill] sm:$0xff]  ;;  %v258_v3 = vld [vmem:[#allocation2 + $0xda] sm:$0x1]  ;;  %v3926_v54 = vsub.f32 %v246_v8, %v502_v27  ;;  %v3940_v27 = vsub.f32 %v251_v26, %v507_v22 }
  0xea   :  { %v3914_v1 = vadd.f32 %v7686_v63, %v3466_v42  ;;  %v259_v14 = vld [vmem:[#allocation2 + $0xdb] sm:$0x1]  ;;  %v260_v19 = vld [vmem:[#allocation2 + $0xdc] sm:$0x1]  ;;  %v508_v50 = vld [vmem:[#allocation5 + $0xd4] sm:$0x1] }
  0xeb   :  { %v509_v6 = vld [vmem:[#allocation5 + $0xd5] sm:$0x1]  ;;  %v510_v56 = vld [vmem:[#allocation5 + $0xd6] sm:$0x1]  ;;  %7688 = vst [vmem:[#allocation279_spill] sm:$0xff] %v3916_v9  ;;  %7689 = vst [vmem:[#allocation280_spill] sm:$0xff] %v3918_v43  ;;  %v3938_v43 = vsub.f32 %v250_v55, %v506_v35 }
  0xec   :  { %7687 = vst [vmem:[#allocation278_spill] sm:$0xff] %v3914_v1  ;;  %7690 = vst [vmem:[#allocation281_spill] sm:$0xff] %v3920_v39  ;;  %v7691_v5 = vld [vmem:[#allocation101_spill] sm:$0xff]  ;;  %v261_v46 = vld [vmem:[#allocation2 + $0xdd] sm:$0x1]  ;;  %v3936_v39 = vsub.f32 %v249_v45, %v505_v33  ;;  %v3950_v45 = vsub.f32 %v254_v21, %v510_v56 }
  0xed   :  { %v3924_v16 = vadd.f32 %v7691_v5, %v7686_v63  ;;  %v262_v10 = vld [vmem:[#allocation2 + $0xde] sm:$0x1]  ;;  %v263_v2 = vld [vmem:[#allocation2 + $0xdf] sm:$0x1]  ;;  %v511_v1 = vld [vmem:[#allocation5 + $0xd7] sm:$0x1]  ;;  %v3934_v49 = vadd.f32 %v3476_v61, %v7691_v5 }
  0xee   :  { %v512_v42 = vld [vmem:[#allocation5 + $0xd8] sm:$0x1]  ;;  %v513_v25 = vld [vmem:[#allocation5 + $0xd9] sm:$0x1]  ;;  %7693 = vst [vmem:[#allocation283_spill] sm:$0xff] %v3926_v54  ;;  %7694 = vst [vmem:[#allocation284_spill] sm:$0xff] %v3928_v20  ;;  %v3946_v20 = vsub.f32 %v252_v15, %v508_v50  ;;  %v3948_v54 = vsub.f32 %v253_v57, %v509_v6 }
  0xef   :  { %7692 = vst [vmem:[#allocation282_spill] sm:$0xff] %v3924_v16  ;;  %7695 = vst [vmem:[#allocation285_spill] sm:$0xff] %v3930_v58  ;;  %v264_v47 = vld [vmem:[#allocation2 + $0xe0] sm:$0x1]  ;;  %v265_v48 = vld [vmem:[#allocation2 + $0xe1] sm:$0x1]  ;;  %v3960_v15 = vsub.f32 %v257_v52, %v513_v25 }
  0xf0   :  { %7696 = vst [vmem:[#allocation286_spill] sm:$0xff] %v3934_v49  ;;  %v266_v31 = vld [vmem:[#allocation2 + $0xe2] sm:$0x1]  ;;  %v514_v40 = vld [vmem:[#allocation5 + $0xda] sm:$0x1]  ;;  %7697 = vst [vmem:[#allocation287_spill] sm:$0xff] %v3936_v39  ;;  %v3958_v39 = vsub.f32 %v256_v24, %v512_v42 }
  0xf1   :  { %v515_v16 = vld [vmem:[#allocation5 + $0xdb] sm:$0x1]  ;;  %v516_v63 = vld [vmem:[#allocation5 + $0xdc] sm:$0x1]  ;;  %7698 = vst [vmem:[#allocation288_spill] sm:$0xff] %v3938_v43  ;;  %7699 = vst [vmem:[#allocation289_spill] sm:$0xff] %v3940_v27  ;;  %v3956_v43 = vsub.f32 %v255_v38, %v511_v1 }
  0xf2   :  { %v7700_v8 = vld [vmem:[#allocation104_spill] sm:$0xff]  ;;  %v267_v4 = vld [vmem:[#allocation2 + $0xe3] sm:$0x1]  ;;  %v268_v12 = vld [vmem:[#allocation2 + $0xe4] sm:$0x1]  ;;  %7702 = vst [vmem:[#allocation291_spill] sm:$0xff] %v3946_v20  ;;  %v3970_v38 = vsub.f32 %v260_v19, %v516_v63 }
  0xf3   :  { %v3944_v30 = vadd.f32 %v7700_v8, %v3476_v61  ;;  %v269_v23 = vld [vmem:[#allocation2 + $0xe5] sm:$0x1]  ;;  %v517_v49 = vld [vmem:[#allocation5 + $0xdd] sm:$0x1]  ;;  %v518_v5 = vld [vmem:[#allocation5 + $0xde] sm:$0x1] }
  0xf4   :  { %v519_v58 = vld [vmem:[#allocation5 + $0xdf] sm:$0x1]  ;;  %7703 = vst [vmem:[#allocation292_spill] sm:$0xff] %v3948_v54  ;;  %7704 = vst [vmem:[#allocation293_spill] sm:$0xff] %v3950_v45  ;;  %v7705_v55 = vld [vmem:[#allocation105_spill] sm:$0xff]  ;;  %v3966_v45 = vsub.f32 %v258_v3, %v514_v40  ;;  %v3968_v54 = vsub.f32 %v259_v14, %v515_v16 }
  0xf5   :  { %7701 = vst [vmem:[#allocation290_spill] sm:$0xff] %v3944_v30  ;;  %v3954_v22 = vadd.f32 %v7705_v55, %v7700_v8  ;;  %v270_v26 = vld [vmem:[#allocation2 + $0xe6] sm:$0x1]  ;;  %v271_v35 = vld [vmem:[#allocation2 + $0xe7] sm:$0x1]  ;;  %7707 = vst [vmem:[#allocation295_spill] sm:$0xff] %v3956_v43  ;;  %v3964_v6 = vadd.f32 %v3486_v7, %v7705_v55  ;;  %v3978_v43 = vsub.f32 %v262_v10, %v518_v5 }
  0xf6   :  { %v272_v33 = vld [vmem:[#allocation2 + $0xe8] sm:$0x1]  ;;  %v520_v30 = vld [vmem:[#allocation5 + $0xe0] sm:$0x1]  ;;  %v521_v61 = vld [vmem:[#allocation5 + $0xe1] sm:$0x1]  ;;  %v3980_v3 = vsub.f32 %v263_v2, %v519_v58 }
  0xf7   :  { %7706 = vst [vmem:[#allocation294_spill] sm:$0xff] %v3954_v22  ;;  %v522_v27 = vld [vmem:[#allocation5 + $0xe2] sm:$0x1]  ;;  %7708 = vst [vmem:[#allocation296_spill] sm:$0xff] %v3958_v39  ;;  %v273_v57 = vld [vmem:[#allocation2 + $0xe9] sm:$0x1]  ;;  %v3976_v39 = vsub.f32 %v261_v46, %v517_v49 }
  0xf8   :  { %7709 = vst [vmem:[#allocation297_spill] sm:$0xff] %v3960_v15  ;;  %7710 = vst [vmem:[#allocation298_spill] sm:$0xff] %v3964_v6  ;;  %v274_v21 = vld [vmem:[#allocation2 + $0xea] sm:$0x1]  ;;  %v275_v56 = vld [vmem:[#allocation2 + $0xeb] sm:$0x1]  ;;  %v3990_v46 = vsub.f32 %v266_v31, %v522_v27 }
  0xf9   :  { %v523_v50 = vld [vmem:[#allocation5 + $0xe3] sm:$0x1]  ;;  %v524_v22 = vld [vmem:[#allocation5 + $0xe4] sm:$0x1]  ;;  %v525_v8 = vld [vmem:[#allocation5 + $0xe5] sm:$0x1] }
  0xfa   :  { %7711 = vst [vmem:[#allocation299_spill] sm:$0xff] %v3966_v45  ;;  %7712 = vst [vmem:[#allocation300_spill] sm:$0xff] %v3968_v54  ;;  %v7714_v42 = vld [vmem:[#allocation108_spill] sm:$0xff]  ;;  %v526_v6 = vld [vmem:[#allocation5 + $0xe6] sm:$0x1]  ;;  %v3986_v54 = vsub.f32 %v264_v47, %v520_v30  ;;  %v3988_v45 = vsub.f32 %v265_v48, %v521_v61  ;;  %v4000_v47 = vsub.f32 %v269_v23, %v525_v8 }
  0xfb   :  { %7713 = vst [vmem:[#allocation301_spill] sm:$0xff] %v3970_v38  ;;  %v3974_v24 = vadd.f32 %v7714_v42, %v3486_v7  ;;  %v276_v52 = vld [vmem:[#allocation2 + $0xec] sm:$0x1]  ;;  %v277_v25 = vld [vmem:[#allocation2 + $0xed] sm:$0x1]  ;;  %7716 = vst [vmem:[#allocation303_spill] sm:$0xff] %v3976_v39 }
  0xfc   :  { %v278_v1 = vld [vmem:[#allocation2 + $0xee] sm:$0x1]  ;;  %v527_v55 = vld [vmem:[#allocation5 + $0xe7] sm:$0x1]  ;;  %v528_v15 = vld [vmem:[#allocation5 + $0xe8] sm:$0x1] }
  0xfd   :  { %7715 = vst [vmem:[#allocation302_spill] sm:$0xff] %v3974_v24  ;;  %7717 = vst [vmem:[#allocation304_spill] sm:$0xff] %v3978_v43  ;;  %v7719_v14 = vld [vmem:[#allocation109_spill] sm:$0xff]  ;;  %v279_v19 = vld [vmem:[#allocation2 + $0xef] sm:$0x1]  ;;  %v3998_v43 = vsub.f32 %v268_v12, %v524_v22 }
  0xfe   :  { %7718 = vst [vmem:[#allocation305_spill] sm:$0xff] %v3980_v3  ;;  %v3984_v63 = vadd.f32 %v7719_v14, %v7714_v42  ;;  %v280_v16 = vld [vmem:[#allocation2 + $0xf0] sm:$0x1]  ;;  %v281_v40 = vld [vmem:[#allocation2 + $0xf1] sm:$0x1]  ;;  %7721 = vst [vmem:[#allocation307_spill] sm:$0xff] %v3986_v54  ;;  %v3994_v5 = vadd.f32 %v3496_v17, %v7719_v14  ;;  %v3996_v3 = vsub.f32 %v267_v4, %v523_v50 }
  0xff   :  { %v529_v24 = vld [vmem:[#allocation5 + $0xe9] sm:$0x1]  ;;  %v530_v7 = vld [vmem:[#allocation5 + $0xea] sm:$0x1]  ;;  %v531_v38 = vld [vmem:[#allocation5 + $0xeb] sm:$0x1]  ;;  %v4008_v54 = vsub.f32 %v271_v35, %v527_v55  ;;  %v4010_v4 = vsub.f32 %v272_v33, %v528_v15 }
 0x100   :  { %7720 = vst [vmem:[#allocation306_spill] sm:$0xff] %v3984_v63  ;;  %7722 = vst [vmem:[#allocation308_spill] sm:$0xff] %v3988_v45  ;;  %v282_v10 = vld [vmem:[#allocation2 + $0xf2] sm:$0x1]  ;;  %v283_v2 = vld [vmem:[#allocation2 + $0xf3] sm:$0x1]  ;;  %v4006_v45 = vsub.f32 %v270_v26, %v526_v6  ;;  %v4020_v26 = vsub.f32 %v275_v56, %v531_v38 }
 0x101   :  { %7723 = vst [vmem:[#allocation309_spill] sm:$0xff] %v3990_v46  ;;  %7724 = vst [vmem:[#allocation310_spill] sm:$0xff] %v3994_v5  ;;  %v284_v58 = vld [vmem:[#allocation2 + $0xf4] sm:$0x1]  ;;  %v532_v49 = vld [vmem:[#allocation5 + $0xec] sm:$0x1] }
 0x102   :  { %v533_v63 = vld [vmem:[#allocation5 + $0xed] sm:$0x1]  ;;  %v534_v42 = vld [vmem:[#allocation5 + $0xee] sm:$0x1]  ;;  %7725 = vst [vmem:[#allocation311_spill] sm:$0xff] %v3996_v3  ;;  %7726 = vst [vmem:[#allocation312_spill] sm:$0xff] %v3998_v43  ;;  %v4016_v43 = vsub.f32 %v273_v57, %v529_v24  ;;  %v4018_v3 = vsub.f32 %v274_v21, %v530_v7 }
 0x103   :  { %7727 = vst [vmem:[#allocation313_spill] sm:$0xff] %v4000_v47  ;;  %v7728_v61 = vld [vmem:[#allocation112_spill] sm:$0xff]  ;;  %v285_v31 = vld [vmem:[#allocation2 + $0xf5] sm:$0x1]  ;;  %v286_v27 = vld [vmem:[#allocation2 + $0xf6] sm:$0x1]  ;;  %v4030_v57 = vsub.f32 %v278_v1, %v534_v42 }
 0x104   :  { %v4004_v48 = vadd.f32 %v7728_v61, %v3496_v17  ;;  %v287_v30 = vld [vmem:[#allocation2 + $0xf7] sm:$0x1]  ;;  %v535_v5 = vld [vmem:[#allocation5 + $0xef] sm:$0x1]  ;;  %v536_v14 = vld [vmem:[#allocation5 + $0xf0] sm:$0x1] }
 0x105   :  { %v537_v46 = vld [vmem:[#allocation5 + $0xf1] sm:$0x1]  ;;  %7730 = vst [vmem:[#allocation315_spill] sm:$0xff] %v4006_v45  ;;  %7731 = vst [vmem:[#allocation316_spill] sm:$0xff] %v4008_v54  ;;  %v7733_v12 = vld [vmem:[#allocation113_spill] sm:$0xff]  ;;  %v4028_v54 = vsub.f32 %v277_v25, %v533_v63 }
 0x106   :  { %7729 = vst [vmem:[#allocation314_spill] sm:$0xff] %v4004_v48  ;;  %7732 = vst [vmem:[#allocation317_spill] sm:$0xff] %v4010_v4  ;;  %v4014_v8 = vadd.f32 %v7733_v12, %v7728_v61  ;;  %v288_v23 = vld [vmem:[#allocation2 + $0xf8] sm:$0x1]  ;;  %v289_v22 = vld [vmem:[#allocation2 + $0xf9] sm:$0x1]  ;;  %v4026_v61 = vsub.f32 %v276_v52, %v532_v49 }
 0x107   :  { %v290_v50 = vld [vmem:[#allocation2 + $0xfa] sm:$0x1]  ;;  %v538_v48 = vld [vmem:[#allocation5 + $0xf2] sm:$0x1]  ;;  %v539_v17 = vld [vmem:[#allocation5 + $0xf3] sm:$0x1] }
 0x108   :  { %7734 = vst [vmem:[#allocation318_spill] sm:$0xff] %v4014_v8  ;;  %v540_v47 = vld [vmem:[#allocation5 + $0xf4] sm:$0x1]  ;;  %7735 = vst [vmem:[#allocation319_spill] sm:$0xff] %v4016_v43  ;;  %v7738_v55 = vld [vmem:[#allocation116_spill] sm:$0xff]  ;;  %v4046_v63 = vsub.f32 %v282_v10, %v538_v48  ;;  %v4048_v49 = vsub.f32 %v283_v2, %v539_v17 }
 0x109   :  { %7736 = vst [vmem:[#allocation320_spill] sm:$0xff] %v4018_v3  ;;  %7737 = vst [vmem:[#allocation321_spill] sm:$0xff] %v4020_v26  ;;  %v4024_v35 = vadd.f32 %v7738_v55, %v3506_v29  ;;  %v291_v33 = vld [vmem:[#allocation2 + $0xfb] sm:$0x1]  ;;  %v292_v15 = vld [vmem:[#allocation2 + $0xfc] sm:$0x1]  ;;  %v4036_v26 = vsub.f32 %v279_v19, %v535_v5  ;;  %v4038_v3 = vsub.f32 %v280_v16, %v536_v14 }
 0x10a   :  { %v293_v6 = vld [vmem:[#allocation2 + $0xfd] sm:$0x1]  ;;  %v541_v8 = vld [vmem:[#allocation5 + $0xf5] sm:$0x1]  ;;  %v542_v4 = vld [vmem:[#allocation5 + $0xf6] sm:$0x1] }
 0x10b   :  { %7739 = vst [vmem:[#allocation322_spill] sm:$0xff] %v4024_v35  ;;  %v543_v12 = vld [vmem:[#allocation5 + $0xf7] sm:$0x1]  ;;  %7740 = vst [vmem:[#allocation323_spill] sm:$0xff] %v4026_v61  ;;  %v294_v56 = vld [vmem:[#allocation2 + $0xfe] sm:$0x1]  ;;  %v4040_v35 = vsub.f32 %v281_v40, %v537_v46  ;;  %v4056_v46 = vsub.f32 %v285_v31, %v541_v8 }
 0x10c   :  { %7741 = vst [vmem:[#allocation324_spill] sm:$0xff] %v4028_v54  ;;  %7742 = vst [vmem:[#allocation325_spill] sm:$0xff] %v4030_v57  ;;  %v7743_v7 = vld [vmem:[#allocation117_spill] sm:$0xff]  ;;  %v546_v29 = vld [vmem:[#allocation5 + $0xfa] sm:$0x1]  ;;  %v4050_v57 = vsub.f32 %v284_v58, %v540_v47 }
 0x10d   :  { %v4034_v21 = vadd.f32 %v7743_v7, %v7738_v55  ;;  %v544_v38 = vld [vmem:[#allocation5 + $0xf8] sm:$0x1]  ;;  %v545_v24 = vld [vmem:[#allocation5 + $0xf9] sm:$0x1]  ;;  %7745 = vst [vmem:[#allocation327_spill] sm:$0xff] %v4036_v26  ;;  %7746 = vst [vmem:[#allocation328_spill] sm:$0xff] %v4038_v3  ;;  %v4044_v52 = vadd.f32 %v3516_v51, %v7743_v7  ;;  %v4060_v3 = vsub.f32 %v287_v30, %v543_v12 }
 0x10e   :  { %7747 = vst [vmem:[#allocation329_spill] sm:$0xff] %v4040_v35  ;;  %v547_v42 = vld [vmem:[#allocation5 + $0xfb] sm:$0x1]  ;;  %v548_v25 = vld [vmem:[#allocation5 + $0xfc] sm:$0x1]  ;;  %7749 = vst [vmem:[#allocation331_spill] sm:$0xff] %v4046_v63  ;;  %v4058_v35 = vsub.f32 %v286_v27, %v542_v4  ;;  %v4066_v17 = vsub.f32 %v288_v23, %v544_v38  ;;  %v4068_v2 = vsub.f32 %v289_v22, %v545_v24 }
 0x10f   :  { %7744 = vst [vmem:[#allocation326_spill] sm:$0xff] %v4034_v21  ;;  %7748 = vst [vmem:[#allocation330_spill] sm:$0xff] %v4044_v52  ;;  %v549_v1 = vld [vmem:[#allocation5 + $0xfd] sm:$0x1]  ;;  %v7752_v19 = vld [vmem:[#allocation120_spill] sm:$0xff]  ;;  %v4070_v58 = vsub.f32 %v290_v50, %v546_v29  ;;  %v4076_v31 = vsub.f32 %v291_v33, %v547_v42  ;;  %v4078_v27 = vsub.f32 %v292_v15, %v548_v25 }
 0x110   :  { %7750 = vst [vmem:[#allocation332_spill] sm:$0xff] %v4048_v49  ;;  %7751 = vst [vmem:[#allocation333_spill] sm:$0xff] %v4050_v57  ;;  %v4054_v5 = vadd.f32 %v7752_v19, %v3516_v51  ;;  %v295_v14 = vld [vmem:[#allocation2 + $0xff] sm:$0x1]  ;;  %v550_v16 = vld [vmem:[#allocation5 + $0xfe] sm:$0x1]  ;;  %v4080_v30 = vsub.f32 %v293_v6, %v549_v1 }
 0x111   :  { %v551_v40 = vld [vmem:[#allocation5 + $0xff] sm:$0x1]  ;;  %7754 = vst [vmem:[#allocation335_spill] sm:$0xff] %v4056_v46  ;;  %7755 = vst [vmem:[#allocation336_spill] sm:$0xff] %v4058_v35  ;;  %v7757_v10 = vld [vmem:[#allocation121_spill] sm:$0xff]  ;;  %v4086_v8 = vsub.f32 %v294_v56, %v550_v16 }
 0x112   :  { %7753 = vst [vmem:[#allocation334_spill] sm:$0xff] %v4054_v5  ;;  %7756 = vst [vmem:[#allocation337_spill] sm:$0xff] %v4060_v3  ;;  %v4064_v48 = vadd.f32 %v7757_v10, %v7752_v19  ;;  %v4074_v47 = vadd.f32 %v3526_v28, %v7757_v10  ;;  %v7766_v4 = vld [vmem:[#allocation124_spill] sm:$0xff]  ;;  %v4088_v23 = vsub.f32 %v295_v14, %v551_v40  ;;  %v7770_v29 = vld [vmem:[#allocation125_spill] sm:$0xff] }
 0x113   :  { %7759 = vst [vmem:[#allocation339_spill] sm:$0xff] %v4066_v17  ;;  %7760 = vst [vmem:[#allocation340_spill] sm:$0xff] %v4068_v2  ;;  %v4084_v12 = vadd.f32 %v7766_v4, %v3526_v28  ;;  %v4092_v22 = vadd.f32 %v7770_v29, %v7766_v4  ;;  %v7772_v50 = vld [vmem:[#allocation127_spill] sm:$0xff]  ;;  %v7774_v15 = vld [vmem:[#allocation128_spill] sm:$0xff] }
 0x114   :  { %7758 = vst [vmem:[#allocation338_spill] sm:$0xff] %v4064_v48  ;;  %7761 = vst [vmem:[#allocation341_spill] sm:$0xff] %v4070_v58  ;;  %v4096_v33 = vadd.f32 %v7772_v50, %v7770_v29  ;;  %v4100_v6 = vadd.f32 %v7774_v15, %v7772_v50  ;;  %v7776_v38 = vld [vmem:[#allocation129_spill] sm:$0xff]  ;;  %v7778_v56 = vld [vmem:[#allocation131_spill] sm:$0xff] }
 0x115   :  { %7762 = vst [vmem:[#allocation342_spill] sm:$0xff] %v4074_v47  ;;  %7763 = vst [vmem:[#allocation343_spill] sm:$0xff] %v4076_v31  ;;  %v4104_v24 = vadd.f32 %v7776_v38, %v7774_v15  ;;  %v4108_v42 = vadd.f32 %v7778_v56, %v7776_v38  ;;  %v7780_v25 = vld [vmem:[#allocation132_spill] sm:$0xff]  ;;  %v7782_v14 = vld [vmem:[#allocation133_spill] sm:$0xff] }
 0x116   :  { %7764 = vst [vmem:[#allocation344_spill] sm:$0xff] %v4078_v27  ;;  %7765 = vst [vmem:[#allocation345_spill] sm:$0xff] %v4080_v30  ;;  %v4112_v1 = vadd.f32 %v7780_v25, %v7778_v56  ;;  %v4116_v16 = vadd.f32 %v7782_v14, %v7780_v25  ;;  %v4120_v40 = vadd.f32 %v3556_v37, %v7782_v14  ;;  %v7788_v27 = vld [vmem:[#allocation139_spill] sm:$0xff]  ;;  %v7790_v58 = vld [vmem:[#allocation140_spill] sm:$0xff] }
 0x117   :  { %7767 = vst [vmem:[#allocation346_spill] sm:$0xff] %v4084_v12  ;;  %7768 = vst [vmem:[#allocation347_spill] sm:$0xff] %v4086_v8  ;;  %v7786_v8 = vld [vmem:[#allocation137_spill] sm:$0xff]  ;;  %v4132_v2 = vadd.f32 %v7790_v58, %v7788_v27  ;;  %v7795_v46 = vld [vmem:[#allocation144_spill] sm:$0xff] }
 0x118   :  { %7769 = vst [vmem:[#allocation348_spill] sm:$0xff] %v4088_v23  ;;  %7771 = vst [vmem:[#allocation349_spill] sm:$0xff] %v4092_v22  ;;  %v7785_v23 = vld [vmem:[#allocation136_spill] sm:$0xff]  ;;  %v4128_v31 = vadd.f32 %v7788_v27, %v7786_v8  ;;  %v7792_v17 = vld [vmem:[#allocation141_spill] sm:$0xff]  ;;  %v4144_v57 = vadd.f32 %v7795_v46, %v3576_v34 }
 0x119   :  { %7773 = vst [vmem:[#allocation350_spill] sm:$0xff] %v4096_v33  ;;  %7775 = vst [vmem:[#allocation351_spill] sm:$0xff] %v4100_v6  ;;  %v4124_v30 = vadd.f32 %v7786_v8, %v7785_v23  ;;  %v4136_v3 = vadd.f32 %v7792_v17, %v7790_v58  ;;  %v4140_v35 = vadd.f32 %v3576_v34, %v7792_v17  ;;  %v7797_v49 = vld [vmem:[#allocation145_spill] sm:$0xff]  ;;  %v7799_v26 = vld [vmem:[#allocation147_spill] sm:$0xff] }
 0x11a   :  { %7777 = vst [vmem:[#allocation352_spill] sm:$0xff] %v4104_v24  ;;  %7779 = vst [vmem:[#allocation353_spill] sm:$0xff] %v4108_v42  ;;  %v4148_v63 = vadd.f32 %v7797_v49, %v7795_v46  ;;  %v4152_v8 = vadd.f32 %v7799_v26, %v7797_v49  ;;  %v7801_v23 = vld [vmem:[#allocation148_spill] sm:$0xff]  ;;  %v7803_v61 = vld [vmem:[#allocation149_spill] sm:$0xff] }
 0x11b   :  { %7781 = vst [vmem:[#allocation354_spill] sm:$0xff] %v4112_v1  ;;  %7783 = vst [vmem:[#allocation355_spill] sm:$0xff] %v4116_v16  ;;  %v4156_v54 = vadd.f32 %v7801_v23, %v7799_v26  ;;  %v7815_v26 = vld [vmem:[#allocation159_spill] sm:$0xff]  ;;  %v7990_v58 = vld [vmem:[#allocation273_spill] sm:$0xff] }
 0x11c   :  { %7784 = vst [vmem:[#allocation356_spill] sm:$0xff] %v4120_v40  ;;  %7787 = vst [vmem:[#allocation357_spill] sm:$0xff] %v4124_v30  ;;  %v7992_v40 = vld [vmem:[#allocation275_spill] sm:$0xff]  ;;  %v8001_v37 = vld [vmem:[#allocation98_spill] sm:$0xff] }
 0x11d   :  { %7789 = vst [vmem:[#allocation358_spill] sm:$0xff] %v4128_v31  ;;  %7791 = vst [vmem:[#allocation359_spill] sm:$0xff] %v4132_v2  ;;  %v8015_v24 = vld [vmem:[#allocation19_spill] sm:$0xff]  ;;  %v8018_v6 = vld [vmem:[#allocation106_spill] sm:$0xff] }
 0x11e   :  { %7793 = vst [vmem:[#allocation360_spill] sm:$0xff] %v4136_v3  ;;  %7794 = vst [vmem:[#allocation361_spill] sm:$0xff] %v4140_v35  ;;  %v4160_v3 = vadd.f32 %v7803_v61, %v7801_v23  ;;  %v7805_v35 = vld [vmem:[#allocation151_spill] sm:$0xff]  ;;  %v8022_v33 = vld [vmem:[#allocation41_spill] sm:$0xff] }
 0x11f   :  { %7796 = vst [vmem:[#allocation362_spill] sm:$0xff] %v4144_v57  ;;  %7798 = vst [vmem:[#allocation363_spill] sm:$0xff] %v4148_v63  ;;  %v4164_v34 = vadd.f32 %v7805_v35, %v7803_v61  ;;  %v7807_v57 = vld [vmem:[#allocation152_spill] sm:$0xff]  ;;  %v7809_v63 = vld [vmem:[#allocation153_spill] sm:$0xff] }
 0x120   :  { %7800 = vst [vmem:[#allocation364_spill] sm:$0xff] %v4152_v8  ;;  %7802 = vst [vmem:[#allocation365_spill] sm:$0xff] %v4156_v54  ;;  %v4168_v46 = vadd.f32 %v7807_v57, %v7805_v35  ;;  %v4172_v49 = vadd.f32 %v7809_v63, %v7807_v57  ;;  %v4176_v8 = vadd.f32 %v3606_v60, %v7809_v63  ;;  %v7812_v54 = vld [vmem:[#allocation156_spill] sm:$0xff]  ;;  %v8026_v12 = vld [vmem:[#allocation54_spill] sm:$0xff] }
 0x121   :  { %7804 = vst [vmem:[#allocation366_spill] sm:$0xff] %v4160_v3  ;;  %7806 = vst [vmem:[#allocation367_spill] sm:$0xff] %v4164_v34  ;;  %v4180_v23 = vadd.f32 %v7812_v54, %v3606_v60  ;;  %v7814_v3 = vld [vmem:[#allocation157_spill] sm:$0xff]  ;;  %v7817_v34 = vld [vmem:[#allocation160_spill] sm:$0xff] }
 0x122   :  { %7808 = vst [vmem:[#allocation368_spill] sm:$0xff] %v4168_v46  ;;  %7810 = vst [vmem:[#allocation369_spill] sm:$0xff] %v4172_v49  ;;  %v4184_v61 = vadd.f32 %v7815_v26, %v7814_v3  ;;  %v4188_v35 = vadd.f32 %v7817_v34, %v7815_v26  ;;  %v7819_v46 = vld [vmem:[#allocation161_spill] sm:$0xff]  ;;  %v7821_v49 = vld [vmem:[#allocation163_spill] sm:$0xff] }
 0x123   :  { %7811 = vst [vmem:[#allocation370_spill] sm:$0xff] %v4176_v8  ;;  %7813 = vst [vmem:[#allocation371_spill] sm:$0xff] %v4180_v23  ;;  %v4192_v57 = vadd.f32 %v7819_v46, %v7817_v34  ;;  %v4196_v63 = vadd.f32 %v7821_v49, %v7819_v46  ;;  %v7823_v8 = vld [vmem:[#allocation164_spill] sm:$0xff]  ;;  %v7825_v23 = vld [vmem:[#allocation165_spill] sm:$0xff] }
 0x124   :  { %7816 = vst [vmem:[#allocation372_spill] sm:$0xff] %v4184_v61  ;;  %7818 = vst [vmem:[#allocation373_spill] sm:$0xff] %v4188_v35  ;;  %v4200_v54 = vadd.f32 %v7823_v8, %v7821_v49  ;;  %v4204_v3 = vadd.f32 %v7825_v23, %v7823_v8  ;;  %v4208_v26 = vadd.f32 %v3636_v32, %v7825_v23  ;;  %v7828_v35 = vld [vmem:[#allocation168_spill] sm:$0xff]  ;;  %v7980_v34 = vld [vmem:[#allocation30_spill] sm:$0xff] }
 0x125   :  { %7820 = vst [vmem:[#allocation374_spill] sm:$0xff] %v4192_v57  ;;  %7822 = vst [vmem:[#allocation375_spill] sm:$0xff] %v4196_v63  ;;  %v4212_v61 = vadd.f32 %v7828_v35, %v3636_v32  ;;  %v7830_v57 = vld [vmem:[#allocation169_spill] sm:$0xff]  ;;  %v7832_v63 = vld [vmem:[#allocation171_spill] sm:$0xff] }
 0x126   :  { %7824 = vst [vmem:[#allocation376_spill] sm:$0xff] %v4200_v54  ;;  %7826 = vst [vmem:[#allocation377_spill] sm:$0xff] %v4204_v3  ;;  %v4216_v46 = vadd.f32 %v7830_v57, %v7828_v35  ;;  %v4220_v49 = vadd.f32 %v7832_v63, %v7830_v57  ;;  %v7834_v54 = vld [vmem:[#allocation172_spill] sm:$0xff]  ;;  %v7836_v3 = vld [vmem:[#allocation173_spill] sm:$0xff] }
 0x127   :  { %7827 = vst [vmem:[#allocation378_spill] sm:$0xff] %v4208_v26  ;;  %7829 = vst [vmem:[#allocation379_spill] sm:$0xff] %v4212_v61  ;;  %v4224_v8 = vadd.f32 %v7834_v54, %v7832_v63  ;;  %v4228_v23 = vadd.f32 %v7836_v3, %v7834_v54  ;;  %v7838_v26 = vld [vmem:[#allocation175_spill] sm:$0xff]  ;;  %v7840_v61 = vld [vmem:[#allocation176_spill] sm:$0xff] }
 0x128   :  { %7831 = vst [vmem:[#allocation380_spill] sm:$0xff] %v4216_v46  ;;  %7833 = vst [vmem:[#allocation381_spill] sm:$0xff] %v4220_v49  ;;  %v4232_v32 = vadd.f32 %v7838_v26, %v7836_v3  ;;  %v4236_v35 = vadd.f32 %v7840_v61, %v7838_v26  ;;  %v7842_v46 = vld [vmem:[#allocation177_spill] sm:$0xff]  ;;  %v7844_v49 = vld [vmem:[#allocation180_spill] sm:$0xff] }
 0x129   :  { %7835 = vst [vmem:[#allocation382_spill] sm:$0xff] %v4224_v8  ;;  %7837 = vst [vmem:[#allocation383_spill] sm:$0xff] %v4228_v23  ;;  %v4240_v57 = vadd.f32 %v7842_v46, %v7840_v61  ;;  %v4244_v63 = vadd.f32 %v7844_v49, %v3666_v59  ;;  %v7846_v8 = vld [vmem:[#allocation181_spill] sm:$0xff]  ;;  %v7848_v23 = vld [vmem:[#allocation183_spill] sm:$0xff] }
 0x12a   :  { %7839 = vst [vmem:[#allocation384_spill] sm:$0xff] %v4232_v32  ;;  %7841 = vst [vmem:[#allocation385_spill] sm:$0xff] %v4236_v35  ;;  %v4248_v54 = vadd.f32 %v7846_v8, %v7844_v49  ;;  %v4252_v3 = vadd.f32 %v7848_v23, %v7846_v8  ;;  %v7850_v32 = vld [vmem:[#allocation184_spill] sm:$0xff]  ;;  %v7852_v35 = vld [vmem:[#allocation185_spill] sm:$0xff] }
 0x12b   :  { %7843 = vst [vmem:[#allocation386_spill] sm:$0xff] %v4240_v57  ;;  %7845 = vst [vmem:[#allocation387_spill] sm:$0xff] %v4244_v63  ;;  %v4256_v26 = vadd.f32 %v7850_v32, %v7848_v23  ;;  %v4260_v46 = vadd.f32 %v7852_v35, %v7850_v32  ;;  %v7854_v57 = vld [vmem:[#allocation187_spill] sm:$0xff]  ;;  %v7856_v63 = vld [vmem:[#allocation188_spill] sm:$0xff] }
 0x12c   :  { %7847 = vst [vmem:[#allocation388_spill] sm:$0xff] %v4248_v54  ;;  %7849 = vst [vmem:[#allocation389_spill] sm:$0xff] %v4252_v3  ;;  %v4264_v59 = vadd.f32 %v7854_v57, %v7852_v35  ;;  %v4268_v49 = vadd.f32 %v7856_v63, %v7854_v57  ;;  %v7858_v54 = vld [vmem:[#allocation189_spill] sm:$0xff]  ;;  %v7982_v60 = vld [vmem:[#allocation90_spill] sm:$0xff] }
 0x12d   :  { %7851 = vst [vmem:[#allocation390_spill] sm:$0xff] %v4256_v26  ;;  %7853 = vst [vmem:[#allocation391_spill] sm:$0xff] %v4260_v46  ;;  %v4272_v8 = vadd.f32 %v7858_v54, %v7856_v63  ;;  %v4276_v3 = vadd.f32 %v3696_v0, %v7858_v54  ;;  %v7861_v26 = vld [vmem:[#allocation192_spill] sm:$0xff]  ;;  %v7863_v46 = vld [vmem:[#allocation193_spill] sm:$0xff] }
 0x12e   :  { %7855 = vst [vmem:[#allocation392_spill] sm:$0xff] %v4264_v59  ;;  %7857 = vst [vmem:[#allocation393_spill] sm:$0xff] %v4268_v49  ;;  %v4280_v32 = vadd.f32 %v7861_v26, %v3696_v0  ;;  %v4284_v35 = vadd.f32 %v7863_v46, %v7861_v26  ;;  %v7865_v59 = vld [vmem:[#allocation195_spill] sm:$0xff]  ;;  %v7867_v49 = vld [vmem:[#allocation196_spill] sm:$0xff] }
 0x12f   :  { %7859 = vst [vmem:[#allocation394_spill] sm:$0xff] %v4272_v8  ;;  %7860 = vst [vmem:[#allocation395_spill] sm:$0xff] %v4276_v3  ;;  %v4288_v57 = vadd.f32 %v7865_v59, %v7863_v46  ;;  %v4292_v63 = vadd.f32 %v7867_v49, %v7865_v59  ;;  %v7869_v8 = vld [vmem:[#allocation197_spill] sm:$0xff]  ;;  %v8027_v29 = vld [vmem:[#allocation23_spill] sm:$0xff] }
 0x130   :  { %7862 = vst [vmem:[#allocation396_spill] sm:$0xff] %v4280_v32  ;;  %7864 = vst [vmem:[#allocation397_spill] sm:$0xff] %v4284_v35  ;;  %v4296_v54 = vadd.f32 %v7869_v8, %v7867_v49  ;;  %v4300_v3 = vadd.f32 %v3716_v53, %v7869_v8  ;;  %v7872_v32 = vld [vmem:[#allocation200_spill] sm:$0xff]  ;;  %v7873_v0 = vld [vmem:[#allocation201_spill] sm:$0xff] }
 0x131   :  { %7866 = vst [vmem:[#allocation398_spill] sm:$0xff] %v4288_v57  ;;  %7868 = vst [vmem:[#allocation399_spill] sm:$0xff] %v4292_v63  ;;  %v4304_v26 = vadd.f32 %v7873_v0, %v7872_v32  ;;  %v4308_v35 = vadd.f32 %v3726_v11, %v7873_v0  ;;  %v7876_v57 = vld [vmem:[#allocation204_spill] sm:$0xff]  ;;  %v7878_v63 = vld [vmem:[#allocation205_spill] sm:$0xff] }
 0x132   :  { %7870 = vst [vmem:[#allocation400_spill] sm:$0xff] %v4296_v54  ;;  %7871 = vst [vmem:[#allocation401_spill] sm:$0xff] %v4300_v3  ;;  %v4312_v59 = vadd.f32 %v7876_v57, %v3726_v11  ;;  %v4316_v49 = vadd.f32 %v7878_v63, %v7876_v57  ;;  %v7880_v54 = vld [vmem:[#allocation207_spill] sm:$0xff]  ;;  %v7882_v3 = vld [vmem:[#allocation208_spill] sm:$0xff] }
 0x133   :  { %7874 = vst [vmem:[#allocation402_spill] sm:$0xff] %v4304_v26  ;;  %7875 = vst [vmem:[#allocation403_spill] sm:$0xff] %v4308_v35  ;;  %v4320_v53 = vadd.f32 %v7880_v54, %v7878_v63  ;;  %v4324_v32 = vadd.f32 %v7882_v3, %v7880_v54  ;;  %v7884_v26 = vld [vmem:[#allocation209_spill] sm:$0xff]  ;;  %v7967_v8 = vld [vmem:[#allocation264_spill] sm:$0xff] }
 0x134   :  { %7877 = vst [vmem:[#allocation404_spill] sm:$0xff] %v4312_v59  ;;  %7879 = vst [vmem:[#allocation405_spill] sm:$0xff] %v4316_v49  ;;  %v4328_v0 = vadd.f32 %v7884_v26, %v7882_v3  ;;  %v4332_v35 = vadd.f32 %v3746_v41, %v7884_v26  ;;  %v7887_v59 = vld [vmem:[#allocation212_spill] sm:$0xff]  ;;  %v7889_v49 = vld [vmem:[#allocation213_spill] sm:$0xff] }
 0x135   :  { %7881 = vst [vmem:[#allocation406_spill] sm:$0xff] %v4320_v53  ;;  %7883 = vst [vmem:[#allocation407_spill] sm:$0xff] %v4324_v32  ;;  %v4336_v57 = vadd.f32 %v7887_v59, %v3746_v41  ;;  %v4340_v63 = vadd.f32 %v7889_v49, %v7887_v59  ;;  %v7891_v53 = vld [vmem:[#allocation215_spill] sm:$0xff]  ;;  %v7893_v32 = vld [vmem:[#allocation216_spill] sm:$0xff] }
 0x136   :  { %7885 = vst [vmem:[#allocation408_spill] sm:$0xff] %v4328_v0  ;;  %7886 = vst [vmem:[#allocation409_spill] sm:$0xff] %v4332_v35  ;;  %v4344_v54 = vadd.f32 %v7891_v53, %v7889_v49  ;;  %v4348_v3 = vadd.f32 %v7893_v32, %v7891_v53  ;;  %v7895_v0 = vld [vmem:[#allocation217_spill] sm:$0xff]  ;;  %v7897_v35 = vld [vmem:[#allocation219_spill] sm:$0xff] }
 0x137   :  { %7888 = vst [vmem:[#allocation410_spill] sm:$0xff] %v4336_v57  ;;  %7890 = vst [vmem:[#allocation411_spill] sm:$0xff] %v4340_v63  ;;  %v4352_v26 = vadd.f32 %v7895_v0, %v7893_v32  ;;  %v4356_v41 = vadd.f32 %v7897_v35, %v7895_v0  ;;  %v7899_v57 = vld [vmem:[#allocation220_spill] sm:$0xff]  ;;  %v7901_v63 = vld [vmem:[#allocation221_spill] sm:$0xff] }
 0x138   :  { %7892 = vst [vmem:[#allocation412_spill] sm:$0xff] %v4344_v54  ;;  %7894 = vst [vmem:[#allocation413_spill] sm:$0xff] %v4348_v3  ;;  %v4360_v59 = vadd.f32 %v7899_v57, %v7897_v35  ;;  %v4364_v49 = vadd.f32 %v3776_v36, %v7901_v63  ;;  %v7903_v54 = vld [vmem:[#allocation224_spill] sm:$0xff]  ;;  %v7905_v3 = vld [vmem:[#allocation225_spill] sm:$0xff] }
 0x139   :  { %7896 = vst [vmem:[#allocation414_spill] sm:$0xff] %v4352_v26  ;;  %7898 = vst [vmem:[#allocation415_spill] sm:$0xff] %v4356_v41  ;;  %v4368_v53 = vadd.f32 %v7903_v54, %v3776_v36  ;;  %v4372_v32 = vadd.f32 %v7905_v3, %v7903_v54  ;;  %v7907_v26 = vld [vmem:[#allocation227_spill] sm:$0xff]  ;;  %v7909_v41 = vld [vmem:[#allocation228_spill] sm:$0xff] }
 0x13a   :  { %7900 = vst [vmem:[#allocation416_spill] sm:$0xff] %v4360_v59  ;;  %7902 = vst [vmem:[#allocation417_spill] sm:$0xff] %v4364_v49  ;;  %v4376_v0 = vadd.f32 %v7907_v26, %v7905_v3  ;;  %v4380_v57 = vadd.f32 %v7909_v41, %v7907_v26  ;;  %v7911_v59 = vld [vmem:[#allocation229_spill] sm:$0xff]  ;;  %v7913_v49 = vld [vmem:[#allocation231_spill] sm:$0xff] }
 0x13b   :  { %7904 = vst [vmem:[#allocation418_spill] sm:$0xff] %v4368_v53  ;;  %7906 = vst [vmem:[#allocation419_spill] sm:$0xff] %v4372_v32  ;;  %v4384_v63 = vadd.f32 %v7911_v59, %v7909_v41  ;;  %v4388_v36 = vadd.f32 %v7913_v49, %v7911_v59  ;;  %v7915_v53 = vld [vmem:[#allocation232_spill] sm:$0xff]  ;;  %v7917_v32 = vld [vmem:[#allocation233_spill] sm:$0xff] }
 0x13c   :  { %7908 = vst [vmem:[#allocation420_spill] sm:$0xff] %v4376_v0  ;;  %7910 = vst [vmem:[#allocation421_spill] sm:$0xff] %v4380_v57  ;;  %v4392_v54 = vadd.f32 %v7915_v53, %v7913_v49  ;;  %v4396_v3 = vadd.f32 %v7917_v32, %v7915_v53  ;;  %v4400_v0 = vadd.f32 %v3806_v18, %v7917_v32  ;;  %v7920_v57 = vld [vmem:[#allocation236_spill] sm:$0xff]  ;;  %v7968_v46 = vld [vmem:[#allocation265_spill] sm:$0xff] }
 0x13d   :  { %7912 = vst [vmem:[#allocation422_spill] sm:$0xff] %v4384_v63  ;;  %7914 = vst [vmem:[#allocation423_spill] sm:$0xff] %v4388_v36  ;;  %v4404_v41 = vadd.f32 %v7920_v57, %v3806_v18  ;;  %v7922_v63 = vld [vmem:[#allocation237_spill] sm:$0xff]  ;;  %v7924_v36 = vld [vmem:[#allocation239_spill] sm:$0xff]  ;;  %v4496_v23 = vadd.f32 %v7968_v46, %v7967_v8  ;;  %v4500_v61 = vadd.f32 %v3886_v62, %v7968_v46 }
 0x13e   :  { %7916 = vst [vmem:[#allocation424_spill] sm:$0xff] %v4392_v54  ;;  %7918 = vst [vmem:[#allocation425_spill] sm:$0xff] %v4396_v3  ;;  %v4408_v59 = vadd.f32 %v7922_v63, %v7920_v57  ;;  %v4412_v49 = vadd.f32 %v7924_v36, %v7922_v63  ;;  %v7926_v54 = vld [vmem:[#allocation240_spill] sm:$0xff]  ;;  %v7928_v3 = vld [vmem:[#allocation241_spill] sm:$0xff] }
 0x13f   :  { %7919 = vst [vmem:[#allocation426_spill] sm:$0xff] %v4400_v0  ;;  %7921 = vst [vmem:[#allocation427_spill] sm:$0xff] %v4404_v41  ;;  %v4416_v53 = vadd.f32 %v7926_v54, %v7924_v36  ;;  %v4420_v32 = vadd.f32 %v7928_v3, %v7926_v54  ;;  %v7930_v0 = vld [vmem:[#allocation243_spill] sm:$0xff]  ;;  %v7931_v26 = vld [vmem:[#allocation244_spill] sm:$0xff] }
 0x140   :  { %7923 = vst [vmem:[#allocation428_spill] sm:$0xff] %v4408_v59  ;;  %7925 = vst [vmem:[#allocation429_spill] sm:$0xff] %v4412_v49  ;;  %v4424_v18 = vadd.f32 %v7931_v26, %v7930_v0  ;;  %v7933_v41 = vld [vmem:[#allocation245_spill] sm:$0xff]  ;;  %v7936_v49 = vld [vmem:[#allocation248_spill] sm:$0xff] }
 0x141   :  { %7927 = vst [vmem:[#allocation430_spill] sm:$0xff] %v4416_v53  ;;  %7929 = vst [vmem:[#allocation431_spill] sm:$0xff] %v4420_v32  ;;  %v4428_v57 = vadd.f32 %v7933_v41, %v7931_v26  ;;  %v4432_v59 = vadd.f32 %v3836_v13, %v7933_v41  ;;  %v4436_v36 = vadd.f32 %v7936_v49, %v3836_v13  ;;  %v7938_v53 = vld [vmem:[#allocation249_spill] sm:$0xff]  ;;  %v7940_v32 = vld [vmem:[#allocation251_spill] sm:$0xff] }
 0x142   :  { %7932 = vst [vmem:[#allocation432_spill] sm:$0xff] %v4424_v18  ;;  %v4440_v3 = vadd.f32 %v7938_v53, %v7936_v49  ;;  %v4444_v0 = vadd.f32 %v7940_v32, %v7938_v53  ;;  %v7942_v18 = vld [vmem:[#allocation252_spill] sm:$0xff]  ;;  %v7956_v13 = vld [vmem:[#allocation22_spill] sm:$0xff]  ;;  %v8029_v4 = vld [vmem:[#allocation43_spill] sm:$0xff] }
 0x143   :  { %7934 = vst [vmem:[#allocation433_spill] sm:$0xff] %v4428_v57  ;;  %7935 = vst [vmem:[#allocation434_spill] sm:$0xff] %v4432_v59  ;;  %v4448_v26 = vadd.f32 %v7942_v18, %v7940_v32  ;;  %v7944_v57 = vld [vmem:[#allocation253_spill] sm:$0xff]  ;;  %v7958_v54 = vld [vmem:[#allocation82_spill] sm:$0xff] }
 0x144   :  { %7937 = vst [vmem:[#allocation435_spill] sm:$0xff] %v4436_v36  ;;  %7939 = vst [vmem:[#allocation436_spill] sm:$0xff] %v4440_v3  ;;  %v4452_v41 = vadd.f32 %v7944_v57, %v7942_v18  ;;  %v4456_v59 = vadd.f32 %v3856_v44, %v7944_v57  ;;  %v7947_v36 = vld [vmem:[#allocation256_spill] sm:$0xff]  ;;  %v7949_v3 = vld [vmem:[#allocation257_spill] sm:$0xff] }
 0x145   :  { %7941 = vst [vmem:[#allocation437_spill] sm:$0xff] %v4444_v0  ;;  %7943 = vst [vmem:[#allocation438_spill] sm:$0xff] %v4448_v26  ;;  %v4460_v49 = vadd.f32 %v7947_v36, %v3856_v44  ;;  %v4464_v53 = vadd.f32 %v7949_v3, %v7947_v36  ;;  %v7951_v0 = vld [vmem:[#allocation259_spill] sm:$0xff]  ;;  %v7953_v26 = vld [vmem:[#allocation260_spill] sm:$0xff] }
 0x146   :  { %7945 = vst [vmem:[#allocation439_spill] sm:$0xff] %v4452_v41  ;;  %7946 = vst [vmem:[#allocation440_spill] sm:$0xff] %v4456_v59  ;;  %v4468_v32 = vadd.f32 %v7951_v0, %v7949_v3  ;;  %v4472_v18 = vadd.f32 %v7953_v26, %v7951_v0  ;;  %v7955_v41 = vld [vmem:[#allocation13_spill] sm:$0xff]  ;;  %v7957_v59 = vld [vmem:[#allocation32_spill] sm:$0xff] }
 0x147   :  { %7948 = vst [vmem:[#allocation441_spill] sm:$0xff] %v4460_v49  ;;  %7950 = vst [vmem:[#allocation442_spill] sm:$0xff] %v4464_v53  ;;  %v1065_v57 = vadd.f32 %v7956_v13, %v7955_v41  ;;  %v4478_v63 = vadd.f32 %v7958_v54, %v7957_v59  ;;  %v7959_v49 = vld [vmem:[#allocation261_spill] sm:$0xff]  ;;  %v7961_v53 = vld [vmem:[#allocation263_spill] sm:$0xff] }
 0x148   :  { %7952 = vst [vmem:[#allocation443_spill] sm:$0xff] %v4468_v32  ;;  %7954 = vst [vmem:[#allocation444_spill] sm:$0xff] %v4472_v18  ;;  %v4482_v44 = vadd.f32 %v7959_v49, %v7953_v26  ;;  %v4486_v36 = vadd.f32 %v7961_v53, %v7959_v49  ;;  %v7963_v32 = vld [vmem:[#allocation14_spill] sm:$0xff]  ;;  %v7965_v0 = vld [vmem:[#allocation33_spill] sm:$0xff] }
 0x149   :  { %v7964_v3 = vld [vmem:[#allocation26_spill] sm:$0xff]  ;;  %7969 = vst [vmem:[#allocation32_spill] sm:$0xff] %v4496_v23  ;;  %7970 = vst [vmem:[#allocation82_spill] sm:$0xff] %v4500_v61  ;;  %v7977_v49 = vld [vmem:[#allocation272_spill] sm:$0xff] }
 0x14a   :  { %7960 = vst [vmem:[#allocation13_spill] sm:$0xff] %v4482_v44  ;;  %7962 = vst [vmem:[#allocation22_spill] sm:$0xff] %v4486_v36  ;;  %v1066_v35 = vadd.f32 %v7964_v3, %v7963_v32  ;;  %v7966_v18 = vld [vmem:[#allocation86_spill] sm:$0xff]  ;;  %v7971_v44 = vld [vmem:[#allocation268_spill] sm:$0xff] }
 0x14b   :  { %v4492_v11 = vadd.f32 %v7966_v18, %v7965_v0  ;;  %v4504_v26 = vadd.f32 %v7971_v44, %v3886_v62  ;;  %v7973_v36 = vld [vmem:[#allocation269_spill] sm:$0xff]  ;;  %v7975_v3 = vld [vmem:[#allocation271_spill] sm:$0xff]  ;;  %v7984_v62 = vld [vmem:[#allocation34_spill] sm:$0xff] }
 0x14c   :  { %v4508_v53 = vadd.f32 %v7973_v36, %v7971_v44  ;;  %v4512_v18 = vadd.f32 %v7975_v3, %v7973_v36  ;;  %v4516_v8 = vadd.f32 %v7977_v49, %v7975_v3  ;;  %v7979_v23 = vld [vmem:[#allocation15_spill] sm:$0xff]  ;;  %v7985_v44 = vld [vmem:[#allocation36_spill] sm:$0xff]  ;;  %v8028_v47 = vld [vmem:[#allocation58_spill] sm:$0xff] }
 0x14d   :  { %7972 = vst [vmem:[#allocation14_spill] sm:$0xff] %v4504_v26  ;;  %v1067_v46 = vadd.f32 %v7980_v34, %v7979_v23  ;;  %v7981_v61 = vld [vmem:[#allocation35_spill] sm:$0xff]  ;;  %v7983_v26 = vld [vmem:[#allocation16_spill] sm:$0xff]  ;;  %v4538_v34 = vadd.f32 %v4492_v11, %v1066_v35  ;;  %v7996_v35 = vld [vmem:[#allocation277_spill] sm:$0xff] }
 0x14e   :  { %7974 = vst [vmem:[#allocation26_spill] sm:$0xff] %v4508_v53  ;;  %7976 = vst [vmem:[#allocation33_spill] sm:$0xff] %v4512_v18  ;;  %v4522_v55 = vadd.f32 %v7982_v60, %v7981_v61  ;;  %v1068_v2 = vadd.f32 %v7984_v62, %v7983_v26  ;;  %v7986_v53 = vld [vmem:[#allocation94_spill] sm:$0xff]  ;;  %v4532_v18 = vadd.f32 %v7958_v54, %v7956_v13  ;;  %v7988_v3 = vld [vmem:[#allocation11_spill] sm:$0xff]  ;;  %v1834_v62 = vmul.f32 9.0, %v7955_v41 }
 0x14f   :  { %7978 = vst [vmem:[#allocation86_spill] sm:$0xff] %v4516_v8  ;;  %v4528_v17 = vadd.f32 %v7986_v53, %v7985_v44  ;;  %v4535_v8 = vadd.f32 %v4478_v63, %v1065_v57  ;;  %v1832_v60 = vmul.f32 9.0, %v7988_v3  ;;  %v7989_v36 = vld [vmem:[#allocation12_spill] sm:$0xff]  ;;  %v4545_v53 = vadd.f32 %v7990_v58, %v7977_v49  ;;  %v7998_v3 = vld [vmem:[#allocation17_spill] sm:$0xff]  ;;  %v8007_v49 = vld [vmem:[#allocation102_spill] sm:$0xff] }
 0x150   :  { %v1833_v31 = vmul.f32 9.0, %v7989_v36  ;;  %v4549_v13 = vadd.f32 %v7992_v40, %v7990_v58  ;;  %v7994_v57 = vld [vmem:[#allocation276_spill] sm:$0xff]  ;;  %v7999_v36 = vld [vmem:[#allocation38_spill] sm:$0xff]  ;;  %v8000_v41 = vld [vmem:[#allocation37_spill] sm:$0xff]  ;;  %v2090_v42 = vsub.f32 %v1834_v62, %v4538_v34 }
 0x151   :  { %7987 = vst [vmem:[#allocation15_spill] sm:$0xff] %v4528_v17  ;;  %7991 = vst [vmem:[#allocation30_spill] sm:$0xff] %v4545_v53  ;;  %v4553_v30 = vadd.f32 %v7994_v57, %v7992_v40  ;;  %v4557_v27 = vadd.f32 %v7996_v35, %v7994_v57  ;;  %v1069_v16 = vadd.f32 %v7999_v36, %v7998_v3  ;;  %v8005_v58 = vld [vmem:[#allocation42_spill] sm:$0xff]  ;;  %v8032_v28 = vld [vmem:[#allocation44_spill] sm:$0xff] }
 0x152   :  { %7993 = vst [vmem:[#allocation35_spill] sm:$0xff] %v4549_v13  ;;  %v4563_v1 = vadd.f32 %v8001_v37, %v8000_v41  ;;  %v4566_v53 = vadd.f32 %v4522_v55, %v1067_v46  ;;  %v1835_v13 = vmul.f32 9.0, %v7963_v32  ;;  %v4571_v40 = vadd.f32 %v3916_v9, %v7996_v35  ;;  %v8030_v48 = vld [vmem:[#allocation114_spill] sm:$0xff]  ;;  %v8035_v52 = vld [vmem:[#allocation24_spill] sm:$0xff]  ;;  %v8040_v51 = vld [vmem:[#allocation25_spill] sm:$0xff] }
 0x153   :  { %7995 = vst [vmem:[#allocation90_spill] sm:$0xff] %v4553_v30  ;;  %7997 = vst [vmem:[#allocation16_spill] sm:$0xff] %v4557_v27  ;;  %v8004_v30 = vld [vmem:[#allocation18_spill] sm:$0xff]  ;;  %v8006_v27 = vld [vmem:[#allocation39_spill] sm:$0xff]  ;;  %v4580_v36 = vadd.f32 %v4528_v17, %v1068_v2  ;;  %v1836_v37 = vmul.f32 9.0, %v7979_v23  ;;  %v2088_v46 = vsub.f32 %v1832_v60, %v4532_v18  ;;  %v2089_v32 = vsub.f32 %v1833_v31, %v4535_v8 }
 0x154   :  { %8002 = vst [vmem:[#allocation34_spill] sm:$0xff] %v4563_v1  ;;  %8003 = vst [vmem:[#allocation36_spill] sm:$0xff] %v4571_v40  ;;  %v1070_v57 = vadd.f32 %v8005_v58, %v8004_v30  ;;  %v4577_v14 = vadd.f32 %v8007_v49, %v8006_v27  ;;  %v8009_v40 = vld [vmem:[#allocation280_spill] sm:$0xff]  ;;  %v8011_v58 = vld [vmem:[#allocation281_spill] sm:$0xff]  ;;  %v4605_v62 = vadd.f32 %v4563_v1, %v1069_v16  ;;  %v2346_v50 = vand.u32 2147483647, %v2090_v42 }
 0x155   :  { %v4588_v35 = vadd.f32 %v8009_v40, %v3916_v9  ;;  %v4592_v25 = vadd.f32 %v8011_v58, %v8009_v40  ;;  %v8013_v49 = vld [vmem:[#allocation283_spill] sm:$0xff]  ;;  %v8016_v23 = vld [vmem:[#allocation46_spill] sm:$0xff]  ;;  %v8017_v60 = vld [vmem:[#allocation40_spill] sm:$0xff]  ;;  %v2091_v9 = vsub.f32 %v1835_v13, %v4566_v53  ;;  %v2092_v15 = vsub.f32 %v1836_v37, %v4580_v36 }
 0x156   :  { %8008 = vst [vmem:[#allocation94_spill] sm:$0xff] %v4577_v14  ;;  %v4596_v2 = vadd.f32 %v8013_v49, %v8011_v58  ;;  %v1071_v56 = vadd.f32 %v8016_v23, %v8015_v24  ;;  %v4602_v31 = vadd.f32 %v8018_v6, %v8017_v60  ;;  %v8020_v40 = vld [vmem:[#allocation20_spill] sm:$0xff]  ;;  %v8023_v58 = vld [vmem:[#allocation110_spill] sm:$0xff]  ;;  %v4616_v23 = vadd.f32 %v4577_v14, %v1070_v57  ;;  %v8042_v43 = vld [vmem:[#allocation47_spill] sm:$0xff] }
 0x157   :  { %8010 = vst [vmem:[#allocation11_spill] sm:$0xff] %v4588_v35  ;;  %8012 = vst [vmem:[#allocation12_spill] sm:$0xff] %v4592_v25  ;;  %v1837_v35 = vmul.f32 9.0, %v7983_v26  ;;  %v8021_v25 = vld [vmem:[#allocation50_spill] sm:$0xff]  ;;  %v1838_v6 = vmul.f32 9.0, %v7998_v3  ;;  %v8025_v26 = vld [vmem:[#allocation21_spill] sm:$0xff] }
 0x158   :  { %8014 = vst [vmem:[#allocation17_spill] sm:$0xff] %v4596_v2  ;;  %8019 = vst [vmem:[#allocation38_spill] sm:$0xff] %v4602_v31  ;;  %v1072_v38 = vadd.f32 %v8021_v25, %v8020_v40  ;;  %v4613_v2 = vadd.f32 %v8023_v58, %v8022_v33  ;;  %v2344_v16 = vand.u32 2147483647, %v2088_v46  ;;  %v2345_v22 = vand.u32 2147483647, %v2089_v32 }
 0x159   :  { %v1073_v13 = vadd.f32 %v8026_v12, %v8025_v26  ;;  %v1074_v25 = vadd.f32 %v8028_v47, %v8027_v29  ;;  %v4626_v58 = vadd.f32 %v8030_v48, %v8029_v4  ;;  %v8033_v57 = vld [vmem:[#allocation118_spill] sm:$0xff]  ;;  %v4633_v3 = vadd.f32 %v4602_v31, %v1071_v56  ;;  %v8052_v14 = vld [vmem:[#allocation49_spill] sm:$0xff] }
 0x15a   :  { %8024 = vst [vmem:[#allocation37_spill] sm:$0xff] %v4613_v2  ;;  %v4630_v5 = vadd.f32 %v8033_v57, %v8032_v28  ;;  %v1839_v37 = vmul.f32 9.0, %v8004_v30  ;;  %v2093_v42 = vsub.f32 %v1837_v35, %v4605_v62  ;;  %v2347_v46 = vand.u32 2147483647, %v2091_v9  ;;  %v8036_v30 = vld [vmem:[#allocation62_spill] sm:$0xff]  ;;  %v8037_v35 = vld [vmem:[#allocation45_spill] sm:$0xff] }
 0x15b   :  { %8031 = vst [vmem:[#allocation98_spill] sm:$0xff] %v4626_v58  ;;  %v4638_v12 = vadd.f32 %v4613_v2, %v1072_v38  ;;  %v1840_v47 = vmul.f32 9.0, %v8015_v24  ;;  %v2094_v48 = vsub.f32 %v1838_v6, %v4616_v23  ;;  %v2348_v32 = vand.u32 2147483647, %v2092_v15  ;;  %v8038_v9 = vld [vmem:[#allocation122_spill] sm:$0xff]  ;;  %v8047_v2 = vld [vmem:[#allocation48_spill] sm:$0xff] }
 0x15c   :  { %8034 = vst [vmem:[#allocation18_spill] sm:$0xff] %v4630_v5  ;;  %v2601_v57 = vsel %vm2600_vm0, %v2344_v16, 0.0  ;;  %v2602_v10 = vsel %vm2600_vm0, %v2345_v22, 0.0  ;;  %v2604_v56 = vsel %vm2600_vm0, %v2346_v50, 0.0  ;;  %v1075_v19 = vadd.f32 %v8036_v30, %v8035_v52  ;;  %v8041_v50 = vld [vmem:[#allocation66_spill] sm:$0xff] }
 0x15d   :  { %v4649_v21 = vadd.f32 %v8038_v9, %v8037_v35  ;;  %v4652_v38 = vadd.f32 %v4626_v58, %v1073_v13  ;;  %v2603_v24 = vadd.f32 %v2602_v10, %v2601_v57  ;;  %v1841_v6 = vmul.f32 9.0, %v8020_v40  ;;  %v8043_v30 = vld [vmem:[#allocation126_spill] sm:$0xff] }
 0x15e   :  { %v2095_v15 = vsub.f32 %v1839_v37, %v4633_v3  ;;  %v2349_v16 = vand.u32 2147483647, %v2093_v42  ;;  %v2606_v22 = vsel %vm2600_vm0, %v2347_v46, 0.0  ;;  %v1076_v7 = vadd.f32 %v8041_v50, %v8040_v51  ;;  %v8045_v42 = vld [vmem:[#allocation27_spill] sm:$0xff]  ;;  %v8046_v46 = vld [vmem:[#allocation70_spill] sm:$0xff] }
 0x15f   :  { %8039 = vst [vmem:[#allocation42_spill] sm:$0xff] %v4649_v21  ;;  %v4661_v45 = vadd.f32 %v8043_v30, %v8042_v43  ;;  %v4664_v9 = vadd.f32 %v4630_v5, %v1074_v25  ;;  %v2605_v13 = vadd.f32 %v2604_v56, %v2603_v24  ;;  %v1842_v10 = vmul.f32 9.0, %v8025_v26  ;;  %v8048_v50 = vld [vmem:[#allocation130_spill] sm:$0xff] }
 0x160   :  { %v2096_v40 = vsub.f32 %v1840_v47, %v4638_v12  ;;  %v2350_v57 = vand.u32 2147483647, %v2094_v48  ;;  %v2608_v37 = vsel %vm2600_vm0, %v2348_v32, 0.0  ;;  %v1077_v58 = vadd.f32 %v8046_v46, %v8045_v42  ;;  %v8050_v48 = vld [vmem:[#allocation28_spill] sm:$0xff]  ;;  %v8051_v32 = vld [vmem:[#allocation74_spill] sm:$0xff] }
 0x161   :  { %8044 = vst [vmem:[#allocation39_spill] sm:$0xff] %v4661_v45  ;;  %v4673_v31 = vadd.f32 %v8048_v50, %v8047_v2  ;;  %v4676_v30 = vadd.f32 %v4649_v21, %v1075_v19  ;;  %v2607_v25 = vadd.f32 %v2606_v22, %v2605_v13  ;;  %v1843_v56 = vmul.f32 9.0, %v8027_v29  ;;  %v8053_v46 = vld [vmem:[#allocation134_spill] sm:$0xff]  ;;  %v8058_v21 = vld [vmem:[#allocation287_spill] sm:$0xff] }
 0x162   :  { %v2097_v26 = vsub.f32 %v1841_v6, %v4652_v38  ;;  %v2351_v24 = vand.u32 2147483647, %v2095_v15  ;;  %v2610_v47 = vsel %vm2600_vm0, %v2349_v16, 0.0  ;;  %v1078_v5 = vadd.f32 %v8051_v32, %v8050_v48  ;;  %v8055_v15 = vld [vmem:[#allocation284_spill] sm:$0xff]  ;;  %v8057_v32 = vld [vmem:[#allocation285_spill] sm:$0xff] }
 0x163   :  { %8049 = vst [vmem:[#allocation102_spill] sm:$0xff] %v4673_v31  ;;  %v4685_v1 = vadd.f32 %v8053_v46, %v8052_v14  ;;  %v4688_v50 = vadd.f32 %v4661_v45, %v1076_v7  ;;  %v2609_v19 = vadd.f32 %v2608_v37, %v2607_v25  ;;  %v1844_v22 = vmul.f32 9.0, %v8035_v52 }
 0x164   :  { %v2098_v29 = vsub.f32 %v1842_v10, %v4664_v9  ;;  %v2352_v13 = vand.u32 2147483647, %v2096_v40  ;;  %v2612_v6 = vsel %vm2600_vm0, %v2350_v57, 0.0  ;;  %v4695_v16 = vadd.f32 %v8055_v15, %v8013_v49  ;;  %v8060_v57 = vld [vmem:[#allocation288_spill] sm:$0xff] }
 0x165   :  { %8054 = vst [vmem:[#allocation19_spill] sm:$0xff] %v4685_v1  ;;  %v4699_v17 = vadd.f32 %v8058_v21, %v8057_v32  ;;  %v4702_v46 = vadd.f32 %v4673_v31, %v1077_v58  ;;  %v2611_v7 = vadd.f32 %v2610_v47, %v2609_v19  ;;  %v1845_v37 = vmul.f32 9.0, %v8040_v51  ;;  %v8065_v19 = vld [vmem:[#allocation53_spill] sm:$0xff] }
 0x166   :  { %8056 = vst [vmem:[#allocation46_spill] sm:$0xff] %v4695_v16  ;;  %v2099_v52 = vsub.f32 %v1843_v56, %v4676_v30  ;;  %v2353_v10 = vand.u32 2147483647, %v2097_v26  ;;  %v2614_v40 = vsel %vm2600_vm0, %v2351_v24, 0.0  ;;  %v4709_v25 = vadd.f32 %v8060_v57, %v8058_v21  ;;  %v8062_v16 = vld [vmem:[#allocation289_spill] sm:$0xff]  ;;  %v8066_v21 = vld [vmem:[#allocation142_spill] sm:$0xff] }
 0x167   :  { %8059 = vst [vmem:[#allocation40_spill] sm:$0xff] %v4699_v17  ;;  %v4713_v15 = vadd.f32 %v8062_v16, %v8060_v57  ;;  %v4716_v32 = vadd.f32 %v4685_v1, %v1078_v5  ;;  %v2613_v58 = vadd.f32 %v2612_v6, %v2611_v7  ;;  %v1846_v47 = vmul.f32 9.0, %v8045_v42  ;;  %v8068_v17 = vld [vmem:[#allocation138_spill] sm:$0xff]  ;;  %v8069_v7 = vld [vmem:[#allocation292_spill] sm:$0xff] }
 0x168   :  { %8061 = vst [vmem:[#allocation106_spill] sm:$0xff] %v4709_v25  ;;  %v2100_v51 = vsub.f32 %v1844_v22, %v4688_v50  ;;  %v2354_v56 = vand.u32 2147483647, %v2098_v29  ;;  %v2616_v26 = vsel %vm2600_vm0, %v2352_v13, 0.0  ;;  %v4723_v24 = vadd.f32 %v3946_v20, %v8062_v16  ;;  %v8072_v57 = vld [vmem:[#allocation146_spill] sm:$0xff] }
 0x169   :  { %8063 = vst [vmem:[#allocation20_spill] sm:$0xff] %v4713_v15  ;;  %v4727_v25 = vadd.f32 %v8066_v21, %v8065_v19  ;;  %v8067_v15 = vld [vmem:[#allocation78_spill] sm:$0xff]  ;;  %v2615_v6 = vadd.f32 %v2614_v40, %v2613_v58  ;;  %v1847_v42 = vmul.f32 9.0, %v8050_v48  ;;  %v2101_v22 = vsub.f32 %v1845_v37, %v4702_v46  ;;  %v8073_v40 = vld [vmem:[#allocation29_spill] sm:$0xff] }
 0x16a   :  { %8064 = vst [vmem:[#allocation50_spill] sm:$0xff] %v4723_v24  ;;  %v4731_v5 = vadd.f32 %v8068_v17, %v8067_v15  ;;  %v2355_v29 = vand.u32 2147483647, %v2099_v52  ;;  %v2618_v13 = vsel %vm2600_vm0, %v2353_v10, 0.0  ;;  %v4738_v16 = vadd.f32 %v8069_v7, %v3946_v20  ;;  %v8071_v24 = vld [vmem:[#allocation55_spill] sm:$0xff]  ;;  %v8074_v10 = vld [vmem:[#allocation293_spill] sm:$0xff] }
 0x16b   :  { %v4742_v49 = vadd.f32 %v8072_v57, %v8071_v24  ;;  %v1592_v15 = vadd.f32 %v4532_v18, %v8066_v21  ;;  %v2617_v17 = vadd.f32 %v2616_v26, %v2615_v6  ;;  %v1848_v58 = vmul.f32 9.0, %v8073_v40  ;;  %v8077_v20 = vld [vmem:[#allocation150_spill] sm:$0xff]  ;;  %v8078_v26 = vld [vmem:[#allocation31_spill] sm:$0xff] }
 0x16c   :  { %8070 = vst [vmem:[#allocation41_spill] sm:$0xff] %v4738_v16  ;;  %v2102_v48 = vsub.f32 %v1846_v47, %v4716_v32  ;;  %v2356_v37 = vand.u32 2147483647, %v2100_v51  ;;  %v2620_v52 = vsel %vm2600_vm0, %v2354_v56, 0.0  ;;  %v4751_v1 = vadd.f32 %v8074_v10, %v8069_v7  ;;  %v8076_v16 = vld [vmem:[#allocation56_spill] sm:$0xff]  ;;  %v8079_v56 = vld [vmem:[#allocation295_spill] sm:$0xff] }
 0x16d   :  { %v4755_v31 = vadd.f32 %v8077_v20, %v8076_v16  ;;  %v1593_v57 = vadd.f32 %v4535_v8, %v4727_v25  ;;  %v2619_v18 = vadd.f32 %v2618_v13, %v2617_v17  ;;  %v1849_v6 = vmul.f32 9.0, %v8078_v26  ;;  %v8082_v7 = vld [vmem:[#allocation154_spill] sm:$0xff] }
 0x16e   :  { %8075 = vst [vmem:[#allocation110_spill] sm:$0xff] %v4751_v1  ;;  %v2103_v40 = vsub.f32 %v1847_v42, %v4731_v5  ;;  %v2357_v47 = vand.u32 2147483647, %v2101_v22  ;;  %v2622_v51 = vsel %vm2600_vm0, %v2355_v29, 0.0  ;;  %v4764_v45 = vadd.f32 %v8079_v56, %v8074_v10  ;;  %v8081_v1 = vld [vmem:[#allocation57_spill] sm:$0xff]  ;;  %v8083_v22 = vld [vmem:[#allocation296_spill] sm:$0xff] }
 0x16f   :  { %v4768_v24 = vadd.f32 %v8082_v7, %v8081_v1  ;;  %v1594_v20 = vadd.f32 %v4538_v34, %v4742_v49  ;;  %v2621_v8 = vadd.f32 %v2620_v52, %v2619_v18  ;;  %v1850_v17 = vmul.f32 9.0, %v7957_v59  ;;  %v8085_v10 = vld [vmem:[#allocation59_spill] sm:$0xff]  ;;  %v8090_v18 = vld [vmem:[#allocation162_spill] sm:$0xff] }
 0x170   :  { %8080 = vst [vmem:[#allocation21_spill] sm:$0xff] %v4764_v45  ;;  %v2104_v13 = vsub.f32 %v1848_v58, %v1592_v15  ;;  %v2358_v26 = vand.u32 2147483647, %v2102_v48  ;;  %v2624_v42 = vsel %vm2600_vm0, %v2356_v37, 0.0  ;;  %v4776_v29 = vadd.f32 %v8083_v22, %v8079_v56  ;;  %v8086_v45 = vld [vmem:[#allocation158_spill] sm:$0xff]  ;;  %v8087_v58 = vld [vmem:[#allocation297_spill] sm:$0xff] }
 0x171   :  { %v4780_v16 = vadd.f32 %v8086_v45, %v8085_v10  ;;  %v1595_v7 = vadd.f32 %v4566_v53, %v4755_v31  ;;  %v2623_v1 = vadd.f32 %v2622_v51, %v2621_v8  ;;  %v1851_v34 = vmul.f32 9.0, %v7965_v0  ;;  %v8089_v37 = vld [vmem:[#allocation60_spill] sm:$0xff]  ;;  %v8095_v8 = vld [vmem:[#allocation166_spill] sm:$0xff] }
 0x172   :  { %8084 = vst [vmem:[#allocation54_spill] sm:$0xff] %v4776_v29  ;;  %v2105_v52 = vsub.f32 %v1849_v6, %v1593_v57  ;;  %v2359_v59 = vand.u32 2147483647, %v2103_v40  ;;  %v2626_v15 = vsel %vm2600_vm0, %v2357_v47, 0.0  ;;  %v4788_v48 = vadd.f32 %v8087_v58, %v8083_v22  ;;  %v8092_v6 = vld [vmem:[#allocation299_spill] sm:$0xff]  ;;  %v8094_v47 = vld [vmem:[#allocation61_spill] sm:$0xff] }
 0x173   :  { %v4792_v29 = vadd.f32 %v8090_v18, %v8089_v37  ;;  %v1596_v45 = vadd.f32 %v4580_v36, %v4768_v24  ;;  %v2625_v56 = vadd.f32 %v2624_v42, %v2623_v1  ;;  %v1852_v53 = vmul.f32 9.0, %v7981_v61  ;;  %v8099_v42 = vld [vmem:[#allocation170_spill] sm:$0xff] }
 0x174   :  { %8088 = vst [vmem:[#allocation23_spill] sm:$0xff] %v4788_v48  ;;  %v2106_v51 = vsub.f32 %v1850_v17, %v1594_v20  ;;  %v2360_v0 = vand.u32 2147483647, %v2104_v13  ;;  %v2628_v57 = vsel %vm2600_vm0, %v2358_v26, 0.0  ;;  %v4800_v40 = vadd.f32 %v8092_v6, %v8087_v58  ;;  %v8096_v17 = vld [vmem:[#allocation300_spill] sm:$0xff]  ;;  %v8098_v26 = vld [vmem:[#allocation63_spill] sm:$0xff] }
 0x175   :  { %8091 = vst [vmem:[#allocation58_spill] sm:$0xff] %v4792_v29  ;;  %v4804_v48 = vadd.f32 %v8095_v8, %v8094_v47  ;;  %v1597_v18 = vadd.f32 %v4605_v62, %v4780_v16  ;;  %v2627_v22 = vadd.f32 %v2626_v15, %v2625_v56  ;;  %v1853_v1 = vmul.f32 9.0, %v7985_v44  ;;  %v8103_v15 = vld [vmem:[#allocation174_spill] sm:$0xff] }
 0x176   :  { %8093 = vst [vmem:[#allocation43_spill] sm:$0xff] %v4800_v40  ;;  %v2107_v36 = vsub.f32 %v1851_v34, %v1595_v7  ;;  %v2361_v61 = vand.u32 2147483647, %v2105_v52  ;;  %v2630_v20 = vsel %vm2600_vm0, %v2359_v59, 0.0  ;;  %v4812_v13 = vadd.f32 %v8096_v17, %v8092_v6  ;;  %v8100_v34 = vld [vmem:[#allocation301_spill] sm:$0xff]  ;;  %v8102_v59 = vld [vmem:[#allocation64_spill] sm:$0xff] }
 0x177   :  { %v4816_v40 = vadd.f32 %v8099_v42, %v8098_v26  ;;  %v1598_v8 = vadd.f32 %v4616_v23, %v4792_v29  ;;  %v2629_v58 = vadd.f32 %v2628_v57, %v2627_v22  ;;  %v1854_v62 = vmul.f32 9.0, %v8000_v41 }
 0x178   :  { %8097 = vst [vmem:[#allocation114_spill] sm:$0xff] %v4812_v13  ;;  %v2108_v56 = vsub.f32 %v1852_v53, %v1596_v45  ;;  %v2362_v44 = vand.u32 2147483647, %v2106_v51  ;;  %v2632_v7 = vsel %vm2600_vm0, %v2360_v0, 0.0  ;;  %v4824_v52 = vadd.f32 %v8100_v34, %v8096_v17  ;;  %v8105_v51 = vld [vmem:[#allocation65_spill] sm:$0xff]  ;;  %v8106_v0 = vld [vmem:[#allocation178_spill] sm:$0xff] }
 0x179   :  { %v4828_v13 = vadd.f32 %v8103_v15, %v8102_v59  ;;  %v1599_v42 = vadd.f32 %v4633_v3, %v4804_v48  ;;  %v2631_v6 = vadd.f32 %v2630_v20, %v2629_v58  ;;  %v1855_v23 = vmul.f32 9.0, %v8006_v27  ;;  %v8110_v20 = vld [vmem:[#allocation182_spill] sm:$0xff] }
 0x17a   :  { %8101 = vst [vmem:[#allocation44_spill] sm:$0xff] %v4824_v52  ;;  %v2109_v22 = vsub.f32 %v1853_v1, %v1597_v18  ;;  %v2363_v41 = vand.u32 2147483647, %v2107_v36  ;;  %v2634_v45 = vsel %vm2600_vm0, %v2361_v61, 0.0  ;;  %v4836_v53 = vadd.f32 %v3976_v39, %v8100_v34  ;;  %v8107_v1 = vld [vmem:[#allocation304_spill] sm:$0xff]  ;;  %v8109_v61 = vld [vmem:[#allocation67_spill] sm:$0xff] }
 0x17b   :  { %v4840_v57 = vadd.f32 %v8106_v0, %v8105_v51  ;;  %v1600_v15 = vadd.f32 %v4638_v12, %v4816_v40  ;;  %v2633_v52 = vadd.f32 %v2632_v7, %v2631_v6  ;;  %v1856_v3 = vmul.f32 9.0, %v8017_v60  ;;  %v8114_v7 = vld [vmem:[#allocation186_spill] sm:$0xff] }
 0x17c   :  { %8104 = vst [vmem:[#allocation118_spill] sm:$0xff] %v4836_v53  ;;  %v2110_v58 = vsub.f32 %v1854_v62, %v1598_v8  ;;  %v2364_v27 = vand.u32 2147483647, %v2108_v56  ;;  %v2636_v18 = vsel %vm2600_vm0, %v2362_v44, 0.0  ;;  %v4848_v36 = vadd.f32 %v8107_v1, %v3976_v39  ;;  %v8111_v62 = vld [vmem:[#allocation305_spill] sm:$0xff]  ;;  %v8113_v44 = vld [vmem:[#allocation68_spill] sm:$0xff] }
 0x17d   :  { %v4852_v53 = vadd.f32 %v8110_v20, %v8109_v61  ;;  %v1601_v0 = vadd.f32 %v4652_v38, %v4828_v13  ;;  %v2635_v34 = vadd.f32 %v2634_v45, %v2633_v52  ;;  %v1857_v12 = vmul.f32 9.0, %v8022_v33  ;;  %v8118_v45 = vld [vmem:[#allocation69_spill] sm:$0xff] }
 0x17e   :  { %8108 = vst [vmem:[#allocation24_spill] sm:$0xff] %v4848_v36  ;;  %v2111_v6 = vsub.f32 %v1855_v23, %v1599_v42  ;;  %v2365_v60 = vand.u32 2147483647, %v2109_v22  ;;  %v2638_v8 = vsel %vm2600_vm0, %v2363_v41, 0.0  ;;  %v4860_v56 = vadd.f32 %v8111_v62, %v8107_v1  ;;  %v8115_v23 = vld [vmem:[#allocation307_spill] sm:$0xff]  ;;  %v8116_v22 = vld [vmem:[#allocation308_spill] sm:$0xff] }
 0x17f   :  { %v4864_v36 = vadd.f32 %v8114_v7, %v8113_v44  ;;  %v1602_v20 = vadd.f32 %v4664_v9, %v4840_v57  ;;  %v2637_v39 = vadd.f32 %v2636_v18, %v2635_v34  ;;  %v1858_v38 = vmul.f32 9.0, %v8029_v4  ;;  %v8123_v18 = vld [vmem:[#allocation194_spill] sm:$0xff] }
 0x180   :  { %8112 = vst [vmem:[#allocation62_spill] sm:$0xff] %v4860_v56  ;;  %v2112_v52 = vsub.f32 %v1856_v3, %v1600_v15  ;;  %v2366_v33 = vand.u32 2147483647, %v2110_v58  ;;  %v2640_v42 = vsel %vm2600_vm0, %v2364_v27, 0.0  ;;  %v4872_v41 = vadd.f32 %v8116_v22, %v8115_v23  ;;  %v8119_v56 = vld [vmem:[#allocation190_spill] sm:$0xff]  ;;  %v8120_v3 = vld [vmem:[#allocation309_spill] sm:$0xff] }
 0x181   :  { %v4876_v62 = vadd.f32 %v8119_v56, %v8118_v45  ;;  %v1603_v7 = vadd.f32 %v4676_v30, %v4852_v53  ;;  %v2639_v1 = vadd.f32 %v2638_v8, %v2637_v39  ;;  %v1859_v9 = vmul.f32 9.0, %v8032_v28  ;;  %v8122_v27 = vld [vmem:[#allocation71_spill] sm:$0xff] }
 0x182   :  { %8117 = vst [vmem:[#allocation45_spill] sm:$0xff] %v4872_v41  ;;  %v2113_v34 = vsub.f32 %v1857_v12, %v1601_v0  ;;  %v2367_v4 = vand.u32 2147483647, %v2111_v6  ;;  %v2642_v15 = vsel %vm2600_vm0, %v2365_v60, 0.0  ;;  %v4884_v58 = vadd.f32 %v8120_v3, %v8116_v22  ;;  %v8124_v12 = vld [vmem:[#allocation311_spill] sm:$0xff]  ;;  %v8126_v60 = vld [vmem:[#allocation312_spill] sm:$0xff] }
 0x183   :  { %v4888_v23 = vadd.f32 %v8123_v18, %v8122_v27  ;;  %v1604_v56 = vadd.f32 %v4688_v50, %v4864_v36  ;;  %v2641_v41 = vadd.f32 %v2640_v42, %v2639_v1  ;;  %v1860_v39 = vmul.f32 9.0, %v8037_v35 }
 0x184   :  { %8121 = vst [vmem:[#allocation122_spill] sm:$0xff] %v4884_v58  ;;  %v2114_v30 = vsub.f32 %v1858_v38, %v1602_v20  ;;  %v2368_v28 = vand.u32 2147483647, %v2112_v52  ;;  %v2644_v0 = vsel %vm2600_vm0, %v2366_v33, 0.0  ;;  %v4896_v6 = vadd.f32 %v8124_v12, %v8120_v3  ;;  %v8128_v38 = vld [vmem:[#allocation313_spill] sm:$0xff]  ;;  %v8135_v58 = vld [vmem:[#allocation51_spill] sm:$0xff] }
 0x185   :  { %v4900_v8 = vadd.f32 %v8126_v60, %v8124_v12  ;;  %v1605_v18 = vadd.f32 %v4702_v46, %v4876_v62  ;;  %v2643_v22 = vadd.f32 %v2642_v15, %v2641_v41  ;;  %v1861_v50 = vmul.f32 9.0, %v8042_v43 }
 0x186   :  { %8125 = vst [vmem:[#allocation25_spill] sm:$0xff] %v4896_v6  ;;  %v2115_v1 = vsub.f32 %v1859_v9, %v1603_v7  ;;  %v2369_v35 = vand.u32 2147483647, %v2113_v34  ;;  %v2646_v20 = vsel %vm2600_vm0, %v2367_v4, 0.0  ;;  %v4908_v52 = vadd.f32 %v8128_v38, %v8126_v60  ;;  %v8130_v7 = vld [vmem:[#allocation75_spill] sm:$0xff]  ;;  %v8131_v9 = vld [vmem:[#allocation202_spill] sm:$0xff] }
 0x187   :  { %8127 = vst [vmem:[#allocation66_spill] sm:$0xff] %v4900_v8  ;;  %v1352_v33 = vadd.f32 %v8066_v21, %v7958_v54  ;;  %v1606_v42 = vadd.f32 %v4716_v32, %v4888_v23  ;;  %v2645_v8 = vadd.f32 %v2644_v0, %v2643_v22  ;;  %v1862_v46 = vmul.f32 9.0, %v8047_v2 }
 0x188   :  { %8129 = vst [vmem:[#allocation47_spill] sm:$0xff] %v4908_v52  ;;  %v2116_v41 = vsub.f32 %v1860_v39, %v1604_v56  ;;  %v2370_v15 = vand.u32 2147483647, %v2114_v30  ;;  %v2648_v43 = vsel %vm2600_vm0, %v2368_v28, 0.0  ;;  %v4918_v34 = vadd.f32 %v8131_v9, %v8130_v7  ;;  %v8132_v52 = vld [vmem:[#allocation198_spill] sm:$0xff]  ;;  %v8133_v56 = vld [vmem:[#allocation76_spill] sm:$0xff] }
 0x189   :  { %v1353_v4 = vadd.f32 %v4727_v25, %v4478_v63  ;;  %v1607_v54 = vadd.f32 %v4731_v5, %v8132_v52  ;;  %v2647_v6 = vadd.f32 %v2646_v20, %v2645_v8  ;;  %v1863_v32 = vmul.f32 9.0, %v8052_v14  ;;  %v8134_v39 = vld [vmem:[#allocation206_spill] sm:$0xff] }
 0x18a   :  { %v2117_v22 = vsub.f32 %v1861_v50, %v1605_v18  ;;  %v2371_v0 = vand.u32 2147483647, %v2115_v1  ;;  %v2650_v2 = vsel %vm2600_vm0, %v2369_v35, 0.0  ;;  %v4928_v30 = vadd.f32 %v8134_v39, %v8133_v56  ;;  %v8136_v18 = vld [vmem:[#allocation77_spill] sm:$0xff]  ;;  %v8137_v50 = vld [vmem:[#allocation210_spill] sm:$0xff] }
 0x18b   :  { %v1354_v28 = vadd.f32 %v4742_v49, %v4492_v11  ;;  %v1608_v60 = vadd.f32 %v1352_v33, %v8131_v9  ;;  %v2649_v63 = vadd.f32 %v2648_v43, %v2647_v6  ;;  %v1864_v12 = vmul.f32 9.0, %v8135_v58  ;;  %v8138_v11 = vld [vmem:[#allocation52_spill] sm:$0xff] }
 0x18c   :  { %v2118_v5 = vsub.f32 %v1862_v46, %v1606_v42  ;;  %v2372_v8 = vand.u32 2147483647, %v2116_v41  ;;  %v2652_v14 = vsel %vm2600_vm0, %v2370_v15, 0.0  ;;  %v4937_v1 = vadd.f32 %v8137_v50, %v8136_v18  ;;  %v8139_v42 = vld [vmem:[#allocation79_spill] sm:$0xff]  ;;  %v8140_v46 = vld [vmem:[#allocation214_spill] sm:$0xff] }
 0x18d   :  { %v1355_v35 = vadd.f32 %v4755_v31, %v4522_v55  ;;  %v1609_v20 = vadd.f32 %v1353_v4, %v4918_v34  ;;  %v2651_v39 = vadd.f32 %v2650_v2, %v2649_v63  ;;  %v1865_v3 = vmul.f32 9.0, %v8138_v11  ;;  %v8141_v15 = vld [vmem:[#allocation15_spill] sm:$0xff] }
 0x18e   :  { %v2119_v33 = vsub.f32 %v1863_v32, %v1607_v54  ;;  %v2373_v6 = vand.u32 2147483647, %v2117_v22  ;;  %v2654_v58 = vsel %vm2600_vm0, %v2371_v0, 0.0  ;;  %v4946_v41 = vadd.f32 %v8140_v46, %v8139_v42  ;;  %v8142_v54 = vld [vmem:[#allocation80_spill] sm:$0xff]  ;;  %v8143_v32 = vld [vmem:[#allocation218_spill] sm:$0xff] }
 0x18f   :  { %v1356_v43 = vadd.f32 %v4768_v24, %v8141_v15  ;;  %v1610_v50 = vadd.f32 %v1354_v28, %v4928_v30  ;;  %v2653_v17 = vadd.f32 %v2652_v14, %v2651_v39  ;;  %v1866_v55 = vmul.f32 9.0, %v8065_v19  ;;  %v8144_v0 = vld [vmem:[#allocation34_spill] sm:$0xff]  ;;  %v8145_v15 = vld [vmem:[#allocation55_spill] sm:$0xff] }
 0x190   :  { %v2120_v4 = vsub.f32 %v1864_v12, %v1608_v60  ;;  %v2374_v2 = vand.u32 2147483647, %v2118_v5  ;;  %v2656_v63 = vsel %vm2600_vm0, %v2372_v8, 0.0  ;;  %v4955_v22 = vadd.f32 %v8143_v32, %v8142_v54  ;;  %v8146_v12 = vld [vmem:[#allocation81_spill] sm:$0xff]  ;;  %v8147_v60 = vld [vmem:[#allocation222_spill] sm:$0xff] }
 0x191   :  { %v1357_v11 = vadd.f32 %v4780_v16, %v8144_v0  ;;  %v1611_v46 = vadd.f32 %v1355_v35, %v4937_v1  ;;  %v2655_v42 = vadd.f32 %v2654_v58, %v2653_v17  ;;  %v1867_v18 = vmul.f32 9.0, %v8145_v15  ;;  %v8148_v8 = vld [vmem:[#allocation94_spill] sm:$0xff]  ;;  %v8149_v0 = vld [vmem:[#allocation56_spill] sm:$0xff] }
 0x192   :  { %v2121_v28 = vsub.f32 %v1865_v3, %v1609_v20  ;;  %v2375_v14 = vand.u32 2147483647, %v2119_v33  ;;  %v2658_v19 = vsel %vm2600_vm0, %v2373_v6, 0.0  ;;  %v4964_v5 = vadd.f32 %v8147_v60, %v8146_v12  ;;  %v8150_v3 = vld [vmem:[#allocation83_spill] sm:$0xff]  ;;  %v8151_v20 = vld [vmem:[#allocation226_spill] sm:$0xff] }
 0x193   :  { %v1358_v39 = vadd.f32 %v4792_v29, %v8148_v8  ;;  %v1612_v32 = vadd.f32 %v1356_v43, %v4946_v41  ;;  %v2657_v54 = vadd.f32 %v2656_v63, %v2655_v42  ;;  %v1868_v56 = vmul.f32 9.0, %v8149_v0  ;;  %v8152_v6 = vld [vmem:[#allocation38_spill] sm:$0xff]  ;;  %v8153_v8 = vld [vmem:[#allocation57_spill] sm:$0xff] }
 0x194   :  { %v2122_v35 = vsub.f32 %v1866_v55, %v1610_v50  ;;  %v2376_v17 = vand.u32 2147483647, %v2120_v4  ;;  %v2660_v58 = vsel %vm2600_vm0, %v2374_v2, 0.0  ;;  %v4973_v33 = vadd.f32 %v8151_v20, %v8150_v3  ;;  %v8154_v50 = vld [vmem:[#allocation84_spill] sm:$0xff]  ;;  %v8155_v55 = vld [vmem:[#allocation230_spill] sm:$0xff]  ;;  %v8156_v2 = vld [vmem:[#allocation37_spill] sm:$0xff] }
 0x195   :  { %v1359_v15 = vadd.f32 %v4804_v48, %v8152_v6  ;;  %v1613_v60 = vadd.f32 %v1357_v11, %v4955_v22  ;;  %v2659_v12 = vadd.f32 %v2658_v19, %v2657_v54  ;;  %v1869_v29 = vmul.f32 9.0, %v8153_v8 }
 0x196   :  { %v2123_v43 = vsub.f32 %v1867_v18, %v1611_v46  ;;  %v2377_v42 = vand.u32 2147483647, %v2121_v28  ;;  %v2662_v63 = vsel %vm2600_vm0, %v2375_v14, 0.0  ;;  %v4982_v4 = vadd.f32 %v8155_v55, %v8154_v50  ;;  %v8157_v18 = vld [vmem:[#allocation85_spill] sm:$0xff]  ;;  %v8158_v46 = vld [vmem:[#allocation234_spill] sm:$0xff] }
 0x197   :  { %v1360_v0 = vadd.f32 %v4816_v40, %v8156_v2  ;;  %v1614_v20 = vadd.f32 %v1358_v39, %v4964_v5  ;;  %v2661_v3 = vadd.f32 %v2660_v58, %v2659_v12  ;;  %v1870_v6 = vmul.f32 9.0, %v8085_v10  ;;  %v8159_v14 = vld [vmem:[#allocation98_spill] sm:$0xff] }
 0x198   :  { %v2124_v11 = vsub.f32 %v1868_v56, %v1612_v32  ;;  %v2378_v54 = vand.u32 2147483647, %v2122_v35  ;;  %v2664_v19 = vsel %vm2600_vm0, %v2376_v17, 0.0  ;;  %v4991_v28 = vadd.f32 %v8158_v46, %v8157_v18  ;;  %v8160_v56 = vld [vmem:[#allocation87_spill] sm:$0xff]  ;;  %v8161_v32 = vld [vmem:[#allocation238_spill] sm:$0xff] }
 0x199   :  { %v1361_v8 = vadd.f32 %v4828_v13, %v8159_v14  ;;  %v1615_v55 = vadd.f32 %v1359_v15, %v4973_v33  ;;  %v2663_v50 = vadd.f32 %v2662_v63, %v2661_v3  ;;  %v1871_v2 = vmul.f32 9.0, %v8089_v37  ;;  %v8162_v17 = vld [vmem:[#allocation18_spill] sm:$0xff] }
 0x19a   :  { %v2125_v39 = vsub.f32 %v1869_v29, %v1613_v60  ;;  %v2379_v12 = vand.u32 2147483647, %v2123_v43  ;;  %v2666_v10 = vsel %vm2600_vm0, %v2377_v42, 0.0  ;;  %v5000_v35 = vadd.f32 %v8161_v32, %v8160_v56  ;;  %v8163_v29 = vld [vmem:[#allocation88_spill] sm:$0xff]  ;;  %v8164_v60 = vld [vmem:[#allocation242_spill] sm:$0xff] }
 0x19b   :  { %v1362_v58 = vadd.f32 %v4840_v57, %v8162_v17  ;;  %v1616_v46 = vadd.f32 %v1360_v0, %v4982_v4  ;;  %v2665_v18 = vadd.f32 %v2664_v19, %v2663_v50  ;;  %v1872_v14 = vmul.f32 9.0, %v8094_v47  ;;  %v8165_v42 = vld [vmem:[#allocation42_spill] sm:$0xff] }
 0x19c   :  { %v2126_v15 = vsub.f32 %v1870_v6, %v1614_v20  ;;  %v2380_v3 = vand.u32 2147483647, %v2124_v11  ;;  %v2668_v37 = vsel %vm2600_vm0, %v2378_v54, 0.0  ;;  %v5009_v43 = vadd.f32 %v8164_v60, %v8163_v29  ;;  %v8166_v20 = vld [vmem:[#allocation89_spill] sm:$0xff]  ;;  %v8167_v6 = vld [vmem:[#allocation246_spill] sm:$0xff]  ;;  %v8168_v54 = vld [vmem:[#allocation39_spill] sm:$0xff] }
 0x19d   :  { %v1363_v63 = vadd.f32 %v4852_v53, %v8165_v42  ;;  %v1617_v32 = vadd.f32 %v1361_v8, %v4991_v28  ;;  %v2667_v56 = vadd.f32 %v2666_v10, %v2665_v18  ;;  %v1873_v17 = vmul.f32 9.0, %v8098_v26 }
 0x19e   :  { %v2127_v0 = vsub.f32 %v1871_v2, %v1615_v55  ;;  %v2381_v50 = vand.u32 2147483647, %v2125_v39  ;;  %v2670_v47 = vsel %vm2600_vm0, %v2379_v12, 0.0  ;;  %v5018_v11 = vadd.f32 %v8167_v6, %v8166_v20  ;;  %v8169_v55 = vld [vmem:[#allocation91_spill] sm:$0xff]  ;;  %v8170_v2 = vld [vmem:[#allocation250_spill] sm:$0xff] }
 0x19f   :  { %v1364_v19 = vadd.f32 %v4864_v36, %v8168_v54  ;;  %v1618_v60 = vadd.f32 %v1362_v58, %v5000_v35  ;;  %v2669_v29 = vadd.f32 %v2668_v37, %v2667_v56  ;;  %v1874_v42 = vmul.f32 9.0, %v8102_v59  ;;  %v8171_v12 = vld [vmem:[#allocation102_spill] sm:$0xff] }
 0x1a0   :  { %v2128_v8 = vsub.f32 %v1872_v14, %v1616_v46  ;;  %v2382_v18 = vand.u32 2147483647, %v2126_v15  ;;  %v2672_v26 = vsel %vm2600_vm0, %v2380_v3, 0.0  ;;  %v5027_v39 = vadd.f32 %v8170_v2, %v8169_v55  ;;  %v8172_v46 = vld [vmem:[#allocation92_spill] sm:$0xff]  ;;  %v8173_v14 = vld [vmem:[#allocation254_spill] sm:$0xff]  ;;  %v8174_v3 = vld [vmem:[#allocation19_spill] sm:$0xff] }
 0x1a1   :  { %v1365_v10 = vadd.f32 %v4876_v62, %v8171_v12  ;;  %v1619_v6 = vadd.f32 %v1363_v63, %v5009_v43  ;;  %v2671_v20 = vadd.f32 %v2670_v47, %v2669_v29  ;;  %v1875_v54 = vmul.f32 9.0, %v8105_v51 }
 0x1a2   :  { %v2129_v58 = vsub.f32 %v1873_v17, %v1617_v32  ;;  %v2383_v56 = vand.u32 2147483647, %v2127_v0  ;;  %v2674_v59 = vsel %vm2600_vm0, %v2381_v50, 0.0  ;;  %v5036_v15 = vadd.f32 %v8173_v14, %v8172_v46  ;;  %v8175_v32 = vld [vmem:[#allocation315_spill] sm:$0xff]  ;;  %v8177_v0 = vld [vmem:[#allocation138_spill] sm:$0xff] }
 0x1a3   :  { %v1366_v37 = vadd.f32 %v4888_v23, %v8174_v3  ;;  %v1620_v2 = vadd.f32 %v1364_v19, %v5018_v11  ;;  %v2673_v55 = vadd.f32 %v2672_v26, %v2671_v20  ;;  %v1876_v12 = vmul.f32 9.0, %v8109_v61 }
 0x1a4   :  { %v2130_v63 = vsub.f32 %v1874_v42, %v1618_v60  ;;  %v2384_v29 = vand.u32 2147483647, %v2128_v8  ;;  %v2676_v51 = vsel %vm2600_vm0, %v2382_v18, 0.0  ;;  %v5045_v17 = vadd.f32 %v8175_v32, %v8128_v38  ;;  %v8178_v60 = vld [vmem:[#allocation316_spill] sm:$0xff] }
 0x1a5   :  { %v1367_v50 = vadd.f32 %v8132_v52, %v8177_v0  ;;  %v1621_v47 = vadd.f32 %v1365_v10, %v5027_v39  ;;  %v2675_v14 = vadd.f32 %v2674_v59, %v2673_v55  ;;  %v1877_v3 = vmul.f32 9.0, %v8113_v44  ;;  %v8182_v59 = vld [vmem:[#allocation258_spill] sm:$0xff] }
 0x1a6   :  { %8176 = vst [vmem:[#allocation126_spill] sm:$0xff] %v5045_v17  ;;  %v2131_v19 = vsub.f32 %v1875_v54, %v1619_v6  ;;  %v2385_v20 = vand.u32 2147483647, %v2129_v58  ;;  %v2678_v61 = vsel %vm2600_vm0, %v2383_v56, 0.0  ;;  %v5054_v42 = vadd.f32 %v8178_v60, %v8175_v32  ;;  %v8180_v6 = vld [vmem:[#allocation96_spill] sm:$0xff]  ;;  %v8181_v54 = vld [vmem:[#allocation262_spill] sm:$0xff] }
 0x1a7   :  { %v1368_v8 = vadd.f32 %v8131_v9, %v8066_v21  ;;  %v1622_v18 = vadd.f32 %v1366_v37, %v5036_v15  ;;  %v2677_v26 = vadd.f32 %v2676_v51, %v2675_v14  ;;  %v1878_v0 = vmul.f32 9.0, %v8118_v45 }
 0x1a8   :  { %8179 = vst [vmem:[#allocation27_spill] sm:$0xff] %v5054_v42  ;;  %v2132_v10 = vsub.f32 %v1876_v12, %v1620_v2  ;;  %v2386_v55 = vand.u32 2147483647, %v2130_v63  ;;  %v2680_v44 = vsel %vm2600_vm0, %v2384_v29, 0.0  ;;  %v5063_v58 = vadd.f32 %v8181_v54, %v8180_v6  ;;  %v8183_v2 = vld [vmem:[#allocation97_spill] sm:$0xff]  ;;  %v8184_v12 = vld [vmem:[#allocation266_spill] sm:$0xff] }
 0x1a9   :  { %v1369_v56 = vadd.f32 %v4918_v34, %v4727_v25  ;;  %v1623_v42 = vadd.f32 %v1367_v50, %v8182_v59  ;;  %v2679_v17 = vadd.f32 %v2678_v61, %v2677_v26  ;;  %v1879_v21 = vmul.f32 9.0, %v8122_v27  ;;  %v8185_v25 = vld [vmem:[#allocation72_spill] sm:$0xff] }
 0x1aa   :  { %v2133_v37 = vsub.f32 %v1877_v3, %v1621_v47  ;;  %v2387_v51 = vand.u32 2147483647, %v2131_v19  ;;  %v2682_v45 = vsel %vm2600_vm0, %v2385_v20, 0.0  ;;  %v5072_v63 = vadd.f32 %v8184_v12, %v8183_v2  ;;  %v8186_v47 = vld [vmem:[#allocation99_spill] sm:$0xff]  ;;  %v8187_v3 = vld [vmem:[#allocation270_spill] sm:$0xff] }
 0x1ab   :  { %v1370_v29 = vadd.f32 %v4928_v30, %v4742_v49  ;;  %v1624_v14 = vadd.f32 %v1368_v8, %v8181_v54  ;;  %v2681_v32 = vadd.f32 %v2680_v44, %v2679_v17  ;;  %v1880_v38 = vmul.f32 9.0, %v8185_v25  ;;  %v8188_v49 = vld [vmem:[#allocation73_spill] sm:$0xff] }
 0x1ac   :  { %v2134_v50 = vsub.f32 %v1878_v0, %v1622_v18  ;;  %v2388_v61 = vand.u32 2147483647, %v2132_v10  ;;  %v2684_v27 = vsel %vm2600_vm0, %v2386_v55, 0.0  ;;  %v5081_v19 = vadd.f32 %v8187_v3, %v8186_v47  ;;  %v8189_v18 = vld [vmem:[#allocation100_spill] sm:$0xff]  ;;  %v8190_v0 = vld [vmem:[#allocation274_spill] sm:$0xff] }
 0x1ad   :  { %v1371_v20 = vadd.f32 %v4937_v1, %v4755_v31  ;;  %v1625_v26 = vadd.f32 %v1369_v56, %v5063_v58  ;;  %v2683_v12 = vadd.f32 %v2682_v45, %v2681_v32  ;;  %v1881_v2 = vmul.f32 9.0, %v8188_v49 }
 0x1ae   :  { %v2135_v8 = vsub.f32 %v1879_v21, %v1623_v42  ;;  %v2389_v17 = vand.u32 2147483647, %v2133_v37  ;;  %v2686_v44 = vsel %vm2600_vm0, %v2387_v51, 0.0  ;;  %v5090_v10 = vadd.f32 %v8190_v0, %v8189_v18  ;;  %v8191_v42 = vld [vmem:[#allocation101_spill] sm:$0xff]  ;;  %v8192_v21 = vld [vmem:[#allocation278_spill] sm:$0xff] }
 0x1af   :  { %v1372_v55 = vadd.f32 %v4946_v41, %v4768_v24  ;;  %v1626_v25 = vadd.f32 %v1370_v29, %v5072_v63  ;;  %v2685_v3 = vadd.f32 %v2684_v27, %v2683_v12  ;;  %v1882_v31 = vmul.f32 9.0, %v8130_v7  ;;  %v8193_v24 = vld [vmem:[#allocation76_spill] sm:$0xff] }
 0x1b0   :  { %v2136_v56 = vsub.f32 %v1880_v38, %v1624_v14  ;;  %v2390_v32 = vand.u32 2147483647, %v2134_v50  ;;  %v2688_v45 = vsel %vm2600_vm0, %v2388_v61, 0.0  ;;  %v5099_v37 = vadd.f32 %v8192_v21, %v8191_v42  ;;  %v8194_v38 = vld [vmem:[#allocation103_spill] sm:$0xff]  ;;  %v8195_v14 = vld [vmem:[#allocation282_spill] sm:$0xff] }
 0x1b1   :  { %v1373_v51 = vadd.f32 %v4955_v22, %v4780_v16  ;;  %v1627_v49 = vadd.f32 %v1371_v20, %v5081_v19  ;;  %v2687_v0 = vadd.f32 %v2686_v44, %v2685_v3  ;;  %v1883_v18 = vmul.f32 9.0, %v8193_v24  ;;  %v8196_v61 = vld [vmem:[#allocation58_spill] sm:$0xff]  ;;  %v8197_v16 = vld [vmem:[#allocation77_spill] sm:$0xff] }
 0x1b2   :  { %v2137_v29 = vsub.f32 %v1881_v2, %v1625_v26  ;;  %v2391_v27 = vand.u32 2147483647, %v2135_v8  ;;  %v2690_v7 = vsel %vm2600_vm0, %v2389_v17, 0.0  ;;  %v5108_v50 = vadd.f32 %v8195_v14, %v8194_v38  ;;  %v8198_v2 = vld [vmem:[#allocation104_spill] sm:$0xff]  ;;  %v8199_v26 = vld [vmem:[#allocation286_spill] sm:$0xff] }
 0x1b3   :  { %v1374_v12 = vadd.f32 %v4964_v5, %v8196_v61  ;;  %v1628_v21 = vadd.f32 %v1372_v55, %v5090_v10  ;;  %v2689_v42 = vadd.f32 %v2688_v45, %v2687_v0  ;;  %v1884_v47 = vmul.f32 9.0, %v8197_v16  ;;  %v8200_v61 = vld [vmem:[#allocation79_spill] sm:$0xff] }
 0x1b4   :  { %v2138_v20 = vsub.f32 %v1882_v31, %v1626_v25  ;;  %v2392_v44 = vand.u32 2147483647, %v2136_v56  ;;  %v2692_v3 = vsel %vm2600_vm0, %v2390_v32, 0.0  ;;  %v5117_v8 = vadd.f32 %v8199_v26, %v8198_v2  ;;  %v8201_v25 = vld [vmem:[#allocation105_spill] sm:$0xff]  ;;  %v8202_v31 = vld [vmem:[#allocation290_spill] sm:$0xff] }
 0x1b5   :  { %v1375_v17 = vadd.f32 %v4973_v33, %v4804_v48  ;;  %v1629_v24 = vadd.f32 %v1373_v51, %v5099_v37  ;;  %v2691_v14 = vadd.f32 %v2690_v7, %v2689_v42  ;;  %v1885_v38 = vmul.f32 9.0, %v8200_v61  ;;  %v8203_v48 = vld [vmem:[#allocation80_spill] sm:$0xff] }
 0x1b6   :  { %v2139_v55 = vsub.f32 %v1883_v18, %v1627_v49  ;;  %v2393_v45 = vand.u32 2147483647, %v2137_v29  ;;  %v2694_v0 = vsel %vm2600_vm0, %v2391_v27, 0.0  ;;  %v5126_v56 = vadd.f32 %v8202_v31, %v8201_v25  ;;  %v8204_v18 = vld [vmem:[#allocation107_spill] sm:$0xff]  ;;  %v8205_v49 = vld [vmem:[#allocation294_spill] sm:$0xff] }
 0x1b7   :  { %v1376_v32 = vadd.f32 %v4982_v4, %v4816_v40  ;;  %v1630_v16 = vadd.f32 %v1374_v12, %v5108_v50  ;;  %v2693_v26 = vadd.f32 %v2692_v3, %v2691_v14  ;;  %v1886_v2 = vmul.f32 9.0, %v8203_v48  ;;  %v8206_v40 = vld [vmem:[#allocation81_spill] sm:$0xff] }
 0x1b8   :  { %v2140_v51 = vsub.f32 %v1884_v47, %v1628_v21  ;;  %v2394_v42 = vand.u32 2147483647, %v2138_v20  ;;  %v2696_v7 = vsel %vm2600_vm0, %v2392_v44, 0.0  ;;  %v5135_v29 = vadd.f32 %v8205_v49, %v8204_v18  ;;  %v8207_v47 = vld [vmem:[#allocation108_spill] sm:$0xff]  ;;  %v8208_v21 = vld [vmem:[#allocation298_spill] sm:$0xff] }
 0x1b9   :  { %v1377_v27 = vadd.f32 %v4991_v28, %v4828_v13  ;;  %v1631_v61 = vadd.f32 %v1375_v17, %v5117_v8  ;;  %v2695_v31 = vadd.f32 %v2694_v0, %v2693_v26  ;;  %v1887_v25 = vmul.f32 9.0, %v8206_v40  ;;  %v8209_v13 = vld [vmem:[#allocation83_spill] sm:$0xff] }
 0x1ba   :  { %v2141_v12 = vsub.f32 %v1885_v38, %v1629_v24  ;;  %v2395_v3 = vand.u32 2147483647, %v2139_v55  ;;  %v2698_v14 = vsel %vm2600_vm0, %v2393_v45, 0.0  ;;  %v5144_v20 = vadd.f32 %v8208_v21, %v8207_v47  ;;  %v8210_v38 = vld [vmem:[#allocation109_spill] sm:$0xff]  ;;  %v8211_v24 = vld [vmem:[#allocation302_spill] sm:$0xff] }
 0x1bb   :  { %v1378_v44 = vadd.f32 %v5000_v35, %v4840_v57  ;;  %v1632_v48 = vadd.f32 %v1376_v32, %v5126_v56  ;;  %v2697_v49 = vadd.f32 %v2696_v7, %v2695_v31  ;;  %v1888_v18 = vmul.f32 9.0, %v8209_v13  ;;  %v8212_v57 = vld [vmem:[#allocation84_spill] sm:$0xff] }
 0x1bc   :  { %v2142_v17 = vsub.f32 %v1886_v2, %v1630_v16  ;;  %v2396_v0 = vand.u32 2147483647, %v2140_v51  ;;  %v2700_v26 = vsel %vm2600_vm0, %v2394_v42, 0.0  ;;  %v5153_v55 = vadd.f32 %v8211_v24, %v8210_v38  ;;  %v8213_v2 = vld [vmem:[#allocation111_spill] sm:$0xff]  ;;  %v8214_v16 = vld [vmem:[#allocation306_spill] sm:$0xff] }
 0x1bd   :  { %v1379_v45 = vadd.f32 %v5009_v43, %v4852_v53  ;;  %v1633_v40 = vadd.f32 %v1377_v27, %v5135_v29  ;;  %v2699_v21 = vadd.f32 %v2698_v14, %v2697_v49  ;;  %v1889_v47 = vmul.f32 9.0, %v8212_v57  ;;  %v8215_v53 = vld [vmem:[#allocation85_spill] sm:$0xff] }
 0x1be   :  { %v2143_v32 = vsub.f32 %v1887_v25, %v1631_v61  ;;  %v2397_v7 = vand.u32 2147483647, %v2141_v12  ;;  %v2702_v31 = vsel %vm2600_vm0, %v2395_v3, 0.0  ;;  %v5162_v51 = vadd.f32 %v8214_v16, %v8213_v2  ;;  %v8216_v25 = vld [vmem:[#allocation112_spill] sm:$0xff]  ;;  %v8217_v61 = vld [vmem:[#allocation310_spill] sm:$0xff] }
 0x1bf   :  { %v1380_v42 = vadd.f32 %v5018_v11, %v4864_v36  ;;  %v1634_v13 = vadd.f32 %v1378_v44, %v5144_v20  ;;  %v2701_v24 = vadd.f32 %v2700_v26, %v2699_v21  ;;  %v1890_v38 = vmul.f32 9.0, %v8215_v53  ;;  %v8218_v36 = vld [vmem:[#allocation87_spill] sm:$0xff] }
 0x1c0   :  { %v2144_v27 = vsub.f32 %v1888_v18, %v1632_v48  ;;  %v2398_v14 = vand.u32 2147483647, %v2142_v17  ;;  %v2704_v49 = vsel %vm2600_vm0, %v2396_v0, 0.0  ;;  %v5171_v12 = vadd.f32 %v8217_v61, %v8216_v25  ;;  %v8219_v18 = vld [vmem:[#allocation113_spill] sm:$0xff]  ;;  %v8220_v48 = vld [vmem:[#allocation314_spill] sm:$0xff] }
 0x1c1   :  { %v1381_v3 = vadd.f32 %v5027_v39, %v4876_v62  ;;  %v1635_v57 = vadd.f32 %v1379_v45, %v5153_v55  ;;  %v2703_v16 = vadd.f32 %v2702_v31, %v2701_v24  ;;  %v1891_v2 = vmul.f32 9.0, %v8218_v36  ;;  %v8221_v62 = vld [vmem:[#allocation88_spill] sm:$0xff] }
 0x1c2   :  { %v2145_v44 = vsub.f32 %v1889_v47, %v1633_v40  ;;  %v2399_v26 = vand.u32 2147483647, %v2143_v32  ;;  %v2706_v21 = vsel %vm2600_vm0, %v2397_v7, 0.0  ;;  %v5180_v17 = vadd.f32 %v8220_v48, %v8219_v18  ;;  %v8222_v47 = vld [vmem:[#allocation317_spill] sm:$0xff] }
 0x1c3   :  { %v1382_v0 = vadd.f32 %v5036_v15, %v4888_v23  ;;  %v1636_v53 = vadd.f32 %v1380_v42, %v5162_v51  ;;  %v2705_v61 = vadd.f32 %v2704_v49, %v2703_v16  ;;  %v1892_v25 = vmul.f32 9.0, %v8221_v62  ;;  %v8224_v23 = vld [vmem:[#allocation89_spill] sm:$0xff] }
 0x1c4   :  { %v2146_v45 = vsub.f32 %v1890_v38, %v1634_v13  ;;  %v2400_v31 = vand.u32 2147483647, %v2144_v27  ;;  %v2708_v24 = vsel %vm2600_vm0, %v2398_v14, 0.0  ;;  %v5189_v40 = vadd.f32 %v8222_v47, %v8178_v60  ;;  %v8225_v38 = vld [vmem:[#allocation319_spill] sm:$0xff] }
 0x1c5   :  { %v1383_v32 = vadd.f32 %v8182_v59, %v8132_v52  ;;  %v1637_v7 = vadd.f32 %v1381_v3, %v5171_v12  ;;  %v2707_v36 = vadd.f32 %v2706_v21, %v2705_v61  ;;  %v1893_v48 = vmul.f32 9.0, %v8224_v23  ;;  %v8227_v52 = vld [vmem:[#allocation91_spill] sm:$0xff]  ;;  %v8230_v23 = vld [vmem:[#allocation318_spill] sm:$0xff] }
 0x1c6   :  { %8223 = vst [vmem:[#allocation70_spill] sm:$0xff] %v5189_v40  ;;  %v2147_v42 = vsub.f32 %v1891_v2, %v1635_v57  ;;  %v2401_v49 = vand.u32 2147483647, %v2145_v44  ;;  %v2710_v16 = vsel %vm2600_vm0, %v2399_v26, 0.0  ;;  %v5198_v13 = vadd.f32 %v8225_v38, %v8222_v47  ;;  %v8228_v2 = vld [vmem:[#allocation117_spill] sm:$0xff]  ;;  %v8229_v57 = vld [vmem:[#allocation322_spill] sm:$0xff] }
 0x1c7   :  { %v1384_v27 = vadd.f32 %v8181_v54, %v8131_v9  ;;  %v1638_v14 = vadd.f32 %v1382_v0, %v5180_v17  ;;  %v2709_v62 = vadd.f32 %v2708_v24, %v2707_v36  ;;  %v1894_v40 = vmul.f32 9.0, %v8227_v52 }
 0x1c8   :  { %8226 = vst [vmem:[#allocation48_spill] sm:$0xff] %v5198_v13  ;;  %v2148_v3 = vsub.f32 %v1892_v25, %v1636_v53  ;;  %v2402_v21 = vand.u32 2147483647, %v2146_v45  ;;  %v2712_v61 = vsel %vm2600_vm0, %v2400_v31, 0.0  ;;  %v5207_v44 = vadd.f32 %v8229_v57, %v8228_v2  ;;  %v8231_v25 = vld [vmem:[#allocation119_spill] sm:$0xff]  ;;  %v8232_v53 = vld [vmem:[#allocation326_spill] sm:$0xff] }
 0x1c9   :  { %v1385_v26 = vadd.f32 %v5063_v58, %v4918_v34  ;;  %v1639_v13 = vadd.f32 %v1383_v32, %v8230_v23  ;;  %v2711_v47 = vadd.f32 %v2710_v16, %v2709_v62  ;;  %v1895_v9 = vmul.f32 9.0, %v8172_v46  ;;  %v8233_v34 = vld [vmem:[#allocation93_spill] sm:$0xff] }
 0x1ca   :  { %v2149_v0 = vsub.f32 %v1893_v48, %v1637_v7  ;;  %v2403_v24 = vand.u32 2147483647, %v2147_v42  ;;  %v2714_v36 = vsel %vm2600_vm0, %v2401_v49, 0.0  ;;  %v5216_v45 = vadd.f32 %v8232_v53, %v8231_v25  ;;  %v8234_v7 = vld [vmem:[#allocation120_spill] sm:$0xff]  ;;  %v8235_v48 = vld [vmem:[#allocation330_spill] sm:$0xff] }
 0x1cb   :  { %v1386_v31 = vadd.f32 %v5072_v63, %v4928_v30  ;;  %v1640_v52 = vadd.f32 %v1384_v27, %v8229_v57  ;;  %v2713_v60 = vadd.f32 %v2712_v61, %v2711_v47  ;;  %v1896_v2 = vmul.f32 9.0, %v8233_v34  ;;  %v8236_v30 = vld [vmem:[#allocation95_spill] sm:$0xff] }
 0x1cc   :  { %v2150_v32 = vsub.f32 %v1894_v40, %v1638_v14  ;;  %v2404_v16 = vand.u32 2147483647, %v2148_v3  ;;  %v2716_v46 = vsel %vm2600_vm0, %v2402_v21, 0.0  ;;  %v5225_v42 = vadd.f32 %v8235_v48, %v8234_v7  ;;  %v8237_v40 = vld [vmem:[#allocation121_spill] sm:$0xff]  ;;  %v8238_v14 = vld [vmem:[#allocation334_spill] sm:$0xff] }
 0x1cd   :  { %v1387_v49 = vadd.f32 %v5081_v19, %v4937_v1  ;;  %v1641_v62 = vadd.f32 %v1385_v26, %v5207_v44  ;;  %v2715_v53 = vadd.f32 %v2714_v36, %v2713_v60  ;;  %v1897_v25 = vmul.f32 9.0, %v8236_v30 }
 0x1ce   :  { %v2151_v27 = vsub.f32 %v1895_v9, %v1639_v13  ;;  %v2405_v47 = vand.u32 2147483647, %v2149_v0  ;;  %v2718_v61 = vsel %vm2600_vm0, %v2403_v24, 0.0  ;;  %v5234_v3 = vadd.f32 %v8238_v14, %v8237_v40  ;;  %v8239_v13 = vld [vmem:[#allocation123_spill] sm:$0xff]  ;;  %v8240_v9 = vld [vmem:[#allocation338_spill] sm:$0xff] }
 0x1cf   :  { %v1388_v21 = vadd.f32 %v5090_v10, %v4946_v41  ;;  %v1642_v34 = vadd.f32 %v1386_v31, %v5216_v45  ;;  %v2717_v48 = vadd.f32 %v2716_v46, %v2715_v53  ;;  %v1898_v1 = vmul.f32 9.0, %v8180_v6  ;;  %v8241_v41 = vld [vmem:[#allocation97_spill] sm:$0xff] }
 0x1d0   :  { %v2152_v26 = vsub.f32 %v1896_v2, %v1640_v52  ;;  %v2406_v60 = vand.u32 2147483647, %v2150_v32  ;;  %v2720_v36 = vsel %vm2600_vm0, %v2404_v16, 0.0  ;;  %v5243_v0 = vadd.f32 %v8240_v9, %v8239_v13  ;;  %v8242_v2 = vld [vmem:[#allocation124_spill] sm:$0xff]  ;;  %v8243_v52 = vld [vmem:[#allocation342_spill] sm:$0xff] }
 0x1d1   :  { %v1389_v24 = vadd.f32 %v5099_v37, %v4955_v22  ;;  %v1643_v30 = vadd.f32 %v1387_v49, %v5225_v42  ;;  %v2719_v14 = vadd.f32 %v2718_v61, %v2717_v48  ;;  %v1899_v40 = vmul.f32 9.0, %v8241_v41  ;;  %v8244_v22 = vld [vmem:[#allocation99_spill] sm:$0xff] }
 0x1d2   :  { %v2153_v31 = vsub.f32 %v1897_v25, %v1641_v62  ;;  %v2407_v46 = vand.u32 2147483647, %v2151_v27  ;;  %v2722_v6 = vsel %vm2600_vm0, %v2405_v47, 0.0  ;;  %v5252_v32 = vadd.f32 %v8243_v52, %v8242_v2  ;;  %v8245_v25 = vld [vmem:[#allocation125_spill] sm:$0xff]  ;;  %v8246_v62 = vld [vmem:[#allocation346_spill] sm:$0xff] }
 0x1d3   :  { %v1390_v16 = vadd.f32 %v5108_v50, %v4964_v5  ;;  %v1644_v53 = vadd.f32 %v1388_v21, %v5234_v3  ;;  %v2721_v9 = vadd.f32 %v2720_v36, %v2719_v14  ;;  %v1900_v13 = vmul.f32 9.0, %v8244_v22  ;;  %v8247_v5 = vld [vmem:[#allocation100_spill] sm:$0xff] }
 0x1d4   :  { %v2154_v49 = vsub.f32 %v1898_v1, %v1642_v34  ;;  %v2408_v61 = vand.u32 2147483647, %v2152_v26  ;;  %v2724_v48 = vsel %vm2600_vm0, %v2406_v60, 0.0  ;;  %v5261_v27 = vadd.f32 %v8246_v62, %v8245_v25  ;;  %v8248_v34 = vld [vmem:[#allocation127_spill] sm:$0xff]  ;;  %v8249_v1 = vld [vmem:[#allocation349_spill] sm:$0xff] }
 0x1d5   :  { %v1391_v47 = vadd.f32 %v5117_v8, %v4973_v33  ;;  %v1645_v41 = vadd.f32 %v1389_v24, %v5243_v0  ;;  %v2723_v52 = vadd.f32 %v2722_v6, %v2721_v9  ;;  %v1901_v2 = vmul.f32 9.0, %v8247_v5  ;;  %v8250_v33 = vld [vmem:[#allocation101_spill] sm:$0xff] }
 0x1d6   :  { %v2155_v21 = vsub.f32 %v1899_v40, %v1643_v30  ;;  %v2409_v36 = vand.u32 2147483647, %v2153_v31  ;;  %v2726_v14 = vsel %vm2600_vm0, %v2407_v46, 0.0  ;;  %v5270_v26 = vadd.f32 %v8249_v1, %v8248_v34  ;;  %v8251_v40 = vld [vmem:[#allocation128_spill] sm:$0xff]  ;;  %v8252_v30 = vld [vmem:[#allocation350_spill] sm:$0xff] }
 0x1d7   :  { %v1392_v60 = vadd.f32 %v5126_v56, %v4982_v4  ;;  %v1646_v22 = vadd.f32 %v1390_v16, %v5252_v32  ;;  %v2725_v62 = vadd.f32 %v2724_v48, %v2723_v52  ;;  %v1902_v25 = vmul.f32 9.0, %v8250_v33  ;;  %v8253_v4 = vld [vmem:[#allocation103_spill] sm:$0xff] }
 0x1d8   :  { %v2156_v24 = vsub.f32 %v1900_v13, %v1644_v53  ;;  %v2410_v6 = vand.u32 2147483647, %v2154_v49  ;;  %v2728_v9 = vsel %vm2600_vm0, %v2408_v61, 0.0  ;;  %v5279_v31 = vadd.f32 %v8252_v30, %v8251_v40  ;;  %v8254_v13 = vld [vmem:[#allocation129_spill] sm:$0xff]  ;;  %v8255_v53 = vld [vmem:[#allocation351_spill] sm:$0xff] }
 0x1d9   :  { %v1393_v46 = vadd.f32 %v5135_v29, %v4991_v28  ;;  %v1647_v5 = vadd.f32 %v1391_v47, %v5261_v27  ;;  %v2727_v1 = vadd.f32 %v2726_v14, %v2725_v62  ;;  %v1903_v34 = vmul.f32 9.0, %v8253_v4  ;;  %v8256_v28 = vld [vmem:[#allocation104_spill] sm:$0xff] }
 0x1da   :  { %v2157_v16 = vsub.f32 %v1901_v2, %v1645_v41  ;;  %v2411_v48 = vand.u32 2147483647, %v2155_v21  ;;  %v2730_v52 = vsel %vm2600_vm0, %v2409_v36, 0.0  ;;  %v5288_v49 = vadd.f32 %v8255_v53, %v8254_v13  ;;  %v8257_v2 = vld [vmem:[#allocation131_spill] sm:$0xff]  ;;  %v8258_v41 = vld [vmem:[#allocation352_spill] sm:$0xff] }
 0x1db   :  { %v1394_v61 = vadd.f32 %v5144_v20, %v5000_v35  ;;  %v1648_v33 = vadd.f32 %v1392_v60, %v5270_v26  ;;  %v2729_v30 = vadd.f32 %v2728_v9, %v2727_v1  ;;  %v1904_v40 = vmul.f32 9.0, %v8256_v28  ;;  %v8259_v35 = vld [vmem:[#allocation105_spill] sm:$0xff] }
 0x1dc   :  { %v2158_v47 = vsub.f32 %v1902_v25, %v1646_v22  ;;  %v2412_v14 = vand.u32 2147483647, %v2156_v24  ;;  %v2732_v62 = vsel %vm2600_vm0, %v2410_v6, 0.0  ;;  %v5297_v21 = vadd.f32 %v8258_v41, %v8257_v2  ;;  %v8260_v25 = vld [vmem:[#allocation132_spill] sm:$0xff]  ;;  %v8261_v22 = vld [vmem:[#allocation353_spill] sm:$0xff] }
 0x1dd   :  { %v1395_v36 = vadd.f32 %v5153_v55, %v5009_v43  ;;  %v1649_v4 = vadd.f32 %v1393_v46, %v5279_v31  ;;  %v2731_v53 = vadd.f32 %v2730_v52, %v2729_v30  ;;  %v1905_v13 = vmul.f32 9.0, %v8259_v35  ;;  %v8262_v43 = vld [vmem:[#allocation107_spill] sm:$0xff] }
 0x1de   :  { %v2159_v60 = vsub.f32 %v1903_v34, %v1647_v5  ;;  %v2413_v9 = vand.u32 2147483647, %v2157_v16  ;;  %v2734_v1 = vsel %vm2600_vm0, %v2411_v48, 0.0  ;;  %v5306_v24 = vadd.f32 %v8261_v22, %v8260_v25  ;;  %v8263_v34 = vld [vmem:[#allocation133_spill] sm:$0xff]  ;;  %v8264_v5 = vld [vmem:[#allocation354_spill] sm:$0xff] }
 0x1df   :  { %v1396_v6 = vadd.f32 %v5162_v51, %v5018_v11  ;;  %v1650_v28 = vadd.f32 %v1394_v61, %v5288_v49  ;;  %v2733_v41 = vadd.f32 %v2732_v62, %v2731_v53  ;;  %v1906_v2 = vmul.f32 9.0, %v8262_v43  ;;  %v8265_v11 = vld [vmem:[#allocation108_spill] sm:$0xff] }
 0x1e0   :  { %v2160_v46 = vsub.f32 %v1904_v40, %v1648_v33  ;;  %v2414_v52 = vand.u32 2147483647, %v2158_v47  ;;  %v2736_v30 = vsel %vm2600_vm0, %v2412_v14, 0.0  ;;  %v5315_v16 = vadd.f32 %v8264_v5, %v8263_v34  ;;  %v8266_v40 = vld [vmem:[#allocation135_spill] sm:$0xff] }
 0x1e1   :  { %v1397_v48 = vadd.f32 %v5171_v12, %v5027_v39  ;;  %v1651_v35 = vadd.f32 %v1395_v36, %v5297_v21  ;;  %v2735_v22 = vadd.f32 %v2734_v1, %v2733_v41  ;;  %v1907_v25 = vmul.f32 9.0, %v8265_v11  ;;  %v8267_v33 = vld [vmem:[#allocation355_spill] sm:$0xff]  ;;  %v8268_v39 = vld [vmem:[#allocation109_spill] sm:$0xff] }
 0x1e2   :  { %v2161_v61 = vsub.f32 %v1905_v13, %v1649_v4  ;;  %v2415_v62 = vand.u32 2147483647, %v2159_v60  ;;  %v2738_v53 = vsel %vm2600_vm0, %v2413_v9, 0.0  ;;  %v5324_v47 = vadd.f32 %v8267_v33, %v8266_v40  ;;  %v8269_v13 = vld [vmem:[#allocation320_spill] sm:$0xff] }
 0x1e3   :  { %v1398_v14 = vadd.f32 %v5180_v17, %v5036_v15  ;;  %v1652_v43 = vadd.f32 %v1396_v6, %v5306_v24  ;;  %v2737_v5 = vadd.f32 %v2736_v30, %v2735_v22  ;;  %v1908_v34 = vmul.f32 9.0, %v8268_v39  ;;  %v8271_v15 = vld [vmem:[#allocation111_spill] sm:$0xff] }
 0x1e4   :  { %v2162_v36 = vsub.f32 %v1906_v2, %v1650_v28  ;;  %v2416_v1 = vand.u32 2147483647, %v2160_v46  ;;  %v2740_v41 = vsel %vm2600_vm0, %v2414_v52, 0.0  ;;  %v5333_v4 = vadd.f32 %v8269_v13, %v8225_v38  ;;  %v8272_v2 = vld [vmem:[#allocation321_spill] sm:$0xff] }
 0x1e5   :  { %v1399_v60 = vadd.f32 %v8230_v23, %v8182_v59  ;;  %v1653_v9 = vadd.f32 %v1397_v48, %v5315_v16  ;;  %v2739_v11 = vadd.f32 %v2738_v53, %v2737_v5  ;;  %v1909_v33 = vmul.f32 9.0, %v8271_v15  ;;  %v8274_v59 = vld [vmem:[#allocation112_spill] sm:$0xff] }
 0x1e6   :  { %8270 = vst [vmem:[#allocation130_spill] sm:$0xff] %v5333_v4  ;;  %v2163_v6 = vsub.f32 %v1907_v25, %v1651_v35  ;;  %v2417_v30 = vand.u32 2147483647, %v2161_v61  ;;  %v2742_v22 = vsel %vm2600_vm0, %v2415_v62, 0.0  ;;  %v5342_v28 = vadd.f32 %v8272_v2, %v8269_v13  ;;  %v8275_v25 = vld [vmem:[#allocation139_spill] sm:$0xff]  ;;  %v8276_v35 = vld [vmem:[#allocation357_spill] sm:$0xff] }
 0x1e7   :  { %v1400_v46 = vadd.f32 %v8229_v57, %v8181_v54  ;;  %v1654_v52 = vadd.f32 %v1398_v14, %v5324_v47  ;;  %v2741_v39 = vadd.f32 %v2740_v41, %v2739_v11  ;;  %v1910_v4 = vmul.f32 9.0, %v8274_v59  ;;  %v8277_v15 = vld [vmem:[#allocation356_spill] sm:$0xff] }
 0x1e8   :  { %8273 = vst [vmem:[#allocation28_spill] sm:$0xff] %v5342_v28  ;;  %v2164_v48 = vsub.f32 %v1908_v34, %v1652_v43  ;;  %v2418_v53 = vand.u32 2147483647, %v2162_v36  ;;  %v2744_v5 = vsel %vm2600_vm0, %v2416_v1, 0.0  ;;  %v5351_v61 = vadd.f32 %v8276_v35, %v8275_v25  ;;  %v8278_v34 = vld [vmem:[#allocation140_spill] sm:$0xff]  ;;  %v8279_v43 = vld [vmem:[#allocation358_spill] sm:$0xff] }
 0x1e9   :  { %v1401_v62 = vadd.f32 %v5207_v44, %v5063_v58  ;;  %v1655_v28 = vadd.f32 %v1399_v60, %v8277_v15  ;;  %v2743_v13 = vadd.f32 %v2742_v22, %v2741_v39  ;;  %v1911_v54 = vmul.f32 9.0, %v8219_v18  ;;  %v8280_v58 = vld [vmem:[#allocation115_spill] sm:$0xff] }
 0x1ea   :  { %v2165_v14 = vsub.f32 %v1909_v33, %v1653_v9  ;;  %v2419_v41 = vand.u32 2147483647, %v2163_v6  ;;  %v2746_v11 = vsel %vm2600_vm0, %v2417_v30, 0.0  ;;  %v5360_v36 = vadd.f32 %v8279_v43, %v8278_v34  ;;  %v8281_v9 = vld [vmem:[#allocation141_spill] sm:$0xff]  ;;  %v8282_v33 = vld [vmem:[#allocation359_spill] sm:$0xff] }
 0x1eb   :  { %v1402_v1 = vadd.f32 %v5216_v45, %v5072_v63  ;;  %v1656_v59 = vadd.f32 %v1400_v46, %v8276_v35  ;;  %v2745_v38 = vadd.f32 %v2744_v5, %v2743_v13  ;;  %v1912_v25 = vmul.f32 9.0, %v8280_v58  ;;  %v8283_v63 = vld [vmem:[#allocation116_spill] sm:$0xff] }
 0x1ec   :  { %v2166_v60 = vsub.f32 %v1910_v4, %v1654_v52  ;;  %v2420_v22 = vand.u32 2147483647, %v2164_v48  ;;  %v2748_v18 = vsel %vm2600_vm0, %v2418_v53, 0.0  ;;  %v5369_v6 = vadd.f32 %v8282_v33, %v8281_v9  ;;  %v8284_v4 = vld [vmem:[#allocation143_spill] sm:$0xff]  ;;  %v8285_v52 = vld [vmem:[#allocation360_spill] sm:$0xff] }
 0x1ed   :  { %v1403_v30 = vadd.f32 %v5225_v42, %v5081_v19  ;;  %v1657_v39 = vadd.f32 %v1401_v62, %v5351_v61  ;;  %v2747_v43 = vadd.f32 %v2746_v11, %v2745_v38  ;;  %v1913_v34 = vmul.f32 9.0, %v8283_v63  ;;  %v8286_v19 = vld [vmem:[#allocation117_spill] sm:$0xff] }
 0x1ee   :  { %v2167_v46 = vsub.f32 %v1911_v54, %v1655_v28  ;;  %v2421_v13 = vand.u32 2147483647, %v2165_v14  ;;  %v2750_v5 = vsel %vm2600_vm0, %v2419_v41, 0.0  ;;  %v5378_v48 = vadd.f32 %v8285_v52, %v8284_v4  ;;  %v8287_v28 = vld [vmem:[#allocation144_spill] sm:$0xff]  ;;  %v8288_v54 = vld [vmem:[#allocation361_spill] sm:$0xff] }
 0x1ef   :  { %v1404_v53 = vadd.f32 %v5234_v3, %v5090_v10  ;;  %v1658_v58 = vadd.f32 %v1402_v1, %v5360_v36  ;;  %v2749_v33 = vadd.f32 %v2748_v18, %v2747_v43  ;;  %v1914_v9 = vmul.f32 9.0, %v8286_v19  ;;  %v8289_v10 = vld [vmem:[#allocation119_spill] sm:$0xff] }
 0x1f0   :  { %v2168_v62 = vsub.f32 %v1912_v25, %v1656_v59  ;;  %v2422_v38 = vand.u32 2147483647, %v2166_v60  ;;  %v2752_v11 = vsel %vm2600_vm0, %v2420_v22, 0.0  ;;  %v5387_v14 = vadd.f32 %v8288_v54, %v8287_v28  ;;  %v8290_v25 = vld [vmem:[#allocation145_spill] sm:$0xff]  ;;  %v8291_v59 = vld [vmem:[#allocation362_spill] sm:$0xff] }
 0x1f1   :  { %v1405_v41 = vadd.f32 %v5243_v0, %v5099_v37  ;;  %v1659_v63 = vadd.f32 %v1403_v30, %v5369_v6  ;;  %v2751_v52 = vadd.f32 %v2750_v5, %v2749_v33  ;;  %v1915_v4 = vmul.f32 9.0, %v8289_v10 }
 0x1f2   :  { %v2169_v1 = vsub.f32 %v1913_v34, %v1657_v39  ;;  %v2423_v18 = vand.u32 2147483647, %v2167_v46  ;;  %v2754_v43 = vsel %vm2600_vm0, %v2421_v13, 0.0  ;;  %v5396_v60 = vadd.f32 %v8291_v59, %v8290_v25  ;;  %v8292_v34 = vld [vmem:[#allocation147_spill] sm:$0xff] }
 0x1f3   :  { %v1406_v22 = vadd.f32 %v5252_v32, %v5108_v50  ;;  %v1660_v19 = vadd.f32 %v1404_v53, %v5378_v48  ;;  %v2753_v54 = vadd.f32 %v2752_v11, %v2751_v52  ;;  %v1916_v37 = vmul.f32 9.0, %v8234_v7  ;;  %v8293_v39 = vld [vmem:[#allocation363_spill] sm:$0xff]  ;;  %v8294_v50 = vld [vmem:[#allocation121_spill] sm:$0xff] }
 0x1f4   :  { %v2170_v30 = vsub.f32 %v1914_v9, %v1658_v58  ;;  %v2424_v5 = vand.u32 2147483647, %v2168_v62  ;;  %v2756_v33 = vsel %vm2600_vm0, %v2422_v38, 0.0  ;;  %v5405_v46 = vadd.f32 %v8293_v39, %v8292_v34  ;;  %v8295_v9 = vld [vmem:[#allocation148_spill] sm:$0xff] }
 0x1f5   :  { %v1407_v13 = vadd.f32 %v5261_v27, %v5117_v8  ;;  %v1661_v10 = vadd.f32 %v1405_v41, %v5387_v14  ;;  %v2755_v59 = vadd.f32 %v2754_v43, %v2753_v54  ;;  %v1917_v25 = vmul.f32 9.0, %v8294_v50  ;;  %v8296_v58 = vld [vmem:[#allocation364_spill] sm:$0xff]  ;;  %v8297_v8 = vld [vmem:[#allocation123_spill] sm:$0xff] }
 0x1f6   :  { %v2171_v53 = vsub.f32 %v1915_v4, %v1659_v63  ;;  %v2425_v11 = vand.u32 2147483647, %v2169_v1  ;;  %v2758_v7 = vsel %vm2600_vm0, %v2423_v18, 0.0  ;;  %v5414_v62 = vadd.f32 %v8296_v58, %v8295_v9  ;;  %v8298_v4 = vld [vmem:[#allocation149_spill] sm:$0xff] }
 0x1f7   :  { %v1408_v38 = vadd.f32 %v5270_v26, %v5126_v56  ;;  %v1662_v52 = vadd.f32 %v1406_v22, %v5396_v60  ;;  %v2757_v39 = vadd.f32 %v2756_v33, %v2755_v59  ;;  %v1918_v34 = vmul.f32 9.0, %v8297_v8  ;;  %v8299_v63 = vld [vmem:[#allocation365_spill] sm:$0xff]  ;;  %v8300_v56 = vld [vmem:[#allocation124_spill] sm:$0xff] }
 0x1f8   :  { %v2172_v41 = vsub.f32 %v1916_v37, %v1660_v19  ;;  %v2426_v43 = vand.u32 2147483647, %v2170_v30  ;;  %v2760_v54 = vsel %vm2600_vm0, %v2424_v5, 0.0  ;;  %v5423_v1 = vadd.f32 %v8299_v63, %v8298_v4  ;;  %v8301_v19 = vld [vmem:[#allocation151_spill] sm:$0xff]  ;;  %v8302_v37 = vld [vmem:[#allocation366_spill] sm:$0xff] }
 0x1f9   :  { %v1409_v18 = vadd.f32 %v5279_v31, %v5135_v29  ;;  %v1663_v50 = vadd.f32 %v1407_v13, %v5405_v46  ;;  %v2759_v58 = vadd.f32 %v2758_v7, %v2757_v39  ;;  %v1919_v9 = vmul.f32 9.0, %v8300_v56  ;;  %v8303_v29 = vld [vmem:[#allocation125_spill] sm:$0xff] }
 0x1fa   :  { %v2173_v22 = vsub.f32 %v1917_v25, %v1661_v10  ;;  %v2427_v33 = vand.u32 2147483647, %v2171_v53  ;;  %v2762_v59 = vsel %vm2600_vm0, %v2425_v11, 0.0  ;;  %v5432_v30 = vadd.f32 %v8302_v37, %v8301_v19  ;;  %v8304_v25 = vld [vmem:[#allocation152_spill] sm:$0xff]  ;;  %v8305_v10 = vld [vmem:[#allocation367_spill] sm:$0xff] }
 0x1fb   :  { %v1410_v5 = vadd.f32 %v5288_v49, %v5144_v20  ;;  %v1664_v8 = vadd.f32 %v1408_v38, %v5414_v62  ;;  %v2761_v63 = vadd.f32 %v2760_v54, %v2759_v58  ;;  %v1920_v4 = vmul.f32 9.0, %v8303_v29  ;;  %v8306_v20 = vld [vmem:[#allocation127_spill] sm:$0xff] }
 0x1fc   :  { %v2174_v13 = vsub.f32 %v1918_v34, %v1662_v52  ;;  %v2428_v7 = vand.u32 2147483647, %v2172_v41  ;;  %v2764_v39 = vsel %vm2600_vm0, %v2426_v43, 0.0  ;;  %v5441_v53 = vadd.f32 %v8305_v10, %v8304_v25  ;;  %v8307_v34 = vld [vmem:[#allocation153_spill] sm:$0xff]  ;;  %v8308_v52 = vld [vmem:[#allocation368_spill] sm:$0xff] }
 0x1fd   :  { %v1411_v11 = vadd.f32 %v5297_v21, %v5153_v55  ;;  %v1665_v56 = vadd.f32 %v1409_v18, %v5423_v1  ;;  %v2763_v37 = vadd.f32 %v2762_v59, %v2761_v63  ;;  %v1921_v19 = vmul.f32 9.0, %v8306_v20  ;;  %v8309_v55 = vld [vmem:[#allocation128_spill] sm:$0xff] }
 0x1fe   :  { %v2175_v38 = vsub.f32 %v1919_v9, %v1663_v50  ;;  %v2429_v54 = vand.u32 2147483647, %v2173_v22  ;;  %v2766_v58 = vsel %vm2600_vm0, %v2427_v33, 0.0  ;;  %v5450_v41 = vadd.f32 %v8308_v52, %v8307_v34  ;;  %v8310_v9 = vld [vmem:[#allocation155_spill] sm:$0xff]  ;;  %v8311_v50 = vld [vmem:[#allocation369_spill] sm:$0xff] }
 0x1ff   :  { %v1412_v43 = vadd.f32 %v5306_v24, %v5162_v51  ;;  %v1666_v29 = vadd.f32 %v1410_v5, %v5432_v30  ;;  %v2765_v10 = vadd.f32 %v2764_v39, %v2763_v37  ;;  %v1922_v25 = vmul.f32 9.0, %v8309_v55  ;;  %v8312_v51 = vld [vmem:[#allocation129_spill] sm:$0xff] }
 0x200   :  { %v2176_v18 = vsub.f32 %v1920_v4, %v1664_v8  ;;  %v2430_v59 = vand.u32 2147483647, %v2174_v13  ;;  %v2768_v63 = vsel %vm2600_vm0, %v2428_v7, 0.0  ;;  %v5459_v22 = vadd.f32 %v8311_v50, %v8310_v9  ;;  %v8313_v4 = vld [vmem:[#allocation156_spill] sm:$0xff]  ;;  %v8314_v8 = vld [vmem:[#allocation370_spill] sm:$0xff] }
 0x201   :  { %v1413_v33 = vadd.f32 %v5315_v16, %v5171_v12  ;;  %v1667_v20 = vadd.f32 %v1411_v11, %v5441_v53  ;;  %v2767_v52 = vadd.f32 %v2766_v58, %v2765_v10  ;;  %v1923_v34 = vmul.f32 9.0, %v8312_v51  ;;  %v8315_v12 = vld [vmem:[#allocation131_spill] sm:$0xff] }
 0x202   :  { %v2177_v5 = vsub.f32 %v1921_v19, %v1665_v56  ;;  %v2431_v39 = vand.u32 2147483647, %v2175_v38  ;;  %v2770_v37 = vsel %vm2600_vm0, %v2429_v54, 0.0  ;;  %v5468_v13 = vadd.f32 %v8314_v8, %v8313_v4  ;;  %v8316_v19 = vld [vmem:[#allocation323_spill] sm:$0xff] }
 0x203   :  { %v1414_v7 = vadd.f32 %v5324_v47, %v5180_v17  ;;  %v1668_v55 = vadd.f32 %v1412_v43, %v5450_v41  ;;  %v2769_v50 = vadd.f32 %v2768_v63, %v2767_v52  ;;  %v1924_v9 = vmul.f32 9.0, %v8315_v12  ;;  %v8318_v17 = vld [vmem:[#allocation132_spill] sm:$0xff] }
 0x204   :  { %v2178_v11 = vsub.f32 %v1922_v25, %v1666_v29  ;;  %v2432_v58 = vand.u32 2147483647, %v2176_v18  ;;  %v2772_v10 = vsel %vm2600_vm0, %v2430_v59, 0.0  ;;  %v5477_v56 = vadd.f32 %v8316_v19, %v8272_v2  ;;  %v8319_v25 = vld [vmem:[#allocation324_spill] sm:$0xff] }
 0x205   :  { %v1415_v38 = vadd.f32 %v8277_v15, %v8230_v23  ;;  %v1669_v54 = vadd.f32 %v1413_v33, %v5459_v22  ;;  %v2771_v51 = vadd.f32 %v2770_v37, %v2769_v50  ;;  %v1925_v8 = vmul.f32 9.0, %v8318_v17  ;;  %v8321_v23 = vld [vmem:[#allocation133_spill] sm:$0xff]  ;;  %v8324_v17 = vld [vmem:[#allocation371_spill] sm:$0xff] }
 0x206   :  { %8317 = vst [vmem:[#allocation74_spill] sm:$0xff] %v5477_v56  ;;  %v2179_v43 = vsub.f32 %v1923_v34, %v1667_v20  ;;  %v2433_v63 = vand.u32 2147483647, %v2177_v5  ;;  %v2774_v52 = vsel %vm2600_vm0, %v2431_v39, 0.0  ;;  %v5486_v29 = vadd.f32 %v8319_v25, %v8316_v19  ;;  %v8322_v34 = vld [vmem:[#allocation160_spill] sm:$0xff] }
 0x207   :  { %v1416_v18 = vadd.f32 %v8276_v35, %v8229_v57  ;;  %v1670_v59 = vadd.f32 %v1414_v7, %v5468_v13  ;;  %v2773_v12 = vadd.f32 %v2772_v10, %v2771_v51  ;;  %v1926_v56 = vmul.f32 9.0, %v8321_v23  ;;  %v8323_v20 = vld [vmem:[#allocation372_spill] sm:$0xff] }
 0x208   :  { %8320 = vst [vmem:[#allocation49_spill] sm:$0xff] %v5486_v29  ;;  %v2180_v33 = vsub.f32 %v1924_v9, %v1668_v55  ;;  %v2434_v37 = vand.u32 2147483647, %v2178_v11  ;;  %v2776_v50 = vsel %vm2600_vm0, %v2432_v58, 0.0  ;;  %v5495_v5 = vadd.f32 %v8323_v20, %v8322_v34  ;;  %v8325_v9 = vld [vmem:[#allocation161_spill] sm:$0xff] }
 0x209   :  { %v1417_v39 = vadd.f32 %v5351_v61, %v5207_v44  ;;  %v1671_v29 = vadd.f32 %v1415_v38, %v8324_v17  ;;  %v2775_v19 = vadd.f32 %v2774_v52, %v2773_v12  ;;  %v1927_v57 = vmul.f32 9.0, %v8266_v40  ;;  %v8326_v55 = vld [vmem:[#allocation373_spill] sm:$0xff]  ;;  %v8327_v44 = vld [vmem:[#allocation136_spill] sm:$0xff] }
 0x20a   :  { %v2181_v7 = vsub.f32 %v1925_v8, %v1669_v54  ;;  %v2435_v10 = vand.u32 2147483647, %v2179_v43  ;;  %v2778_v51 = vsel %vm2600_vm0, %v2433_v63, 0.0  ;;  %v5504_v11 = vadd.f32 %v8326_v55, %v8325_v9  ;;  %v8328_v54 = vld [vmem:[#allocation163_spill] sm:$0xff]  ;;  %v8329_v8 = vld [vmem:[#allocation374_spill] sm:$0xff] }
 0x20b   :  { %v1418_v58 = vadd.f32 %v5360_v36, %v5216_v45  ;;  %v1672_v23 = vadd.f32 %v1416_v18, %v8323_v20  ;;  %v2777_v2 = vadd.f32 %v2776_v50, %v2775_v19  ;;  %v1928_v34 = vmul.f32 9.0, %v8327_v44  ;;  %v8330_v45 = vld [vmem:[#allocation137_spill] sm:$0xff] }
 0x20c   :  { %v2182_v38 = vsub.f32 %v1926_v56, %v1670_v59  ;;  %v2436_v52 = vand.u32 2147483647, %v2180_v33  ;;  %v2780_v40 = vsel %vm2600_vm0, %v2434_v37, 0.0  ;;  %v5513_v43 = vadd.f32 %v8329_v8, %v8328_v54  ;;  %v8331_v56 = vld [vmem:[#allocation164_spill] sm:$0xff]  ;;  %v8332_v59 = vld [vmem:[#allocation375_spill] sm:$0xff] }
 0x20d   :  { %v1419_v63 = vadd.f32 %v5369_v6, %v5225_v42  ;;  %v1673_v12 = vadd.f32 %v1417_v39, %v5495_v5  ;;  %v2779_v55 = vadd.f32 %v2778_v51, %v2777_v2  ;;  %v1929_v9 = vmul.f32 9.0, %v8330_v45  ;;  %v8333_v42 = vld [vmem:[#allocation139_spill] sm:$0xff] }
 0x20e   :  { %v2183_v18 = vsub.f32 %v1927_v57, %v1671_v29  ;;  %v2437_v19 = vand.u32 2147483647, %v2181_v7  ;;  %v2782_v50 = vsel %vm2600_vm0, %v2435_v10, 0.0  ;;  %v5522_v33 = vadd.f32 %v8332_v59, %v8331_v56  ;;  %v8334_v29 = vld [vmem:[#allocation165_spill] sm:$0xff]  ;;  %v8335_v57 = vld [vmem:[#allocation376_spill] sm:$0xff] }
 0x20f   :  { %v1420_v37 = vadd.f32 %v5378_v48, %v5234_v3  ;;  %v1674_v44 = vadd.f32 %v1418_v58, %v5504_v11  ;;  %v2781_v8 = vadd.f32 %v2780_v40, %v2779_v55  ;;  %v1930_v54 = vmul.f32 9.0, %v8333_v42  ;;  %v8336_v3 = vld [vmem:[#allocation140_spill] sm:$0xff] }
 0x210   :  { %v2184_v39 = vsub.f32 %v1928_v34, %v1672_v23  ;;  %v2438_v2 = vand.u32 2147483647, %v2182_v38  ;;  %v2784_v51 = vsel %vm2600_vm0, %v2436_v52, 0.0  ;;  %v5531_v7 = vadd.f32 %v8335_v57, %v8334_v29  ;;  %v8337_v34 = vld [vmem:[#allocation167_spill] sm:$0xff]  ;;  %v8338_v23 = vld [vmem:[#allocation377_spill] sm:$0xff] }
 0x211   :  { %v1421_v10 = vadd.f32 %v5387_v14, %v5243_v0  ;;  %v1675_v45 = vadd.f32 %v1419_v63, %v5513_v43  ;;  %v2783_v59 = vadd.f32 %v2782_v50, %v2781_v8  ;;  %v1931_v56 = vmul.f32 9.0, %v8336_v3  ;;  %v8339_v0 = vld [vmem:[#allocation141_spill] sm:$0xff] }
 0x212   :  { %v2185_v58 = vsub.f32 %v1929_v9, %v1673_v12  ;;  %v2439_v40 = vand.u32 2147483647, %v2183_v18  ;;  %v2786_v55 = vsel %vm2600_vm0, %v2437_v19, 0.0  ;;  %v5540_v38 = vadd.f32 %v8338_v23, %v8337_v34  ;;  %v8340_v9 = vld [vmem:[#allocation168_spill] sm:$0xff]  ;;  %v8341_v12 = vld [vmem:[#allocation378_spill] sm:$0xff] }
 0x213   :  { %v1422_v52 = vadd.f32 %v5396_v60, %v5252_v32  ;;  %v1676_v42 = vadd.f32 %v1420_v37, %v5522_v33  ;;  %v2785_v57 = vadd.f32 %v2784_v51, %v2783_v59  ;;  %v1932_v29 = vmul.f32 9.0, %v8339_v0  ;;  %v8342_v32 = vld [vmem:[#allocation143_spill] sm:$0xff] }
 0x214   :  { %v2186_v63 = vsub.f32 %v1930_v54, %v1674_v44  ;;  %v2440_v50 = vand.u32 2147483647, %v2184_v39  ;;  %v2788_v8 = vsel %vm2600_vm0, %v2438_v2, 0.0  ;;  %v5549_v18 = vadd.f32 %v8341_v12, %v8340_v9  ;;  %v8343_v54 = vld [vmem:[#allocation169_spill] sm:$0xff]  ;;  %v8344_v44 = vld [vmem:[#allocation379_spill] sm:$0xff] }
 0x215   :  { %v1423_v19 = vadd.f32 %v5405_v46, %v5261_v27  ;;  %v1677_v3 = vadd.f32 %v1421_v10, %v5531_v7  ;;  %v2787_v23 = vadd.f32 %v2786_v55, %v2785_v57  ;;  %v1933_v34 = vmul.f32 9.0, %v8342_v32 }
 0x216   :  { %v2187_v37 = vsub.f32 %v1931_v56, %v1675_v45  ;;  %v2441_v51 = vand.u32 2147483647, %v2185_v58  ;;  %v2790_v59 = vsel %vm2600_vm0, %v2439_v40, 0.0  ;;  %v5558_v39 = vadd.f32 %v8344_v44, %v8343_v54  ;;  %v8345_v56 = vld [vmem:[#allocation171_spill] sm:$0xff]  ;;  %v8346_v45 = vld [vmem:[#allocation380_spill] sm:$0xff] }
 0x217   :  { %v1424_v2 = vadd.f32 %v5414_v62, %v5270_v26  ;;  %v1678_v0 = vadd.f32 %v1422_v52, %v5540_v38  ;;  %v2789_v12 = vadd.f32 %v2788_v8, %v2787_v23  ;;  %v1934_v27 = vmul.f32 9.0, %v8287_v28  ;;  %v8347_v26 = vld [vmem:[#allocation145_spill] sm:$0xff] }
 0x218   :  { %v2188_v10 = vsub.f32 %v1932_v29, %v1676_v42  ;;  %v2442_v55 = vand.u32 2147483647, %v2186_v63  ;;  %v2792_v57 = vsel %vm2600_vm0, %v2440_v50, 0.0  ;;  %v5567_v58 = vadd.f32 %v8346_v45, %v8345_v56  ;;  %v8348_v29 = vld [vmem:[#allocation172_spill] sm:$0xff]  ;;  %v8349_v42 = vld [vmem:[#allocation381_spill] sm:$0xff] }
 0x219   :  { %v1425_v40 = vadd.f32 %v5423_v1, %v5279_v31  ;;  %v1679_v32 = vadd.f32 %v1423_v19, %v5549_v18  ;;  %v2791_v44 = vadd.f32 %v2790_v59, %v2789_v12  ;;  %v1935_v54 = vmul.f32 9.0, %v8347_v26  ;;  %v8350_v31 = vld [vmem:[#allocation147_spill] sm:$0xff] }
 0x21a   :  { %v2189_v52 = vsub.f32 %v1933_v34, %v1677_v3  ;;  %v2443_v8 = vand.u32 2147483647, %v2187_v37  ;;  %v2794_v28 = vsel %vm2600_vm0, %v2441_v51, 0.0  ;;  %v5576_v63 = vadd.f32 %v8349_v42, %v8348_v29  ;;  %v8351_v34 = vld [vmem:[#allocation173_spill] sm:$0xff]  ;;  %v8352_v3 = vld [vmem:[#allocation382_spill] sm:$0xff] }
 0x21b   :  { %v1426_v50 = vadd.f32 %v5432_v30, %v5288_v49  ;;  %v1680_v23 = vadd.f32 %v1424_v2, %v5558_v39  ;;  %v2793_v45 = vadd.f32 %v2792_v57, %v2791_v44  ;;  %v1936_v56 = vmul.f32 9.0, %v8350_v31  ;;  %v8353_v49 = vld [vmem:[#allocation148_spill] sm:$0xff] }
 0x21c   :  { %v2190_v19 = vsub.f32 %v1934_v27, %v1678_v0  ;;  %v2444_v59 = vand.u32 2147483647, %v2188_v10  ;;  %v2796_v12 = vsel %vm2600_vm0, %v2442_v55, 0.0  ;;  %v5585_v37 = vadd.f32 %v8352_v3, %v8351_v34  ;;  %v8354_v0 = vld [vmem:[#allocation175_spill] sm:$0xff] }
 0x21d   :  { %v1427_v51 = vadd.f32 %v5441_v53, %v5297_v21  ;;  %v1681_v26 = vadd.f32 %v1425_v40, %v5567_v58  ;;  %v2795_v42 = vadd.f32 %v2794_v28, %v2793_v45  ;;  %v1937_v29 = vmul.f32 9.0, %v8353_v49  ;;  %v8355_v27 = vld [vmem:[#allocation383_spill] sm:$0xff]  ;;  %v8356_v21 = vld [vmem:[#allocation149_spill] sm:$0xff] }
 0x21e   :  { %v2191_v2 = vsub.f32 %v1935_v54, %v1679_v32  ;;  %v2445_v57 = vand.u32 2147483647, %v2189_v52  ;;  %v2798_v44 = vsel %vm2600_vm0, %v2443_v8, 0.0  ;;  %v5594_v10 = vadd.f32 %v8355_v27, %v8354_v0  ;;  %v8357_v54 = vld [vmem:[#allocation176_spill] sm:$0xff] }
 0x21f   :  { %v1428_v55 = vadd.f32 %v5450_v41, %v5306_v24  ;;  %v1682_v31 = vadd.f32 %v1426_v50, %v5576_v63  ;;  %v2797_v3 = vadd.f32 %v2796_v12, %v2795_v42  ;;  %v1938_v34 = vmul.f32 9.0, %v8356_v21  ;;  %v8358_v32 = vld [vmem:[#allocation384_spill] sm:$0xff]  ;;  %v8359_v24 = vld [vmem:[#allocation151_spill] sm:$0xff] }
 0x220   :  { %v2192_v40 = vsub.f32 %v1936_v56, %v1680_v23  ;;  %v2446_v28 = vand.u32 2147483647, %v2190_v19  ;;  %v2800_v45 = vsel %vm2600_vm0, %v2444_v59, 0.0  ;;  %v5603_v52 = vadd.f32 %v8358_v32, %v8357_v54  ;;  %v8360_v56 = vld [vmem:[#allocation177_spill] sm:$0xff] }
 0x221   :  { %v1429_v8 = vadd.f32 %v5459_v22, %v5315_v16  ;;  %v1683_v49 = vadd.f32 %v1427_v51, %v5585_v37  ;;  %v2799_v27 = vadd.f32 %v2798_v44, %v2797_v3  ;;  %v1939_v0 = vmul.f32 9.0, %v8359_v24  ;;  %v8361_v23 = vld [vmem:[#allocation385_spill] sm:$0xff]  ;;  %v8362_v16 = vld [vmem:[#allocation152_spill] sm:$0xff] }
 0x222   :  { %v2193_v50 = vsub.f32 %v1937_v29, %v1681_v26  ;;  %v2447_v12 = vand.u32 2147483647, %v2191_v2  ;;  %v2802_v42 = vsel %vm2600_vm0, %v2445_v57, 0.0  ;;  %v5612_v19 = vadd.f32 %v8361_v23, %v8360_v56  ;;  %v8363_v29 = vld [vmem:[#allocation325_spill] sm:$0xff] }
 0x223   :  { %v1430_v59 = vadd.f32 %v5468_v13, %v5324_v47  ;;  %v1684_v21 = vadd.f32 %v1428_v55, %v5594_v10  ;;  %v2801_v32 = vadd.f32 %v2800_v45, %v2799_v27  ;;  %v1940_v54 = vmul.f32 9.0, %v8362_v16  ;;  %v8365_v47 = vld [vmem:[#allocation153_spill] sm:$0xff] }
 0x224   :  { %v2194_v51 = vsub.f32 %v1938_v34, %v1682_v31  ;;  %v2448_v44 = vand.u32 2147483647, %v2192_v40  ;;  %v2804_v3 = vsel %vm2600_vm0, %v2446_v28, 0.0  ;;  %v5621_v26 = vadd.f32 %v8363_v29, %v8319_v25  ;;  %v8366_v34 = vld [vmem:[#allocation327_spill] sm:$0xff] }
 0x225   :  { %v1431_v2 = vadd.f32 %v8324_v17, %v8277_v15  ;;  %v1685_v57 = vadd.f32 %v1429_v8, %v5603_v52  ;;  %v2803_v24 = vadd.f32 %v2802_v42, %v2801_v32  ;;  %v1941_v23 = vmul.f32 9.0, %v8365_v47  ;;  %v8368_v15 = vld [vmem:[#allocation155_spill] sm:$0xff]  ;;  %v8371_v47 = vld [vmem:[#allocation386_spill] sm:$0xff] }
 0x226   :  { %8364 = vst [vmem:[#allocation134_spill] sm:$0xff] %v5621_v26  ;;  %v2195_v55 = vsub.f32 %v1939_v0, %v1683_v49  ;;  %v2449_v45 = vand.u32 2147483647, %v2193_v50  ;;  %v2806_v27 = vsel %vm2600_vm0, %v2447_v12, 0.0  ;;  %v5630_v31 = vadd.f32 %v8366_v34, %v8363_v29  ;;  %v8369_v0 = vld [vmem:[#allocation181_spill] sm:$0xff]  ;;  %v8370_v49 = vld [vmem:[#allocation387_spill] sm:$0xff] }
 0x227   :  { %v1432_v40 = vadd.f32 %v8323_v20, %v8276_v35  ;;  %v1686_v28 = vadd.f32 %v1430_v59, %v5612_v19  ;;  %v2805_v16 = vadd.f32 %v2804_v3, %v2803_v24  ;;  %v1942_v26 = vmul.f32 9.0, %v8368_v15 }
 0x228   :  { %8367 = vst [vmem:[#allocation53_spill] sm:$0xff] %v5630_v31  ;;  %v2196_v8 = vsub.f32 %v1940_v54, %v1684_v21  ;;  %v2450_v42 = vand.u32 2147483647, %v2194_v51  ;;  %v2808_v32 = vsel %vm2600_vm0, %v2448_v44, 0.0  ;;  %v5639_v50 = vadd.f32 %v8370_v49, %v8369_v0  ;;  %v8372_v54 = vld [vmem:[#allocation183_spill] sm:$0xff]  ;;  %v8373_v21 = vld [vmem:[#allocation388_spill] sm:$0xff] }
 0x229   :  { %v1433_v12 = vadd.f32 %v5495_v5, %v5351_v61  ;;  %v1687_v31 = vadd.f32 %v1431_v2, %v8371_v47  ;;  %v2807_v34 = vadd.f32 %v2806_v27, %v2805_v16  ;;  %v1943_v35 = vmul.f32 9.0, %v8313_v4  ;;  %v8374_v61 = vld [vmem:[#allocation157_spill] sm:$0xff] }
 0x22a   :  { %v2197_v59 = vsub.f32 %v1941_v23, %v1685_v57  ;;  %v2451_v3 = vand.u32 2147483647, %v2195_v55  ;;  %v2810_v24 = vsel %vm2600_vm0, %v2449_v45, 0.0  ;;  %v5648_v51 = vadd.f32 %v8373_v21, %v8372_v54  ;;  %v8375_v57 = vld [vmem:[#allocation184_spill] sm:$0xff]  ;;  %v8376_v23 = vld [vmem:[#allocation389_spill] sm:$0xff] }
 0x22b   :  { %v1434_v44 = vadd.f32 %v5504_v11, %v5360_v36  ;;  %v1688_v15 = vadd.f32 %v1432_v40, %v8370_v49  ;;  %v2809_v29 = vadd.f32 %v2808_v32, %v2807_v34  ;;  %v1944_v25 = vmul.f32 9.0, %v8374_v61  ;;  %v8377_v36 = vld [vmem:[#allocation159_spill] sm:$0xff] }
 0x22c   :  { %v2198_v2 = vsub.f32 %v1942_v26, %v1686_v28  ;;  %v2452_v27 = vand.u32 2147483647, %v2196_v8  ;;  %v2812_v4 = vsel %vm2600_vm0, %v2450_v42, 0.0  ;;  %v5657_v55 = vadd.f32 %v8376_v23, %v8375_v57  ;;  %v8378_v26 = vld [vmem:[#allocation185_spill] sm:$0xff]  ;;  %v8379_v28 = vld [vmem:[#allocation390_spill] sm:$0xff] }
 0x22d   :  { %v1435_v45 = vadd.f32 %v5513_v43, %v5369_v6  ;;  %v1689_v16 = vadd.f32 %v1433_v12, %v5639_v50  ;;  %v2811_v21 = vadd.f32 %v2810_v24, %v2809_v29  ;;  %v1945_v54 = vmul.f32 9.0, %v8377_v36  ;;  %v8380_v6 = vld [vmem:[#allocation160_spill] sm:$0xff] }
 0x22e   :  { %v2199_v40 = vsub.f32 %v1943_v35, %v1687_v31  ;;  %v2453_v34 = vand.u32 2147483647, %v2197_v59  ;;  %v2814_v32 = vsel %vm2600_vm0, %v2451_v3, 0.0  ;;  %v5666_v8 = vadd.f32 %v8379_v28, %v8378_v26  ;;  %v8381_v31 = vld [vmem:[#allocation187_spill] sm:$0xff] }
 0x22f   :  { %v1436_v42 = vadd.f32 %v5522_v33, %v5378_v48  ;;  %v1690_v61 = vadd.f32 %v1434_v44, %v5648_v51  ;;  %v2813_v23 = vadd.f32 %v2812_v4, %v2811_v21  ;;  %v1946_v57 = vmul.f32 9.0, %v8380_v6  ;;  %v8382_v35 = vld [vmem:[#allocation391_spill] sm:$0xff]  ;;  %v8383_v48 = vld [vmem:[#allocation161_spill] sm:$0xff] }
 0x230   :  { %v2200_v12 = vsub.f32 %v1944_v25, %v1688_v15  ;;  %v2454_v29 = vand.u32 2147483647, %v2198_v2  ;;  %v2816_v24 = vsel %vm2600_vm0, %v2452_v27, 0.0  ;;  %v5675_v59 = vadd.f32 %v8382_v35, %v8381_v31  ;;  %v8384_v25 = vld [vmem:[#allocation188_spill] sm:$0xff] }
 0x231   :  { %v1437_v3 = vadd.f32 %v5531_v7, %v5387_v14  ;;  %v1691_v36 = vadd.f32 %v1435_v45, %v5657_v55  ;;  %v2815_v28 = vadd.f32 %v2814_v32, %v2813_v23  ;;  %v1947_v26 = vmul.f32 9.0, %v8383_v48  ;;  %v8385_v15 = vld [vmem:[#allocation392_spill] sm:$0xff]  ;;  %v8386_v14 = vld [vmem:[#allocation163_spill] sm:$0xff] }
 0x232   :  { %v2201_v44 = vsub.f32 %v1945_v54, %v1689_v16  ;;  %v2455_v4 = vand.u32 2147483647, %v2199_v40  ;;  %v2818_v21 = vsel %vm2600_vm0, %v2453_v34, 0.0  ;;  %v5684_v2 = vadd.f32 %v8385_v15, %v8384_v25  ;;  %v8387_v54 = vld [vmem:[#allocation189_spill] sm:$0xff] }
 0x233   :  { %v1438_v27 = vadd.f32 %v5540_v38, %v5396_v60  ;;  %v1692_v6 = vadd.f32 %v1436_v42, %v5666_v8  ;;  %v2817_v35 = vadd.f32 %v2816_v24, %v2815_v28  ;;  %v1948_v31 = vmul.f32 9.0, %v8386_v14  ;;  %v8388_v16 = vld [vmem:[#allocation393_spill] sm:$0xff]  ;;  %v8389_v60 = vld [vmem:[#allocation164_spill] sm:$0xff] }
 0x234   :  { %v2202_v45 = vsub.f32 %v1946_v57, %v1690_v61  ;;  %v2456_v32 = vand.u32 2147483647, %v2200_v12  ;;  %v2820_v23 = vsel %vm2600_vm0, %v2454_v29, 0.0  ;;  %v5693_v40 = vadd.f32 %v8388_v16, %v8387_v54  ;;  %v8390_v57 = vld [vmem:[#allocation191_spill] sm:$0xff]  ;;  %v8391_v61 = vld [vmem:[#allocation394_spill] sm:$0xff] }
 0x235   :  { %v1439_v34 = vadd.f32 %v5549_v18, %v5405_v46  ;;  %v1693_v48 = vadd.f32 %v1437_v3, %v5675_v59  ;;  %v2819_v15 = vadd.f32 %v2818_v21, %v2817_v35  ;;  %v1949_v25 = vmul.f32 9.0, %v8389_v60  ;;  %v8392_v46 = vld [vmem:[#allocation165_spill] sm:$0xff] }
 0x236   :  { %v2203_v42 = vsub.f32 %v1947_v26, %v1691_v36  ;;  %v2457_v24 = vand.u32 2147483647, %v2201_v44  ;;  %v2822_v28 = vsel %vm2600_vm0, %v2455_v4, 0.0  ;;  %v5702_v12 = vadd.f32 %v8391_v61, %v8390_v57  ;;  %v8393_v26 = vld [vmem:[#allocation192_spill] sm:$0xff]  ;;  %v8394_v36 = vld [vmem:[#allocation395_spill] sm:$0xff] }
 0x237   :  { %v1440_v29 = vadd.f32 %v5558_v39, %v5414_v62  ;;  %v1694_v14 = vadd.f32 %v1438_v27, %v5684_v2  ;;  %v2821_v16 = vadd.f32 %v2820_v23, %v2819_v15  ;;  %v1950_v54 = vmul.f32 9.0, %v8392_v46  ;;  %v8395_v62 = vld [vmem:[#allocation167_spill] sm:$0xff] }
 0x238   :  { %v2204_v3 = vsub.f32 %v1948_v31, %v1692_v6  ;;  %v2458_v21 = vand.u32 2147483647, %v2202_v45  ;;  %v2824_v35 = vsel %vm2600_vm0, %v2456_v32, 0.0  ;;  %v5711_v44 = vadd.f32 %v8394_v36, %v8393_v26  ;;  %v8396_v31 = vld [vmem:[#allocation193_spill] sm:$0xff]  ;;  %v8397_v6 = vld [vmem:[#allocation396_spill] sm:$0xff] }
 0x239   :  { %v1441_v4 = vadd.f32 %v5567_v58, %v5423_v1  ;;  %v1695_v60 = vadd.f32 %v1439_v34, %v5693_v40  ;;  %v2823_v61 = vadd.f32 %v2822_v28, %v2821_v16  ;;  %v1951_v57 = vmul.f32 9.0, %v8395_v62 }
 0x23a   :  { %v2205_v27 = vsub.f32 %v1949_v25, %v1693_v48  ;;  %v2459_v23 = vand.u32 2147483647, %v2203_v42  ;;  %v2826_v15 = vsel %vm2600_vm0, %v2457_v24, 0.0  ;;  %v5720_v45 = vadd.f32 %v8397_v6, %v8396_v31  ;;  %v8398_v25 = vld [vmem:[#allocation195_spill] sm:$0xff]  ;;  %v8399_v48 = vld [vmem:[#allocation397_spill] sm:$0xff] }
 0x23b   :  { %v1442_v32 = vadd.f32 %v5576_v63, %v5432_v30  ;;  %v1696_v46 = vadd.f32 %v1440_v29, %v5702_v12  ;;  %v2825_v36 = vadd.f32 %v2824_v35, %v2823_v61  ;;  %v1952_v1 = vmul.f32 9.0, %v8340_v9  ;;  %v8400_v30 = vld [vmem:[#allocation169_spill] sm:$0xff] }
 0x23c   :  { %v2206_v34 = vsub.f32 %v1950_v54, %v1694_v14  ;;  %v2460_v28 = vand.u32 2147483647, %v2204_v3  ;;  %v2828_v16 = vsel %vm2600_vm0, %v2458_v21, 0.0  ;;  %v5729_v42 = vadd.f32 %v8399_v48, %v8398_v25  ;;  %v8401_v54 = vld [vmem:[#allocation196_spill] sm:$0xff]  ;;  %v8402_v14 = vld [vmem:[#allocation398_spill] sm:$0xff] }
 0x23d   :  { %v1443_v24 = vadd.f32 %v5585_v37, %v5441_v53  ;;  %v1697_v62 = vadd.f32 %v1441_v4, %v5711_v44  ;;  %v2827_v6 = vadd.f32 %v2826_v15, %v2825_v36  ;;  %v1953_v31 = vmul.f32 9.0, %v8400_v30  ;;  %v8403_v53 = vld [vmem:[#allocation171_spill] sm:$0xff] }
 0x23e   :  { %v2207_v29 = vsub.f32 %v1951_v57, %v1695_v60  ;;  %v2461_v35 = vand.u32 2147483647, %v2205_v27  ;;  %v2830_v9 = vsel %vm2600_vm0, %v2459_v23, 0.0  ;;  %v5738_v3 = vadd.f32 %v8402_v14, %v8401_v54  ;;  %v8404_v57 = vld [vmem:[#allocation197_spill] sm:$0xff]  ;;  %v8405_v60 = vld [vmem:[#allocation399_spill] sm:$0xff] }
 0x23f   :  { %v1444_v21 = vadd.f32 %v5594_v10, %v5450_v41  ;;  %v1698_v61 = vadd.f32 %v1442_v32, %v5720_v45  ;;  %v2829_v48 = vadd.f32 %v2828_v16, %v2827_v6  ;;  %v1954_v25 = vmul.f32 9.0, %v8403_v53  ;;  %v8406_v41 = vld [vmem:[#allocation172_spill] sm:$0xff] }
 0x240   :  { %v2208_v4 = vsub.f32 %v1952_v1, %v1696_v46  ;;  %v2462_v15 = vand.u32 2147483647, %v2206_v34  ;;  %v2832_v36 = vsel %vm2600_vm0, %v2460_v28, 0.0  ;;  %v5747_v27 = vadd.f32 %v8405_v60, %v8404_v57  ;;  %v8407_v46 = vld [vmem:[#allocation199_spill] sm:$0xff]  ;;  %v8408_v1 = vld [vmem:[#allocation400_spill] sm:$0xff] }
 0x241   :  { %v1445_v23 = vadd.f32 %v5603_v52, %v5459_v22  ;;  %v1699_v30 = vadd.f32 %v1443_v24, %v5729_v42  ;;  %v2831_v14 = vadd.f32 %v2830_v9, %v2829_v48  ;;  %v1955_v54 = vmul.f32 9.0, %v8406_v41  ;;  %v8409_v22 = vld [vmem:[#allocation173_spill] sm:$0xff] }
 0x242   :  { %v2209_v32 = vsub.f32 %v1953_v31, %v1697_v62  ;;  %v2463_v16 = vand.u32 2147483647, %v2207_v29  ;;  %v2834_v6 = vsel %vm2600_vm0, %v2461_v35, 0.0  ;;  %v5756_v34 = vadd.f32 %v8408_v1, %v8407_v46  ;;  %v8410_v31 = vld [vmem:[#allocation328_spill] sm:$0xff]  ;;  %v8411_v62 = vld [vmem:[#allocation329_spill] sm:$0xff] }
 0x243   :  { %v1446_v28 = vadd.f32 %v5612_v19, %v5468_v13  ;;  %v1700_v53 = vadd.f32 %v1444_v21, %v5738_v3  ;;  %v2833_v60 = vadd.f32 %v2832_v36, %v2831_v14  ;;  %v1956_v57 = vmul.f32 9.0, %v8409_v22  ;;  %v8413_v13 = vld [vmem:[#allocation175_spill] sm:$0xff] }
 0x244   :  { %v2210_v24 = vsub.f32 %v1954_v25, %v1698_v61  ;;  %v2464_v9 = vand.u32 2147483647, %v2208_v4  ;;  %v2836_v48 = vsel %vm2600_vm0, %v2462_v15, 0.0  ;;  %v5765_v29 = vadd.f32 %v8411_v62, %v8410_v31  ;;  %v8414_v25 = vld [vmem:[#allocation331_spill] sm:$0xff] }
 0x245   :  { %v1447_v35 = vadd.f32 %v8371_v47, %v8324_v17  ;;  %v1701_v41 = vadd.f32 %v1445_v23, %v5747_v27  ;;  %v2835_v1 = vadd.f32 %v2834_v6, %v2833_v60  ;;  %v1957_v46 = vmul.f32 9.0, %v8413_v13  ;;  %v8416_v17 = vld [vmem:[#allocation176_spill] sm:$0xff]  ;;  %v8419_v13 = vld [vmem:[#allocation401_spill] sm:$0xff] }
 0x246   :  { %8412 = vst [vmem:[#allocation142_spill] sm:$0xff] %v5765_v29  ;;  %v2211_v21 = vsub.f32 %v1955_v54, %v1699_v30  ;;  %v2465_v36 = vand.u32 2147483647, %v2209_v32  ;;  %v2838_v14 = vsel %vm2600_vm0, %v2463_v16, 0.0  ;;  %v5774_v61 = vadd.f32 %v8414_v25, %v8411_v62  ;;  %v8417_v54 = vld [vmem:[#allocation203_spill] sm:$0xff]  ;;  %v8418_v30 = vld [vmem:[#allocation402_spill] sm:$0xff] }
 0x247   :  { %v1448_v4 = vadd.f32 %v8370_v49, %v8323_v20  ;;  %v1702_v15 = vadd.f32 %v1446_v28, %v5756_v34  ;;  %v2837_v22 = vadd.f32 %v2836_v48, %v2835_v1  ;;  %v1958_v31 = vmul.f32 9.0, %v8416_v17 }
 0x248   :  { %8415 = vst [vmem:[#allocation78_spill] sm:$0xff] %v5774_v61  ;;  %v2212_v23 = vsub.f32 %v1956_v57, %v1700_v53  ;;  %v2466_v6 = vand.u32 2147483647, %v2210_v24  ;;  %v2840_v60 = vsel %vm2600_vm0, %v2464_v9, 0.0  ;;  %v5783_v32 = vadd.f32 %v8418_v30, %v8417_v54  ;;  %v8420_v57 = vld [vmem:[#allocation204_spill] sm:$0xff]  ;;  %v8421_v53 = vld [vmem:[#allocation403_spill] sm:$0xff] }
 0x249   :  { %v1449_v16 = vadd.f32 %v5639_v50, %v5495_v5  ;;  %v1703_v62 = vadd.f32 %v1447_v35, %v8419_v13  ;;  %v2839_v61 = vadd.f32 %v2838_v14, %v2837_v22  ;;  %v1959_v20 = vmul.f32 9.0, %v8360_v56  ;;  %v8422_v5 = vld [vmem:[#allocation179_spill] sm:$0xff] }
 0x24a   :  { %v2213_v28 = vsub.f32 %v1957_v46, %v1701_v41  ;;  %v2467_v48 = vand.u32 2147483647, %v2211_v21  ;;  %v2842_v1 = vsel %vm2600_vm0, %v2465_v36, 0.0  ;;  %v5792_v24 = vadd.f32 %v8421_v53, %v8420_v57  ;;  %v8423_v46 = vld [vmem:[#allocation205_spill] sm:$0xff]  ;;  %v8424_v41 = vld [vmem:[#allocation404_spill] sm:$0xff] }
 0x24b   :  { %v1450_v9 = vadd.f32 %v5648_v51, %v5504_v11  ;;  %v1704_v17 = vadd.f32 %v1448_v4, %v8418_v30  ;;  %v2841_v29 = vadd.f32 %v2840_v60, %v2839_v61  ;;  %v1960_v54 = vmul.f32 9.0, %v8422_v5  ;;  %v8425_v11 = vld [vmem:[#allocation180_spill] sm:$0xff] }
 0x24c   :  { %v2214_v35 = vsub.f32 %v1958_v31, %v1702_v15  ;;  %v2468_v14 = vand.u32 2147483647, %v2212_v23  ;;  %v2844_v56 = vsel %vm2600_vm0, %v2466_v6, 0.0  ;;  %v5801_v21 = vadd.f32 %v8424_v41, %v8423_v46  ;;  %v8426_v31 = vld [vmem:[#allocation207_spill] sm:$0xff]  ;;  %v8427_v15 = vld [vmem:[#allocation405_spill] sm:$0xff] }
 0x24d   :  { %v1451_v36 = vadd.f32 %v5657_v55, %v5513_v43  ;;  %v1705_v22 = vadd.f32 %v1449_v16, %v5783_v32  ;;  %v2843_v53 = vadd.f32 %v2842_v1, %v2841_v29  ;;  %v1961_v57 = vmul.f32 9.0, %v8425_v11 }
 0x24e   :  { %v2215_v4 = vsub.f32 %v1959_v20, %v1703_v62  ;;  %v2469_v61 = vand.u32 2147483647, %v2213_v28  ;;  %v2846_v60 = vsel %vm2600_vm0, %v2467_v48, 0.0  ;;  %v5810_v23 = vadd.f32 %v8427_v15, %v8426_v31  ;;  %v8428_v62 = vld [vmem:[#allocation208_spill] sm:$0xff]  ;;  %v8429_v20 = vld [vmem:[#allocation406_spill] sm:$0xff] }
 0x24f   :  { %v1452_v6 = vadd.f32 %v5666_v8, %v5522_v33  ;;  %v1706_v5 = vadd.f32 %v1450_v9, %v5792_v24  ;;  %v2845_v41 = vadd.f32 %v2844_v56, %v2843_v53  ;;  %v1962_v43 = vmul.f32 9.0, %v8369_v0  ;;  %v8430_v33 = vld [vmem:[#allocation183_spill] sm:$0xff] }
 0x250   :  { %v2216_v16 = vsub.f32 %v1960_v54, %v1704_v17  ;;  %v2470_v29 = vand.u32 2147483647, %v2214_v35  ;;  %v2848_v1 = vsel %vm2600_vm0, %v2468_v14, 0.0  ;;  %v5819_v28 = vadd.f32 %v8429_v20, %v8428_v62  ;;  %v8431_v54 = vld [vmem:[#allocation209_spill] sm:$0xff]  ;;  %v8432_v17 = vld [vmem:[#allocation407_spill] sm:$0xff] }
 0x251   :  { %v1453_v48 = vadd.f32 %v5675_v59, %v5531_v7  ;;  %v1707_v11 = vadd.f32 %v1451_v36, %v5801_v21  ;;  %v2847_v15 = vadd.f32 %v2846_v60, %v2845_v41  ;;  %v1963_v31 = vmul.f32 9.0, %v8430_v33  ;;  %v8433_v7 = vld [vmem:[#allocation184_spill] sm:$0xff] }
 0x252   :  { %v2217_v9 = vsub.f32 %v1961_v57, %v1705_v22  ;;  %v2471_v56 = vand.u32 2147483647, %v2215_v4  ;;  %v2850_v0 = vsel %vm2600_vm0, %v2469_v61, 0.0  ;;  %v5828_v35 = vadd.f32 %v8432_v17, %v8431_v54  ;;  %v8434_v57 = vld [vmem:[#allocation211_spill] sm:$0xff]  ;;  %v8435_v22 = vld [vmem:[#allocation408_spill] sm:$0xff] }
 0x253   :  { %v1454_v14 = vadd.f32 %v5684_v2, %v5540_v38  ;;  %v1708_v53 = vadd.f32 %v1452_v6, %v5810_v23  ;;  %v2849_v20 = vadd.f32 %v2848_v1, %v2847_v15  ;;  %v1964_v62 = vmul.f32 9.0, %v8433_v7  ;;  %v8436_v38 = vld [vmem:[#allocation185_spill] sm:$0xff] }
 0x254   :  { %v2218_v36 = vsub.f32 %v1962_v43, %v1706_v5  ;;  %v2472_v60 = vand.u32 2147483647, %v2216_v16  ;;  %v2852_v41 = vsel %vm2600_vm0, %v2470_v29, 0.0  ;;  %v5837_v4 = vadd.f32 %v8435_v22, %v8434_v57  ;;  %v8437_v5 = vld [vmem:[#allocation212_spill] sm:$0xff]  ;;  %v8438_v43 = vld [vmem:[#allocation409_spill] sm:$0xff] }
 0x255   :  { %v1455_v61 = vadd.f32 %v5693_v40, %v5549_v18  ;;  %v1709_v33 = vadd.f32 %v1453_v48, %v5819_v28  ;;  %v2851_v17 = vadd.f32 %v2850_v0, %v2849_v20  ;;  %v1965_v54 = vmul.f32 9.0, %v8436_v38  ;;  %v8439_v18 = vld [vmem:[#allocation187_spill] sm:$0xff] }
 0x256   :  { %v2219_v6 = vsub.f32 %v1963_v31, %v1707_v11  ;;  %v2473_v1 = vand.u32 2147483647, %v2217_v9  ;;  %v2854_v15 = vsel %vm2600_vm0, %v2471_v56, 0.0  ;;  %v5846_v16 = vadd.f32 %v8438_v43, %v8437_v5  ;;  %v8440_v31 = vld [vmem:[#allocation213_spill] sm:$0xff]  ;;  %v8441_v11 = vld [vmem:[#allocation410_spill] sm:$0xff] }
 0x257   :  { %v1456_v29 = vadd.f32 %v5702_v12, %v5558_v39  ;;  %v1710_v7 = vadd.f32 %v1454_v14, %v5828_v35  ;;  %v2853_v22 = vadd.f32 %v2852_v41, %v2851_v17  ;;  %v1966_v57 = vmul.f32 9.0, %v8439_v18  ;;  %v8442_v39 = vld [vmem:[#allocation188_spill] sm:$0xff] }
 0x258   :  { %v2220_v48 = vsub.f32 %v1964_v62, %v1708_v53  ;;  %v2474_v0 = vand.u32 2147483647, %v2218_v36  ;;  %v2856_v20 = vsel %vm2600_vm0, %v2472_v60, 0.0  ;;  %v5855_v9 = vadd.f32 %v8441_v11, %v8440_v31  ;;  %v8443_v62 = vld [vmem:[#allocation215_spill] sm:$0xff] }
 0x259   :  { %v1457_v56 = vadd.f32 %v5711_v44, %v5567_v58  ;;  %v1711_v38 = vadd.f32 %v1455_v61, %v5837_v4  ;;  %v2855_v43 = vadd.f32 %v2854_v15, %v2853_v22  ;;  %v1967_v5 = vmul.f32 9.0, %v8442_v39  ;;  %v8444_v53 = vld [vmem:[#allocation411_spill] sm:$0xff]  ;;  %v8445_v58 = vld [vmem:[#allocation189_spill] sm:$0xff] }
 0x25a   :  { %v2221_v14 = vsub.f32 %v1965_v54, %v1709_v33  ;;  %v2475_v41 = vand.u32 2147483647, %v2219_v6  ;;  %v2858_v17 = vsel %vm2600_vm0, %v2473_v1, 0.0  ;;  %v5864_v36 = vadd.f32 %v8444_v53, %v8443_v62  ;;  %v8446_v54 = vld [vmem:[#allocation216_spill] sm:$0xff] }
 0x25b   :  { %v1458_v60 = vadd.f32 %v5720_v45, %v5576_v63  ;;  %v1712_v18 = vadd.f32 %v1456_v29, %v5846_v16  ;;  %v2857_v11 = vadd.f32 %v2856_v20, %v2855_v43  ;;  %v1968_v31 = vmul.f32 9.0, %v8445_v58  ;;  %v8447_v33 = vld [vmem:[#allocation412_spill] sm:$0xff]  ;;  %v8448_v63 = vld [vmem:[#allocation191_spill] sm:$0xff] }
 0x25c   :  { %v2222_v61 = vsub.f32 %v1966_v57, %v1710_v7  ;;  %v2476_v15 = vand.u32 2147483647, %v2220_v48  ;;  %v2860_v22 = vsel %vm2600_vm0, %v2474_v0, 0.0  ;;  %v5873_v6 = vadd.f32 %v8447_v33, %v8446_v54  ;;  %v8449_v57 = vld [vmem:[#allocation217_spill] sm:$0xff] }
 0x25d   :  { %v1459_v1 = vadd.f32 %v5729_v42, %v5585_v37  ;;  %v1713_v39 = vadd.f32 %v1457_v56, %v5855_v9  ;;  %v2859_v53 = vadd.f32 %v2858_v17, %v2857_v11  ;;  %v1969_v62 = vmul.f32 9.0, %v8448_v63  ;;  %v8450_v7 = vld [vmem:[#allocation413_spill] sm:$0xff] }
 0x25e   :  { %v2223_v29 = vsub.f32 %v1967_v5, %v1711_v38  ;;  %v2477_v20 = vand.u32 2147483647, %v2221_v14  ;;  %v2862_v43 = vsel %vm2600_vm0, %v2475_v41, 0.0  ;;  %v5882_v48 = vadd.f32 %v8450_v7, %v8449_v57  ;;  %v8451_v5 = vld [vmem:[#allocation219_spill] sm:$0xff]  ;;  %v8452_v38 = vld [vmem:[#allocation414_spill] sm:$0xff] }
 0x25f   :  { %v1460_v0 = vadd.f32 %v5738_v3, %v5594_v10  ;;  %v1714_v58 = vadd.f32 %v1458_v60, %v5864_v36  ;;  %v2861_v33 = vadd.f32 %v2860_v22, %v2859_v53  ;;  %v1970_v37 = vmul.f32 9.0, %v8393_v26  ;;  %v8453_v10 = vld [vmem:[#allocation193_spill] sm:$0xff] }
 0x260   :  { %v2224_v56 = vsub.f32 %v1968_v31, %v1712_v18  ;;  %v2478_v17 = vand.u32 2147483647, %v2222_v61  ;;  %v2864_v11 = vsel %vm2600_vm0, %v2476_v15, 0.0  ;;  %v5891_v14 = vadd.f32 %v8452_v38, %v8451_v5  ;;  %v8454_v31 = vld [vmem:[#allocation220_spill] sm:$0xff]  ;;  %v8455_v18 = vld [vmem:[#allocation415_spill] sm:$0xff] }
 0x261   :  { %v1461_v41 = vadd.f32 %v5747_v27, %v5603_v52  ;;  %v1715_v63 = vadd.f32 %v1459_v1, %v5873_v6  ;;  %v2863_v7 = vadd.f32 %v2862_v43, %v2861_v33  ;;  %v1971_v57 = vmul.f32 9.0, %v8453_v10  ;;  %v8456_v52 = vld [vmem:[#allocation195_spill] sm:$0xff] }
 0x262   :  { %v2225_v60 = vsub.f32 %v1969_v62, %v1713_v39  ;;  %v2479_v22 = vand.u32 2147483647, %v2223_v29  ;;  %v2866_v26 = vsel %vm2600_vm0, %v2477_v20, 0.0  ;;  %v5900_v61 = vadd.f32 %v8455_v18, %v8454_v31  ;;  %v8457_v62 = vld [vmem:[#allocation332_spill] sm:$0xff] }
 0x263   :  { %v1462_v15 = vadd.f32 %v5756_v34, %v5612_v19  ;;  %v1716_v53 = vadd.f32 %v1460_v0, %v5882_v48  ;;  %v2865_v38 = vadd.f32 %v2864_v11, %v2863_v7  ;;  %v1972_v5 = vmul.f32 9.0, %v8456_v52  ;;  %v8459_v19 = vld [vmem:[#allocation196_spill] sm:$0xff] }
 0x264   :  { %v2226_v1 = vsub.f32 %v1970_v37, %v1714_v58  ;;  %v2480_v43 = vand.u32 2147483647, %v2224_v56  ;;  %v2868_v33 = vsel %vm2600_vm0, %v2478_v17, 0.0  ;;  %v5909_v39 = vadd.f32 %v8457_v62, %v8414_v25  ;;  %v8460_v58 = vld [vmem:[#allocation333_spill] sm:$0xff] }
 0x265   :  { %v1463_v29 = vadd.f32 %v8419_v13, %v8371_v47  ;;  %v1717_v20 = vadd.f32 %v1461_v41, %v5891_v14  ;;  %v2867_v10 = vadd.f32 %v2866_v26, %v2865_v38  ;;  %v1973_v18 = vmul.f32 9.0, %v8459_v19  ;;  %v8462_v47 = vld [vmem:[#allocation197_spill] sm:$0xff]  ;;  %v8465_v19 = vld [vmem:[#allocation416_spill] sm:$0xff] }
 0x266   :  { %8458 = vst [vmem:[#allocation146_spill] sm:$0xff] %v5909_v39  ;;  %v2227_v0 = vsub.f32 %v1971_v57, %v1715_v63  ;;  %v2481_v11 = vand.u32 2147483647, %v2225_v60  ;;  %v2870_v7 = vsel %vm2600_vm0, %v2479_v22, 0.0  ;;  %v5918_v37 = vadd.f32 %v8460_v58, %v8457_v62  ;;  %v8463_v57 = vld [vmem:[#allocation224_spill] sm:$0xff]  ;;  %v8464_v63 = vld [vmem:[#allocation417_spill] sm:$0xff] }
 0x267   :  { %v1464_v56 = vadd.f32 %v8418_v30, %v8370_v49  ;;  %v1718_v17 = vadd.f32 %v1462_v15, %v5900_v61  ;;  %v2869_v52 = vadd.f32 %v2868_v33, %v2867_v10  ;;  %v1974_v39 = vmul.f32 9.0, %v8462_v47  ;;  %v8466_v49 = vld [vmem:[#allocation199_spill] sm:$0xff] }
 0x268   :  { %8461 = vst [vmem:[#allocation29_spill] sm:$0xff] %v5918_v37  ;;  %v2228_v41 = vsub.f32 %v1972_v5, %v1716_v53  ;;  %v2482_v26 = vand.u32 2147483647, %v2226_v1  ;;  %v2872_v38 = vsel %vm2600_vm0, %v2480_v43, 0.0  ;;  %v5927_v60 = vadd.f32 %v8464_v63, %v8463_v57  ;;  %v8467_v5 = vld [vmem:[#allocation225_spill] sm:$0xff]  ;;  %v8468_v53 = vld [vmem:[#allocation418_spill] sm:$0xff] }
 0x269   :  { %v1465_v22 = vadd.f32 %v5783_v32, %v5639_v50  ;;  %v1719_v37 = vadd.f32 %v1463_v29, %v8465_v19  ;;  %v2871_v62 = vadd.f32 %v2870_v7, %v2869_v52  ;;  %v1975_v25 = vmul.f32 9.0, %v8466_v49  ;;  %v8469_v50 = vld [vmem:[#allocation200_spill] sm:$0xff] }
 0x26a   :  { %v2229_v15 = vsub.f32 %v1973_v18, %v1717_v20  ;;  %v2483_v33 = vand.u32 2147483647, %v2227_v0  ;;  %v2874_v10 = vsel %vm2600_vm0, %v2481_v11, 0.0  ;;  %v5936_v1 = vadd.f32 %v8468_v53, %v8467_v5  ;;  %v8470_v20 = vld [vmem:[#allocation227_spill] sm:$0xff] }
 0x26b   :  { %v1466_v43 = vadd.f32 %v5792_v24, %v5648_v51  ;;  %v1720_v47 = vadd.f32 %v1464_v56, %v8464_v63  ;;  %v2873_v57 = vadd.f32 %v2872_v38, %v2871_v62  ;;  %v1976_v31 = vmul.f32 9.0, %v8469_v50  ;;  %v8471_v18 = vld [vmem:[#allocation419_spill] sm:$0xff]  ;;  %v8472_v51 = vld [vmem:[#allocation201_spill] sm:$0xff] }
 0x26c   :  { %v2230_v29 = vsub.f32 %v1974_v39, %v1718_v17  ;;  %v2484_v7 = vand.u32 2147483647, %v2228_v41  ;;  %v2876_v52 = vsel %vm2600_vm0, %v2482_v26, 0.0  ;;  %v5945_v0 = vadd.f32 %v8471_v18, %v8470_v20  ;;  %v8473_v39 = vld [vmem:[#allocation228_spill] sm:$0xff] }
 0x26d   :  { %v1467_v11 = vadd.f32 %v5801_v21, %v5657_v55  ;;  %v1721_v49 = vadd.f32 %v1465_v22, %v5927_v60  ;;  %v2875_v53 = vadd.f32 %v2874_v10, %v2873_v57  ;;  %v1977_v5 = vmul.f32 9.0, %v8472_v51  ;;  %v8474_v17 = vld [vmem:[#allocation420_spill] sm:$0xff]  ;;  %v8475_v55 = vld [vmem:[#allocation203_spill] sm:$0xff] }
 0x26e   :  { %v2231_v56 = vsub.f32 %v1975_v25, %v1719_v37  ;;  %v2485_v62 = vand.u32 2147483647, %v2229_v15  ;;  %v2878_v38 = vsel %vm2600_vm0, %v2483_v33, 0.0  ;;  %v5954_v41 = vadd.f32 %v8474_v17, %v8473_v39  ;;  %v8476_v25 = vld [vmem:[#allocation229_spill] sm:$0xff] }
 0x26f   :  { %v1468_v26 = vadd.f32 %v5810_v23, %v5666_v8  ;;  %v1722_v50 = vadd.f32 %v1466_v43, %v5936_v1  ;;  %v2877_v18 = vadd.f32 %v2876_v52, %v2875_v53  ;;  %v1978_v20 = vmul.f32 9.0, %v8475_v55  ;;  %v8477_v37 = vld [vmem:[#allocation421_spill] sm:$0xff]  ;;  %v8478_v8 = vld [vmem:[#allocation204_spill] sm:$0xff] }
 0x270   :  { %v2232_v22 = vsub.f32 %v1976_v31, %v1720_v47  ;;  %v2486_v57 = vand.u32 2147483647, %v2230_v29  ;;  %v2880_v10 = vsel %vm2600_vm0, %v2484_v7, 0.0  ;;  %v5963_v15 = vadd.f32 %v8477_v37, %v8476_v25  ;;  %v8479_v31 = vld [vmem:[#allocation231_spill] sm:$0xff]  ;;  %v8480_v47 = vld [vmem:[#allocation422_spill] sm:$0xff] }
 0x271   :  { %v1469_v33 = vadd.f32 %v5819_v28, %v5675_v59  ;;  %v1723_v51 = vadd.f32 %v1467_v11, %v5945_v0  ;;  %v2879_v17 = vadd.f32 %v2878_v38, %v2877_v18  ;;  %v1979_v39 = vmul.f32 9.0, %v8478_v8 }
 0x272   :  { %v2233_v43 = vsub.f32 %v1977_v5, %v1721_v49  ;;  %v2487_v52 = vand.u32 2147483647, %v2231_v56  ;;  %v2882_v53 = vsel %vm2600_vm0, %v2485_v62, 0.0  ;;  %v5972_v29 = vadd.f32 %v8480_v47, %v8479_v31  ;;  %v8481_v5 = vld [vmem:[#allocation232_spill] sm:$0xff]  ;;  %v8482_v49 = vld [vmem:[#allocation423_spill] sm:$0xff] }
 0x273   :  { %v1470_v7 = vadd.f32 %v5828_v35, %v5684_v2  ;;  %v1724_v55 = vadd.f32 %v1468_v26, %v5954_v41  ;;  %v2881_v37 = vadd.f32 %v2880_v10, %v2879_v17  ;;  %v1980_v59 = vmul.f32 9.0, %v8423_v46  ;;  %v8483_v2 = vld [vmem:[#allocation207_spill] sm:$0xff] }
 0x274   :  { %v2234_v11 = vsub.f32 %v1978_v20, %v1722_v50  ;;  %v2488_v38 = vand.u32 2147483647, %v2232_v22  ;;  %v2884_v18 = vsel %vm2600_vm0, %v2486_v57, 0.0  ;;  %v5981_v56 = vadd.f32 %v8482_v49, %v8481_v5  ;;  %v8484_v20 = vld [vmem:[#allocation233_spill] sm:$0xff]  ;;  %v8485_v50 = vld [vmem:[#allocation424_spill] sm:$0xff] }
 0x275   :  { %v1471_v62 = vadd.f32 %v5837_v4, %v5693_v40  ;;  %v1725_v8 = vadd.f32 %v1469_v33, %v5963_v15  ;;  %v2883_v47 = vadd.f32 %v2882_v53, %v2881_v37  ;;  %v1981_v31 = vmul.f32 9.0, %v8483_v2  ;;  %v8486_v40 = vld [vmem:[#allocation208_spill] sm:$0xff] }
 0x276   :  { %v2235_v26 = vsub.f32 %v1979_v39, %v1723_v51  ;;  %v2489_v10 = vand.u32 2147483647, %v2233_v43  ;;  %v2886_v46 = vsel %vm2600_vm0, %v2487_v52, 0.0  ;;  %v5990_v22 = vadd.f32 %v8485_v50, %v8484_v20  ;;  %v8487_v39 = vld [vmem:[#allocation235_spill] sm:$0xff]  ;;  %v8488_v51 = vld [vmem:[#allocation425_spill] sm:$0xff] }
 0x277   :  { %v1472_v57 = vadd.f32 %v5846_v16, %v5702_v12  ;;  %v1726_v17 = vadd.f32 %v1470_v7, %v5972_v29  ;;  %v2885_v49 = vadd.f32 %v2884_v18, %v2883_v47  ;;  %v1982_v5 = vmul.f32 9.0, %v8486_v40  ;;  %v8489_v12 = vld [vmem:[#allocation209_spill] sm:$0xff] }
 0x278   :  { %v2236_v33 = vsub.f32 %v1980_v59, %v1724_v55  ;;  %v2490_v53 = vand.u32 2147483647, %v2234_v11  ;;  %v2888_v37 = vsel %vm2600_vm0, %v2488_v38, 0.0  ;;  %v5999_v43 = vadd.f32 %v8488_v51, %v8487_v39  ;;  %v8490_v55 = vld [vmem:[#allocation236_spill] sm:$0xff]  ;;  %v8491_v59 = vld [vmem:[#allocation426_spill] sm:$0xff] }
 0x279   :  { %v1473_v52 = vadd.f32 %v5855_v9, %v5711_v44  ;;  %v1727_v2 = vadd.f32 %v1471_v62, %v5981_v56  ;;  %v2887_v50 = vadd.f32 %v2886_v46, %v2885_v49  ;;  %v1983_v20 = vmul.f32 9.0, %v8489_v12  ;;  %v8492_v44 = vld [vmem:[#allocation211_spill] sm:$0xff] }
 0x27a   :  { %v2237_v7 = vsub.f32 %v1981_v31, %v1725_v8  ;;  %v2491_v18 = vand.u32 2147483647, %v2235_v26  ;;  %v2890_v47 = vsel %vm2600_vm0, %v2489_v10, 0.0  ;;  %v6008_v11 = vadd.f32 %v8491_v59, %v8490_v55  ;;  %v8493_v31 = vld [vmem:[#allocation237_spill] sm:$0xff]  ;;  %v8494_v8 = vld [vmem:[#allocation427_spill] sm:$0xff] }
 0x27b   :  { %v1474_v38 = vadd.f32 %v5864_v36, %v5720_v45  ;;  %v1728_v40 = vadd.f32 %v1472_v57, %v5990_v22  ;;  %v2889_v51 = vadd.f32 %v2888_v37, %v2887_v50  ;;  %v1984_v39 = vmul.f32 9.0, %v8492_v44  ;;  %v8495_v45 = vld [vmem:[#allocation212_spill] sm:$0xff] }
 0x27c   :  { %v2238_v62 = vsub.f32 %v1982_v5, %v1726_v17  ;;  %v2492_v46 = vand.u32 2147483647, %v2236_v33  ;;  %v2892_v49 = vsel %vm2600_vm0, %v2490_v53, 0.0  ;;  %v6017_v26 = vadd.f32 %v8494_v8, %v8493_v31  ;;  %v8496_v5 = vld [vmem:[#allocation239_spill] sm:$0xff]  ;;  %v8497_v17 = vld [vmem:[#allocation428_spill] sm:$0xff] }
 0x27d   :  { %v1475_v10 = vadd.f32 %v5873_v6, %v5729_v42  ;;  %v1729_v12 = vadd.f32 %v1473_v52, %v5999_v43  ;;  %v2891_v59 = vadd.f32 %v2890_v47, %v2889_v51  ;;  %v1985_v55 = vmul.f32 9.0, %v8495_v45  ;;  %v8498_v42 = vld [vmem:[#allocation213_spill] sm:$0xff] }
 0x27e   :  { %v2239_v57 = vsub.f32 %v1983_v20, %v1727_v2  ;;  %v2493_v37 = vand.u32 2147483647, %v2237_v7  ;;  %v2894_v50 = vsel %vm2600_vm0, %v2491_v18, 0.0  ;;  %v6026_v33 = vadd.f32 %v8497_v17, %v8496_v5  ;;  %v8499_v20 = vld [vmem:[#allocation240_spill] sm:$0xff]  ;;  %v8500_v2 = vld [vmem:[#allocation429_spill] sm:$0xff] }
 0x27f   :  { %v1476_v53 = vadd.f32 %v5882_v48, %v5738_v3  ;;  %v1730_v44 = vadd.f32 %v1474_v38, %v6008_v11  ;;  %v2893_v8 = vadd.f32 %v2892_v49, %v2891_v59  ;;  %v1986_v31 = vmul.f32 9.0, %v8498_v42  ;;  %v8501_v3 = vld [vmem:[#allocation215_spill] sm:$0xff] }
 0x280   :  { %v2240_v52 = vsub.f32 %v1984_v39, %v1728_v40  ;;  %v2494_v47 = vand.u32 2147483647, %v2238_v62  ;;  %v2896_v51 = vsel %vm2600_vm0, %v2492_v46, 0.0  ;;  %v6035_v7 = vadd.f32 %v8500_v2, %v8499_v20  ;;  %v8502_v39 = vld [vmem:[#allocation241_spill] sm:$0xff]  ;;  %v8503_v40 = vld [vmem:[#allocation430_spill] sm:$0xff] }
 0x281   :  { %v1477_v18 = vadd.f32 %v5891_v14, %v5747_v27  ;;  %v1731_v45 = vadd.f32 %v1475_v10, %v6017_v26  ;;  %v2895_v17 = vadd.f32 %v2894_v50, %v2893_v8  ;;  %v1987_v5 = vmul.f32 9.0, %v8501_v3 }
 0x282   :  { %v2241_v38 = vsub.f32 %v1985_v55, %v1729_v12  ;;  %v2495_v49 = vand.u32 2147483647, %v2239_v57  ;;  %v2898_v59 = vsel %vm2600_vm0, %v2493_v37, 0.0  ;;  %v6044_v62 = vadd.f32 %v8503_v40, %v8502_v39  ;;  %v8504_v55 = vld [vmem:[#allocation335_spill] sm:$0xff] }
 0x283   :  { %v1478_v46 = vadd.f32 %v5900_v61, %v5756_v34  ;;  %v1732_v42 = vadd.f32 %v1476_v53, %v6026_v33  ;;  %v2897_v2 = vadd.f32 %v2896_v51, %v2895_v17  ;;  %v1988_v27 = vmul.f32 9.0, %v8446_v54  ;;  %v8506_v34 = vld [vmem:[#allocation217_spill] sm:$0xff] }
 0x284   :  { %v2242_v10 = vsub.f32 %v1986_v31, %v1730_v44  ;;  %v2496_v50 = vand.u32 2147483647, %v2240_v52  ;;  %v2900_v8 = vsel %vm2600_vm0, %v2494_v47, 0.0  ;;  %v6053_v12 = vadd.f32 %v8504_v55, %v8460_v58  ;;  %v8507_v31 = vld [vmem:[#allocation336_spill] sm:$0xff] }
 0x285   :  { %v1479_v57 = vadd.f32 %v8465_v19, %v8419_v13  ;;  %v1733_v37 = vadd.f32 %v1477_v18, %v6035_v7  ;;  %v2899_v3 = vadd.f32 %v2898_v59, %v2897_v2  ;;  %v1989_v40 = vmul.f32 9.0, %v8506_v34  ;;  %v8509_v13 = vld [vmem:[#allocation219_spill] sm:$0xff] }
 0x286   :  { %8505 = vst [vmem:[#allocation150_spill] sm:$0xff] %v6053_v12  ;;  %v2243_v53 = vsub.f32 %v1987_v5, %v1731_v45  ;;  %v2497_v51 = vand.u32 2147483647, %v2241_v38  ;;  %v2902_v54 = vsel %vm2600_vm0, %v2495_v49, 0.0  ;;  %v6062_v44 = vadd.f32 %v8507_v31, %v8504_v55  ;;  %v8510_v5 = vld [vmem:[#allocation245_spill] sm:$0xff]  ;;  %v8511_v45 = vld [vmem:[#allocation432_spill] sm:$0xff] }
 0x287   :  { %v1480_v52 = vadd.f32 %v8464_v63, %v8418_v30  ;;  %v1734_v47 = vadd.f32 %v1478_v46, %v6044_v62  ;;  %v2901_v17 = vadd.f32 %v2900_v8, %v2899_v3  ;;  %v1990_v12 = vmul.f32 9.0, %v8509_v13  ;;  %v8512_v34 = vld [vmem:[#allocation431_spill] sm:$0xff]  ;;  %v8513_v30 = vld [vmem:[#allocation220_spill] sm:$0xff] }
 0x288   :  { %8508 = vst [vmem:[#allocation31_spill] sm:$0xff] %v6062_v44  ;;  %v2244_v18 = vsub.f32 %v1988_v27, %v1732_v42  ;;  %v2498_v59 = vand.u32 2147483647, %v2242_v10  ;;  %v2904_v2 = vsel %vm2600_vm0, %v2496_v50, 0.0  ;;  %v6071_v38 = vadd.f32 %v8511_v45, %v8510_v5  ;;  %v8514_v42 = vld [vmem:[#allocation247_spill] sm:$0xff]  ;;  %v8515_v27 = vld [vmem:[#allocation433_spill] sm:$0xff] }
 0x289   :  { %v1481_v49 = vadd.f32 %v5927_v60, %v5783_v32  ;;  %v1735_v44 = vadd.f32 %v1479_v57, %v8512_v34  ;;  %v2903_v55 = vadd.f32 %v2902_v54, %v2901_v17  ;;  %v1991_v58 = vmul.f32 9.0, %v8513_v30  ;;  %v8516_v32 = vld [vmem:[#allocation221_spill] sm:$0xff] }
 0x28a   :  { %v2245_v46 = vsub.f32 %v1989_v40, %v1733_v37  ;;  %v2499_v8 = vand.u32 2147483647, %v2243_v53  ;;  %v2906_v3 = vsel %vm2600_vm0, %v2497_v51, 0.0  ;;  %v6080_v10 = vadd.f32 %v8515_v27, %v8514_v42  ;;  %v8517_v37 = vld [vmem:[#allocation248_spill] sm:$0xff]  ;;  %v8518_v40 = vld [vmem:[#allocation434_spill] sm:$0xff] }
 0x28b   :  { %v1482_v50 = vadd.f32 %v5936_v1, %v5792_v24  ;;  %v1736_v13 = vadd.f32 %v1480_v52, %v8511_v45  ;;  %v2905_v5 = vadd.f32 %v2904_v2, %v2903_v55  ;;  %v1992_v39 = vmul.f32 9.0, %v8516_v32  ;;  %v8519_v24 = vld [vmem:[#allocation223_spill] sm:$0xff] }
 0x28c   :  { %v2246_v57 = vsub.f32 %v1990_v12, %v1734_v47  ;;  %v2500_v54 = vand.u32 2147483647, %v2244_v18  ;;  %v2908_v17 = vsel %vm2600_vm0, %v2498_v59, 0.0  ;;  %v6089_v53 = vadd.f32 %v8518_v40, %v8517_v37  ;;  %v8520_v12 = vld [vmem:[#allocation249_spill] sm:$0xff]  ;;  %v8521_v47 = vld [vmem:[#allocation435_spill] sm:$0xff] }
 0x28d   :  { %v1483_v51 = vadd.f32 %v5945_v0, %v5801_v21  ;;  %v1737_v30 = vadd.f32 %v1481_v49, %v6071_v38  ;;  %v2907_v27 = vadd.f32 %v2906_v3, %v2905_v5  ;;  %v1993_v42 = vmul.f32 9.0, %v8519_v24  ;;  %v8522_v21 = vld [vmem:[#allocation224_spill] sm:$0xff] }
 0x28e   :  { %v2247_v52 = vsub.f32 %v1991_v58, %v1735_v44  ;;  %v2501_v55 = vand.u32 2147483647, %v2245_v46  ;;  %v2910_v2 = vsel %vm2600_vm0, %v2499_v8, 0.0  ;;  %v6098_v18 = vadd.f32 %v8521_v47, %v8520_v12  ;;  %v8523_v58 = vld [vmem:[#allocation251_spill] sm:$0xff]  ;;  %v8524_v44 = vld [vmem:[#allocation436_spill] sm:$0xff] }
 0x28f   :  { %v1484_v59 = vadd.f32 %v5954_v41, %v5810_v23  ;;  %v1738_v32 = vadd.f32 %v1482_v50, %v6080_v10  ;;  %v2909_v40 = vadd.f32 %v2908_v17, %v2907_v27  ;;  %v1994_v37 = vmul.f32 9.0, %v8522_v21  ;;  %v8525_v23 = vld [vmem:[#allocation225_spill] sm:$0xff] }
 0x290   :  { %v2248_v49 = vsub.f32 %v1992_v39, %v1736_v13  ;;  %v2502_v5 = vand.u32 2147483647, %v2246_v57  ;;  %v2912_v3 = vsel %vm2600_vm0, %v2500_v54, 0.0  ;;  %v6107_v46 = vadd.f32 %v8524_v44, %v8523_v58  ;;  %v8526_v39 = vld [vmem:[#allocation252_spill] sm:$0xff]  ;;  %v8527_v13 = vld [vmem:[#allocation437_spill] sm:$0xff] }
 0x291   :  { %v1485_v8 = vadd.f32 %v5963_v15, %v5819_v28  ;;  %v1739_v24 = vadd.f32 %v1483_v51, %v6089_v53  ;;  %v2911_v47 = vadd.f32 %v2910_v2, %v2909_v40  ;;  %v1995_v12 = vmul.f32 9.0, %v8525_v23  ;;  %v8528_v28 = vld [vmem:[#allocation227_spill] sm:$0xff] }
 0x292   :  { %v2249_v50 = vsub.f32 %v1993_v42, %v1737_v30  ;;  %v2503_v17 = vand.u32 2147483647, %v2247_v52  ;;  %v2914_v27 = vsel %vm2600_vm0, %v2501_v55, 0.0  ;;  %v6116_v57 = vadd.f32 %v8527_v13, %v8526_v39  ;;  %v8529_v42 = vld [vmem:[#allocation253_spill] sm:$0xff]  ;;  %v8530_v30 = vld [vmem:[#allocation438_spill] sm:$0xff] }
 0x293   :  { %v1486_v54 = vadd.f32 %v5972_v29, %v5828_v35  ;;  %v1740_v21 = vadd.f32 %v1484_v59, %v6098_v18  ;;  %v2913_v44 = vadd.f32 %v2912_v3, %v2911_v47  ;;  %v1996_v58 = vmul.f32 9.0, %v8528_v28  ;;  %v8531_v35 = vld [vmem:[#allocation228_spill] sm:$0xff] }
 0x294   :  { %v2250_v51 = vsub.f32 %v1994_v37, %v1738_v32  ;;  %v2504_v2 = vand.u32 2147483647, %v2248_v49  ;;  %v2916_v40 = vsel %vm2600_vm0, %v2502_v5, 0.0  ;;  %v6125_v52 = vadd.f32 %v8530_v30, %v8529_v42  ;;  %v8532_v37 = vld [vmem:[#allocation255_spill] sm:$0xff] }
 0x295   :  { %v1487_v55 = vadd.f32 %v5981_v56, %v5837_v4  ;;  %v1741_v23 = vadd.f32 %v1485_v8, %v6107_v46  ;;  %v2915_v13 = vadd.f32 %v2914_v27, %v2913_v44  ;;  %v1997_v39 = vmul.f32 9.0, %v8531_v35  ;;  %v8533_v32 = vld [vmem:[#allocation439_spill] sm:$0xff] }
 0x296   :  { %v2251_v59 = vsub.f32 %v1995_v12, %v1739_v24  ;;  %v2505_v3 = vand.u32 2147483647, %v2249_v50  ;;  %v2918_v47 = vsel %vm2600_vm0, %v2503_v17, 0.0  ;;  %v6134_v49 = vadd.f32 %v8533_v32, %v8532_v37  ;;  %v8534_v12 = vld [vmem:[#allocation256_spill] sm:$0xff] }
 0x297   :  { %v1488_v5 = vadd.f32 %v5990_v22, %v5846_v16  ;;  %v1742_v28 = vadd.f32 %v1486_v54, %v6116_v57  ;;  %v2917_v30 = vadd.f32 %v2916_v40, %v2915_v13  ;;  %v1998_v4 = vmul.f32 9.0, %v8476_v25  ;;  %v8535_v24 = vld [vmem:[#allocation440_spill] sm:$0xff]  ;;  %v8536_v16 = vld [vmem:[#allocation231_spill] sm:$0xff] }
 0x298   :  { %v2252_v8 = vsub.f32 %v1996_v58, %v1740_v21  ;;  %v2506_v27 = vand.u32 2147483647, %v2250_v51  ;;  %v2920_v44 = vsel %vm2600_vm0, %v2504_v2, 0.0  ;;  %v6143_v50 = vadd.f32 %v8535_v24, %v8534_v12  ;;  %v8537_v58 = vld [vmem:[#allocation257_spill] sm:$0xff] }
 0x299   :  { %v1489_v17 = vadd.f32 %v5999_v43, %v5855_v9  ;;  %v1743_v35 = vadd.f32 %v1487_v55, %v6125_v52  ;;  %v2919_v32 = vadd.f32 %v2918_v47, %v2917_v30  ;;  %v1999_v37 = vmul.f32 9.0, %v8536_v16  ;;  %v8538_v21 = vld [vmem:[#allocation441_spill] sm:$0xff]  ;;  %v8539_v9 = vld [vmem:[#allocation232_spill] sm:$0xff] }
 0x29a   :  { %v2253_v54 = vsub.f32 %v1997_v39, %v1741_v23  ;;  %v2507_v40 = vand.u32 2147483647, %v2251_v59  ;;  %v2922_v25 = vsel %vm2600_vm0, %v2505_v3, 0.0  ;;  %v6152_v51 = vadd.f32 %v8538_v21, %v8537_v58  ;;  %v8540_v39 = vld [vmem:[#allocation259_spill] sm:$0xff]  ;;  %v8541_v23 = vld [vmem:[#allocation442_spill] sm:$0xff] }
 0x29b   :  { %v1490_v2 = vadd.f32 %v6008_v11, %v5864_v36  ;;  %v1744_v13 = vadd.f32 %v1488_v5, %v6134_v49  ;;  %v2921_v24 = vadd.f32 %v2920_v44, %v2919_v32  ;;  %v2000_v12 = vmul.f32 9.0, %v8539_v9  ;;  %v8542_v36 = vld [vmem:[#allocation233_spill] sm:$0xff] }
 0x29c   :  { %v2254_v55 = vsub.f32 %v1998_v4, %v1742_v28  ;;  %v2508_v47 = vand.u32 2147483647, %v2252_v8  ;;  %v2924_v30 = vsel %vm2600_vm0, %v2506_v27, 0.0  ;;  %v6161_v59 = vadd.f32 %v8541_v23, %v8540_v39  ;;  %v8543_v28 = vld [vmem:[#allocation260_spill] sm:$0xff]  ;;  %v8544_v4 = vld [vmem:[#allocation443_spill] sm:$0xff] }
 0x29d   :  { %v1491_v3 = vadd.f32 %v6017_v26, %v5873_v6  ;;  %v1745_v16 = vadd.f32 %v1489_v17, %v6143_v50  ;;  %v2923_v21 = vadd.f32 %v2922_v25, %v2921_v24  ;;  %v2001_v58 = vmul.f32 9.0, %v8542_v36  ;;  %v8545_v6 = vld [vmem:[#allocation235_spill] sm:$0xff] }
 0x29e   :  { %v2255_v5 = vsub.f32 %v1999_v37, %v1743_v35  ;;  %v2509_v44 = vand.u32 2147483647, %v2253_v54  ;;  %v2926_v32 = vsel %vm2600_vm0, %v2507_v40, 0.0  ;;  %v6170_v8 = vadd.f32 %v8544_v4, %v8543_v28  ;;  %v8546_v37 = vld [vmem:[#allocation261_spill] sm:$0xff]  ;;  %v8547_v35 = vld [vmem:[#allocation444_spill] sm:$0xff] }
 0x29f   :  { %v1492_v27 = vadd.f32 %v6026_v33, %v5882_v48  ;;  %v1746_v9 = vadd.f32 %v1490_v2, %v6152_v51  ;;  %v2925_v23 = vadd.f32 %v2924_v30, %v2923_v21  ;;  %v2002_v39 = vmul.f32 9.0, %v8545_v6  ;;  %v8548_v48 = vld [vmem:[#allocation236_spill] sm:$0xff] }
 0x2a0   :  { %v2256_v17 = vsub.f32 %v2000_v12, %v1744_v13  ;;  %v2510_v25 = vand.u32 2147483647, %v2254_v55  ;;  %v2928_v24 = vsel %vm2600_vm0, %v2508_v47, 0.0  ;;  %v6179_v54 = vadd.f32 %v8547_v35, %v8546_v37  ;;  %v8549_v12 = vld [vmem:[#allocation263_spill] sm:$0xff]  ;;  %v8550_v13 = vld [vmem:[#allocation13_spill] sm:$0xff] }
 0x2a1   :  { %v1493_v40 = vadd.f32 %v6035_v7, %v5891_v14  ;;  %v1747_v36 = vadd.f32 %v1491_v3, %v6161_v59  ;;  %v2927_v4 = vadd.f32 %v2926_v32, %v2925_v23  ;;  %v2003_v28 = vmul.f32 9.0, %v8548_v48  ;;  %v8551_v14 = vld [vmem:[#allocation237_spill] sm:$0xff] }
 0x2a2   :  { %v2257_v2 = vsub.f32 %v2001_v58, %v1745_v16  ;;  %v2511_v30 = vand.u32 2147483647, %v2255_v5  ;;  %v2930_v21 = vsel %vm2600_vm0, %v2509_v44, 0.0  ;;  %v6188_v55 = vadd.f32 %v8550_v13, %v8549_v12  ;;  %v8552_v58 = vld [vmem:[#allocation337_spill] sm:$0xff] }
 0x2a3   :  { %v1494_v47 = vadd.f32 %v6044_v62, %v5900_v61  ;;  %v1748_v6 = vadd.f32 %v1492_v27, %v6170_v8  ;;  %v2929_v35 = vadd.f32 %v2928_v24, %v2927_v4  ;;  %v2004_v37 = vmul.f32 9.0, %v8551_v14  ;;  %v8554_v61 = vld [vmem:[#allocation239_spill] sm:$0xff] }
 0x2a4   :  { %v2258_v3 = vsub.f32 %v2002_v39, %v1746_v9  ;;  %v2512_v32 = vand.u32 2147483647, %v2256_v17  ;;  %v2932_v23 = vsel %vm2600_vm0, %v2510_v25, 0.0  ;;  %v6197_v16 = vadd.f32 %v8552_v58, %v8507_v31  ;;  %v8555_v39 = vld [vmem:[#allocation339_spill] sm:$0xff] }
 0x2a5   :  { %v1495_v5 = vadd.f32 %v8512_v34, %v8465_v19  ;;  %v1749_v44 = vadd.f32 %v1493_v40, %v6179_v54  ;;  %v2931_v48 = vadd.f32 %v2930_v21, %v2929_v35  ;;  %v2005_v13 = vmul.f32 9.0, %v8554_v61  ;;  %v8559_v61 = vld [vmem:[#allocation22_spill] sm:$0xff] }
 0x2a6   :  { %8553 = vst [vmem:[#allocation154_spill] sm:$0xff] %v6197_v16  ;;  %v2259_v27 = vsub.f32 %v2003_v28, %v1747_v36  ;;  %v2513_v24 = vand.u32 2147483647, %v2257_v2  ;;  %v2934_v4 = vsel %vm2600_vm0, %v2511_v30, 0.0  ;;  %v6206_v9 = vadd.f32 %v8555_v39, %v8552_v58  ;;  %v8557_v28 = vld [vmem:[#allocation267_spill] sm:$0xff]  ;;  %v8558_v36 = vld [vmem:[#allocation32_spill] sm:$0xff] }
 0x2a7   :  { %v1496_v17 = vadd.f32 %v8511_v45, %v8464_v63  ;;  %v1750_v25 = vadd.f32 %v1494_v47, %v6188_v55  ;;  %v2933_v14 = vadd.f32 %v2932_v23, %v2931_v48  ;;  %v2006_v19 = vmul.f32 9.0, %v8499_v20  ;;  %v8560_v63 = vld [vmem:[#allocation241_spill] sm:$0xff] }
 0x2a8   :  { %8556 = vst [vmem:[#allocation59_spill] sm:$0xff] %v6206_v9  ;;  %v2260_v40 = vsub.f32 %v2004_v37, %v1748_v6  ;;  %v2514_v21 = vand.u32 2147483647, %v2258_v3  ;;  %v2936_v35 = vsel %vm2600_vm0, %v2512_v32, 0.0  ;;  %v6215_v2 = vadd.f32 %v8558_v36, %v8557_v28  ;;  %v8561_v37 = vld [vmem:[#allocation268_spill] sm:$0xff]  ;;  %v8562_v6 = vld [vmem:[#allocation82_spill] sm:$0xff] }
 0x2a9   :  { %v1497_v30 = vadd.f32 %v6071_v38, %v5927_v60  ;;  %v1751_v9 = vadd.f32 %v1495_v5, %v8559_v61  ;;  %v2935_v16 = vadd.f32 %v2934_v4, %v2933_v14  ;;  %v2007_v58 = vmul.f32 9.0, %v8560_v63  ;;  %v8563_v60 = vld [vmem:[#allocation243_spill] sm:$0xff] }
 0x2aa   :  { %v2261_v47 = vsub.f32 %v2005_v13, %v1749_v44  ;;  %v2515_v23 = vand.u32 2147483647, %v2259_v27  ;;  %v2938_v20 = vsel %vm2600_vm0, %v2513_v24, 0.0  ;;  %v6224_v3 = vadd.f32 %v8562_v6, %v8561_v37  ;;  %v8564_v44 = vld [vmem:[#allocation269_spill] sm:$0xff]  ;;  %v8565_v13 = vld [vmem:[#allocation14_spill] sm:$0xff] }
 0x2ab   :  { %v1498_v32 = vadd.f32 %v6080_v10, %v5936_v1  ;;  %v1752_v48 = vadd.f32 %v1496_v17, %v8558_v36  ;;  %v2937_v31 = vadd.f32 %v2936_v35, %v2935_v16  ;;  %v2008_v28 = vmul.f32 9.0, %v8563_v60  ;;  %v8566_v1 = vld [vmem:[#allocation244_spill] sm:$0xff] }
 0x2ac   :  { %v2262_v5 = vsub.f32 %v2006_v19, %v1750_v25  ;;  %v2516_v4 = vand.u32 2147483647, %v2260_v40  ;;  %v2940_v14 = vsel %vm2600_vm0, %v2514_v21, 0.0  ;;  %v6233_v27 = vadd.f32 %v8565_v13, %v8564_v44  ;;  %v8567_v25 = vld [vmem:[#allocation271_spill] sm:$0xff]  ;;  %v8568_v19 = vld [vmem:[#allocation26_spill] sm:$0xff] }
 0x2ad   :  { %v1499_v24 = vadd.f32 %v6089_v53, %v5945_v0  ;;  %v1753_v63 = vadd.f32 %v1497_v30, %v6215_v2  ;;  %v2939_v6 = vadd.f32 %v2938_v20, %v2937_v31  ;;  %v2009_v37 = vmul.f32 9.0, %v8566_v1  ;;  %v8569_v0 = vld [vmem:[#allocation245_spill] sm:$0xff] }
 0x2ae   :  { %v2263_v17 = vsub.f32 %v2007_v58, %v1751_v9  ;;  %v2517_v16 = vand.u32 2147483647, %v2261_v47  ;;  %v2942_v35 = vsel %vm2600_vm0, %v2515_v23, 0.0  ;;  %v6242_v40 = vadd.f32 %v8568_v19, %v8567_v25  ;;  %v8570_v58 = vld [vmem:[#allocation272_spill] sm:$0xff]  ;;  %v8571_v9 = vld [vmem:[#allocation33_spill] sm:$0xff] }
 0x2af   :  { %v1500_v21 = vadd.f32 %v6098_v18, %v5954_v41  ;;  %v1754_v60 = vadd.f32 %v1498_v32, %v6224_v3  ;;  %v2941_v13 = vadd.f32 %v2940_v14, %v2939_v6  ;;  %v2010_v44 = vmul.f32 9.0, %v8569_v0  ;;  %v8572_v41 = vld [vmem:[#allocation247_spill] sm:$0xff] }
 0x2b0   :  { %v2264_v30 = vsub.f32 %v2008_v28, %v1752_v48  ;;  %v2518_v31 = vand.u32 2147483647, %v2262_v5  ;;  %v2944_v20 = vsel %vm2600_vm0, %v2516_v4, 0.0  ;;  %v6251_v47 = vadd.f32 %v8571_v9, %v8570_v58  ;;  %v8573_v28 = vld [vmem:[#allocation273_spill] sm:$0xff]  ;;  %v8574_v48 = vld [vmem:[#allocation86_spill] sm:$0xff] }
 0x2b1   :  { %v1501_v23 = vadd.f32 %v6107_v46, %v5963_v15  ;;  %v1755_v1 = vadd.f32 %v1499_v24, %v6233_v27  ;;  %v2943_v19 = vadd.f32 %v2942_v35, %v2941_v13  ;;  %v2011_v25 = vmul.f32 9.0, %v8572_v41  ;;  %v8575_v15 = vld [vmem:[#allocation248_spill] sm:$0xff] }
 0x2b2   :  { %v2265_v32 = vsub.f32 %v2009_v37, %v1753_v63  ;;  %v2519_v14 = vand.u32 2147483647, %v2263_v17  ;;  %v2946_v6 = vsel %vm2600_vm0, %v2517_v16, 0.0  ;;  %v6260_v5 = vadd.f32 %v8574_v48, %v8573_v28  ;;  %v8576_v37 = vld [vmem:[#allocation275_spill] sm:$0xff]  ;;  %v8577_v63 = vld [vmem:[#allocation30_spill] sm:$0xff] }
 0x2b3   :  { %v1502_v4 = vadd.f32 %v6116_v57, %v5972_v29  ;;  %v1756_v0 = vadd.f32 %v1500_v21, %v6242_v40  ;;  %v2945_v9 = vadd.f32 %v2944_v20, %v2943_v19  ;;  %v2012_v58 = vmul.f32 9.0, %v8575_v15  ;;  %v8578_v29 = vld [vmem:[#allocation249_spill] sm:$0xff] }
 0x2b4   :  { %v2266_v24 = vsub.f32 %v2010_v44, %v1754_v60  ;;  %v2520_v35 = vand.u32 2147483647, %v2264_v30  ;;  %v2948_v13 = vsel %vm2600_vm0, %v2518_v31, 0.0  ;;  %v6269_v17 = vadd.f32 %v8577_v63, %v8576_v37  ;;  %v8579_v44 = vld [vmem:[#allocation276_spill] sm:$0xff]  ;;  %v8580_v60 = vld [vmem:[#allocation35_spill] sm:$0xff] }
 0x2b5   :  { %v1503_v16 = vadd.f32 %v6125_v52, %v5981_v56  ;;  %v1757_v41 = vadd.f32 %v1501_v23, %v6251_v47  ;;  %v2947_v48 = vadd.f32 %v2946_v6, %v2945_v9  ;;  %v2013_v28 = vmul.f32 9.0, %v8578_v29  ;;  %v8581_v56 = vld [vmem:[#allocation251_spill] sm:$0xff] }
 0x2b6   :  { %v2267_v21 = vsub.f32 %v2011_v25, %v1755_v1  ;;  %v2521_v20 = vand.u32 2147483647, %v2265_v32  ;;  %v2950_v19 = vsel %vm2600_vm0, %v2519_v14, 0.0  ;;  %v6278_v30 = vadd.f32 %v8580_v60, %v8579_v44  ;;  %v8582_v25 = vld [vmem:[#allocation277_spill] sm:$0xff]  ;;  %v8583_v1 = vld [vmem:[#allocation90_spill] sm:$0xff] }
 0x2b7   :  { %v1504_v31 = vadd.f32 %v6134_v49, %v5990_v22  ;;  %v1758_v15 = vadd.f32 %v1502_v4, %v6260_v5  ;;  %v2949_v63 = vadd.f32 %v2948_v13, %v2947_v48  ;;  %v2014_v37 = vmul.f32 9.0, %v8581_v56  ;;  %v8584_v22 = vld [vmem:[#allocation252_spill] sm:$0xff] }
 0x2b8   :  { %v2268_v23 = vsub.f32 %v2012_v58, %v1756_v0  ;;  %v2522_v6 = vand.u32 2147483647, %v2266_v24  ;;  %v2952_v9 = vsel %vm2600_vm0, %v2520_v35, 0.0  ;;  %v6287_v32 = vadd.f32 %v8583_v1, %v8582_v25  ;;  %v8585_v58 = vld [vmem:[#allocation279_spill] sm:$0xff]  ;;  %v8586_v0 = vld [vmem:[#allocation16_spill] sm:$0xff] }
 0x2b9   :  { %v1505_v14 = vadd.f32 %v6143_v50, %v5999_v43  ;;  %v1759_v29 = vadd.f32 %v1503_v16, %v6269_v17  ;;  %v2951_v60 = vadd.f32 %v2950_v19, %v2949_v63  ;;  %v2015_v44 = vmul.f32 9.0, %v8584_v22 }
 0x2ba   :  { %v2269_v4 = vsub.f32 %v2013_v28, %v1757_v41  ;;  %v2523_v13 = vand.u32 2147483647, %v2267_v21  ;;  %v2954_v48 = vsel %vm2600_vm0, %v2521_v20, 0.0  ;;  %v6296_v24 = vadd.f32 %v8586_v0, %v8585_v58  ;;  %v8587_v28 = vld [vmem:[#allocation280_spill] sm:$0xff] }
 0x2bb   :  { %v1506_v35 = vadd.f32 %v6152_v51, %v6008_v11  ;;  %v1760_v56 = vadd.f32 %v1504_v31, %v6278_v30  ;;  %v2953_v1 = vadd.f32 %v2952_v9, %v2951_v60  ;;  %v2016_v43 = vmul.f32 9.0, %v8529_v42  ;;  %v8588_v41 = vld [vmem:[#allocation36_spill] sm:$0xff]  ;;  %v8589_v11 = vld [vmem:[#allocation255_spill] sm:$0xff] }
 0x2bc   :  { %v2270_v16 = vsub.f32 %v2014_v37, %v1758_v15  ;;  %v2524_v19 = vand.u32 2147483647, %v2268_v23  ;;  %v2956_v63 = vsel %vm2600_vm0, %v2522_v6, 0.0  ;;  %v6305_v21 = vadd.f32 %v8588_v41, %v8587_v28  ;;  %v8590_v37 = vld [vmem:[#allocation281_spill] sm:$0xff]  ;;  %v8591_v15 = vld [vmem:[#allocation11_spill] sm:$0xff] }
 0x2bd   :  { %v1507_v20 = vadd.f32 %v6161_v59, %v6017_v26  ;;  %v1761_v22 = vadd.f32 %v1505_v14, %v6287_v32  ;;  %v2955_v0 = vadd.f32 %v2954_v48, %v2953_v1  ;;  %v2017_v58 = vmul.f32 9.0, %v8589_v11  ;;  %v8592_v26 = vld [vmem:[#allocation256_spill] sm:$0xff] }
 0x2be   :  { %v2271_v31 = vsub.f32 %v2015_v44, %v1759_v29  ;;  %v2525_v9 = vand.u32 2147483647, %v2269_v4  ;;  %v2958_v42 = vsel %vm2600_vm0, %v2523_v13, 0.0  ;;  %v6314_v23 = vadd.f32 %v8591_v15, %v8590_v37  ;;  %v8593_v44 = vld [vmem:[#allocation283_spill] sm:$0xff]  ;;  %v8594_v29 = vld [vmem:[#allocation12_spill] sm:$0xff] }
 0x2bf   :  { %v1508_v6 = vadd.f32 %v6170_v8, %v6026_v33  ;;  %v1762_v60 = vadd.f32 %v1506_v35, %v6296_v24  ;;  %v2957_v41 = vadd.f32 %v2956_v63, %v2955_v0  ;;  %v2018_v28 = vmul.f32 9.0, %v8592_v26  ;;  %v8595_v33 = vld [vmem:[#allocation257_spill] sm:$0xff] }
 0x2c0   :  { %v2272_v14 = vsub.f32 %v2016_v43, %v1760_v56  ;;  %v2526_v48 = vand.u32 2147483647, %v2270_v16  ;;  %v2960_v1 = vsel %vm2600_vm0, %v2524_v19, 0.0  ;;  %v6323_v4 = vadd.f32 %v8594_v29, %v8593_v44  ;;  %v8596_v56 = vld [vmem:[#allocation284_spill] sm:$0xff]  ;;  %v8597_v43 = vld [vmem:[#allocation17_spill] sm:$0xff] }
 0x2c1   :  { %v1509_v13 = vadd.f32 %v6179_v54, %v6035_v7  ;;  %v1763_v11 = vadd.f32 %v1507_v20, %v6305_v21  ;;  %v2959_v15 = vadd.f32 %v2958_v42, %v2957_v41  ;;  %v2019_v37 = vmul.f32 9.0, %v8595_v33  ;;  %v8598_v7 = vld [vmem:[#allocation259_spill] sm:$0xff] }
 0x2c2   :  { %v2273_v35 = vsub.f32 %v2017_v58, %v1761_v22  ;;  %v2527_v63 = vand.u32 2147483647, %v2271_v31  ;;  %v2962_v0 = vsel %vm2600_vm0, %v2525_v9, 0.0  ;;  %v6332_v16 = vadd.f32 %v8597_v43, %v8596_v56  ;;  %v8599_v58 = vld [vmem:[#allocation340_spill] sm:$0xff] }
 0x2c3   :  { %v1510_v19 = vadd.f32 %v6188_v55, %v6044_v62  ;;  %v1764_v26 = vadd.f32 %v1508_v6, %v6314_v23  ;;  %v2961_v29 = vadd.f32 %v2960_v1, %v2959_v15  ;;  %v2020_v44 = vmul.f32 9.0, %v8598_v7  ;;  %v8601_v62 = vld [vmem:[#allocation260_spill] sm:$0xff] }
 0x2c4   :  { %v2274_v20 = vsub.f32 %v2018_v28, %v1762_v60  ;;  %v2528_v42 = vand.u32 2147483647, %v2272_v14  ;;  %v2964_v41 = vsel %vm2600_vm0, %v2526_v48, 0.0  ;;  %v6341_v22 = vadd.f32 %v8599_v58, %v8555_v39  ;;  %v8602_v28 = vld [vmem:[#allocation341_spill] sm:$0xff] }
 0x2c5   :  { %v1511_v31 = vadd.f32 %v8559_v61, %v8512_v34  ;;  %v1765_v9 = vadd.f32 %v1509_v13, %v6323_v4  ;;  %v2963_v33 = vadd.f32 %v2962_v0, %v2961_v29  ;;  %v2021_v43 = vmul.f32 9.0, %v8601_v62  ;;  %v8604_v34 = vld [vmem:[#allocation261_spill] sm:$0xff]  ;;  %v8607_v62 = vld [vmem:[#allocation46_spill] sm:$0xff] }
 0x2c6   :  { %8600 = vst [vmem:[#allocation158_spill] sm:$0xff] %v6341_v22  ;;  %v2275_v6 = vsub.f32 %v2019_v37, %v1763_v11  ;;  %v2529_v1 = vand.u32 2147483647, %v2273_v35  ;;  %v2966_v15 = vsel %vm2600_vm0, %v2527_v63, 0.0  ;;  %v6350_v60 = vadd.f32 %v8602_v28, %v8599_v58  ;;  %v8605_v37 = vld [vmem:[#allocation288_spill] sm:$0xff] }
 0x2c7   :  { %v1512_v14 = vadd.f32 %v8558_v36, %v8511_v45  ;;  %v1766_v48 = vadd.f32 %v1510_v19, %v6332_v16  ;;  %v2965_v7 = vadd.f32 %v2964_v41, %v2963_v33  ;;  %v2022_v22 = vmul.f32 9.0, %v8604_v34  ;;  %v8606_v11 = vld [vmem:[#allocation40_spill] sm:$0xff] }
 0x2c8   :  { %8603 = vst [vmem:[#allocation60_spill] sm:$0xff] %v6350_v60  ;;  %v2276_v13 = vsub.f32 %v2020_v44, %v1764_v26  ;;  %v2530_v0 = vand.u32 2147483647, %v2274_v20  ;;  %v2968_v29 = vsel %vm2600_vm0, %v2528_v42, 0.0  ;;  %v6359_v35 = vadd.f32 %v8606_v11, %v8605_v37  ;;  %v8608_v44 = vld [vmem:[#allocation289_spill] sm:$0xff]  ;;  %v8609_v26 = vld [vmem:[#allocation106_spill] sm:$0xff] }
 0x2c9   :  { %v1513_v63 = vadd.f32 %v6215_v2, %v6071_v38  ;;  %v1767_v60 = vadd.f32 %v1511_v31, %v8607_v62  ;;  %v2967_v58 = vadd.f32 %v2966_v15, %v2965_v7  ;;  %v2023_v45 = vmul.f32 9.0, %v8549_v12  ;;  %v8610_v38 = vld [vmem:[#allocation264_spill] sm:$0xff] }
 0x2ca   :  { %v2277_v19 = vsub.f32 %v2021_v43, %v1765_v9  ;;  %v2531_v41 = vand.u32 2147483647, %v2275_v6  ;;  %v2970_v33 = vsel %vm2600_vm0, %v2529_v1, 0.0  ;;  %v6368_v20 = vadd.f32 %v8609_v26, %v8608_v44  ;;  %v8611_v9 = vld [vmem:[#allocation291_spill] sm:$0xff]  ;;  %v8612_v43 = vld [vmem:[#allocation20_spill] sm:$0xff] }
 0x2cb   :  { %v1514_v42 = vadd.f32 %v6224_v3, %v6080_v10  ;;  %v1768_v34 = vadd.f32 %v1512_v14, %v8606_v11  ;;  %v2969_v39 = vadd.f32 %v2968_v29, %v2967_v58  ;;  %v2024_v37 = vmul.f32 9.0, %v8610_v38  ;;  %v8613_v10 = vld [vmem:[#allocation265_spill] sm:$0xff] }
 0x2cc   :  { %v2278_v31 = vsub.f32 %v2022_v22, %v1766_v48  ;;  %v2532_v15 = vand.u32 2147483647, %v2276_v13  ;;  %v2972_v12 = vsel %vm2600_vm0, %v2530_v0, 0.0  ;;  %v6377_v6 = vadd.f32 %v8612_v43, %v8611_v9  ;;  %v8614_v22 = vld [vmem:[#allocation292_spill] sm:$0xff]  ;;  %v8615_v48 = vld [vmem:[#allocation50_spill] sm:$0xff] }
 0x2cd   :  { %v1515_v1 = vadd.f32 %v6233_v27, %v6089_v53  ;;  %v1769_v7 = vadd.f32 %v1513_v63, %v6359_v35  ;;  %v2971_v26 = vadd.f32 %v2970_v33, %v2969_v39  ;;  %v2025_v44 = vmul.f32 9.0, %v8613_v10  ;;  %v8616_v53 = vld [vmem:[#allocation267_spill] sm:$0xff] }
 0x2ce   :  { %v2279_v14 = vsub.f32 %v2023_v45, %v1767_v60  ;;  %v2533_v58 = vand.u32 2147483647, %v2277_v19  ;;  %v2974_v29 = vsel %vm2600_vm0, %v2531_v41, 0.0  ;;  %v6386_v13 = vadd.f32 %v8615_v48, %v8614_v22  ;;  %v8617_v60 = vld [vmem:[#allocation293_spill] sm:$0xff] }
 0x2cf   :  { %v1516_v0 = vadd.f32 %v6242_v40, %v6098_v18  ;;  %v1770_v38 = vadd.f32 %v1514_v42, %v6368_v20  ;;  %v2973_v43 = vadd.f32 %v2972_v12, %v2971_v26  ;;  %v2026_v9 = vmul.f32 9.0, %v8616_v53  ;;  %v8618_v45 = vld [vmem:[#allocation41_spill] sm:$0xff]  ;;  %v8619_v18 = vld [vmem:[#allocation268_spill] sm:$0xff] }
 0x2d0   :  { %v2280_v63 = vsub.f32 %v2024_v37, %v1768_v34  ;;  %v2534_v39 = vand.u32 2147483647, %v2278_v31  ;;  %v2976_v33 = vsel %vm2600_vm0, %v2532_v15, 0.0  ;;  %v6395_v19 = vadd.f32 %v8618_v45, %v8617_v60  ;;  %v8620_v37 = vld [vmem:[#allocation295_spill] sm:$0xff]  ;;  %v8621_v34 = vld [vmem:[#allocation110_spill] sm:$0xff] }
 0x2d1   :  { %v1517_v41 = vadd.f32 %v6251_v47, %v6107_v46  ;;  %v1771_v10 = vadd.f32 %v1515_v1, %v6377_v6  ;;  %v2975_v48 = vadd.f32 %v2974_v29, %v2973_v43  ;;  %v2027_v22 = vmul.f32 9.0, %v8619_v18  ;;  %v8622_v46 = vld [vmem:[#allocation269_spill] sm:$0xff] }
 0x2d2   :  { %v2281_v42 = vsub.f32 %v2025_v44, %v1769_v7  ;;  %v2535_v12 = vand.u32 2147483647, %v2279_v14  ;;  %v2978_v26 = vsel %vm2600_vm0, %v2533_v58, 0.0  ;;  %v6404_v31 = vadd.f32 %v8621_v34, %v8620_v37  ;;  %v8623_v44 = vld [vmem:[#allocation296_spill] sm:$0xff]  ;;  %v8624_v7 = vld [vmem:[#allocation21_spill] sm:$0xff] }
 0x2d3   :  { %v1518_v15 = vadd.f32 %v6260_v5, %v6116_v57  ;;  %v1772_v53 = vadd.f32 %v1516_v0, %v6386_v13  ;;  %v2977_v45 = vadd.f32 %v2976_v33, %v2975_v48  ;;  %v2028_v60 = vmul.f32 9.0, %v8622_v46  ;;  %v8625_v57 = vld [vmem:[#allocation271_spill] sm:$0xff] }
 0x2d4   :  { %v2282_v1 = vsub.f32 %v2026_v9, %v1770_v38  ;;  %v2536_v29 = vand.u32 2147483647, %v2280_v63  ;;  %v2980_v43 = vsel %vm2600_vm0, %v2534_v39, 0.0  ;;  %v6413_v14 = vadd.f32 %v8624_v7, %v8623_v44  ;;  %v8626_v9 = vld [vmem:[#allocation297_spill] sm:$0xff]  ;;  %v8627_v38 = vld [vmem:[#allocation54_spill] sm:$0xff] }
 0x2d5   :  { %v1519_v58 = vadd.f32 %v6269_v17, %v6125_v52  ;;  %v1773_v18 = vadd.f32 %v1517_v41, %v6395_v19  ;;  %v2979_v34 = vadd.f32 %v2978_v26, %v2977_v45  ;;  %v2029_v37 = vmul.f32 9.0, %v8625_v57  ;;  %v8628_v52 = vld [vmem:[#allocation272_spill] sm:$0xff] }
 0x2d6   :  { %v2283_v0 = vsub.f32 %v2027_v22, %v1771_v10  ;;  %v2537_v33 = vand.u32 2147483647, %v2281_v42  ;;  %v2982_v48 = vsel %vm2600_vm0, %v2535_v12, 0.0  ;;  %v6422_v63 = vadd.f32 %v8627_v38, %v8626_v9  ;;  %v8629_v22 = vld [vmem:[#allocation299_spill] sm:$0xff] }
 0x2d7   :  { %v1520_v39 = vadd.f32 %v6278_v30, %v6134_v49  ;;  %v1774_v46 = vadd.f32 %v1518_v15, %v6404_v31  ;;  %v2981_v7 = vadd.f32 %v2980_v43, %v2979_v34  ;;  %v2030_v44 = vmul.f32 9.0, %v8628_v52  ;;  %v8630_v10 = vld [vmem:[#allocation23_spill] sm:$0xff]  ;;  %v8631_v49 = vld [vmem:[#allocation273_spill] sm:$0xff] }
 0x2d8   :  { %v2284_v41 = vsub.f32 %v2028_v60, %v1772_v53  ;;  %v2538_v26 = vand.u32 2147483647, %v2282_v1  ;;  %v2984_v45 = vsel %vm2600_vm0, %v2536_v29, 0.0  ;;  %v6431_v42 = vadd.f32 %v8630_v10, %v8629_v22  ;;  %v8632_v60 = vld [vmem:[#allocation300_spill] sm:$0xff]  ;;  %v8633_v53 = vld [vmem:[#allocation43_spill] sm:$0xff] }
 0x2d9   :  { %v1521_v12 = vadd.f32 %v6287_v32, %v6143_v50  ;;  %v1775_v57 = vadd.f32 %v1519_v58, %v6413_v14  ;;  %v2983_v38 = vadd.f32 %v2982_v48, %v2981_v7  ;;  %v2031_v9 = vmul.f32 9.0, %v8631_v49  ;;  %v8634_v50 = vld [vmem:[#allocation275_spill] sm:$0xff] }
 0x2da   :  { %v2285_v15 = vsub.f32 %v2029_v37, %v1773_v18  ;;  %v2539_v43 = vand.u32 2147483647, %v2283_v0  ;;  %v2986_v34 = vsel %vm2600_vm0, %v2537_v33, 0.0  ;;  %v6440_v1 = vadd.f32 %v8633_v53, %v8632_v60  ;;  %v8635_v37 = vld [vmem:[#allocation301_spill] sm:$0xff]  ;;  %v8636_v18 = vld [vmem:[#allocation114_spill] sm:$0xff] }
 0x2db   :  { %v1522_v29 = vadd.f32 %v6296_v24, %v6152_v51  ;;  %v1776_v52 = vadd.f32 %v1520_v39, %v6422_v63  ;;  %v2985_v10 = vadd.f32 %v2984_v45, %v2983_v38  ;;  %v2032_v22 = vmul.f32 9.0, %v8634_v50  ;;  %v8637_v51 = vld [vmem:[#allocation276_spill] sm:$0xff] }
 0x2dc   :  { %v2286_v58 = vsub.f32 %v2030_v44, %v1774_v46  ;;  %v2540_v48 = vand.u32 2147483647, %v2284_v41  ;;  %v2988_v7 = vsel %vm2600_vm0, %v2538_v26, 0.0  ;;  %v6449_v0 = vadd.f32 %v8636_v18, %v8635_v37  ;;  %v8638_v44 = vld [vmem:[#allocation303_spill] sm:$0xff]  ;;  %v8639_v46 = vld [vmem:[#allocation44_spill] sm:$0xff] }
 0x2dd   :  { %v1523_v33 = vadd.f32 %v6305_v21, %v6161_v59  ;;  %v1777_v49 = vadd.f32 %v1521_v12, %v6431_v42  ;;  %v2987_v53 = vadd.f32 %v2986_v34, %v2985_v10  ;;  %v2033_v60 = vmul.f32 9.0, %v8637_v51 }
 0x2de   :  { %v2287_v39 = vsub.f32 %v2031_v9, %v1775_v57  ;;  %v2541_v45 = vand.u32 2147483647, %v2285_v15  ;;  %v2990_v38 = vsel %vm2600_vm0, %v2539_v43, 0.0  ;;  %v6458_v41 = vadd.f32 %v8639_v46, %v8638_v44  ;;  %v8640_v9 = vld [vmem:[#allocation304_spill] sm:$0xff]  ;;  %v8641_v57 = vld [vmem:[#allocation118_spill] sm:$0xff] }
 0x2df   :  { %v1524_v26 = vadd.f32 %v6314_v23, %v6170_v8  ;;  %v1778_v50 = vadd.f32 %v1522_v29, %v6440_v1  ;;  %v2989_v18 = vadd.f32 %v2988_v7, %v2987_v53  ;;  %v2034_v59 = vmul.f32 9.0, %v8582_v25  ;;  %v8642_v8 = vld [vmem:[#allocation279_spill] sm:$0xff] }
 0x2e0   :  { %v2288_v12 = vsub.f32 %v2032_v22, %v1776_v52  ;;  %v2542_v34 = vand.u32 2147483647, %v2286_v58  ;;  %v2992_v10 = vsel %vm2600_vm0, %v2540_v48, 0.0  ;;  %v6467_v15 = vadd.f32 %v8641_v57, %v8640_v9  ;;  %v8643_v22 = vld [vmem:[#allocation305_spill] sm:$0xff]  ;;  %v8644_v52 = vld [vmem:[#allocation24_spill] sm:$0xff] }
 0x2e1   :  { %v1525_v43 = vadd.f32 %v6323_v4, %v6179_v54  ;;  %v1779_v51 = vadd.f32 %v1523_v33, %v6449_v0  ;;  %v2991_v46 = vadd.f32 %v2990_v38, %v2989_v18  ;;  %v2035_v44 = vmul.f32 9.0, %v8642_v8  ;;  %v8645_v54 = vld [vmem:[#allocation280_spill] sm:$0xff] }
 0x2e2   :  { %v2289_v29 = vsub.f32 %v2033_v60, %v1777_v49  ;;  %v2543_v7 = vand.u32 2147483647, %v2287_v39  ;;  %v2994_v25 = vsel %vm2600_vm0, %v2541_v45, 0.0  ;;  %v6476_v58 = vadd.f32 %v8644_v52, %v8643_v22  ;;  %v8646_v60 = vld [vmem:[#allocation343_spill] sm:$0xff] }
 0x2e3   :  { %v1526_v48 = vadd.f32 %v6332_v16, %v6188_v55  ;;  %v1780_v53 = vadd.f32 %v1524_v26, %v6458_v41  ;;  %v2993_v57 = vadd.f32 %v2992_v10, %v2991_v46  ;;  %v2036_v9 = vmul.f32 9.0, %v8645_v54  ;;  %v8648_v55 = vld [vmem:[#allocation281_spill] sm:$0xff] }
 0x2e4   :  { %v2290_v33 = vsub.f32 %v2034_v59, %v1778_v50  ;;  %v2544_v38 = vand.u32 2147483647, %v2288_v12  ;;  %v2996_v18 = vsel %vm2600_vm0, %v2542_v34, 0.0  ;;  %v6485_v49 = vadd.f32 %v8646_v60, %v8602_v28  ;;  %v8649_v50 = vld [vmem:[#allocation344_spill] sm:$0xff] }
 0x2e5   :  { %v1527_v39 = vadd.f32 %v8607_v62, %v8559_v61  ;;  %v1781_v45 = vadd.f32 %v1525_v43, %v6467_v15  ;;  %v2995_v8 = vadd.f32 %v2994_v25, %v2993_v57  ;;  %v2037_v52 = vmul.f32 9.0, %v8648_v55  ;;  %v8651_v61 = vld [vmem:[#allocation283_spill] sm:$0xff]  ;;  %v8655_v55 = vld [vmem:[#allocation62_spill] sm:$0xff] }
 0x2e6   :  { %8647 = vst [vmem:[#allocation162_spill] sm:$0xff] %v6485_v49  ;;  %v2291_v26 = vsub.f32 %v2035_v44, %v1779_v51  ;;  %v2545_v10 = vand.u32 2147483647, %v2289_v29  ;;  %v2998_v46 = vsel %vm2600_vm0, %v2543_v7, 0.0  ;;  %v6494_v59 = vadd.f32 %v8649_v50, %v8646_v60  ;;  %v8652_v44 = vld [vmem:[#allocation309_spill] sm:$0xff] }
 0x2e7   :  { %v1528_v12 = vadd.f32 %v8606_v11, %v8558_v36  ;;  %v1782_v34 = vadd.f32 %v1526_v48, %v6476_v58  ;;  %v2997_v54 = vadd.f32 %v2996_v18, %v2995_v8  ;;  %v2038_v49 = vmul.f32 9.0, %v8651_v61  ;;  %v8653_v51 = vld [vmem:[#allocation45_spill] sm:$0xff] }
 0x2e8   :  { %8650 = vst [vmem:[#allocation61_spill] sm:$0xff] %v6494_v59  ;;  %v2292_v43 = vsub.f32 %v2036_v9, %v1780_v53  ;;  %v2546_v25 = vand.u32 2147483647, %v2290_v33  ;;  %v3000_v57 = vsel %vm2600_vm0, %v2544_v38, 0.0  ;;  %v6503_v29 = vadd.f32 %v8653_v51, %v8652_v44  ;;  %v8656_v9 = vld [vmem:[#allocation311_spill] sm:$0xff]  ;;  %v8657_v53 = vld [vmem:[#allocation122_spill] sm:$0xff] }
 0x2e9   :  { %v1529_v7 = vadd.f32 %v6359_v35, %v6215_v2  ;;  %v1783_v59 = vadd.f32 %v1527_v39, %v8655_v55  ;;  %v2999_v60 = vadd.f32 %v2998_v46, %v2997_v54  ;;  %v2039_v36 = vmul.f32 9.0, %v8596_v56  ;;  %v8658_v2 = vld [vmem:[#allocation285_spill] sm:$0xff] }
 0x2ea   :  { %8654 = vst [vmem:[#allocation166_spill] sm:$0xff] %v6503_v29  ;;  %v2293_v48 = vsub.f32 %v2037_v52, %v1781_v45  ;;  %v2547_v18 = vand.u32 2147483647, %v2291_v26  ;;  %v3002_v8 = vsel %vm2600_vm0, %v2545_v10, 0.0  ;;  %v6512_v33 = vadd.f32 %v8657_v53, %v8656_v9  ;;  %v8659_v45 = vld [vmem:[#allocation312_spill] sm:$0xff]  ;;  %v8660_v52 = vld [vmem:[#allocation25_spill] sm:$0xff] }
 0x2eb   :  { %v1530_v38 = vadd.f32 %v6368_v20, %v6224_v3  ;;  %v1784_v61 = vadd.f32 %v1528_v12, %v8653_v51  ;;  %v3001_v28 = vadd.f32 %v3000_v57, %v2999_v60  ;;  %v2040_v44 = vmul.f32 9.0, %v8658_v2  ;;  %v8661_v3 = vld [vmem:[#allocation287_spill] sm:$0xff] }
 0x2ec   :  { %v2294_v39 = vsub.f32 %v2038_v49, %v1782_v34  ;;  %v2548_v46 = vand.u32 2147483647, %v2292_v43  ;;  %v3004_v56 = vsel %vm2600_vm0, %v2546_v25, 0.0  ;;  %v6521_v26 = vadd.f32 %v8660_v52, %v8659_v45  ;;  %v8662_v49 = vld [vmem:[#allocation313_spill] sm:$0xff]  ;;  %v8663_v34 = vld [vmem:[#allocation66_spill] sm:$0xff] }
 0x2ed   :  { %v1531_v10 = vadd.f32 %v6377_v6, %v6233_v27  ;;  %v1785_v54 = vadd.f32 %v1529_v7, %v6503_v29  ;;  %v3003_v53 = vadd.f32 %v3002_v8, %v3001_v28  ;;  %v2041_v9 = vmul.f32 9.0, %v8661_v3  ;;  %v8664_v27 = vld [vmem:[#allocation288_spill] sm:$0xff] }
 0x2ee   :  { %v2295_v12 = vsub.f32 %v2039_v36, %v1783_v59  ;;  %v2549_v60 = vand.u32 2147483647, %v2293_v48  ;;  %v3006_v57 = vsel %vm2600_vm0, %v2547_v18, 0.0  ;;  %v6530_v43 = vadd.f32 %v8663_v34, %v8662_v49  ;;  %v8665_v59 = vld [vmem:[#allocation315_spill] sm:$0xff] }
 0x2ef   :  { %v1532_v25 = vadd.f32 %v6386_v13, %v6242_v40  ;;  %v1786_v2 = vadd.f32 %v1530_v38, %v6512_v33  ;;  %v3005_v52 = vadd.f32 %v3004_v56, %v3003_v53  ;;  %v2042_v45 = vmul.f32 9.0, %v8664_v27  ;;  %v8666_v36 = vld [vmem:[#allocation47_spill] sm:$0xff]  ;;  %v8667_v40 = vld [vmem:[#allocation289_spill] sm:$0xff] }
 0x2f0   :  { %v2296_v7 = vsub.f32 %v2040_v44, %v1784_v61  ;;  %v2550_v28 = vand.u32 2147483647, %v2294_v39  ;;  %v3008_v8 = vsel %vm2600_vm0, %v2548_v46, 0.0  ;;  %v6539_v48 = vadd.f32 %v8666_v36, %v8665_v59  ;;  %v8668_v44 = vld [vmem:[#allocation316_spill] sm:$0xff]  ;;  %v8669_v61 = vld [vmem:[#allocation126_spill] sm:$0xff] }
 0x2f1   :  { %v1533_v18 = vadd.f32 %v6395_v19, %v6251_v47  ;;  %v1787_v3 = vadd.f32 %v1531_v10, %v6521_v26  ;;  %v3007_v34 = vadd.f32 %v3006_v57, %v3005_v52  ;;  %v2043_v49 = vmul.f32 9.0, %v8667_v40  ;;  %v8670_v47 = vld [vmem:[#allocation291_spill] sm:$0xff] }
 0x2f2   :  { %v2297_v38 = vsub.f32 %v2041_v9, %v1785_v54  ;;  %v2551_v56 = vand.u32 2147483647, %v2295_v12  ;;  %v3010_v53 = vsel %vm2600_vm0, %v2549_v60, 0.0  ;;  %v6548_v39 = vadd.f32 %v8669_v61, %v8668_v44  ;;  %v8671_v9 = vld [vmem:[#allocation317_spill] sm:$0xff]  ;;  %v8672_v54 = vld [vmem:[#allocation27_spill] sm:$0xff] }
 0x2f3   :  { %v1534_v46 = vadd.f32 %v6404_v31, %v6260_v5  ;;  %v1788_v27 = vadd.f32 %v1532_v25, %v6530_v43  ;;  %v3009_v36 = vadd.f32 %v3008_v8, %v3007_v34  ;;  %v2044_v59 = vmul.f32 9.0, %v8670_v47  ;;  %v8673_v5 = vld [vmem:[#allocation292_spill] sm:$0xff] }
 0x2f4   :  { %v2298_v10 = vsub.f32 %v2042_v45, %v1786_v2  ;;  %v2552_v57 = vand.u32 2147483647, %v2296_v7  ;;  %v3012_v52 = vsel %vm2600_vm0, %v2550_v28, 0.0  ;;  %v6557_v12 = vadd.f32 %v8672_v54, %v8671_v9  ;;  %v8674_v45 = vld [vmem:[#allocation319_spill] sm:$0xff]  ;;  %v8675_v2 = vld [vmem:[#allocation70_spill] sm:$0xff] }
 0x2f5   :  { %v1535_v60 = vadd.f32 %v6413_v14, %v6269_v17  ;;  %v1789_v40 = vadd.f32 %v1533_v18, %v6539_v48  ;;  %v3011_v61 = vadd.f32 %v3010_v53, %v3009_v36  ;;  %v2045_v44 = vmul.f32 9.0, %v8673_v5  ;;  %v8676_v17 = vld [vmem:[#allocation293_spill] sm:$0xff] }
 0x2f6   :  { %v2299_v25 = vsub.f32 %v2043_v49, %v1787_v3  ;;  %v2553_v8 = vand.u32 2147483647, %v2297_v38  ;;  %v3014_v34 = vsel %vm2600_vm0, %v2551_v56, 0.0  ;;  %v6566_v7 = vadd.f32 %v8675_v2, %v8674_v45  ;;  %v8677_v49 = vld [vmem:[#allocation320_spill] sm:$0xff] }
 0x2f7   :  { %v1536_v28 = vadd.f32 %v6422_v63, %v6278_v30  ;;  %v1790_v47 = vadd.f32 %v1534_v46, %v6548_v39  ;;  %v3013_v54 = vadd.f32 %v3012_v52, %v3011_v61  ;;  %v2046_v9 = vmul.f32 9.0, %v8676_v17  ;;  %v8678_v3 = vld [vmem:[#allocation48_spill] sm:$0xff]  ;;  %v8679_v30 = vld [vmem:[#allocation295_spill] sm:$0xff] }
 0x2f8   :  { %v2300_v18 = vsub.f32 %v2044_v59, %v1788_v27  ;;  %v2554_v53 = vand.u32 2147483647, %v2298_v10  ;;  %v3016_v36 = vsel %vm2600_vm0, %v2552_v57, 0.0  ;;  %v6575_v38 = vadd.f32 %v8678_v3, %v8677_v49  ;;  %v8680_v59 = vld [vmem:[#allocation321_spill] sm:$0xff]  ;;  %v8681_v27 = vld [vmem:[#allocation130_spill] sm:$0xff] }
 0x2f9   :  { %v1537_v56 = vadd.f32 %v6431_v42, %v6287_v32  ;;  %v1791_v5 = vadd.f32 %v1535_v60, %v6557_v12  ;;  %v3015_v2 = vadd.f32 %v3014_v34, %v3013_v54  ;;  %v2047_v45 = vmul.f32 9.0, %v8679_v30  ;;  %v8682_v32 = vld [vmem:[#allocation296_spill] sm:$0xff] }
 0x2fa   :  { %v2301_v46 = vsub.f32 %v2045_v44, %v1789_v40  ;;  %v2555_v52 = vand.u32 2147483647, %v2299_v25  ;;  %v3018_v61 = vsel %vm2600_vm0, %v2553_v8, 0.0  ;;  %v6584_v10 = vadd.f32 %v8681_v27, %v8680_v59  ;;  %v8683_v44 = vld [vmem:[#allocation323_spill] sm:$0xff]  ;;  %v8684_v40 = vld [vmem:[#allocation28_spill] sm:$0xff] }
 0x2fb   :  { %v1538_v57 = vadd.f32 %v6440_v1, %v6296_v24  ;;  %v1792_v17 = vadd.f32 %v1536_v28, %v6566_v7  ;;  %v3017_v3 = vadd.f32 %v3016_v36, %v3015_v2  ;;  %v2048_v49 = vmul.f32 9.0, %v8682_v32  ;;  %v8685_v24 = vld [vmem:[#allocation297_spill] sm:$0xff] }
 0x2fc   :  { %v2302_v60 = vsub.f32 %v2046_v9, %v1790_v47  ;;  %v2556_v34 = vand.u32 2147483647, %v2300_v18  ;;  %v3020_v54 = vsel %vm2600_vm0, %v2554_v53, 0.0  ;;  %v6593_v25 = vadd.f32 %v8684_v40, %v8683_v44  ;;  %v8686_v9 = vld [vmem:[#allocation324_spill] sm:$0xff]  ;;  %v8687_v47 = vld [vmem:[#allocation74_spill] sm:$0xff] }
 0x2fd   :  { %v1539_v8 = vadd.f32 %v6449_v0, %v6305_v21  ;;  %v1793_v30 = vadd.f32 %v1537_v56, %v6575_v38  ;;  %v3019_v27 = vadd.f32 %v3018_v61, %v3017_v3  ;;  %v2049_v59 = vmul.f32 9.0, %v8685_v24  ;;  %v8688_v21 = vld [vmem:[#allocation299_spill] sm:$0xff] }
 0x2fe   :  { %v2303_v28 = vsub.f32 %v2047_v45, %v1791_v5  ;;  %v2557_v36 = vand.u32 2147483647, %v2301_v46  ;;  %v3022_v2 = vsel %vm2600_vm0, %v2555_v52, 0.0  ;;  %v6602_v18 = vadd.f32 %v8687_v47, %v8686_v9  ;;  %v8689_v45 = vld [vmem:[#allocation325_spill] sm:$0xff] }
 0x2ff   :  { %v1540_v53 = vadd.f32 %v6458_v41, %v6314_v23  ;;  %v1794_v32 = vadd.f32 %v1538_v57, %v6584_v10  ;;  %v3021_v40 = vadd.f32 %v3020_v54, %v3019_v27  ;;  %v2050_v44 = vmul.f32 9.0, %v8688_v21  ;;  %v8690_v5 = vld [vmem:[#allocation49_spill] sm:$0xff]  ;;  %v8691_v23 = vld [vmem:[#allocation300_spill] sm:$0xff] }
 0x300   :  { %v2304_v56 = vsub.f32 %v2048_v49, %v1792_v17  ;;  %v2558_v61 = vand.u32 2147483647, %v2302_v60  ;;  %v3024_v3 = vsel %vm2600_vm0, %v2556_v34, 0.0  ;;  %v6611_v46 = vadd.f32 %v8690_v5, %v8689_v45  ;;  %v8692_v49 = vld [vmem:[#allocation327_spill] sm:$0xff]  ;;  %v8693_v17 = vld [vmem:[#allocation134_spill] sm:$0xff] }
 0x301   :  { %v1541_v52 = vadd.f32 %v6467_v15, %v6323_v4  ;;  %v1795_v24 = vadd.f32 %v1539_v8, %v6593_v25  ;;  %v3023_v47 = vadd.f32 %v3022_v2, %v3021_v40  ;;  %v2051_v9 = vmul.f32 9.0, %v8691_v23 }
 0x302   :  { %v2305_v57 = vsub.f32 %v2049_v59, %v1793_v30  ;;  %v2559_v54 = vand.u32 2147483647, %v2303_v28  ;;  %v3026_v27 = vsel %vm2600_vm0, %v2557_v36, 0.0  ;;  %v6620_v60 = vadd.f32 %v8693_v17, %v8692_v49  ;;  %v8694_v59 = vld [vmem:[#allocation345_spill] sm:$0xff] }
 0x303   :  { %v1542_v34 = vadd.f32 %v6476_v58, %v6332_v16  ;;  %v1796_v21 = vadd.f32 %v1540_v53, %v6602_v18  ;;  %v3025_v5 = vadd.f32 %v3024_v3, %v3023_v47  ;;  %v2052_v4 = vmul.f32 9.0, %v8635_v37  ;;  %v8695_v16 = vld [vmem:[#allocation303_spill] sm:$0xff] }
 0x304   :  { %v2306_v8 = vsub.f32 %v2050_v44, %v1794_v32  ;;  %v2560_v2 = vand.u32 2147483647, %v2304_v56  ;;  %v3028_v40 = vsel %vm2600_vm0, %v2558_v61, 0.0  ;;  %v6629_v30 = vadd.f32 %v8694_v59, %v8649_v50  ;;  %v8696_v44 = vld [vmem:[#allocation347_spill] sm:$0xff] }
 0x305   :  { %v1543_v28 = vadd.f32 %v8655_v55, %v8607_v62  ;;  %v1797_v36 = vadd.f32 %v1541_v52, %v6611_v46  ;;  %v3027_v23 = vadd.f32 %v3026_v27, %v3025_v5  ;;  %v2053_v17 = vmul.f32 9.0, %v8695_v16  ;;  %v8697_v62 = vld [vmem:[#allocation304_spill] sm:$0xff]  ;;  %v8700_v16 = vld [vmem:[#allocation53_spill] sm:$0xff] }
 0x306   :  { %v2307_v53 = vsub.f32 %v2051_v9, %v1795_v24  ;;  %v2561_v3 = vand.u32 2147483647, %v2305_v57  ;;  %v3030_v37 = vsel %vm2600_vm0, %v2559_v54, 0.0  ;;  %v6638_v32 = vadd.f32 %v8696_v44, %v8694_v59  ;;  %v8698_v9 = vld [vmem:[#allocation331_spill] sm:$0xff]  ;;  %v8699_v24 = vld [vmem:[#allocation142_spill] sm:$0xff] }
 0x307   :  { %v1544_v56 = vadd.f32 %v8653_v51, %v8606_v11  ;;  %v1798_v61 = vadd.f32 %v1542_v34, %v6620_v60  ;;  %v3029_v47 = vadd.f32 %v3028_v40, %v3027_v23  ;;  %v2054_v49 = vmul.f32 9.0, %v8697_v62 }
 0x308   :  { %v2308_v52 = vsub.f32 %v2052_v4, %v1796_v21  ;;  %v2562_v27 = vand.u32 2147483647, %v2306_v8  ;;  %v3032_v5 = vsel %vm2600_vm0, %v2560_v2, 0.0  ;;  %v6647_v57 = vadd.f32 %v8699_v24, %v8698_v9  ;;  %v8701_v21 = vld [vmem:[#allocation332_spill] sm:$0xff]  ;;  %v8702_v4 = vld [vmem:[#allocation78_spill] sm:$0xff] }
 0x309   :  { %v1545_v54 = vadd.f32 %v6503_v29, %v6359_v35  ;;  %v1799_v45 = vadd.f32 %v1543_v28, %v8700_v16  ;;  %v3031_v55 = vadd.f32 %v3030_v37, %v3029_v47  ;;  %v2055_v11 = vmul.f32 9.0, %v8643_v22  ;;  %v8703_v35 = vld [vmem:[#allocation307_spill] sm:$0xff] }
 0x30a   :  { %v2309_v34 = vsub.f32 %v2053_v17, %v1797_v36  ;;  %v2563_v40 = vand.u32 2147483647, %v2307_v53  ;;  %v3034_v23 = vsel %vm2600_vm0, %v2561_v3, 0.0  ;;  %v6656_v8 = vadd.f32 %v8702_v4, %v8701_v21  ;;  %v8704_v36 = vld [vmem:[#allocation333_spill] sm:$0xff]  ;;  %v8705_v17 = vld [vmem:[#allocation146_spill] sm:$0xff] }
 0x30b   :  { %v1546_v2 = vadd.f32 %v6512_v33, %v6368_v20  ;;  %v1800_v62 = vadd.f32 %v1544_v56, %v8699_v24  ;;  %v3033_v9 = vadd.f32 %v3032_v5, %v3031_v55  ;;  %v2056_v29 = vmul.f32 9.0, %v8703_v35  ;;  %v8706_v20 = vld [vmem:[#allocation308_spill] sm:$0xff] }
 0x30c   :  { %v2310_v28 = vsub.f32 %v2054_v49, %v1798_v61  ;;  %v2564_v37 = vand.u32 2147483647, %v2308_v52  ;;  %v3036_v22 = vsel %vm2600_vm0, %v2562_v27, 0.0  ;;  %v6665_v53 = vadd.f32 %v8705_v17, %v8704_v36  ;;  %v8707_v49 = vld [vmem:[#allocation335_spill] sm:$0xff]  ;;  %v8708_v61 = vld [vmem:[#allocation29_spill] sm:$0xff] }
 0x30d   :  { %v1547_v3 = vadd.f32 %v6521_v26, %v6377_v6  ;;  %v1801_v47 = vadd.f32 %v1545_v54, %v6647_v57  ;;  %v3035_v4 = vadd.f32 %v3034_v23, %v3033_v9  ;;  %v2057_v21 = vmul.f32 9.0, %v8706_v20  ;;  %v8709_v6 = vld [vmem:[#allocation309_spill] sm:$0xff] }
 0x30e   :  { %v2311_v56 = vsub.f32 %v2055_v11, %v1799_v45  ;;  %v2565_v55 = vand.u32 2147483647, %v2309_v34  ;;  %v3038_v5 = vsel %vm2600_vm0, %v2563_v40, 0.0  ;;  %v6674_v52 = vadd.f32 %v8708_v61, %v8707_v49  ;;  %v8710_v45 = vld [vmem:[#allocation336_spill] sm:$0xff]  ;;  %v8711_v11 = vld [vmem:[#allocation150_spill] sm:$0xff] }
 0x30f   :  { %v1548_v27 = vadd.f32 %v6530_v43, %v6386_v13  ;;  %v1802_v35 = vadd.f32 %v1546_v2, %v6656_v8  ;;  %v3037_v17 = vadd.f32 %v3036_v22, %v3035_v4  ;;  %v2058_v36 = vmul.f32 9.0, %v8709_v6  ;;  %v8712_v13 = vld [vmem:[#allocation311_spill] sm:$0xff] }
 0x310   :  { %v2312_v54 = vsub.f32 %v2056_v29, %v1800_v62  ;;  %v2566_v9 = vand.u32 2147483647, %v2310_v28  ;;  %v3040_v23 = vsel %vm2600_vm0, %v2564_v37, 0.0  ;;  %v6683_v34 = vadd.f32 %v8711_v11, %v8710_v45  ;;  %v8713_v29 = vld [vmem:[#allocation337_spill] sm:$0xff]  ;;  %v8714_v62 = vld [vmem:[#allocation31_spill] sm:$0xff] }
 0x311   :  { %v1549_v40 = vadd.f32 %v6539_v48, %v6395_v19  ;;  %v1803_v20 = vadd.f32 %v1547_v3, %v6665_v53  ;;  %v3039_v61 = vadd.f32 %v3038_v5, %v3037_v17  ;;  %v2059_v49 = vmul.f32 9.0, %v8712_v13  ;;  %v8715_v19 = vld [vmem:[#allocation312_spill] sm:$0xff] }
 0x312   :  { %v2313_v2 = vsub.f32 %v2057_v21, %v1801_v47  ;;  %v2567_v22 = vand.u32 2147483647, %v2311_v56  ;;  %v3042_v4 = vsel %vm2600_vm0, %v2565_v55, 0.0  ;;  %v6692_v28 = vadd.f32 %v8714_v62, %v8713_v29  ;;  %v8716_v21 = vld [vmem:[#allocation339_spill] sm:$0xff]  ;;  %v8717_v47 = vld [vmem:[#allocation154_spill] sm:$0xff] }
 0x313   :  { %v1550_v37 = vadd.f32 %v6548_v39, %v6404_v31  ;;  %v1804_v6 = vadd.f32 %v1548_v27, %v6674_v52  ;;  %v3041_v11 = vadd.f32 %v3040_v23, %v3039_v61  ;;  %v2060_v45 = vmul.f32 9.0, %v8715_v19  ;;  %v8718_v31 = vld [vmem:[#allocation313_spill] sm:$0xff] }
 0x314   :  { %v2314_v3 = vsub.f32 %v2058_v36, %v1802_v35  ;;  %v2568_v5 = vand.u32 2147483647, %v2312_v54  ;;  %v3044_v17 = vsel %vm2600_vm0, %v2566_v9, 0.0  ;;  %v6701_v56 = vadd.f32 %v8717_v47, %v8716_v21  ;;  %v8719_v36 = vld [vmem:[#allocation340_spill] sm:$0xff]  ;;  %v8720_v35 = vld [vmem:[#allocation59_spill] sm:$0xff] }
 0x315   :  { %v1551_v55 = vadd.f32 %v6557_v12, %v6413_v14  ;;  %v1805_v13 = vadd.f32 %v1549_v40, %v6683_v34  ;;  %v3043_v62 = vadd.f32 %v3042_v4, %v3041_v11  ;;  %v2061_v29 = vmul.f32 9.0, %v8718_v31  ;;  %v8721_v14 = vld [vmem:[#allocation315_spill] sm:$0xff] }
 0x316   :  { %v2315_v27 = vsub.f32 %v2059_v49, %v1803_v20  ;;  %v2569_v23 = vand.u32 2147483647, %v2313_v2  ;;  %v3046_v61 = vsel %vm2600_vm0, %v2567_v22, 0.0  ;;  %v6710_v54 = vadd.f32 %v8720_v35, %v8719_v36  ;;  %v8722_v49 = vld [vmem:[#allocation341_spill] sm:$0xff]  ;;  %v8723_v20 = vld [vmem:[#allocation158_spill] sm:$0xff] }
 0x317   :  { %v1552_v9 = vadd.f32 %v6566_v7, %v6422_v63  ;;  %v1806_v19 = vadd.f32 %v1550_v37, %v6692_v28  ;;  %v3045_v47 = vadd.f32 %v3044_v17, %v3043_v62  ;;  %v2062_v21 = vmul.f32 9.0, %v8721_v14  ;;  %v8724_v63 = vld [vmem:[#allocation316_spill] sm:$0xff] }
 0x318   :  { %v2316_v40 = vsub.f32 %v2060_v45, %v1804_v6  ;;  %v2570_v4 = vand.u32 2147483647, %v2314_v3  ;;  %v3048_v11 = vsel %vm2600_vm0, %v2568_v5, 0.0  ;;  %v6719_v2 = vadd.f32 %v8723_v20, %v8722_v49  ;;  %v8725_v45 = vld [vmem:[#allocation343_spill] sm:$0xff]  ;;  %v8726_v6 = vld [vmem:[#allocation60_spill] sm:$0xff] }
 0x319   :  { %v1553_v22 = vadd.f32 %v6575_v38, %v6431_v42  ;;  %v1807_v31 = vadd.f32 %v1551_v55, %v6701_v56  ;;  %v3047_v35 = vadd.f32 %v3046_v61, %v3045_v47  ;;  %v2063_v36 = vmul.f32 9.0, %v8724_v63  ;;  %v8727_v42 = vld [vmem:[#allocation317_spill] sm:$0xff] }
 0x31a   :  { %v2317_v37 = vsub.f32 %v2061_v29, %v1805_v13  ;;  %v2571_v17 = vand.u32 2147483647, %v2315_v27  ;;  %v3050_v62 = vsel %vm2600_vm0, %v2569_v23, 0.0  ;;  %v6728_v3 = vadd.f32 %v8726_v6, %v8725_v45  ;;  %v8728_v29 = vld [vmem:[#allocation162_spill] sm:$0xff] }
 0x31b   :  { %v1554_v5 = vadd.f32 %v6584_v10, %v6440_v1  ;;  %v1808_v14 = vadd.f32 %v1552_v9, %v6710_v54  ;;  %v3049_v20 = vadd.f32 %v3048_v11, %v3047_v35  ;;  %v2064_v49 = vmul.f32 9.0, %v8727_v42  ;;  %v8729_v1 = vld [vmem:[#allocation319_spill] sm:$0xff] }
 0x31c   :  { %v2318_v55 = vsub.f32 %v2062_v21, %v1806_v19  ;;  %v2572_v61 = vand.u32 2147483647, %v2316_v40  ;;  %v3052_v47 = vsel %vm2600_vm0, %v2570_v4, 0.0  ;;  %v6737_v13 = vadd.f32 %v8728_v29, %v8649_v50  ;;  %v8730_v21 = vld [vmem:[#allocation61_spill] sm:$0xff] }
 0x31d   :  { %v1555_v27 = vadd.f32 %v6593_v25, %v6449_v0  ;;  %v1809_v23 = vadd.f32 %v1553_v22, %v6719_v2  ;;  %v3051_v63 = vadd.f32 %v3050_v62, %v3049_v20  ;;  %v2065_v6 = vmul.f32 9.0, %v8729_v1  ;;  %v8731_v0 = vld [vmem:[#allocation320_spill] sm:$0xff] }
 0x31e   :  { %v2319_v9 = vsub.f32 %v2063_v36, %v1807_v31  ;;  %v2573_v11 = vand.u32 2147483647, %v2317_v37  ;;  %v3054_v35 = vsel %vm2600_vm0, %v2571_v17, 0.0  ;;  %v6746_v19 = vadd.f32 %v8730_v21, %v8694_v59 }
 0x31f   :  { %v1556_v40 = vadd.f32 %v6602_v18, %v6458_v41  ;;  %v1810_v4 = vadd.f32 %v1554_v5, %v6728_v3  ;;  %v3053_v42 = vadd.f32 %v3052_v47, %v3051_v63  ;;  %v2066_v29 = vmul.f32 9.0, %v8731_v0  ;;  %v8732_v41 = vld [vmem:[#allocation321_spill] sm:$0xff] }
 0x320   :  { %v2320_v22 = vsub.f32 %v2064_v49, %v1808_v14  ;;  %v2574_v62 = vand.u32 2147483647, %v2318_v55  ;;  %v3056_v20 = vsel %vm2600_vm0, %v2572_v61, 0.0  ;;  %v6755_v36 = vadd.f32 %v6629_v30, %v8696_v44  ;;  %v8733_v49 = vld [vmem:[#allocation348_spill] sm:$0xff] }
 0x321   :  { %v1557_v31 = vadd.f32 %v6611_v46, %v6467_v15  ;;  %v1811_v37 = vadd.f32 %v1555_v27, %v6737_v13  ;;  %v3055_v17 = vadd.f32 %v3054_v35, %v3053_v42  ;;  %v2067_v1 = vmul.f32 9.0, %v8732_v41  ;;  %v8734_v15 = vld [vmem:[#allocation323_spill] sm:$0xff] }
 0x322   :  { %v2321_v5 = vsub.f32 %v2065_v6, %v1809_v23  ;;  %v2575_v47 = vand.u32 2147483647, %v2319_v9  ;;  %v3058_v63 = vsel %vm2600_vm0, %v2573_v11, 0.0  ;;  %v6764_v14 = vadd.f32 %v6638_v32, %v8733_v49  ;;  %v8735_v6 = vld [vmem:[#allocation62_spill] sm:$0xff] }
 0x323   :  { %v1558_v30 = vadd.f32 %v6620_v60, %v6476_v58  ;;  %v1812_v55 = vadd.f32 %v1556_v40, %v6746_v19  ;;  %v3057_v61 = vadd.f32 %v3056_v20, %v3055_v17  ;;  %v2068_v21 = vmul.f32 9.0, %v8734_v15  ;;  %v8736_v58 = vld [vmem:[#allocation324_spill] sm:$0xff] }
 0x324   :  { %v2322_v27 = vsub.f32 %v2066_v29, %v1810_v4  ;;  %v2576_v35 = vand.u32 2147483647, %v2320_v22  ;;  %v3060_v42 = vsel %vm2600_vm0, %v2574_v62, 0.0  ;;  %v6773_v23 = vadd.f32 %v8733_v49, %v8696_v44  ;;  %v8737_v22 = vld [vmem:[#allocation325_spill] sm:$0xff] }
 0x325   :  { %v1559_v32 = vadd.f32 %v8700_v16, %v8735_v6  ;;  %v1813_v9 = vadd.f32 %v1557_v31, %v6755_v36  ;;  %v3059_v11 = vadd.f32 %v3058_v63, %v3057_v61  ;;  %v2069_v0 = vmul.f32 9.0, %v8736_v58  ;;  %v8738_v31 = vld [vmem:[#allocation327_spill] sm:$0xff] }
 0x326   :  { %v2323_v40 = vsub.f32 %v2067_v1, %v1811_v37  ;;  %v2577_v20 = vand.u32 2147483647, %v2321_v5  ;;  %v3062_v17 = vsel %vm2600_vm0, %v2575_v47, 0.0  ;;  %v1814_v4 = vadd.f32 %v1558_v30, %v6764_v14  ;;  %v8739_v47 = vld [vmem:[#allocation328_spill] sm:$0xff] }
 0x327   :  { %v3061_v29 = vadd.f32 %v3060_v42, %v3059_v11  ;;  %v2070_v62 = vmul.f32 9.0, %v8737_v22  ;;  %v2324_v41 = vsub.f32 %v2068_v21, %v1812_v55  ;;  %v2578_v15 = vand.u32 2147483647, %v2322_v27  ;;  %v8740_v27 = vld [vmem:[#allocation166_spill] sm:$0xff]  ;;  %v8741_v11 = vld [vmem:[#allocation329_spill] sm:$0xff] }
 0x328   :  { %v3064_v49 = vsel %vm2600_vm0, %v2576_v35, 0.0  ;;  %v1815_v6 = vadd.f32 %v1559_v32, %v6773_v23  ;;  %v2071_v63 = vmul.f32 9.0, %v8738_v31  ;;  %v2325_v61 = vsub.f32 %v2069_v0, %v1813_v9 }
 0x329   :  { %v3063_v16 = vadd.f32 %v3062_v17, %v3061_v29  ;;  %v2579_v58 = vand.u32 2147483647, %v2323_v40  ;;  %v3066_v37 = vsel %vm2600_vm0, %v2577_v20, 0.0  ;;  %v1560_v1 = vadd.f32 %v8699_v24, %v8653_v51 }
 0x32a   :  { %v2072_v30 = vmul.f32 9.0, %v8739_v47  ;;  %v2326_v42 = vsub.f32 %v2070_v62, %v1814_v4  ;;  %v2580_v55 = vand.u32 2147483647, %v2324_v41  ;;  %v3068_v21 = vsel %vm2600_vm0, %v2578_v15, 0.0  ;;  %v8743_v62 = vld [vmem:[#allocation332_spill] sm:$0xff] }
 0x32b   :  { %v3065_v5 = vadd.f32 %v3064_v49, %v3063_v16  ;;  %v1561_v35 = vadd.f32 %v6647_v57, %v8740_v27  ;;  %v2073_v17 = vmul.f32 9.0, %v8741_v11  ;;  %v2327_v9 = vsub.f32 %v2071_v63, %v1815_v6  ;;  %v8742_v16 = vld [vmem:[#allocation331_spill] sm:$0xff]  ;;  %v8744_v63 = vld [vmem:[#allocation333_spill] sm:$0xff] }
 0x32c   :  { %v2581_v0 = vand.u32 2147483647, %v2325_v61  ;;  %v3070_v40 = vsel %vm2600_vm0, %v2579_v58, 0.0  ;;  %v1562_v51 = vadd.f32 %v6656_v8, %v6512_v33  ;;  %v2074_v49 = vmul.f32 9.0, %v8742_v16 }
 0x32d   :  { %v3067_v32 = vadd.f32 %v3066_v37, %v3065_v5  ;;  %v2328_v20 = vsub.f32 %v2072_v30, %v1560_v1  ;;  %v2582_v4 = vand.u32 2147483647, %v2326_v42  ;;  %v3072_v29 = vsel %vm2600_vm0, %v2580_v55, 0.0  ;;  %v8745_v5 = vld [vmem:[#allocation335_spill] sm:$0xff] }
 0x32e   :  { %v1563_v57 = vadd.f32 %v6665_v53, %v6521_v26  ;;  %v2075_v41 = vmul.f32 9.0, %v8743_v62  ;;  %v2329_v15 = vsub.f32 %v2073_v17, %v1561_v35  ;;  %v2583_v6 = vand.u32 2147483647, %v2327_v9  ;;  %v8747_v17 = vld [vmem:[#allocation337_spill] sm:$0xff] }
 0x32f   :  { %v3069_v24 = vadd.f32 %v3068_v21, %v3067_v32  ;;  %v3074_v31 = vsel %vm2600_vm0, %v2581_v0, 0.0  ;;  %v1564_v33 = vadd.f32 %v6674_v52, %v6530_v43  ;;  %v2076_v61 = vmul.f32 9.0, %v8744_v63  ;;  %v8746_v21 = vld [vmem:[#allocation336_spill] sm:$0xff] }
 0x330   :  { %v2330_v58 = vsub.f32 %v2074_v49, %v1562_v51  ;;  %v2584_v37 = vand.u32 2147483647, %v2328_v20  ;;  %v3076_v1 = vsel %vm2600_vm0, %v2582_v4, 0.0  ;;  %v1565_v26 = vadd.f32 %v6683_v34, %v6539_v48 }
 0x331   :  { %v3071_v22 = vadd.f32 %v3070_v40, %v3069_v24  ;;  %v2077_v47 = vmul.f32 9.0, %v8745_v5  ;;  %v2331_v30 = vsub.f32 %v2075_v41, %v1563_v57  ;;  %v2585_v42 = vand.u32 2147483647, %v2329_v15  ;;  %v8748_v24 = vld [vmem:[#allocation339_spill] sm:$0xff]  ;;  %v8750_v15 = vld [vmem:[#allocation341_spill] sm:$0xff] }
 0x332   :  { %v3078_v55 = vsel %vm2600_vm0, %v2583_v6, 0.0  ;;  %v1566_v43 = vadd.f32 %v6692_v28, %v6548_v39  ;;  %v2078_v27 = vmul.f32 9.0, %v8746_v21  ;;  %v2332_v35 = vsub.f32 %v2076_v61, %v1564_v33  ;;  %v8751_v21 = vld [vmem:[#allocation53_spill] sm:$0xff] }
 0x333   :  { %v3073_v8 = vadd.f32 %v3072_v29, %v3071_v22  ;;  %v2586_v32 = vand.u32 2147483647, %v2330_v58  ;;  %v3080_v11 = vsel %vm2600_vm0, %v2584_v37, 0.0  ;;  %v1567_v48 = vadd.f32 %v6701_v56, %v6557_v12  ;;  %v8749_v29 = vld [vmem:[#allocation340_spill] sm:$0xff] }
 0x334   :  { %v2079_v9 = vmul.f32 9.0, %v8747_v17  ;;  %v2333_v0 = vsub.f32 %v2077_v47, %v1565_v26  ;;  %v2587_v40 = vand.u32 2147483647, %v2331_v30  ;;  %v3082_v51 = vsel %vm2600_vm0, %v2585_v42, 0.0 }
 0x335   :  { %v3075_v53 = vadd.f32 %v3074_v31, %v3073_v8  ;;  %v1568_v39 = vadd.f32 %v6710_v54, %v6566_v7  ;;  %v2080_v16 = vmul.f32 9.0, %v8748_v24  ;;  %v2334_v49 = vsub.f32 %v2078_v27, %v1566_v43  ;;  %v8752_v27 = vld [vmem:[#allocation348_spill] sm:$0xff] }
 0x336   :  { %v2588_v20 = vand.u32 2147483647, %v2332_v35  ;;  %v3084_v4 = vsel %vm2600_vm0, %v2586_v32, 0.0  ;;  %v1569_v12 = vadd.f32 %v6719_v2, %v6575_v38  ;;  %v2081_v57 = vmul.f32 9.0, %v8749_v29 }
 0x337   :  { %v3077_v52 = vadd.f32 %v3076_v1, %v3075_v53  ;;  %v2335_v22 = vsub.f32 %v2079_v9, %v1567_v48  ;;  %v2589_v62 = vand.u32 2147483647, %v2333_v0  ;;  %v3086_v41 = vsel %vm2600_vm0, %v2587_v40, 0.0 }
 0x338   :  { %v1570_v7 = vadd.f32 %v6728_v3, %v6584_v10  ;;  %v2082_v6 = vmul.f32 9.0, %v8750_v15  ;;  %v2336_v31 = vsub.f32 %v2080_v16, %v1568_v39  ;;  %v2590_v33 = vand.u32 2147483647, %v2334_v49 }
 0x339   :  { %v3079_v34 = vadd.f32 %v3078_v55, %v3077_v52  ;;  %v3088_v8 = vsel %vm2600_vm0, %v2588_v20, 0.0  ;;  %v1571_v38 = vadd.f32 %v6737_v13, %v6593_v25  ;;  %v2083_v63 = vmul.f32 9.0, %v8725_v45 }
 0x33a   :  { %v2337_v61 = vsub.f32 %v2081_v57, %v1569_v12  ;;  %v2591_v58 = vand.u32 2147483647, %v2335_v22  ;;  %v3090_v37 = vsel %vm2600_vm0, %v2589_v62, 0.0  ;;  %v1572_v10 = vadd.f32 %v6746_v19, %v6602_v18 }
 0x33b   :  { %v3081_v28 = vadd.f32 %v3080_v11, %v3079_v34  ;;  %v2084_v1 = vmul.f32 9.0, %v8649_v50  ;;  %v2338_v26 = vsub.f32 %v2082_v6, %v1570_v7  ;;  %v2592_v53 = vand.u32 2147483647, %v2336_v31 }
 0x33c   :  { %v3092_v5 = vsel %vm2600_vm0, %v2590_v33, 0.0  ;;  %v1573_v25 = vadd.f32 %v6755_v36, %v6611_v46  ;;  %v2085_v45 = vmul.f32 9.0, %v8694_v59  ;;  %v2339_v47 = vsub.f32 %v2083_v63, %v1571_v38 }
 0x33d   :  { %v3083_v56 = vadd.f32 %v3082_v51, %v3081_v28  ;;  %v2593_v30 = vand.u32 2147483647, %v2337_v61  ;;  %v3094_v42 = vsel %vm2600_vm0, %v2591_v58, 0.0  ;;  %v1574_v18 = vadd.f32 %v6764_v14, %v6620_v60 }
 0x33e   :  { %v2086_v50 = vmul.f32 9.0, %v8696_v44  ;;  %v2340_v55 = vsub.f32 %v2084_v1, %v1572_v10  ;;  %v2594_v43 = vand.u32 2147483647, %v2338_v26  ;;  %v3096_v52 = vsel %vm2600_vm0, %v2592_v53, 0.0 }
 0x33f   :  { %v3085_v54 = vadd.f32 %v3084_v4, %v3083_v56  ;;  %v1575_v46 = vadd.f32 %v6773_v23, %v8751_v21  ;;  %v2087_v59 = vmul.f32 9.0, %v8752_v27  ;;  %v2341_v35 = vsub.f32 %v2085_v45, %v1573_v25 }
 0x340   :  { %v2595_v32 = vand.u32 2147483647, %v2339_v47  ;;  %v3098_v11 = vsel %vm2600_vm0, %v2593_v30, 0.0  ;;  %v2342_v34 = vsub.f32 %v2086_v50, %v1574_v18  ;;  %v2596_v60 = vand.u32 2147483647, %v2340_v55 }
 0x341   :  { %v3087_v2 = vadd.f32 %v3086_v41, %v3085_v54  ;;  %v3100_v14 = vsel %vm2600_vm0, %v2594_v43, 0.0  ;;  %v2343_v17 = vsub.f32 %v2087_v59, %v1575_v46  ;;  %v2597_v9 = vand.u32 2147483647, %v2341_v35 }
 0x342   :  { %v3102_v0 = vsel %vm2600_vm0, %v2595_v32, 0.0  ;;  %v2598_v51 = vand.u32 2147483647, %v2342_v34  ;;  %v3104_v23 = vsel %vm2600_vm0, %v2596_v60, 0.0 }
 0x343   :  { %v3089_v3 = vadd.f32 %v3088_v8, %v3087_v2  ;;  %v2599_v28 = vand.u32 2147483647, %v2343_v17  ;;  %v3106_v24 = vsel %vm2600_vm0, %v2597_v9, 0.0 }
 0x344   :  { %v3108_v49 = vsel %vm2600_vm0, %v2598_v51, 0.0 }
 0x345   :  { %v3091_v13 = vadd.f32 %v3090_v37, %v3089_v3  ;;  %v3110_v4 = vsel %vm2600_vm0, %v2599_v28, 0.0 }
 0x347   :  { %v3093_v19 = vadd.f32 %v3092_v5, %v3091_v13 }
 0x349   :  { %v3095_v36 = vadd.f32 %v3094_v42, %v3093_v19 }
 0x34b   :  { %v3097_v48 = vadd.f32 %v3096_v52, %v3095_v36 }
 0x34d   :  { %v3099_v44 = vadd.f32 %v3098_v11, %v3097_v48 }
 0x34f   :  { %v3101_v40 = vadd.f32 %v3100_v14, %v3099_v44 }
 0x351   :  { %v3103_v39 = vadd.f32 %v3102_v0, %v3101_v40 }
 0x353   :  { %v3105_v16 = vadd.f32 %v3104_v23, %v3103_v39 }
 0x355   :  { %v3107_v20 = vadd.f32 %v3106_v24, %v3105_v16 }
 0x357   :  { %v3109_v12 = vadd.f32 %v3108_v49, %v3107_v20 }
 0x359   :  { %v3111_v56 = vadd.f32 %v3110_v4, %v3109_v12 }
 0x35b   :  { %3112 = vst [vmem:[#allocation7] sm:$0x1] %v3111_v56 }
 0x35c   :  { %3189 = shalt.err (!%p3186_p6)
}
 0x35d   :  { %s3190_s11 = scalar_lea.hbm %s6870_s2, 16 }
 0x35e   :  { %p3191_p7 = scmp.ne.s32.totalorder %s6870_s2, %s3190_s11  ;;  %p3194_p8 = scmp.lt.u32.totalorder %s3190_s11, %s6870_s2 }
 0x360   :  { %p3196_p9 = pnand %p3194_p8, %p3191_p7 }
 0x362   :  { %3199 = shalt.err (!%p3196_p9)
}
 0x363   :  { %3122 = dma.vmem_to_hbm [thread:$0]  %s3120_s6, 16, %s6870_s2, [#allocation4]  }
 0x364   :  { %3204 = dma.done.wait [#allocation4], 16  }
 0x365   :  { %3205 = vsyncadd [#allocation4], 4294967280 }
 0x366   :  { %3126 = vsyncpa [#allocation3], 1 }
 0x367   :  { %3127 = vsyncpa [#allocation6], 1 }
 0x368   :  { %3128 = vsyncpa [#allocation4], 1 }

</bundles_post_ra>
